<compile_context>
chip_gen: v7x
topology: tpu7x:2x2x1
jax: 0.10.0
libtpu: 0.0.40
codegen_flags: <defaults>
</compile_context>

<pallas_src>
import numpy as np
import jax
import jax.numpy as jnp
from jax import lax
from jax.experimental import pallas as pl
from jax.experimental.pallas import tpu as pltpu

H = W = 28
HW = H * W                      # 784
COUT = 16
KH = KW = 3
FC_IN = COUT * HW               # 12544
FC_OUT = 10
TAPS = tuple((di, dj) for di in range(KH) for dj in range(KW))


def _tap_masks():
    """(9, 1, 784) float32: 1.0 where the shifted source pixel lies inside the image."""
    pos = np.arange(HW)
    hh, ww = pos // W, pos % W
    m = np.zeros((len(TAPS), 1, HW), np.float32)
    for t, (di, dj) in enumerate(TAPS):
        valid = np.ones(HW, bool)
        if di == 0:
            valid &= hh >= 1
        if di == KH - 1:
            valid &= hh <= H - 2
        if dj == 0:
            valid &= ww >= 1
        if dj == KW - 1:
            valid &= ww <= W - 2
        m[t, 0] = valid
    return jnp.asarray(m)


def fused_cnn_kernel(x_ref, mask_ref, fcw_ref, fcb_ref, w9_ref, cb_ref,
                     o_ref, patches_ref):
    """One grid step processes a (TB, 784) batch tile end-to-end.

    x_ref      : (TB, 784)      flat images (lane-dense), VMEM
    mask_ref   : (9, 1, 784)    per-tap border-validity masks, VMEM (resident)
    fcw_ref    : (16, 10, 784)  fc weight, channel-major & lane-dense, VMEM (resident)
    fcb_ref    : (1, 10)        fc bias, VMEM
    w9_ref     : (16, 9)        conv weights (tap = di*3 + dj), SMEM scalars
    cb_ref     : (16,)          conv bias, SMEM scalars
    o_ref      : (TB, 10)       logits
    patches_ref: (9, TB, 784)   VMEM scratch: shifted + masked tap patches
    """
    x = x_ref[...]
    tb = x.shape[0]

    # 1) Build the 9 shifted tap patches once, directly in flat lane space:
    #    patch_t[b, h*28 + w] = x[b, (h+di-1)*28 + (w+dj-1)], zero outside the image.
    for t, (di, dj) in enumerate(TAPS):
        s = (di - 1) * W + (dj - 1)
        if s > 0:
            shifted = jnp.concatenate(
                [x[:, s:], jnp.zeros((tb, s), jnp.float32)], axis=1)
        elif s < 0:
            shifted = jnp.concatenate(
                [jnp.zeros((tb, -s), jnp.float32), x[:, :s]], axis=1)
        else:
            shifted = x
        patches_ref[t] = jnp.where(mask_ref[t] != 0.0, shifted, 0.0)

    # 2) Per output channel: 9-tap combine (VPU) + bias + ReLU, then immediately
    #    contract against the matching fc-weight slice on the MXU.
    acc = jnp.zeros((tb, FC_OUT), jnp.float32)
    for c in range(COUT):
        conv_c = jnp.zeros((tb, HW), jnp.float32)
        for t in range(len(TAPS)):
            conv_c = conv_c + w9_ref[c, t] * patches_ref[t]
        act_c = jnp.maximum(conv_c + cb_ref[c], 0.0)            # (TB, 784)
        acc = acc + lax.dot_general(                            # (TB, 10)
            act_c, fcw_ref[c],
            dimension_numbers=(((1,), (1,)), ((), ())),
            preferred_element_type=jnp.float32)

    o_ref[...] = acc + fcb_ref[...]


def simple_cnn_forward(x, conv_w, conv_b, fc_w, fc_b):
    """x: (B, 1, 28, 28) float32 NCHW -> logits (B, 10)."""
    B = x.shape[0]
    TB = min(B, 8)                       # images per grid step
    grid = (pl.cdiv(B, TB),)

    # Wrapper glue (cheap / one-time):
    x_flat = x.reshape(B, HW).astype(jnp.float32)            # free reshape (C=1, contiguous)
    w9 = conv_w.reshape(COUT, KH * KW).astype(jnp.float32)   # (16, 9)
    cb = conv_b.astype(jnp.float32)                          # (16,)
    # fc weight reorganised ONCE into channel-major, lane-dense (16, 10, 784);
    # fcw_r[c, o, hw] == fc_w[o, c*784 + hw]  (matches torch's view(B, -1) order).
    fcw_r = fc_w.reshape(FC_OUT, COUT, HW).transpose(1, 0, 2).astype(jnp.float32)
    fcb = fc_b.reshape(1, FC_OUT).astype(jnp.float32)
    masks = _tap_masks()

    return pl.pallas_call(
        fused_cnn_kernel,
        out_shape=jax.ShapeDtypeStruct((B, FC_OUT), jnp.float32),
        grid_spec=pltpu.PrefetchScalarGridSpec(
            num_scalar_prefetch=0,
            grid=grid,
            in_specs=[
                pl.BlockSpec((TB, HW), lambda b: (b, 0)),
                pl.BlockSpec((len(TAPS), 1, HW), lambda b: (0, 0, 0)),
                pl.BlockSpec((COUT, FC_OUT, HW), lambda b: (0, 0, 0)),
                pl.BlockSpec((1, FC_OUT), lambda b: (0, 0)),
                pl.BlockSpec(memory_space=pltpu.MemorySpace.SMEM),
                pl.BlockSpec(memory_space=pltpu.MemorySpace.SMEM),
            ],
            out_specs=pl.BlockSpec((TB, FC_OUT), lambda b: (b, 0)),
            scratch_shapes=[pltpu.VMEM((len(TAPS), TB, HW), jnp.float32)],
        ),
        compiler_params=pltpu.CompilerParams(
            dimension_semantics=("parallel",)),
    )(x_flat, masks, fcw_r, fcb, w9, cb)


def reference_forward(x, conv_w, conv_b, fc_w, fc_b):
    """Pure-JAX reference mirroring the PyTorch module."""
    y = lax.conv_general_dilated(
        x, conv_w, window_strides=(1, 1), padding="SAME",
        dimension_numbers=("NCHW", "OIHW", "NCHW"))
    y = jax.nn.relu(y + conv_b.reshape(1, COUT, 1, 1))
    y = y.reshape(x.shape[0], -1)
    return y @ fc_w.T + fc_b


if __name__ == "__main__":
    key = jax.random.PRNGKey(0)
    k1, k2, k3, k4, k5 = jax.random.split(key, 5)

    # Deterministic, PyTorch-style uniform(-1/sqrt(fan_in), 1/sqrt(fan_in)) init.
    conv_bound = 1.0 / (1 * KH * KW) ** 0.5
    conv_w = jax.random.uniform(k1, (COUT, 1, KH, KW), jnp.float32,
                                -conv_bound, conv_bound)
    conv_b = jax.random.uniform(k2, (COUT,), jnp.float32, -conv_bound, conv_bound)
    fc_bound = 1.0 / FC_IN ** 0.5
    fc_w = jax.random.uniform(k3, (FC_OUT, FC_IN), jnp.float32, -fc_bound, fc_bound)
    fc_b = jax.random.uniform(k4, (FC_OUT,), jnp.float32, -fc_bound, fc_bound)

    B = 2
    x = jax.random.normal(k5, (B, 1, H, W), jnp.float32)

    out = jax.block_until_ready(
        simple_cnn_forward(x, conv_w, conv_b, fc_w, fc_b))
    ref = jax.block_until_ready(
        reference_forward(x, conv_w, conv_b, fc_w, fc_b))

    assert out.shape == (B, FC_OUT) and out.dtype == jnp.float32
    assert bool(jnp.all(jnp.isfinite(out)))
    assert bool(jnp.allclose(out, ref, atol=5e-2, rtol=5e-2)), (
        f"max abs err {jnp.max(jnp.abs(out - ref))}")
    print("KERNEL_OK")
</pallas_src>

<mosaic_0001>
module attributes {stable_mosaic.version = 11 : i64} {
  func.func @fused_cnn_kernel(%arg0: i32, %arg1: memref<2x784xf32, #tpu.memory_space<vmem>>, %arg2: memref<9x1x784xf32, #tpu.memory_space<vmem>>, %arg3: memref<16x10x784xf32, #tpu.memory_space<vmem>>, %arg4: memref<1x10xf32, #tpu.memory_space<vmem>>, %arg5: memref<16x9xf32, #tpu.memory_space<smem>>, %arg6: memref<16xf32, #tpu.memory_space<smem>>, %arg7: memref<2x10xf32, #tpu.memory_space<vmem>>, %arg8: memref<9x2x784xf32, #tpu.memory_space<vmem>>) attributes {dimension_semantics = [#tpu.dimension_semantics<parallel>], iteration_bounds = array<i64: 1>, scalar_prefetch = 0 : i64, scratch_operands = 1 : i64, tpu.core_type = #tpu.core_type<tc>, window_params = [{transform_indices = @transform_0, window_bounds = array<i64: 2, 784>}, {pipeline_mode = #tpu.pipeline_mode<synchronous>, transform_indices = @transform_1, window_bounds = array<i64: 9, 1, 784>}, {pipeline_mode = #tpu.pipeline_mode<synchronous>, transform_indices = @transform_2, window_bounds = array<i64: 16, 10, 784>}, {pipeline_mode = #tpu.pipeline_mode<synchronous>, transform_indices = @transform_3, window_bounds = array<i64: 1, 10>}, {transform_indices = @transform_4, window_bounds = array<i64: 16, 9>}, {transform_indices = @transform_5, window_bounds = array<i64: 16>}, {transform_indices = @transform_6, window_bounds = array<i64: 2, 10>}]} {
    %c0 = arith.constant 0 : index
    %c0_0 = arith.constant 0 : index
    %0 = vector.load %arg1[%c0, %c0_0] : memref<2x784xf32, #tpu.memory_space<vmem>>, vector<2x784xf32>
    %cst = arith.constant 0.000000e+00 : f32
    %1 = vector.broadcast %cst : f32 to vector<2x29xf32>
    %2 = vector.extract_strided_slice %0 {offsets = [0, 0], sizes = [2, 755], strides = [1, 1]} : vector<2x784xf32> to vector<2x755xf32>
    %3 = tpu.concatenate %1, %2 in 1 : vector<2x29xf32>, vector<2x755xf32> -> vector<2x784xf32>
    %c0_1 = arith.constant 0 : index
    %c0_2 = arith.constant 0 : index
    %c0_3 = arith.constant 0 : index
    %4 = vector.load %arg2[%c0_1, %c0_2, %c0_3] : memref<9x1x784xf32, #tpu.memory_space<vmem>>, vector<1x1x784xf32>
    %5 = vector.shape_cast %4 : vector<1x1x784xf32> to vector<1x784xf32>
    %cst_4 = arith.constant 0.000000e+00 : f32
    %6 = vector.broadcast %cst_4 : f32 to vector<1x784xf32>
    %7 = arith.cmpf one, %5, %6 : vector<1x784xf32>
    %cst_5 = arith.constant 0.000000e+00 : f32
    %8 = vector.shape_cast %7 : vector<1x784xi1> to vector<1x784xi1>
    %9 = vector.broadcast %8 : vector<1x784xi1> to vector<2x784xi1>
    %10 = vector.broadcast %cst_5 : f32 to vector<2x784xf32>
    %11 = arith.select %9, %3, %10 : vector<2x784xi1>, vector<2x784xf32>
    %c0_6 = arith.constant 0 : index
    %c0_7 = arith.constant 0 : index
    %c0_8 = arith.constant 0 : index
    %12 = vector.load %arg8[%c0_6, %c0_7, %c0_8] : memref<9x2x784xf32, #tpu.memory_space<vmem>>, vector<1x2x784xf32>
    %13 = vector.shape_cast %12 : vector<1x2x784xf32> to vector<2x784xf32>
    %14 = vector.shape_cast %11 : vector<2x784xf32> to vector<1x2x784xf32>
    tpu.vector_store %arg8[%c0_6, %c0_7, %c0_8], %14 {strides = array<i32>} : memref<9x2x784xf32, #tpu.memory_space<vmem>>, vector<1x2x784xf32>,
    %cst_9 = arith.constant 0.000000e+00 : f32
    %15 = vector.broadcast %cst_9 : f32 to vector<2x28xf32>
    %16 = vector.extract_strided_slice %0 {offsets = [0, 0], sizes = [2, 756], strides = [1, 1]} : vector<2x784xf32> to vector<2x756xf32>
    %17 = tpu.concatenate %15, %16 in 1 : vector<2x28xf32>, vector<2x756xf32> -> vector<2x784xf32>
    %c1 = arith.constant 1 : index
    %c0_10 = arith.constant 0 : index
    %c0_11 = arith.constant 0 : index
    %18 = vector.load %arg2[%c1, %c0_10, %c0_11] : memref<9x1x784xf32, #tpu.memory_space<vmem>>, vector<1x1x784xf32>
    %19 = vector.shape_cast %18 : vector<1x1x784xf32> to vector<1x784xf32>
    %cst_12 = arith.constant 0.000000e+00 : f32
    %20 = vector.broadcast %cst_12 : f32 to vector<1x784xf32>
    %21 = arith.cmpf one, %19, %20 : vector<1x784xf32>
    %cst_13 = arith.constant 0.000000e+00 : f32
    %22 = vector.shape_cast %21 : vector<1x784xi1> to vector<1x784xi1>
    %23 = vector.broadcast %22 : vector<1x784xi1> to vector<2x784xi1>
    %24 = vector.broadcast %cst_13 : f32 to vector<2x784xf32>
    %25 = arith.select %23, %17, %24 : vector<2x784xi1>, vector<2x784xf32>
    %c1_14 = arith.constant 1 : index
    %c0_15 = arith.constant 0 : index
    %c0_16 = arith.constant 0 : index
    %26 = vector.load %arg8[%c1_14, %c0_15, %c0_16] : memref<9x2x784xf32, #tpu.memory_space<vmem>>, vector<1x2x784xf32>
    %27 = vector.shape_cast %26 : vector<1x2x784xf32> to vector<2x784xf32>
    %28 = vector.shape_cast %25 : vector<2x784xf32> to vector<1x2x784xf32>
    tpu.vector_store %arg8[%c1_14, %c0_15, %c0_16], %28 {strides = array<i32>} : memref<9x2x784xf32, #tpu.memory_space<vmem>>, vector<1x2x784xf32>,
    %cst_17 = arith.constant 0.000000e+00 : f32
    %29 = vector.broadcast %cst_17 : f32 to vector<2x27xf32>
    %30 = vector.extract_strided_slice %0 {offsets = [0, 0], sizes = [2, 757], strides = [1, 1]} : vector<2x784xf32> to vector<2x757xf32>
    %31 = tpu.concatenate %29, %30 in 1 : vector<2x27xf32>, vector<2x757xf32> -> vector<2x784xf32>
    %c2 = arith.constant 2 : index
    %c0_18 = arith.constant 0 : index
    %c0_19 = arith.constant 0 : index
    %32 = vector.load %arg2[%c2, %c0_18, %c0_19] : memref<9x1x784xf32, #tpu.memory_space<vmem>>, vector<1x1x784xf32>
    %33 = vector.shape_cast %32 : vector<1x1x784xf32> to vector<1x784xf32>
    %cst_20 = arith.constant 0.000000e+00 : f32
    %34 = vector.broadcast %cst_20 : f32 to vector<1x784xf32>
    %35 = arith.cmpf one, %33, %34 : vector<1x784xf32>
    %cst_21 = arith.constant 0.000000e+00 : f32
    %36 = vector.shape_cast %35 : vector<1x784xi1> to vector<1x784xi1>
    %37 = vector.broadcast %36 : vector<1x784xi1> to vector<2x784xi1>
    %38 = vector.broadcast %cst_21 : f32 to vector<2x784xf32>
    %39 = arith.select %37, %31, %38 : vector<2x784xi1>, vector<2x784xf32>
    %c2_22 = arith.constant 2 : index
    %c0_23 = arith.constant 0 : index
    %c0_24 = arith.constant 0 : index
    %40 = vector.load %arg8[%c2_22, %c0_23, %c0_24] : memref<9x2x784xf32, #tpu.memory_space<vmem>>, vector<1x2x784xf32>
    %41 = vector.shape_cast %40 : vector<1x2x784xf32> to vector<2x784xf32>
    %42 = vector.shape_cast %39 : vector<2x784xf32> to vector<1x2x784xf32>
    tpu.vector_store %arg8[%c2_22, %c0_23, %c0_24], %42 {strides = array<i32>} : memref<9x2x784xf32, #tpu.memory_space<vmem>>, vector<1x2x784xf32>,
    %cst_25 = arith.constant 0.000000e+00 : f32
    %43 = vector.broadcast %cst_25 : f32 to vector<2x1xf32>
    %44 = vector.extract_strided_slice %0 {offsets = [0, 0], sizes = [2, 783], strides = [1, 1]} : vector<2x784xf32> to vector<2x783xf32>
    %45 = tpu.concatenate %43, %44 in 1 : vector<2x1xf32>, vector<2x783xf32> -> vector<2x784xf32>
    %c3 = arith.constant 3 : index
    %c0_26 = arith.constant 0 : index
    %c0_27 = arith.constant 0 : index
    %46 = vector.load %arg2[%c3, %c0_26, %c0_27] : memref<9x1x784xf32, #tpu.memory_space<vmem>>, vector<1x1x784xf32>
    %47 = vector.shape_cast %46 : vector<1x1x784xf32> to vector<1x784xf32>
    %cst_28 = arith.constant 0.000000e+00 : f32
    %48 = vector.broadcast %cst_28 : f32 to vector<1x784xf32>
    %49 = arith.cmpf one, %47, %48 : vector<1x784xf32>
    %cst_29 = arith.constant 0.000000e+00 : f32
    %50 = vector.shape_cast %49 : vector<1x784xi1> to vector<1x784xi1>
    %51 = vector.broadcast %50 : vector<1x784xi1> to vector<2x784xi1>
    %52 = vector.broadcast %cst_29 : f32 to vector<2x784xf32>
    %53 = arith.select %51, %45, %52 : vector<2x784xi1>, vector<2x784xf32>
    %c3_30 = arith.constant 3 : index
    %c0_31 = arith.constant 0 : index
    %c0_32 = arith.constant 0 : index
    %54 = vector.load %arg8[%c3_30, %c0_31, %c0_32] : memref<9x2x784xf32, #tpu.memory_space<vmem>>, vector<1x2x784xf32>
    %55 = vector.shape_cast %54 : vector<1x2x784xf32> to vector<2x784xf32>
    %56 = vector.shape_cast %53 : vector<2x784xf32> to vector<1x2x784xf32>
    tpu.vector_store %arg8[%c3_30, %c0_31, %c0_32], %56 {strides = array<i32>} : memref<9x2x784xf32, #tpu.memory_space<vmem>>, vector<1x2x784xf32>,
    %c4 = arith.constant 4 : index
    %c0_33 = arith.constant 0 : index
    %c0_34 = arith.constant 0 : index
    %57 = vector.load %arg2[%c4, %c0_33, %c0_34] : memref<9x1x784xf32, #tpu.memory_space<vmem>>, vector<1x1x784xf32>
    %58 = vector.shape_cast %57 : vector<1x1x784xf32> to vector<1x784xf32>
    %cst_35 = arith.constant 0.000000e+00 : f32
    %59 = vector.broadcast %cst_35 : f32 to vector<1x784xf32>
    %60 = arith.cmpf one, %58, %59 : vector<1x784xf32>
    %cst_36 = arith.constant 0.000000e+00 : f32
    %61 = vector.shape_cast %60 : vector<1x784xi1> to vector<1x784xi1>
    %62 = vector.broadcast %61 : vector<1x784xi1> to vector<2x784xi1>
    %63 = vector.broadcast %cst_36 : f32 to vector<2x784xf32>
    %64 = arith.select %62, %0, %63 : vector<2x784xi1>, vector<2x784xf32>
    %c4_37 = arith.constant 4 : index
    %c0_38 = arith.constant 0 : index
    %c0_39 = arith.constant 0 : index
    %65 = vector.load %arg8[%c4_37, %c0_38, %c0_39] : memref<9x2x784xf32, #tpu.memory_space<vmem>>, vector<1x2x784xf32>
    %66 = vector.shape_cast %65 : vector<1x2x784xf32> to vector<2x784xf32>
    %67 = vector.shape_cast %64 : vector<2x784xf32> to vector<1x2x784xf32>
    tpu.vector_store %arg8[%c4_37, %c0_38, %c0_39], %67 {strides = array<i32>} : memref<9x2x784xf32, #tpu.memory_space<vmem>>, vector<1x2x784xf32>,
    %68 = vector.extract_strided_slice %0 {offsets = [0, 1], sizes = [2, 783], strides = [1, 1]} : vector<2x784xf32> to vector<2x783xf32>
    %cst_40 = arith.constant 0.000000e+00 : f32
    %69 = vector.broadcast %cst_40 : f32 to vector<2x1xf32>
    %70 = tpu.concatenate %68, %69 in 1 : vector<2x783xf32>, vector<2x1xf32> -> vector<2x784xf32>
    %c5 = arith.constant 5 : index
    %c0_41 = arith.constant 0 : index
    %c0_42 = arith.constant 0 : index
    %71 = vector.load %arg2[%c5, %c0_41, %c0_42] : memref<9x1x784xf32, #tpu.memory_space<vmem>>, vector<1x1x784xf32>
    %72 = vector.shape_cast %71 : vector<1x1x784xf32> to vector<1x784xf32>
    %cst_43 = arith.constant 0.000000e+00 : f32
    %73 = vector.broadcast %cst_43 : f32 to vector<1x784xf32>
    %74 = arith.cmpf one, %72, %73 : vector<1x784xf32>
    %cst_44 = arith.constant 0.000000e+00 : f32
    %75 = vector.shape_cast %74 : vector<1x784xi1> to vector<1x784xi1>
    %76 = vector.broadcast %75 : vector<1x784xi1> to vector<2x784xi1>
    %77 = vector.broadcast %cst_44 : f32 to vector<2x784xf32>
    %78 = arith.select %76, %70, %77 : vector<2x784xi1>, vector<2x784xf32>
    %c5_45 = arith.constant 5 : index
    %c0_46 = arith.constant 0 : index
    %c0_47 = arith.constant 0 : index
    %79 = vector.load %arg8[%c5_45, %c0_46, %c0_47] : memref<9x2x784xf32, #tpu.memory_space<vmem>>, vector<1x2x784xf32>
    %80 = vector.shape_cast %79 : vector<1x2x784xf32> to vector<2x784xf32>
    %81 = vector.shape_cast %78 : vector<2x784xf32> to vector<1x2x784xf32>
    tpu.vector_store %arg8[%c5_45, %c0_46, %c0_47], %81 {strides = array<i32>} : memref<9x2x784xf32, #tpu.memory_space<vmem>>, vector<1x2x784xf32>,
    %82 = vector.extract_strided_slice %0 {offsets = [0, 27], sizes = [2, 757], strides = [1, 1]} : vector<2x784xf32> to vector<2x757xf32>
    %cst_48 = arith.constant 0.000000e+00 : f32
    %83 = vector.broadcast %cst_48 : f32 to vector<2x27xf32>
    %84 = tpu.concatenate %82, %83 in 1 : vector<2x757xf32>, vector<2x27xf32> -> vector<2x784xf32>
    %c6 = arith.constant 6 : index
    %c0_49 = arith.constant 0 : index
    %c0_50 = arith.constant 0 : index
    %85 = vector.load %arg2[%c6, %c0_49, %c0_50] : memref<9x1x784xf32, #tpu.memory_space<vmem>>, vector<1x1x784xf32>
    %86 = vector.shape_cast %85 : vector<1x1x784xf32> to vector<1x784xf32>
    %cst_51 = arith.constant 0.000000e+00 : f32
    %87 = vector.broadcast %cst_51 : f32 to vector<1x784xf32>
    %88 = arith.cmpf one, %86, %87 : vector<1x784xf32>
    %cst_52 = arith.constant 0.000000e+00 : f32
    %89 = vector.shape_cast %88 : vector<1x784xi1> to vector<1x784xi1>
    %90 = vector.broadcast %89 : vector<1x784xi1> to vector<2x784xi1>
    %91 = vector.broadcast %cst_52 : f32 to vector<2x784xf32>
    %92 = arith.select %90, %84, %91 : vector<2x784xi1>, vector<2x784xf32>
    %c6_53 = arith.constant 6 : index
    %c0_54 = arith.constant 0 : index
    %c0_55 = arith.constant 0 : index
    %93 = vector.load %arg8[%c6_53, %c0_54, %c0_55] : memref<9x2x784xf32, #tpu.memory_space<vmem>>, vector<1x2x784xf32>
    %94 = vector.shape_cast %93 : vector<1x2x784xf32> to vector<2x784xf32>
    %95 = vector.shape_cast %92 : vector<2x784xf32> to vector<1x2x784xf32>
    tpu.vector_store %arg8[%c6_53, %c0_54, %c0_55], %95 {strides = array<i32>} : memref<9x2x784xf32, #tpu.memory_space<vmem>>, vector<1x2x784xf32>,
    %96 = vector.extract_strided_slice %0 {offsets = [0, 28], sizes = [2, 756], strides = [1, 1]} : vector<2x784xf32> to vector<2x756xf32>
    %cst_56 = arith.constant 0.000000e+00 : f32
    %97 = vector.broadcast %cst_56 : f32 to vector<2x28xf32>
    %98 = tpu.concatenate %96, %97 in 1 : vector<2x756xf32>, vector<2x28xf32> -> vector<2x784xf32>
    %c7 = arith.constant 7 : index
    %c0_57 = arith.constant 0 : index
    %c0_58 = arith.constant 0 : index
    %99 = vector.load %arg2[%c7, %c0_57, %c0_58] : memref<9x1x784xf32, #tpu.memory_space<vmem>>, vector<1x1x784xf32>
    %100 = vector.shape_cast %99 : vector<1x1x784xf32> to vector<1x784xf32>
    %cst_59 = arith.constant 0.000000e+00 : f32
    %101 = vector.broadcast %cst_59 : f32 to vector<1x784xf32>
    %102 = arith.cmpf one, %100, %101 : vector<1x784xf32>
    %cst_60 = arith.constant 0.000000e+00 : f32
    %103 = vector.shape_cast %102 : vector<1x784xi1> to vector<1x784xi1>
    %104 = vector.broadcast %103 : vector<1x784xi1> to vector<2x784xi1>
    %105 = vector.broadcast %cst_60 : f32 to vector<2x784xf32>
    %106 = arith.select %104, %98, %105 : vector<2x784xi1>, vector<2x784xf32>
    %c7_61 = arith.constant 7 : index
    %c0_62 = arith.constant 0 : index
    %c0_63 = arith.constant 0 : index
    %107 = vector.load %arg8[%c7_61, %c0_62, %c0_63] : memref<9x2x784xf32, #tpu.memory_space<vmem>>, vector<1x2x784xf32>
    %108 = vector.shape_cast %107 : vector<1x2x784xf32> to vector<2x784xf32>
    %109 = vector.shape_cast %106 : vector<2x784xf32> to vector<1x2x784xf32>
    tpu.vector_store %arg8[%c7_61, %c0_62, %c0_63], %109 {strides = array<i32>} : memref<9x2x784xf32, #tpu.memory_space<vmem>>, vector<1x2x784xf32>,
    %110 = vector.extract_strided_slice %0 {offsets = [0, 29], sizes = [2, 755], strides = [1, 1]} : vector<2x784xf32> to vector<2x755xf32>
    %cst_64 = arith.constant 0.000000e+00 : f32
    %111 = vector.broadcast %cst_64 : f32 to vector<2x29xf32>
    %112 = tpu.concatenate %110, %111 in 1 : vector<2x755xf32>, vector<2x29xf32> -> vector<2x784xf32>
    %c8 = arith.constant 8 : index
    %c0_65 = arith.constant 0 : index
    %c0_66 = arith.constant 0 : index
    %113 = vector.load %arg2[%c8, %c0_65, %c0_66] : memref<9x1x784xf32, #tpu.memory_space<vmem>>, vector<1x1x784xf32>
    %114 = vector.shape_cast %113 : vector<1x1x784xf32> to vector<1x784xf32>
    %cst_67 = arith.constant 0.000000e+00 : f32
    %115 = vector.broadcast %cst_67 : f32 to vector<1x784xf32>
    %116 = arith.cmpf one, %114, %115 : vector<1x784xf32>
    %cst_68 = arith.constant 0.000000e+00 : f32
    %117 = vector.shape_cast %116 : vector<1x784xi1> to vector<1x784xi1>
    %118 = vector.broadcast %117 : vector<1x784xi1> to vector<2x784xi1>
    %119 = vector.broadcast %cst_68 : f32 to vector<2x784xf32>
    %120 = arith.select %118, %112, %119 : vector<2x784xi1>, vector<2x784xf32>
    %c8_69 = arith.constant 8 : index
    %c0_70 = arith.constant 0 : index
    %c0_71 = arith.constant 0 : index
    %121 = vector.load %arg8[%c8_69, %c0_70, %c0_71] : memref<9x2x784xf32, #tpu.memory_space<vmem>>, vector<1x2x784xf32>
    %122 = vector.shape_cast %121 : vector<1x2x784xf32> to vector<2x784xf32>
    %123 = vector.shape_cast %120 : vector<2x784xf32> to vector<1x2x784xf32>
    tpu.vector_store %arg8[%c8_69, %c0_70, %c0_71], %123 {strides = array<i32>} : memref<9x2x784xf32, #tpu.memory_space<vmem>>, vector<1x2x784xf32>,
    %cst_72 = arith.constant 0.000000e+00 : f32
    %124 = vector.broadcast %cst_72 : f32 to vector<2x10xf32>
    %cst_73 = arith.constant 0.000000e+00 : f32
    %125 = vector.broadcast %cst_73 : f32 to vector<2x784xf32>
    %c0_74 = arith.constant 0 : index
    %c0_75 = arith.constant 0 : index
    %126 = memref.load %arg5[%c0_74, %c0_75] : memref<16x9xf32, #tpu.memory_space<smem>>
    %c0_76 = arith.constant 0 : index
    %c0_77 = arith.constant 0 : index
    %c0_78 = arith.constant 0 : index
    %127 = vector.load %arg8[%c0_76, %c0_77, %c0_78] : memref<9x2x784xf32, #tpu.memory_space<vmem>>, vector<1x2x784xf32>
    %128 = vector.shape_cast %127 : vector<1x2x784xf32> to vector<2x784xf32>
    %129 = vector.broadcast %126 : f32 to vector<2x784xf32>
    %130 = arith.mulf %129, %128 : vector<2x784xf32>
    %131 = arith.addf %125, %130 : vector<2x784xf32>
    %c0_79 = arith.constant 0 : index
    %c1_80 = arith.constant 1 : index
    %132 = memref.load %arg5[%c0_79, %c1_80] : memref<16x9xf32, #tpu.memory_space<smem>>
    %c1_81 = arith.constant 1 : index
    %c0_82 = arith.constant 0 : index
    %c0_83 = arith.constant 0 : index
    %133 = vector.load %arg8[%c1_81, %c0_82, %c0_83] : memref<9x2x784xf32, #tpu.memory_space<vmem>>, vector<1x2x784xf32>
    %134 = vector.shape_cast %133 : vector<1x2x784xf32> to vector<2x784xf32>
    %135 = vector.broadcast %132 : f32 to vector<2x784xf32>
    %136 = arith.mulf %135, %134 : vector<2x784xf32>
    %137 = arith.addf %131, %136 : vector<2x784xf32>
    %c0_84 = arith.constant 0 : index
    %c2_85 = arith.constant 2 : index
    %138 = memref.load %arg5[%c0_84, %c2_85] : memref<16x9xf32, #tpu.memory_space<smem>>
    %c2_86 = arith.constant 2 : index
    %c0_87 = arith.constant 0 : index
    %c0_88 = arith.constant 0 : index
    %139 = vector.load %arg8[%c2_86, %c0_87, %c0_88] : memref<9x2x784xf32, #tpu.memory_space<vmem>>, vector<1x2x784xf32>
    %140 = vector.shape_cast %139 : vector<1x2x784xf32> to vector<2x784xf32>
    %141 = vector.broadcast %138 : f32 to vector<2x784xf32>
    %142 = arith.mulf %141, %140 : vector<2x784xf32>
    %143 = arith.addf %137, %142 : vector<2x784xf32>
    %c0_89 = arith.constant 0 : index
    %c3_90 = arith.constant 3 : index
    %144 = memref.load %arg5[%c0_89, %c3_90] : memref<16x9xf32, #tpu.memory_space<smem>>
    %c3_91 = arith.constant 3 : index
    %c0_92 = arith.constant 0 : index
    %c0_93 = arith.constant 0 : index
    %145 = vector.load %arg8[%c3_91, %c0_92, %c0_93] : memref<9x2x784xf32, #tpu.memory_space<vmem>>, vector<1x2x784xf32>
    %146 = vector.shape_cast %145 : vector<1x2x784xf32> to vector<2x784xf32>
    %147 = vector.broadcast %144 : f32 to vector<2x784xf32>
    %148 = arith.mulf %147, %146 : vector<2x784xf32>
    %149 = arith.addf %143, %148 : vector<2x784xf32>
    %c0_94 = arith.constant 0 : index
    %c4_95 = arith.constant 4 : index
    %150 = memref.load %arg5[%c0_94, %c4_95] : memref<16x9xf32, #tpu.memory_space<smem>>
    %c4_96 = arith.constant 4 : index
    %c0_97 = arith.constant 0 : index
    %c0_98 = arith.constant 0 : index
    %151 = vector.load %arg8[%c4_96, %c0_97, %c0_98] : memref<9x2x784xf32, #tpu.memory_space<vmem>>, vector<1x2x784xf32>
    %152 = vector.shape_cast %151 : vector<1x2x784xf32> to vector<2x784xf32>
    %153 = vector.broadcast %150 : f32 to vector<2x784xf32>
    %154 = arith.mulf %153, %152 : vector<2x784xf32>
    %155 = arith.addf %149, %154 : vector<2x784xf32>
    %c0_99 = arith.constant 0 : index
    %c5_100 = arith.constant 5 : index
    %156 = memref.load %arg5[%c0_99, %c5_100] : memref<16x9xf32, #tpu.memory_space<smem>>
    %c5_101 = arith.constant 5 : index
    %c0_102 = arith.constant 0 : index
    %c0_103 = arith.constant 0 : index
    %157 = vector.load %arg8[%c5_101, %c0_102, %c0_103] : memref<9x2x784xf32, #tpu.memory_space<vmem>>, vector<1x2x784xf32>
    %158 = vector.shape_cast %157 : vector<1x2x784xf32> to vector<2x784xf32>
    %159 = vector.broadcast %156 : f32 to vector<2x784xf32>
    %160 = arith.mulf %159, %158 : vector<2x784xf32>
    %161 = arith.addf %155, %160 : vector<2x784xf32>
    %c0_104 = arith.constant 0 : index
    %c6_105 = arith.constant 6 : index
    %162 = memref.load %arg5[%c0_104, %c6_105] : memref<16x9xf32, #tpu.memory_space<smem>>
    %c6_106 = arith.constant 6 : index
    %c0_107 = arith.constant 0 : index
    %c0_108 = arith.constant 0 : index
    %163 = vector.load %arg8[%c6_106, %c0_107, %c0_108] : memref<9x2x784xf32, #tpu.memory_space<vmem>>, vector<1x2x784xf32>
    %164 = vector.shape_cast %163 : vector<1x2x784xf32> to vector<2x784xf32>
    %165 = vector.broadcast %162 : f32 to vector<2x784xf32>
    %166 = arith.mulf %165, %164 : vector<2x784xf32>
    %167 = arith.addf %161, %166 : vector<2x784xf32>
    %c0_109 = arith.constant 0 : index
    %c7_110 = arith.constant 7 : index
    %168 = memref.load %arg5[%c0_109, %c7_110] : memref<16x9xf32, #tpu.memory_space<smem>>
    %c7_111 = arith.constant 7 : index
    %c0_112 = arith.constant 0 : index
    %c0_113 = arith.constant 0 : index
    %169 = vector.load %arg8[%c7_111, %c0_112, %c0_113] : memref<9x2x784xf32, #tpu.memory_space<vmem>>, vector<1x2x784xf32>
    %170 = vector.shape_cast %169 : vector<1x2x784xf32> to vector<2x784xf32>
    %171 = vector.broadcast %168 : f32 to vector<2x784xf32>
    %172 = arith.mulf %171, %170 : vector<2x784xf32>
    %173 = arith.addf %167, %172 : vector<2x784xf32>
    %c0_114 = arith.constant 0 : index
    %c8_115 = arith.constant 8 : index
    %174 = memref.load %arg5[%c0_114, %c8_115] : memref<16x9xf32, #tpu.memory_space<smem>>
    %c8_116 = arith.constant 8 : index
    %c0_117 = arith.constant 0 : index
    %c0_118 = arith.constant 0 : index
    %175 = vector.load %arg8[%c8_116, %c0_117, %c0_118] : memref<9x2x784xf32, #tpu.memory_space<vmem>>, vector<1x2x784xf32>
    %176 = vector.shape_cast %175 : vector<1x2x784xf32> to vector<2x784xf32>
    %177 = vector.broadcast %174 : f32 to vector<2x784xf32>
    %178 = arith.mulf %177, %176 : vector<2x784xf32>
    %179 = arith.addf %173, %178 : vector<2x784xf32>
    %c0_119 = arith.constant 0 : index
    %180 = memref.load %arg6[%c0_119] : memref<16xf32, #tpu.memory_space<smem>>
    %181 = vector.broadcast %180 : f32 to vector<2x784xf32>
    %182 = arith.addf %179, %181 : vector<2x784xf32>
    %cst_120 = arith.constant 0.000000e+00 : f32
    %183 = vector.broadcast %cst_120 : f32 to vector<2x784xf32>
    %184 = arith.maximumf %182, %183 : vector<2x784xf32>
    %c0_121 = arith.constant 0 : index
    %c0_122 = arith.constant 0 : index
    %c0_123 = arith.constant 0 : index
    %185 = vector.load %arg3[%c0_121, %c0_122, %c0_123] : memref<16x10x784xf32, #tpu.memory_space<vmem>>, vector<1x10x784xf32>
    %186 = vector.shape_cast %185 : vector<1x10x784xf32> to vector<10x784xf32>
    %cst_124 = arith.constant dense<0.000000e+00> : vector<2x10xf32>
    %187 = tpu.matmul %184, %186, %cst_124 {dimension_numbers = #tpu.dot_dimension_numbers<[1], [1], [0], [0], [0, 0, 1, 0], [], []>} : vector<2x784xf32>, vector<10x784xf32>, vector<2x10xf32> -> vector<2x10xf32>
    %188 = arith.addf %124, %187 : vector<2x10xf32>
    %cst_125 = arith.constant 0.000000e+00 : f32
    %189 = vector.broadcast %cst_125 : f32 to vector<2x784xf32>
    %c1_126 = arith.constant 1 : index
    %c0_127 = arith.constant 0 : index
    %190 = memref.load %arg5[%c1_126, %c0_127] : memref<16x9xf32, #tpu.memory_space<smem>>
    %c0_128 = arith.constant 0 : index
    %c0_129 = arith.constant 0 : index
    %c0_130 = arith.constant 0 : index
    %191 = vector.load %arg8[%c0_128, %c0_129, %c0_130] : memref<9x2x784xf32, #tpu.memory_space<vmem>>, vector<1x2x784xf32>
    %192 = vector.shape_cast %191 : vector<1x2x784xf32> to vector<2x784xf32>
    %193 = vector.broadcast %190 : f32 to vector<2x784xf32>
    %194 = arith.mulf %193, %192 : vector<2x784xf32>
    %195 = arith.addf %189, %194 : vector<2x784xf32>
    %c1_131 = arith.constant 1 : index
    %c1_132 = arith.constant 1 : index
    %196 = memref.load %arg5[%c1_131, %c1_132] : memref<16x9xf32, #tpu.memory_space<smem>>
    %c1_133 = arith.constant 1 : index
    %c0_134 = arith.constant 0 : index
    %c0_135 = arith.constant 0 : index
    %197 = vector.load %arg8[%c1_133, %c0_134, %c0_135] : memref<9x2x784xf32, #tpu.memory_space<vmem>>, vector<1x2x784xf32>
    %198 = vector.shape_cast %197 : vector<1x2x784xf32> to vector<2x784xf32>
    %199 = vector.broadcast %196 : f32 to vector<2x784xf32>
    %200 = arith.mulf %199, %198 : vector<2x784xf32>
    %201 = arith.addf %195, %200 : vector<2x784xf32>
    %c1_136 = arith.constant 1 : index
    %c2_137 = arith.constant 2 : index
    %202 = memref.load %arg5[%c1_136, %c2_137] : memref<16x9xf32, #tpu.memory_space<smem>>
    %c2_138 = arith.constant 2 : index
    %c0_139 = arith.constant 0 : index
    %c0_140 = arith.constant 0 : index
    %203 = vector.load %arg8[%c2_138, %c0_139, %c0_140] : memref<9x2x784xf32, #tpu.memory_space<vmem>>, vector<1x2x784xf32>
    %204 = vector.shape_cast %203 : vector<1x2x784xf32> to vector<2x784xf32>
    %205 = vector.broadcast %202 : f32 to vector<2x784xf32>
    %206 = arith.mulf %205, %204 : vector<2x784xf32>
    %207 = arith.addf %201, %206 : vector<2x784xf32>
    %c1_141 = arith.constant 1 : index
    %c3_142 = arith.constant 3 : index
    %208 = memref.load %arg5[%c1_141, %c3_142] : memref<16x9xf32, #tpu.memory_space<smem>>
    %c3_143 = arith.constant 3 : index
    %c0_144 = arith.constant 0 : index
    %c0_145 = arith.constant 0 : index
    %209 = vector.load %arg8[%c3_143, %c0_144, %c0_145] : memref<9x2x784xf32, #tpu.memory_space<vmem>>, vector<1x2x784xf32>
    %210 = vector.shape_cast %209 : vector<1x2x784xf32> to vector<2x784xf32>
    %211 = vector.broadcast %208 : f32 to vector<2x784xf32>
    %212 = arith.mulf %211, %210 : vector<2x784xf32>
    %213 = arith.addf %207, %212 : vector<2x784xf32>
    %c1_146 = arith.constant 1 : index
    %c4_147 = arith.constant 4 : index
    %214 = memref.load %arg5[%c1_146, %c4_147] : memref<16x9xf32, #tpu.memory_space<smem>>
    %c4_148 = arith.constant 4 : index
    %c0_149 = arith.constant 0 : index
    %c0_150 = arith.constant 0 : index
    %215 = vector.load %arg8[%c4_148, %c0_149, %c0_150] : memref<9x2x784xf32, #tpu.memory_space<vmem>>, vector<1x2x784xf32>
    %216 = vector.shape_cast %215 : vector<1x2x784xf32> to vector<2x784xf32>
    %217 = vector.broadcast %214 : f32 to vector<2x784xf32>
    %218 = arith.mulf %217, %216 : vector<2x784xf32>
    %219 = arith.addf %213, %218 : vector<2x784xf32>
    %c1_151 = arith.constant 1 : index
    %c5_152 = arith.constant 5 : index
    %220 = memref.load %arg5[%c1_151, %c5_152] : memref<16x9xf32, #tpu.memory_space<smem>>
    %c5_153 = arith.constant 5 : index
    %c0_154 = arith.constant 0 : index
    %c0_155 = arith.constant 0 : index
    %221 = vector.load %arg8[%c5_153, %c0_154, %c0_155] : memref<9x2x784xf32, #tpu.memory_space<vmem>>, vector<1x2x784xf32>
    %222 = vector.shape_cast %221 : vector<1x2x784xf32> to vector<2x784xf32>
    %223 = vector.broadcast %220 : f32 to vector<2x784xf32>
    %224 = arith.mulf %223, %222 : vector<2x784xf32>
    %225 = arith.addf %219, %224 : vector<2x784xf32>
    %c1_156 = arith.constant 1 : index
    %c6_157 = arith.constant 6 : index
    %226 = memref.load %arg5[%c1_156, %c6_157] : memref<16x9xf32, #tpu.memory_space<smem>>
    %c6_158 = arith.constant 6 : index
    %c0_159 = arith.constant 0 : index
    %c0_160 = arith.constant 0 : index
    %227 = vector.load %arg8[%c6_158, %c0_159, %c0_160] : memref<9x2x784xf32, #tpu.memory_space<vmem>>, vector<1x2x784xf32>
    %228 = vector.shape_cast %227 : vector<1x2x784xf32> to vector<2x784xf32>
    %229 = vector.broadcast %226 : f32 to vector<2x784xf32>
    %230 = arith.mulf %229, %228 : vector<2x784xf32>
    %231 = arith.addf %225, %230 : vector<2x784xf32>
    %c1_161 = arith.constant 1 : index
    %c7_162 = arith.constant 7 : index
    %232 = memref.load %arg5[%c1_161, %c7_162] : memref<16x9xf32, #tpu.memory_space<smem>>
    %c7_163 = arith.constant 7 : index
    %c0_164 = arith.constant 0 : index
    %c0_165 = arith.constant 0 : index
    %233 = vector.load %arg8[%c7_163, %c0_164, %c0_165] : memref<9x2x784xf32, #tpu.memory_space<vmem>>, vector<1x2x784xf32>
    %234 = vector.shape_cast %233 : vector<1x2x784xf32> to vector<2x784xf32>
    %235 = vector.broadcast %232 : f32 to vector<2x784xf32>
    %236 = arith.mulf %235, %234 : vector<2x784xf32>
    %237 = arith.addf %231, %236 : vector<2x784xf32>
    %c1_166 = arith.constant 1 : index
    %c8_167 = arith.constant 8 : index
    %238 = memref.load %arg5[%c1_166, %c8_167] : memref<16x9xf32, #tpu.memory_space<smem>>
    %c8_168 = arith.constant 8 : index
    %c0_169 = arith.constant 0 : index
    %c0_170 = arith.constant 0 : index
    %239 = vector.load %arg8[%c8_168, %c0_169, %c0_170] : memref<9x2x784xf32, #tpu.memory_space<vmem>>, vector<1x2x784xf32>
    %240 = vector.shape_cast %239 : vector<1x2x784xf32> to vector<2x784xf32>
    %241 = vector.broadcast %238 : f32 to vector<2x784xf32>
    %242 = arith.mulf %241, %240 : vector<2x784xf32>
    %243 = arith.addf %237, %242 : vector<2x784xf32>
    %c1_171 = arith.constant 1 : index
    %244 = memref.load %arg6[%c1_171] : memref<16xf32, #tpu.memory_space<smem>>
    %245 = vector.broadcast %244 : f32 to vector<2x784xf32>
    %246 = arith.addf %243, %245 : vector<2x784xf32>
    %cst_172 = arith.constant 0.000000e+00 : f32
    %247 = vector.broadcast %cst_172 : f32 to vector<2x784xf32>
    %248 = arith.maximumf %246, %247 : vector<2x784xf32>
    %c1_173 = arith.constant 1 : index
    %c0_174 = arith.constant 0 : index
    %c0_175 = arith.constant 0 : index
    %249 = vector.load %arg3[%c1_173, %c0_174, %c0_175] : memref<16x10x784xf32, #tpu.memory_space<vmem>>, vector<1x10x784xf32>
    %250 = vector.shape_cast %249 : vector<1x10x784xf32> to vector<10x784xf32>
    %cst_176 = arith.constant dense<0.000000e+00> : vector<2x10xf32>
    %251 = tpu.matmul %248, %250, %cst_176 {dimension_numbers = #tpu.dot_dimension_numbers<[1], [1], [0], [0], [0, 0, 1, 0], [], []>} : vector<2x784xf32>, vector<10x784xf32>, vector<2x10xf32> -> vector<2x10xf32>
    %252 = arith.addf %188, %251 : vector<2x10xf32>
    %cst_177 = arith.constant 0.000000e+00 : f32
    %253 = vector.broadcast %cst_177 : f32 to vector<2x784xf32>
    %c2_178 = arith.constant 2 : index
    %c0_179 = arith.constant 0 : index
    %254 = memref.load %arg5[%c2_178, %c0_179] : memref<16x9xf32, #tpu.memory_space<smem>>
    %c0_180 = arith.constant 0 : index
    %c0_181 = arith.constant 0 : index
    %c0_182 = arith.constant 0 : index
    %255 = vector.load %arg8[%c0_180, %c0_181, %c0_182] : memref<9x2x784xf32, #tpu.memory_space<vmem>>, vector<1x2x784xf32>
    %256 = vector.shape_cast %255 : vector<1x2x784xf32> to vector<2x784xf32>
    %257 = vector.broadcast %254 : f32 to vector<2x784xf32>
    %258 = arith.mulf %257, %256 : vector<2x784xf32>
    %259 = arith.addf %253, %258 : vector<2x784xf32>
    %c2_183 = arith.constant 2 : index
    %c1_184 = arith.constant 1 : index
    %260 = memref.load %arg5[%c2_183, %c1_184] : memref<16x9xf32, #tpu.memory_space<smem>>
    %c1_185 = arith.constant 1 : index
    %c0_186 = arith.constant 0 : index
    %c0_187 = arith.constant 0 : index
    %261 = vector.load %arg8[%c1_185, %c0_186, %c0_187] : memref<9x2x784xf32, #tpu.memory_space<vmem>>, vector<1x2x784xf32>
    %262 = vector.shape_cast %261 : vector<1x2x784xf32> to vector<2x784xf32>
    %263 = vector.broadcast %260 : f32 to vector<2x784xf32>
    %264 = arith.mulf %263, %262 : vector<2x784xf32>
    %265 = arith.addf %259, %264 : vector<2x784xf32>
    %c2_188 = arith.constant 2 : index
    %c2_189 = arith.constant 2 : index
    %266 = memref.load %arg5[%c2_188, %c2_189] : memref<16x9xf32, #tpu.memory_space<smem>>
    %c2_190 = arith.constant 2 : index
    %c0_191 = arith.constant 0 : index
    %c0_192 = arith.constant 0 : index
    %267 = vector.load %arg8[%c2_190, %c0_191, %c0_192] : memref<9x2x784xf32, #tpu.memory_space<vmem>>, vector<1x2x784xf32>
    %268 = vector.shape_cast %267 : vector<1x2x784xf32> to vector<2x784xf32>
    %269 = vector.broadcast %266 : f32 to vector<2x784xf32>
    %270 = arith.mulf %269, %268 : vector<2x784xf32>
    %271 = arith.addf %265, %270 : vector<2x784xf32>
    %c2_193 = arith.constant 2 : index
    %c3_194 = arith.constant 3 : index
    %272 = memref.load %arg5[%c2_193, %c3_194] : memref<16x9xf32, #tpu.memory_space<smem>>
    %c3_195 = arith.constant 3 : index
    %c0_196 = arith.constant 0 : index
    %c0_197 = arith.constant 0 : index
    %273 = vector.load %arg8[%c3_195, %c0_196, %c0_197] : memref<9x2x784xf32, #tpu.memory_space<vmem>>, vector<1x2x784xf32>
    %274 = vector.shape_cast %273 : vector<1x2x784xf32> to vector<2x784xf32>
    %275 = vector.broadcast %272 : f32 to vector<2x784xf32>
    %276 = arith.mulf %275, %274 : vector<2x784xf32>
    %277 = arith.addf %271, %276 : vector<2x784xf32>
    %c2_198 = arith.constant 2 : index
    %c4_199 = arith.constant 4 : index
    %278 = memref.load %arg5[%c2_198, %c4_199] : memref<16x9xf32, #tpu.memory_space<smem>>
    %c4_200 = arith.constant 4 : index
    %c0_201 = arith.constant 0 : index
    %c0_202 = arith.constant 0 : index
    %279 = vector.load %arg8[%c4_200, %c0_201, %c0_202] : memref<9x2x784xf32, #tpu.memory_space<vmem>>, vector<1x2x784xf32>
    %280 = vector.shape_cast %279 : vector<1x2x784xf32> to vector<2x784xf32>
    %281 = vector.broadcast %278 : f32 to vector<2x784xf32>
    %282 = arith.mulf %281, %280 : vector<2x784xf32>
    %283 = arith.addf %277, %282 : vector<2x784xf32>
    %c2_203 = arith.constant 2 : index
    %c5_204 = arith.constant 5 : index
    %284 = memref.load %arg5[%c2_203, %c5_204] : memref<16x9xf32, #tpu.memory_space<smem>>
    %c5_205 = arith.constant 5 : index
    %c0_206 = arith.constant 0 : index
    %c0_207 = arith.constant 0 : index
    %285 = vector.load %arg8[%c5_205, %c0_206, %c0_207] : memref<9x2x784xf32, #tpu.memory_space<vmem>>, vector<1x2x784xf32>
    %286 = vector.shape_cast %285 : vector<1x2x784xf32> to vector<2x784xf32>
    %287 = vector.broadcast %284 : f32 to vector<2x784xf32>
    %288 = arith.mulf %287, %286 : vector<2x784xf32>
    %289 = arith.addf %283, %288 : vector<2x784xf32>
    %c2_208 = arith.constant 2 : index
    %c6_209 = arith.constant 6 : index
    %290 = memref.load %arg5[%c2_208, %c6_209] : memref<16x9xf32, #tpu.memory_space<smem>>
    %c6_210 = arith.constant 6 : index
    %c0_211 = arith.constant 0 : index
    %c0_212 = arith.constant 0 : index
    %291 = vector.load %arg8[%c6_210, %c0_211, %c0_212] : memref<9x2x784xf32, #tpu.memory_space<vmem>>, vector<1x2x784xf32>
    %292 = vector.shape_cast %291 : vector<1x2x784xf32> to vector<2x784xf32>
    %293 = vector.broadcast %290 : f32 to vector<2x784xf32>
    %294 = arith.mulf %293, %292 : vector<2x784xf32>
    %295 = arith.addf %289, %294 : vector<2x784xf32>
    %c2_213 = arith.constant 2 : index
    %c7_214 = arith.constant 7 : index
    %296 = memref.load %arg5[%c2_213, %c7_214] : memref<16x9xf32, #tpu.memory_space<smem>>
    %c7_215 = arith.constant 7 : index
    %c0_216 = arith.constant 0 : index
    %c0_217 = arith.constant 0 : index
    %297 = vector.load %arg8[%c7_215, %c0_216, %c0_217] : memref<9x2x784xf32, #tpu.memory_space<vmem>>, vector<1x2x784xf32>
    %298 = vector.shape_cast %297 : vector<1x2x784xf32> to vector<2x784xf32>
    %299 = vector.broadcast %296 : f32 to vector<2x784xf32>
    %300 = arith.mulf %299, %298 : vector<2x784xf32>
    %301 = arith.addf %295, %300 : vector<2x784xf32>
    %c2_218 = arith.constant 2 : index
    %c8_219 = arith.constant 8 : index
    %302 = memref.load %arg5[%c2_218, %c8_219] : memref<16x9xf32, #tpu.memory_space<smem>>
    %c8_220 = arith.constant 8 : index
    %c0_221 = arith.constant 0 : index
    %c0_222 = arith.constant 0 : index
    %303 = vector.load %arg8[%c8_220, %c0_221, %c0_222] : memref<9x2x784xf32, #tpu.memory_space<vmem>>, vector<1x2x784xf32>
    %304 = vector.shape_cast %303 : vector<1x2x784xf32> to vector<2x784xf32>
    %305 = vector.broadcast %302 : f32 to vector<2x784xf32>
    %306 = arith.mulf %305, %304 : vector<2x784xf32>
    %307 = arith.addf %301, %306 : vector<2x784xf32>
    %c2_223 = arith.constant 2 : index
    %308 = memref.load %arg6[%c2_223] : memref<16xf32, #tpu.memory_space<smem>>
    %309 = vector.broadcast %308 : f32 to vector<2x784xf32>
    %310 = arith.addf %307, %309 : vector<2x784xf32>
    %cst_224 = arith.constant 0.000000e+00 : f32
    %311 = vector.broadcast %cst_224 : f32 to vector<2x784xf32>
    %312 = arith.maximumf %310, %311 : vector<2x784xf32>
    %c2_225 = arith.constant 2 : index
    %c0_226 = arith.constant 0 : index
    %c0_227 = arith.constant 0 : index
    %313 = vector.load %arg3[%c2_225, %c0_226, %c0_227] : memref<16x10x784xf32, #tpu.memory_space<vmem>>, vector<1x10x784xf32>
    %314 = vector.shape_cast %313 : vector<1x10x784xf32> to vector<10x784xf32>
    %cst_228 = arith.constant dense<0.000000e+00> : vector<2x10xf32>
    %315 = tpu.matmul %312, %314, %cst_228 {dimension_numbers = #tpu.dot_dimension_numbers<[1], [1], [0], [0], [0, 0, 1, 0], [], []>} : vector<2x784xf32>, vector<10x784xf32>, vector<2x10xf32> -> vector<2x10xf32>
    %316 = arith.addf %252, %315 : vector<2x10xf32>
    %cst_229 = arith.constant 0.000000e+00 : f32
    %317 = vector.broadcast %cst_229 : f32 to vector<2x784xf32>
    %c3_230 = arith.constant 3 : index
    %c0_231 = arith.constant 0 : index
    %318 = memref.load %arg5[%c3_230, %c0_231] : memref<16x9xf32, #tpu.memory_space<smem>>
    %c0_232 = arith.constant 0 : index
    %c0_233 = arith.constant 0 : index
    %c0_234 = arith.constant 0 : index
    %319 = vector.load %arg8[%c0_232, %c0_233, %c0_234] : memref<9x2x784xf32, #tpu.memory_space<vmem>>, vector<1x2x784xf32>
    %320 = vector.shape_cast %319 : vector<1x2x784xf32> to vector<2x784xf32>
    %321 = vector.broadcast %318 : f32 to vector<2x784xf32>
    %322 = arith.mulf %321, %320 : vector<2x784xf32>
    %323 = arith.addf %317, %322 : vector<2x784xf32>
    %c3_235 = arith.constant 3 : index
    %c1_236 = arith.constant 1 : index
    %324 = memref.load %arg5[%c3_235, %c1_236] : memref<16x9xf32, #tpu.memory_space<smem>>
    %c1_237 = arith.constant 1 : index
    %c0_238 = arith.constant 0 : index
    %c0_239 = arith.constant 0 : index
    %325 = vector.load %arg8[%c1_237, %c0_238, %c0_239] : memref<9x2x784xf32, #tpu.memory_space<vmem>>, vector<1x2x784xf32>
    %326 = vector.shape_cast %325 : vector<1x2x784xf32> to vector<2x784xf32>
    %327 = vector.broadcast %324 : f32 to vector<2x784xf32>
    %328 = arith.mulf %327, %326 : vector<2x784xf32>
    %329 = arith.addf %323, %328 : vector<2x784xf32>
    %c3_240 = arith.constant 3 : index
    %c2_241 = arith.constant 2 : index
    %330 = memref.load %arg5[%c3_240, %c2_241] : memref<16x9xf32, #tpu.memory_space<smem>>
    %c2_242 = arith.constant 2 : index
    %c0_243 = arith.constant 0 : index
    %c0_244 = arith.constant 0 : index
    %331 = vector.load %arg8[%c2_242, %c0_243, %c0_244] : memref<9x2x784xf32, #tpu.memory_space<vmem>>, vector<1x2x784xf32>
    %332 = vector.shape_cast %331 : vector<1x2x784xf32> to vector<2x784xf32>
    %333 = vector.broadcast %330 : f32 to vector<2x784xf32>
    %334 = arith.mulf %333, %332 : vector<2x784xf32>
    %335 = arith.addf %329, %334 : vector<2x784xf32>
    %c3_245 = arith.constant 3 : index
    %c3_246 = arith.constant 3 : index
    %336 = memref.load %arg5[%c3_245, %c3_246] : memref<16x9xf32, #tpu.memory_space<smem>>
    %c3_247 = arith.constant 3 : index
    %c0_248 = arith.constant 0 : index
    %c0_249 = arith.constant 0 : index
    %337 = vector.load %arg8[%c3_247, %c0_248, %c0_249] : memref<9x2x784xf32, #tpu.memory_space<vmem>>, vector<1x2x784xf32>
    %338 = vector.shape_cast %337 : vector<1x2x784xf32> to vector<2x784xf32>
    %339 = vector.broadcast %336 : f32 to vector<2x784xf32>
    %340 = arith.mulf %339, %338 : vector<2x784xf32>
    %341 = arith.addf %335, %340 : vector<2x784xf32>
    %c3_250 = arith.constant 3 : index
    %c4_251 = arith.constant 4 : index
    %342 = memref.load %arg5[%c3_250, %c4_251] : memref<16x9xf32, #tpu.memory_space<smem>>
    %c4_252 = arith.constant 4 : index
    %c0_253 = arith.constant 0 : index
    %c0_254 = arith.constant 0 : index
    %343 = vector.load %arg8[%c4_252, %c0_253, %c0_254] : memref<9x2x784xf32, #tpu.memory_space<vmem>>, vector<1x2x784xf32>
    %344 = vector.shape_cast %343 : vector<1x2x784xf32> to vector<2x784xf32>
    %345 = vector.broadcast %342 : f32 to vector<2x784xf32>
    %346 = arith.mulf %345, %344 : vector<2x784xf32>
    %347 = arith.addf %341, %346 : vector<2x784xf32>
    %c3_255 = arith.constant 3 : index
    %c5_256 = arith.constant 5 : index
    %348 = memref.load %arg5[%c3_255, %c5_256] : memref<16x9xf32, #tpu.memory_space<smem>>
    %c5_257 = arith.constant 5 : index
    %c0_258 = arith.constant 0 : index
    %c0_259 = arith.constant 0 : index
    %349 = vector.load %arg8[%c5_257, %c0_258, %c0_259] : memref<9x2x784xf32, #tpu.memory_space<vmem>>, vector<1x2x784xf32>
    %350 = vector.shape_cast %349 : vector<1x2x784xf32> to vector<2x784xf32>
    %351 = vector.broadcast %348 : f32 to vector<2x784xf32>
    %352 = arith.mulf %351, %350 : vector<2x784xf32>
    %353 = arith.addf %347, %352 : vector<2x784xf32>
    %c3_260 = arith.constant 3 : index
    %c6_261 = arith.constant 6 : index
    %354 = memref.load %arg5[%c3_260, %c6_261] : memref<16x9xf32, #tpu.memory_space<smem>>
    %c6_262 = arith.constant 6 : index
    %c0_263 = arith.constant 0 : index
    %c0_264 = arith.constant 0 : index
    %355 = vector.load %arg8[%c6_262, %c0_263, %c0_264] : memref<9x2x784xf32, #tpu.memory_space<vmem>>, vector<1x2x784xf32>
    %356 = vector.shape_cast %355 : vector<1x2x784xf32> to vector<2x784xf32>
    %357 = vector.broadcast %354 : f32 to vector<2x784xf32>
    %358 = arith.mulf %357, %356 : vector<2x784xf32>
    %359 = arith.addf %353, %358 : vector<2x784xf32>
    %c3_265 = arith.constant 3 : index
    %c7_266 = arith.constant 7 : index
    %360 = memref.load %arg5[%c3_265, %c7_266] : memref<16x9xf32, #tpu.memory_space<smem>>
    %c7_267 = arith.constant 7 : index
    %c0_268 = arith.constant 0 : index
    %c0_269 = arith.constant 0 : index
    %361 = vector.load %arg8[%c7_267, %c0_268, %c0_269] : memref<9x2x784xf32, #tpu.memory_space<vmem>>, vector<1x2x784xf32>
    %362 = vector.shape_cast %361 : vector<1x2x784xf32> to vector<2x784xf32>
    %363 = vector.broadcast %360 : f32 to vector<2x784xf32>
    %364 = arith.mulf %363, %362 : vector<2x784xf32>
    %365 = arith.addf %359, %364 : vector<2x784xf32>
    %c3_270 = arith.constant 3 : index
    %c8_271 = arith.constant 8 : index
    %366 = memref.load %arg5[%c3_270, %c8_271] : memref<16x9xf32, #tpu.memory_space<smem>>
    %c8_272 = arith.constant 8 : index
    %c0_273 = arith.constant 0 : index
    %c0_274 = arith.constant 0 : index
    %367 = vector.load %arg8[%c8_272, %c0_273, %c0_274] : memref<9x2x784xf32, #tpu.memory_space<vmem>>, vector<1x2x784xf32>
    %368 = vector.shape_cast %367 : vector<1x2x784xf32> to vector<2x784xf32>
    %369 = vector.broadcast %366 : f32 to vector<2x784xf32>
    %370 = arith.mulf %369, %368 : vector<2x784xf32>
    %371 = arith.addf %365, %370 : vector<2x784xf32>
    %c3_275 = arith.constant 3 : index
    %372 = memref.load %arg6[%c3_275] : memref<16xf32, #tpu.memory_space<smem>>
    %373 = vector.broadcast %372 : f32 to vector<2x784xf32>
    %374 = arith.addf %371, %373 : vector<2x784xf32>
    %cst_276 = arith.constant 0.000000e+00 : f32
    %375 = vector.broadcast %cst_276 : f32 to vector<2x784xf32>
    %376 = arith.maximumf %374, %375 : vector<2x784xf32>
    %c3_277 = arith.constant 3 : index
    %c0_278 = arith.constant 0 : index
    %c0_279 = arith.constant 0 : index
    %377 = vector.load %arg3[%c3_277, %c0_278, %c0_279] : memref<16x10x784xf32, #tpu.memory_space<vmem>>, vector<1x10x784xf32>
    %378 = vector.shape_cast %377 : vector<1x10x784xf32> to vector<10x784xf32>
    %cst_280 = arith.constant dense<0.000000e+00> : vector<2x10xf32>
    %379 = tpu.matmul %376, %378, %cst_280 {dimension_numbers = #tpu.dot_dimension_numbers<[1], [1], [0], [0], [0, 0, 1, 0], [], []>} : vector<2x784xf32>, vector<10x784xf32>, vector<2x10xf32> -> vector<2x10xf32>
    %380 = arith.addf %316, %379 : vector<2x10xf32>
    %cst_281 = arith.constant 0.000000e+00 : f32
    %381 = vector.broadcast %cst_281 : f32 to vector<2x784xf32>
    %c4_282 = arith.constant 4 : index
    %c0_283 = arith.constant 0 : index
    %382 = memref.load %arg5[%c4_282, %c0_283] : memref<16x9xf32, #tpu.memory_space<smem>>
    %c0_284 = arith.constant 0 : index
    %c0_285 = arith.constant 0 : index
    %c0_286 = arith.constant 0 : index
    %383 = vector.load %arg8[%c0_284, %c0_285, %c0_286] : memref<9x2x784xf32, #tpu.memory_space<vmem>>, vector<1x2x784xf32>
    %384 = vector.shape_cast %383 : vector<1x2x784xf32> to vector<2x784xf32>
    %385 = vector.broadcast %382 : f32 to vector<2x784xf32>
    %386 = arith.mulf %385, %384 : vector<2x784xf32>
    %387 = arith.addf %381, %386 : vector<2x784xf32>
    %c4_287 = arith.constant 4 : index
    %c1_288 = arith.constant 1 : index
    %388 = memref.load %arg5[%c4_287, %c1_288] : memref<16x9xf32, #tpu.memory_space<smem>>
    %c1_289 = arith.constant 1 : index
    %c0_290 = arith.constant 0 : index
    %c0_291 = arith.constant 0 : index
    %389 = vector.load %arg8[%c1_289, %c0_290, %c0_291] : memref<9x2x784xf32, #tpu.memory_space<vmem>>, vector<1x2x784xf32>
    %390 = vector.shape_cast %389 : vector<1x2x784xf32> to vector<2x784xf32>
    %391 = vector.broadcast %388 : f32 to vector<2x784xf32>
    %392 = arith.mulf %391, %390 : vector<2x784xf32>
    %393 = arith.addf %387, %392 : vector<2x784xf32>
    %c4_292 = arith.constant 4 : index
    %c2_293 = arith.constant 2 : index
    %394 = memref.load %arg5[%c4_292, %c2_293] : memref<16x9xf32, #tpu.memory_space<smem>>
    %c2_294 = arith.constant 2 : index
    %c0_295 = arith.constant 0 : index
    %c0_296 = arith.constant 0 : index
    %395 = vector.load %arg8[%c2_294, %c0_295, %c0_296] : memref<9x2x784xf32, #tpu.memory_space<vmem>>, vector<1x2x784xf32>
    %396 = vector.shape_cast %395 : vector<1x2x784xf32> to vector<2x784xf32>
    %397 = vector.broadcast %394 : f32 to vector<2x784xf32>
    %398 = arith.mulf %397, %396 : vector<2x784xf32>
    %399 = arith.addf %393, %398 : vector<2x784xf32>
    %c4_297 = arith.constant 4 : index
    %c3_298 = arith.constant 3 : index
    %400 = memref.load %arg5[%c4_297, %c3_298] : memref<16x9xf32, #tpu.memory_space<smem>>
    %c3_299 = arith.constant 3 : index
    %c0_300 = arith.constant 0 : index
    %c0_301 = arith.constant 0 : index
    %401 = vector.load %arg8[%c3_299, %c0_300, %c0_301] : memref<9x2x784xf32, #tpu.memory_space<vmem>>, vector<1x2x784xf32>
    %402 = vector.shape_cast %401 : vector<1x2x784xf32> to vector<2x784xf32>
    %403 = vector.broadcast %400 : f32 to vector<2x784xf32>
    %404 = arith.mulf %403, %402 : vector<2x784xf32>
    %405 = arith.addf %399, %404 : vector<2x784xf32>
    %c4_302 = arith.constant 4 : index
    %c4_303 = arith.constant 4 : index
    %406 = memref.load %arg5[%c4_302, %c4_303] : memref<16x9xf32, #tpu.memory_space<smem>>
    %c4_304 = arith.constant 4 : index
    %c0_305 = arith.constant 0 : index
    %c0_306 = arith.constant 0 : index
    %407 = vector.load %arg8[%c4_304, %c0_305, %c0_306] : memref<9x2x784xf32, #tpu.memory_space<vmem>>, vector<1x2x784xf32>
    %408 = vector.shape_cast %407 : vector<1x2x784xf32> to vector<2x784xf32>
    %409 = vector.broadcast %406 : f32 to vector<2x784xf32>
    %410 = arith.mulf %409, %408 : vector<2x784xf32>
    %411 = arith.addf %405, %410 : vector<2x784xf32>
    %c4_307 = arith.constant 4 : index
    %c5_308 = arith.constant 5 : index
    %412 = memref.load %arg5[%c4_307, %c5_308] : memref<16x9xf32, #tpu.memory_space<smem>>
    %c5_309 = arith.constant 5 : index
    %c0_310 = arith.constant 0 : index
    %c0_311 = arith.constant 0 : index
    %413 = vector.load %arg8[%c5_309, %c0_310, %c0_311] : memref<9x2x784xf32, #tpu.memory_space<vmem>>, vector<1x2x784xf32>
    %414 = vector.shape_cast %413 : vector<1x2x784xf32> to vector<2x784xf32>
    %415 = vector.broadcast %412 : f32 to vector<2x784xf32>
    %416 = arith.mulf %415, %414 : vector<2x784xf32>
    %417 = arith.addf %411, %416 : vector<2x784xf32>
    %c4_312 = arith.constant 4 : index
    %c6_313 = arith.constant 6 : index
    %418 = memref.load %arg5[%c4_312, %c6_313] : memref<16x9xf32, #tpu.memory_space<smem>>
    %c6_314 = arith.constant 6 : index
    %c0_315 = arith.constant 0 : index
    %c0_316 = arith.constant 0 : index
    %419 = vector.load %arg8[%c6_314, %c0_315, %c0_316] : memref<9x2x784xf32, #tpu.memory_space<vmem>>, vector<1x2x784xf32>
    %420 = vector.shape_cast %419 : vector<1x2x784xf32> to vector<2x784xf32>
    %421 = vector.broadcast %418 : f32 to vector<2x784xf32>
    %422 = arith.mulf %421, %420 : vector<2x784xf32>
    %423 = arith.addf %417, %422 : vector<2x784xf32>
    %c4_317 = arith.constant 4 : index
    %c7_318 = arith.constant 7 : index
    %424 = memref.load %arg5[%c4_317, %c7_318] : memref<16x9xf32, #tpu.memory_space<smem>>
    %c7_319 = arith.constant 7 : index
    %c0_320 = arith.constant 0 : index
    %c0_321 = arith.constant 0 : index
    %425 = vector.load %arg8[%c7_319, %c0_320, %c0_321] : memref<9x2x784xf32, #tpu.memory_space<vmem>>, vector<1x2x784xf32>
    %426 = vector.shape_cast %425 : vector<1x2x784xf32> to vector<2x784xf32>
    %427 = vector.broadcast %424 : f32 to vector<2x784xf32>
    %428 = arith.mulf %427, %426 : vector<2x784xf32>
    %429 = arith.addf %423, %428 : vector<2x784xf32>
    %c4_322 = arith.constant 4 : index
    %c8_323 = arith.constant 8 : index
    %430 = memref.load %arg5[%c4_322, %c8_323] : memref<16x9xf32, #tpu.memory_space<smem>>
    %c8_324 = arith.constant 8 : index
    %c0_325 = arith.constant 0 : index
    %c0_326 = arith.constant 0 : index
    %431 = vector.load %arg8[%c8_324, %c0_325, %c0_326] : memref<9x2x784xf32, #tpu.memory_space<vmem>>, vector<1x2x784xf32>
    %432 = vector.shape_cast %431 : vector<1x2x784xf32> to vector<2x784xf32>
    %433 = vector.broadcast %430 : f32 to vector<2x784xf32>
    %434 = arith.mulf %433, %432 : vector<2x784xf32>
    %435 = arith.addf %429, %434 : vector<2x784xf32>
    %c4_327 = arith.constant 4 : index
    %436 = memref.load %arg6[%c4_327] : memref<16xf32, #tpu.memory_space<smem>>
    %437 = vector.broadcast %436 : f32 to vector<2x784xf32>
    %438 = arith.addf %435, %437 : vector<2x784xf32>
    %cst_328 = arith.constant 0.000000e+00 : f32
    %439 = vector.broadcast %cst_328 : f32 to vector<2x784xf32>
    %440 = arith.maximumf %438, %439 : vector<2x784xf32>
    %c4_329 = arith.constant 4 : index
    %c0_330 = arith.constant 0 : index
    %c0_331 = arith.constant 0 : index
    %441 = vector.load %arg3[%c4_329, %c0_330, %c0_331] : memref<16x10x784xf32, #tpu.memory_space<vmem>>, vector<1x10x784xf32>
    %442 = vector.shape_cast %441 : vector<1x10x784xf32> to vector<10x784xf32>
    %cst_332 = arith.constant dense<0.000000e+00> : vector<2x10xf32>
    %443 = tpu.matmul %440, %442, %cst_332 {dimension_numbers = #tpu.dot_dimension_numbers<[1], [1], [0], [0], [0, 0, 1, 0], [], []>} : vector<2x784xf32>, vector<10x784xf32>, vector<2x10xf32> -> vector<2x10xf32>
    %444 = arith.addf %380, %443 : vector<2x10xf32>
    %cst_333 = arith.constant 0.000000e+00 : f32
    %445 = vector.broadcast %cst_333 : f32 to vector<2x784xf32>
    %c5_334 = arith.constant 5 : index
    %c0_335 = arith.constant 0 : index
    %446 = memref.load %arg5[%c5_334, %c0_335] : memref<16x9xf32, #tpu.memory_space<smem>>
    %c0_336 = arith.constant 0 : index
    %c0_337 = arith.constant 0 : index
    %c0_338 = arith.constant 0 : index
    %447 = vector.load %arg8[%c0_336, %c0_337, %c0_338] : memref<9x2x784xf32, #tpu.memory_space<vmem>>, vector<1x2x784xf32>
    %448 = vector.shape_cast %447 : vector<1x2x784xf32> to vector<2x784xf32>
    %449 = vector.broadcast %446 : f32 to vector<2x784xf32>
    %450 = arith.mulf %449, %448 : vector<2x784xf32>
    %451 = arith.addf %445, %450 : vector<2x784xf32>
    %c5_339 = arith.constant 5 : index
    %c1_340 = arith.constant 1 : index
    %452 = memref.load %arg5[%c5_339, %c1_340] : memref<16x9xf32, #tpu.memory_space<smem>>
    %c1_341 = arith.constant 1 : index
    %c0_342 = arith.constant 0 : index
    %c0_343 = arith.constant 0 : index
    %453 = vector.load %arg8[%c1_341, %c0_342, %c0_343] : memref<9x2x784xf32, #tpu.memory_space<vmem>>, vector<1x2x784xf32>
    %454 = vector.shape_cast %453 : vector<1x2x784xf32> to vector<2x784xf32>
    %455 = vector.broadcast %452 : f32 to vector<2x784xf32>
    %456 = arith.mulf %455, %454 : vector<2x784xf32>
    %457 = arith.addf %451, %456 : vector<2x784xf32>
    %c5_344 = arith.constant 5 : index
    %c2_345 = arith.constant 2 : index
    %458 = memref.load %arg5[%c5_344, %c2_345] : memref<16x9xf32, #tpu.memory_space<smem>>
    %c2_346 = arith.constant 2 : index
    %c0_347 = arith.constant 0 : index
    %c0_348 = arith.constant 0 : index
    %459 = vector.load %arg8[%c2_346, %c0_347, %c0_348] : memref<9x2x784xf32, #tpu.memory_space<vmem>>, vector<1x2x784xf32>
    %460 = vector.shape_cast %459 : vector<1x2x784xf32> to vector<2x784xf32>
    %461 = vector.broadcast %458 : f32 to vector<2x784xf32>
    %462 = arith.mulf %461, %460 : vector<2x784xf32>
    %463 = arith.addf %457, %462 : vector<2x784xf32>
    %c5_349 = arith.constant 5 : index
    %c3_350 = arith.constant 3 : index
    %464 = memref.load %arg5[%c5_349, %c3_350] : memref<16x9xf32, #tpu.memory_space<smem>>
    %c3_351 = arith.constant 3 : index
    %c0_352 = arith.constant 0 : index
    %c0_353 = arith.constant 0 : index
    %465 = vector.load %arg8[%c3_351, %c0_352, %c0_353] : memref<9x2x784xf32, #tpu.memory_space<vmem>>, vector<1x2x784xf32>
    %466 = vector.shape_cast %465 : vector<1x2x784xf32> to vector<2x784xf32>
    %467 = vector.broadcast %464 : f32 to vector<2x784xf32>
    %468 = arith.mulf %467, %466 : vector<2x784xf32>
    %469 = arith.addf %463, %468 : vector<2x784xf32>
    %c5_354 = arith.constant 5 : index
    %c4_355 = arith.constant 4 : index
    %470 = memref.load %arg5[%c5_354, %c4_355] : memref<16x9xf32, #tpu.memory_space<smem>>
    %c4_356 = arith.constant 4 : index
    %c0_357 = arith.constant 0 : index
    %c0_358 = arith.constant 0 : index
    %471 = vector.load %arg8[%c4_356, %c0_357, %c0_358] : memref<9x2x784xf32, #tpu.memory_space<vmem>>, vector<1x2x784xf32>
    %472 = vector.shape_cast %471 : vector<1x2x784xf32> to vector<2x784xf32>
    %473 = vector.broadcast %470 : f32 to vector<2x784xf32>
    %474 = arith.mulf %473, %472 : vector<2x784xf32>
    %475 = arith.addf %469, %474 : vector<2x784xf32>
    %c5_359 = arith.constant 5 : index
    %c5_360 = arith.constant 5 : index
    %476 = memref.load %arg5[%c5_359, %c5_360] : memref<16x9xf32, #tpu.memory_space<smem>>
    %c5_361 = arith.constant 5 : index
    %c0_362 = arith.constant 0 : index
    %c0_363 = arith.constant 0 : index
    %477 = vector.load %arg8[%c5_361, %c0_362, %c0_363] : memref<9x2x784xf32, #tpu.memory_space<vmem>>, vector<1x2x784xf32>
    %478 = vector.shape_cast %477 : vector<1x2x784xf32> to vector<2x784xf32>
    %479 = vector.broadcast %476 : f32 to vector<2x784xf32>
    %480 = arith.mulf %479, %478 : vector<2x784xf32>
    %481 = arith.addf %475, %480 : vector<2x784xf32>
    %c5_364 = arith.constant 5 : index
    %c6_365 = arith.constant 6 : index
    %482 = memref.load %arg5[%c5_364, %c6_365] : memref<16x9xf32, #tpu.memory_space<smem>>
    %c6_366 = arith.constant 6 : index
    %c0_367 = arith.constant 0 : index
    %c0_368 = arith.constant 0 : index
    %483 = vector.load %arg8[%c6_366, %c0_367, %c0_368] : memref<9x2x784xf32, #tpu.memory_space<vmem>>, vector<1x2x784xf32>
    %484 = vector.shape_cast %483 : vector<1x2x784xf32> to vector<2x784xf32>
    %485 = vector.broadcast %482 : f32 to vector<2x784xf32>
    %486 = arith.mulf %485, %484 : vector<2x784xf32>
    %487 = arith.addf %481, %486 : vector<2x784xf32>
    %c5_369 = arith.constant 5 : index
    %c7_370 = arith.constant 7 : index
    %488 = memref.load %arg5[%c5_369, %c7_370] : memref<16x9xf32, #tpu.memory_space<smem>>
    %c7_371 = arith.constant 7 : index
    %c0_372 = arith.constant 0 : index
    %c0_373 = arith.constant 0 : index
    %489 = vector.load %arg8[%c7_371, %c0_372, %c0_373] : memref<9x2x784xf32, #tpu.memory_space<vmem>>, vector<1x2x784xf32>
    %490 = vector.shape_cast %489 : vector<1x2x784xf32> to vector<2x784xf32>
    %491 = vector.broadcast %488 : f32 to vector<2x784xf32>
    %492 = arith.mulf %491, %490 : vector<2x784xf32>
    %493 = arith.addf %487, %492 : vector<2x784xf32>
    %c5_374 = arith.constant 5 : index
    %c8_375 = arith.constant 8 : index
    %494 = memref.load %arg5[%c5_374, %c8_375] : memref<16x9xf32, #tpu.memory_space<smem>>
    %c8_376 = arith.constant 8 : index
    %c0_377 = arith.constant 0 : index
    %c0_378 = arith.constant 0 : index
    %495 = vector.load %arg8[%c8_376, %c0_377, %c0_378] : memref<9x2x784xf32, #tpu.memory_space<vmem>>, vector<1x2x784xf32>
    %496 = vector.shape_cast %495 : vector<1x2x784xf32> to vector<2x784xf32>
    %497 = vector.broadcast %494 : f32 to vector<2x784xf32>
    %498 = arith.mulf %497, %496 : vector<2x784xf32>
    %499 = arith.addf %493, %498 : vector<2x784xf32>
    %c5_379 = arith.constant 5 : index
    %500 = memref.load %arg6[%c5_379] : memref<16xf32, #tpu.memory_space<smem>>
    %501 = vector.broadcast %500 : f32 to vector<2x784xf32>
    %502 = arith.addf %499, %501 : vector<2x784xf32>
    %cst_380 = arith.constant 0.000000e+00 : f32
    %503 = vector.broadcast %cst_380 : f32 to vector<2x784xf32>
    %504 = arith.maximumf %502, %503 : vector<2x784xf32>
    %c5_381 = arith.constant 5 : index
    %c0_382 = arith.constant 0 : index
    %c0_383 = arith.constant 0 : index
    %505 = vector.load %arg3[%c5_381, %c0_382, %c0_383] : memref<16x10x784xf32, #tpu.memory_space<vmem>>, vector<1x10x784xf32>
    %506 = vector.shape_cast %505 : vector<1x10x784xf32> to vector<10x784xf32>
    %cst_384 = arith.constant dense<0.000000e+00> : vector<2x10xf32>
    %507 = tpu.matmul %504, %506, %cst_384 {dimension_numbers = #tpu.dot_dimension_numbers<[1], [1], [0], [0], [0, 0, 1, 0], [], []>} : vector<2x784xf32>, vector<10x784xf32>, vector<2x10xf32> -> vector<2x10xf32>
    %508 = arith.addf %444, %507 : vector<2x10xf32>
    %cst_385 = arith.constant 0.000000e+00 : f32
    %509 = vector.broadcast %cst_385 : f32 to vector<2x784xf32>
    %c6_386 = arith.constant 6 : index
    %c0_387 = arith.constant 0 : index
    %510 = memref.load %arg5[%c6_386, %c0_387] : memref<16x9xf32, #tpu.memory_space<smem>>
    %c0_388 = arith.constant 0 : index
    %c0_389 = arith.constant 0 : index
    %c0_390 = arith.constant 0 : index
    %511 = vector.load %arg8[%c0_388, %c0_389, %c0_390] : memref<9x2x784xf32, #tpu.memory_space<vmem>>, vector<1x2x784xf32>
    %512 = vector.shape_cast %511 : vector<1x2x784xf32> to vector<2x784xf32>
    %513 = vector.broadcast %510 : f32 to vector<2x784xf32>
    %514 = arith.mulf %513, %512 : vector<2x784xf32>
    %515 = arith.addf %509, %514 : vector<2x784xf32>
    %c6_391 = arith.constant 6 : index
    %c1_392 = arith.constant 1 : index
    %516 = memref.load %arg5[%c6_391, %c1_392] : memref<16x9xf32, #tpu.memory_space<smem>>
    %c1_393 = arith.constant 1 : index
    %c0_394 = arith.constant 0 : index
    %c0_395 = arith.constant 0 : index
    %517 = vector.load %arg8[%c1_393, %c0_394, %c0_395] : memref<9x2x784xf32, #tpu.memory_space<vmem>>, vector<1x2x784xf32>
    %518 = vector.shape_cast %517 : vector<1x2x784xf32> to vector<2x784xf32>
    %519 = vector.broadcast %516 : f32 to vector<2x784xf32>
    %520 = arith.mulf %519, %518 : vector<2x784xf32>
    %521 = arith.addf %515, %520 : vector<2x784xf32>
    %c6_396 = arith.constant 6 : index
    %c2_397 = arith.constant 2 : index
    %522 = memref.load %arg5[%c6_396, %c2_397] : memref<16x9xf32, #tpu.memory_space<smem>>
    %c2_398 = arith.constant 2 : index
    %c0_399 = arith.constant 0 : index
    %c0_400 = arith.constant 0 : index
    %523 = vector.load %arg8[%c2_398, %c0_399, %c0_400] : memref<9x2x784xf32, #tpu.memory_space<vmem>>, vector<1x2x784xf32>
    %524 = vector.shape_cast %523 : vector<1x2x784xf32> to vector<2x784xf32>
    %525 = vector.broadcast %522 : f32 to vector<2x784xf32>
    %526 = arith.mulf %525, %524 : vector<2x784xf32>
    %527 = arith.addf %521, %526 : vector<2x784xf32>
    %c6_401 = arith.constant 6 : index
    %c3_402 = arith.constant 3 : index
    %528 = memref.load %arg5[%c6_401, %c3_402] : memref<16x9xf32, #tpu.memory_space<smem>>
    %c3_403 = arith.constant 3 : index
    %c0_404 = arith.constant 0 : index
    %c0_405 = arith.constant 0 : index
    %529 = vector.load %arg8[%c3_403, %c0_404, %c0_405] : memref<9x2x784xf32, #tpu.memory_space<vmem>>, vector<1x2x784xf32>
    %530 = vector.shape_cast %529 : vector<1x2x784xf32> to vector<2x784xf32>
    %531 = vector.broadcast %528 : f32 to vector<2x784xf32>
    %532 = arith.mulf %531, %530 : vector<2x784xf32>
    %533 = arith.addf %527, %532 : vector<2x784xf32>
    %c6_406 = arith.constant 6 : index
    %c4_407 = arith.constant 4 : index
    %534 = memref.load %arg5[%c6_406, %c4_407] : memref<16x9xf32, #tpu.memory_space<smem>>
    %c4_408 = arith.constant 4 : index
    %c0_409 = arith.constant 0 : index
    %c0_410 = arith.constant 0 : index
    %535 = vector.load %arg8[%c4_408, %c0_409, %c0_410] : memref<9x2x784xf32, #tpu.memory_space<vmem>>, vector<1x2x784xf32>
    %536 = vector.shape_cast %535 : vector<1x2x784xf32> to vector<2x784xf32>
    %537 = vector.broadcast %534 : f32 to vector<2x784xf32>
    %538 = arith.mulf %537, %536 : vector<2x784xf32>
    %539 = arith.addf %533, %538 : vector<2x784xf32>
    %c6_411 = arith.constant 6 : index
    %c5_412 = arith.constant 5 : index
    %540 = memref.load %arg5[%c6_411, %c5_412] : memref<16x9xf32, #tpu.memory_space<smem>>
    %c5_413 = arith.constant 5 : index
    %c0_414 = arith.constant 0 : index
    %c0_415 = arith.constant 0 : index
    %541 = vector.load %arg8[%c5_413, %c0_414, %c0_415] : memref<9x2x784xf32, #tpu.memory_space<vmem>>, vector<1x2x784xf32>
    %542 = vector.shape_cast %541 : vector<1x2x784xf32> to vector<2x784xf32>
    %543 = vector.broadcast %540 : f32 to vector<2x784xf32>
    %544 = arith.mulf %543, %542 : vector<2x784xf32>
    %545 = arith.addf %539, %544 : vector<2x784xf32>
    %c6_416 = arith.constant 6 : index
    %c6_417 = arith.constant 6 : index
    %546 = memref.load %arg5[%c6_416, %c6_417] : memref<16x9xf32, #tpu.memory_space<smem>>
    %c6_418 = arith.constant 6 : index
    %c0_419 = arith.constant 0 : index
    %c0_420 = arith.constant 0 : index
    %547 = vector.load %arg8[%c6_418, %c0_419, %c0_420] : memref<9x2x784xf32, #tpu.memory_space<vmem>>, vector<1x2x784xf32>
    %548 = vector.shape_cast %547 : vector<1x2x784xf32> to vector<2x784xf32>
    %549 = vector.broadcast %546 : f32 to vector<2x784xf32>
    %550 = arith.mulf %549, %548 : vector<2x784xf32>
    %551 = arith.addf %545, %550 : vector<2x784xf32>
    %c6_421 = arith.constant 6 : index
    %c7_422 = arith.constant 7 : index
    %552 = memref.load %arg5[%c6_421, %c7_422] : memref<16x9xf32, #tpu.memory_space<smem>>
    %c7_423 = arith.constant 7 : index
    %c0_424 = arith.constant 0 : index
    %c0_425 = arith.constant 0 : index
    %553 = vector.load %arg8[%c7_423, %c0_424, %c0_425] : memref<9x2x784xf32, #tpu.memory_space<vmem>>, vector<1x2x784xf32>
    %554 = vector.shape_cast %553 : vector<1x2x784xf32> to vector<2x784xf32>
    %555 = vector.broadcast %552 : f32 to vector<2x784xf32>
    %556 = arith.mulf %555, %554 : vector<2x784xf32>
    %557 = arith.addf %551, %556 : vector<2x784xf32>
    %c6_426 = arith.constant 6 : index
    %c8_427 = arith.constant 8 : index
    %558 = memref.load %arg5[%c6_426, %c8_427] : memref<16x9xf32, #tpu.memory_space<smem>>
    %c8_428 = arith.constant 8 : index
    %c0_429 = arith.constant 0 : index
    %c0_430 = arith.constant 0 : index
    %559 = vector.load %arg8[%c8_428, %c0_429, %c0_430] : memref<9x2x784xf32, #tpu.memory_space<vmem>>, vector<1x2x784xf32>
    %560 = vector.shape_cast %559 : vector<1x2x784xf32> to vector<2x784xf32>
    %561 = vector.broadcast %558 : f32 to vector<2x784xf32>
    %562 = arith.mulf %561, %560 : vector<2x784xf32>
    %563 = arith.addf %557, %562 : vector<2x784xf32>
    %c6_431 = arith.constant 6 : index
    %564 = memref.load %arg6[%c6_431] : memref<16xf32, #tpu.memory_space<smem>>
    %565 = vector.broadcast %564 : f32 to vector<2x784xf32>
    %566 = arith.addf %563, %565 : vector<2x784xf32>
    %cst_432 = arith.constant 0.000000e+00 : f32
    %567 = vector.broadcast %cst_432 : f32 to vector<2x784xf32>
    %568 = arith.maximumf %566, %567 : vector<2x784xf32>
    %c6_433 = arith.constant 6 : index
    %c0_434 = arith.constant 0 : index
    %c0_435 = arith.constant 0 : index
    %569 = vector.load %arg3[%c6_433, %c0_434, %c0_435] : memref<16x10x784xf32, #tpu.memory_space<vmem>>, vector<1x10x784xf32>
    %570 = vector.shape_cast %569 : vector<1x10x784xf32> to vector<10x784xf32>
    %cst_436 = arith.constant dense<0.000000e+00> : vector<2x10xf32>
    %571 = tpu.matmul %568, %570, %cst_436 {dimension_numbers = #tpu.dot_dimension_numbers<[1], [1], [0], [0], [0, 0, 1, 0], [], []>} : vector<2x784xf32>, vector<10x784xf32>, vector<2x10xf32> -> vector<2x10xf32>
    %572 = arith.addf %508, %571 : vector<2x10xf32>
    %cst_437 = arith.constant 0.000000e+00 : f32
    %573 = vector.broadcast %cst_437 : f32 to vector<2x784xf32>
    %c7_438 = arith.constant 7 : index
    %c0_439 = arith.constant 0 : index
    %574 = memref.load %arg5[%c7_438, %c0_439] : memref<16x9xf32, #tpu.memory_space<smem>>
    %c0_440 = arith.constant 0 : index
    %c0_441 = arith.constant 0 : index
    %c0_442 = arith.constant 0 : index
    %575 = vector.load %arg8[%c0_440, %c0_441, %c0_442] : memref<9x2x784xf32, #tpu.memory_space<vmem>>, vector<1x2x784xf32>
    %576 = vector.shape_cast %575 : vector<1x2x784xf32> to vector<2x784xf32>
    %577 = vector.broadcast %574 : f32 to vector<2x784xf32>
    %578 = arith.mulf %577, %576 : vector<2x784xf32>
    %579 = arith.addf %573, %578 : vector<2x784xf32>
    %c7_443 = arith.constant 7 : index
    %c1_444 = arith.constant 1 : index
    %580 = memref.load %arg5[%c7_443, %c1_444] : memref<16x9xf32, #tpu.memory_space<smem>>
    %c1_445 = arith.constant 1 : index
    %c0_446 = arith.constant 0 : index
    %c0_447 = arith.constant 0 : index
    %581 = vector.load %arg8[%c1_445, %c0_446, %c0_447] : memref<9x2x784xf32, #tpu.memory_space<vmem>>, vector<1x2x784xf32>
    %582 = vector.shape_cast %581 : vector<1x2x784xf32> to vector<2x784xf32>
    %583 = vector.broadcast %580 : f32 to vector<2x784xf32>
    %584 = arith.mulf %583, %582 : vector<2x784xf32>
    %585 = arith.addf %579, %584 : vector<2x784xf32>
    %c7_448 = arith.constant 7 : index
    %c2_449 = arith.constant 2 : index
    %586 = memref.load %arg5[%c7_448, %c2_449] : memref<16x9xf32, #tpu.memory_space<smem>>
    %c2_450 = arith.constant 2 : index
    %c0_451 = arith.constant 0 : index
    %c0_452 = arith.constant 0 : index
    %587 = vector.load %arg8[%c2_450, %c0_451, %c0_452] : memref<9x2x784xf32, #tpu.memory_space<vmem>>, vector<1x2x784xf32>
    %588 = vector.shape_cast %587 : vector<1x2x784xf32> to vector<2x784xf32>
    %589 = vector.broadcast %586 : f32 to vector<2x784xf32>
    %590 = arith.mulf %589, %588 : vector<2x784xf32>
    %591 = arith.addf %585, %590 : vector<2x784xf32>
    %c7_453 = arith.constant 7 : index
    %c3_454 = arith.constant 3 : index
    %592 = memref.load %arg5[%c7_453, %c3_454] : memref<16x9xf32, #tpu.memory_space<smem>>
    %c3_455 = arith.constant 3 : index
    %c0_456 = arith.constant 0 : index
    %c0_457 = arith.constant 0 : index
    %593 = vector.load %arg8[%c3_455, %c0_456, %c0_457] : memref<9x2x784xf32, #tpu.memory_space<vmem>>, vector<1x2x784xf32>
    %594 = vector.shape_cast %593 : vector<1x2x784xf32> to vector<2x784xf32>
    %595 = vector.broadcast %592 : f32 to vector<2x784xf32>
    %596 = arith.mulf %595, %594 : vector<2x784xf32>
    %597 = arith.addf %591, %596 : vector<2x784xf32>
    %c7_458 = arith.constant 7 : index
    %c4_459 = arith.constant 4 : index
    %598 = memref.load %arg5[%c7_458, %c4_459] : memref<16x9xf32, #tpu.memory_space<smem>>
    %c4_460 = arith.constant 4 : index
    %c0_461 = arith.constant 0 : index
    %c0_462 = arith.constant 0 : index
    %599 = vector.load %arg8[%c4_460, %c0_461, %c0_462] : memref<9x2x784xf32, #tpu.memory_space<vmem>>, vector<1x2x784xf32>
    %600 = vector.shape_cast %599 : vector<1x2x784xf32> to vector<2x784xf32>
    %601 = vector.broadcast %598 : f32 to vector<2x784xf32>
    %602 = arith.mulf %601, %600 : vector<2x784xf32>
    %603 = arith.addf %597, %602 : vector<2x784xf32>
    %c7_463 = arith.constant 7 : index
    %c5_464 = arith.constant 5 : index
    %604 = memref.load %arg5[%c7_463, %c5_464] : memref<16x9xf32, #tpu.memory_space<smem>>
    %c5_465 = arith.constant 5 : index
    %c0_466 = arith.constant 0 : index
    %c0_467 = arith.constant 0 : index
    %605 = vector.load %arg8[%c5_465, %c0_466, %c0_467] : memref<9x2x784xf32, #tpu.memory_space<vmem>>, vector<1x2x784xf32>
    %606 = vector.shape_cast %605 : vector<1x2x784xf32> to vector<2x784xf32>
    %607 = vector.broadcast %604 : f32 to vector<2x784xf32>
    %608 = arith.mulf %607, %606 : vector<2x784xf32>
    %609 = arith.addf %603, %608 : vector<2x784xf32>
    %c7_468 = arith.constant 7 : index
    %c6_469 = arith.constant 6 : index
    %610 = memref.load %arg5[%c7_468, %c6_469] : memref<16x9xf32, #tpu.memory_space<smem>>
    %c6_470 = arith.constant 6 : index
    %c0_471 = arith.constant 0 : index
    %c0_472 = arith.constant 0 : index
    %611 = vector.load %arg8[%c6_470, %c0_471, %c0_472] : memref<9x2x784xf32, #tpu.memory_space<vmem>>, vector<1x2x784xf32>
    %612 = vector.shape_cast %611 : vector<1x2x784xf32> to vector<2x784xf32>
    %613 = vector.broadcast %610 : f32 to vector<2x784xf32>
    %614 = arith.mulf %613, %612 : vector<2x784xf32>
    %615 = arith.addf %609, %614 : vector<2x784xf32>
    %c7_473 = arith.constant 7 : index
    %c7_474 = arith.constant 7 : index
    %616 = memref.load %arg5[%c7_473, %c7_474] : memref<16x9xf32, #tpu.memory_space<smem>>
    %c7_475 = arith.constant 7 : index
    %c0_476 = arith.constant 0 : index
    %c0_477 = arith.constant 0 : index
    %617 = vector.load %arg8[%c7_475, %c0_476, %c0_477] : memref<9x2x784xf32, #tpu.memory_space<vmem>>, vector<1x2x784xf32>
    %618 = vector.shape_cast %617 : vector<1x2x784xf32> to vector<2x784xf32>
    %619 = vector.broadcast %616 : f32 to vector<2x784xf32>
    %620 = arith.mulf %619, %618 : vector<2x784xf32>
    %621 = arith.addf %615, %620 : vector<2x784xf32>
    %c7_478 = arith.constant 7 : index
    %c8_479 = arith.constant 8 : index
    %622 = memref.load %arg5[%c7_478, %c8_479] : memref<16x9xf32, #tpu.memory_space<smem>>
    %c8_480 = arith.constant 8 : index
    %c0_481 = arith.constant 0 : index
    %c0_482 = arith.constant 0 : index
    %623 = vector.load %arg8[%c8_480, %c0_481, %c0_482] : memref<9x2x784xf32, #tpu.memory_space<vmem>>, vector<1x2x784xf32>
    %624 = vector.shape_cast %623 : vector<1x2x784xf32> to vector<2x784xf32>
    %625 = vector.broadcast %622 : f32 to vector<2x784xf32>
    %626 = arith.mulf %625, %624 : vector<2x784xf32>
    %627 = arith.addf %621, %626 : vector<2x784xf32>
    %c7_483 = arith.constant 7 : index
    %628 = memref.load %arg6[%c7_483] : memref<16xf32, #tpu.memory_space<smem>>
    %629 = vector.broadcast %628 : f32 to vector<2x784xf32>
    %630 = arith.addf %627, %629 : vector<2x784xf32>
    %cst_484 = arith.constant 0.000000e+00 : f32
    %631 = vector.broadcast %cst_484 : f32 to vector<2x784xf32>
    %632 = arith.maximumf %630, %631 : vector<2x784xf32>
    %c7_485 = arith.constant 7 : index
    %c0_486 = arith.constant 0 : index
    %c0_487 = arith.constant 0 : index
    %633 = vector.load %arg3[%c7_485, %c0_486, %c0_487] : memref<16x10x784xf32, #tpu.memory_space<vmem>>, vector<1x10x784xf32>
    %634 = vector.shape_cast %633 : vector<1x10x784xf32> to vector<10x784xf32>
    %cst_488 = arith.constant dense<0.000000e+00> : vector<2x10xf32>
    %635 = tpu.matmul %632, %634, %cst_488 {dimension_numbers = #tpu.dot_dimension_numbers<[1], [1], [0], [0], [0, 0, 1, 0], [], []>} : vector<2x784xf32>, vector<10x784xf32>, vector<2x10xf32> -> vector<2x10xf32>
    %636 = arith.addf %572, %635 : vector<2x10xf32>
    %cst_489 = arith.constant 0.000000e+00 : f32
    %637 = vector.broadcast %cst_489 : f32 to vector<2x784xf32>
    %c8_490 = arith.constant 8 : index
    %c0_491 = arith.constant 0 : index
    %638 = memref.load %arg5[%c8_490, %c0_491] : memref<16x9xf32, #tpu.memory_space<smem>>
    %c0_492 = arith.constant 0 : index
    %c0_493 = arith.constant 0 : index
    %c0_494 = arith.constant 0 : index
    %639 = vector.load %arg8[%c0_492, %c0_493, %c0_494] : memref<9x2x784xf32, #tpu.memory_space<vmem>>, vector<1x2x784xf32>
    %640 = vector.shape_cast %639 : vector<1x2x784xf32> to vector<2x784xf32>
    %641 = vector.broadcast %638 : f32 to vector<2x784xf32>
    %642 = arith.mulf %641, %640 : vector<2x784xf32>
    %643 = arith.addf %637, %642 : vector<2x784xf32>
    %c8_495 = arith.constant 8 : index
    %c1_496 = arith.constant 1 : index
    %644 = memref.load %arg5[%c8_495, %c1_496] : memref<16x9xf32, #tpu.memory_space<smem>>
    %c1_497 = arith.constant 1 : index
    %c0_498 = arith.constant 0 : index
    %c0_499 = arith.constant 0 : index
    %645 = vector.load %arg8[%c1_497, %c0_498, %c0_499] : memref<9x2x784xf32, #tpu.memory_space<vmem>>, vector<1x2x784xf32>
    %646 = vector.shape_cast %645 : vector<1x2x784xf32> to vector<2x784xf32>
    %647 = vector.broadcast %644 : f32 to vector<2x784xf32>
    %648 = arith.mulf %647, %646 : vector<2x784xf32>
    %649 = arith.addf %643, %648 : vector<2x784xf32>
    %c8_500 = arith.constant 8 : index
    %c2_501 = arith.constant 2 : index
    %650 = memref.load %arg5[%c8_500, %c2_501] : memref<16x9xf32, #tpu.memory_space<smem>>
    %c2_502 = arith.constant 2 : index
    %c0_503 = arith.constant 0 : index
    %c0_504 = arith.constant 0 : index
    %651 = vector.load %arg8[%c2_502, %c0_503, %c0_504] : memref<9x2x784xf32, #tpu.memory_space<vmem>>, vector<1x2x784xf32>
    %652 = vector.shape_cast %651 : vector<1x2x784xf32> to vector<2x784xf32>
    %653 = vector.broadcast %650 : f32 to vector<2x784xf32>
    %654 = arith.mulf %653, %652 : vector<2x784xf32>
    %655 = arith.addf %649, %654 : vector<2x784xf32>
    %c8_505 = arith.constant 8 : index
    %c3_506 = arith.constant 3 : index
    %656 = memref.load %arg5[%c8_505, %c3_506] : memref<16x9xf32, #tpu.memory_space<smem>>
    %c3_507 = arith.constant 3 : index
    %c0_508 = arith.constant 0 : index
    %c0_509 = arith.constant 0 : index
    %657 = vector.load %arg8[%c3_507, %c0_508, %c0_509] : memref<9x2x784xf32, #tpu.memory_space<vmem>>, vector<1x2x784xf32>
    %658 = vector.shape_cast %657 : vector<1x2x784xf32> to vector<2x784xf32>
    %659 = vector.broadcast %656 : f32 to vector<2x784xf32>
    %660 = arith.mulf %659, %658 : vector<2x784xf32>
    %661 = arith.addf %655, %660 : vector<2x784xf32>
    %c8_510 = arith.constant 8 : index
    %c4_511 = arith.constant 4 : index
    %662 = memref.load %arg5[%c8_510, %c4_511] : memref<16x9xf32, #tpu.memory_space<smem>>
    %c4_512 = arith.constant 4 : index
    %c0_513 = arith.constant 0 : index
    %c0_514 = arith.constant 0 : index
    %663 = vector.load %arg8[%c4_512, %c0_513, %c0_514] : memref<9x2x784xf32, #tpu.memory_space<vmem>>, vector<1x2x784xf32>
    %664 = vector.shape_cast %663 : vector<1x2x784xf32> to vector<2x784xf32>
    %665 = vector.broadcast %662 : f32 to vector<2x784xf32>
    %666 = arith.mulf %665, %664 : vector<2x784xf32>
    %667 = arith.addf %661, %666 : vector<2x784xf32>
    %c8_515 = arith.constant 8 : index
    %c5_516 = arith.constant 5 : index
    %668 = memref.load %arg5[%c8_515, %c5_516] : memref<16x9xf32, #tpu.memory_space<smem>>
    %c5_517 = arith.constant 5 : index
    %c0_518 = arith.constant 0 : index
    %c0_519 = arith.constant 0 : index
    %669 = vector.load %arg8[%c5_517, %c0_518, %c0_519] : memref<9x2x784xf32, #tpu.memory_space<vmem>>, vector<1x2x784xf32>
    %670 = vector.shape_cast %669 : vector<1x2x784xf32> to vector<2x784xf32>
    %671 = vector.broadcast %668 : f32 to vector<2x784xf32>
    %672 = arith.mulf %671, %670 : vector<2x784xf32>
    %673 = arith.addf %667, %672 : vector<2x784xf32>
    %c8_520 = arith.constant 8 : index
    %c6_521 = arith.constant 6 : index
    %674 = memref.load %arg5[%c8_520, %c6_521] : memref<16x9xf32, #tpu.memory_space<smem>>
    %c6_522 = arith.constant 6 : index
    %c0_523 = arith.constant 0 : index
    %c0_524 = arith.constant 0 : index
    %675 = vector.load %arg8[%c6_522, %c0_523, %c0_524] : memref<9x2x784xf32, #tpu.memory_space<vmem>>, vector<1x2x784xf32>
    %676 = vector.shape_cast %675 : vector<1x2x784xf32> to vector<2x784xf32>
    %677 = vector.broadcast %674 : f32 to vector<2x784xf32>
    %678 = arith.mulf %677, %676 : vector<2x784xf32>
    %679 = arith.addf %673, %678 : vector<2x784xf32>
    %c8_525 = arith.constant 8 : index
    %c7_526 = arith.constant 7 : index
    %680 = memref.load %arg5[%c8_525, %c7_526] : memref<16x9xf32, #tpu.memory_space<smem>>
    %c7_527 = arith.constant 7 : index
    %c0_528 = arith.constant 0 : index
    %c0_529 = arith.constant 0 : index
    %681 = vector.load %arg8[%c7_527, %c0_528, %c0_529] : memref<9x2x784xf32, #tpu.memory_space<vmem>>, vector<1x2x784xf32>
    %682 = vector.shape_cast %681 : vector<1x2x784xf32> to vector<2x784xf32>
    %683 = vector.broadcast %680 : f32 to vector<2x784xf32>
    %684 = arith.mulf %683, %682 : vector<2x784xf32>
    %685 = arith.addf %679, %684 : vector<2x784xf32>
    %c8_530 = arith.constant 8 : index
    %c8_531 = arith.constant 8 : index
    %686 = memref.load %arg5[%c8_530, %c8_531] : memref<16x9xf32, #tpu.memory_space<smem>>
    %c8_532 = arith.constant 8 : index
    %c0_533 = arith.constant 0 : index
    %c0_534 = arith.constant 0 : index
    %687 = vector.load %arg8[%c8_532, %c0_533, %c0_534] : memref<9x2x784xf32, #tpu.memory_space<vmem>>, vector<1x2x784xf32>
    %688 = vector.shape_cast %687 : vector<1x2x784xf32> to vector<2x784xf32>
    %689 = vector.broadcast %686 : f32 to vector<2x784xf32>
    %690 = arith.mulf %689, %688 : vector<2x784xf32>
    %691 = arith.addf %685, %690 : vector<2x784xf32>
    %c8_535 = arith.constant 8 : index
    %692 = memref.load %arg6[%c8_535] : memref<16xf32, #tpu.memory_space<smem>>
    %693 = vector.broadcast %692 : f32 to vector<2x784xf32>
    %694 = arith.addf %691, %693 : vector<2x784xf32>
    %cst_536 = arith.constant 0.000000e+00 : f32
    %695 = vector.broadcast %cst_536 : f32 to vector<2x784xf32>
    %696 = arith.maximumf %694, %695 : vector<2x784xf32>
    %c8_537 = arith.constant 8 : index
    %c0_538 = arith.constant 0 : index
    %c0_539 = arith.constant 0 : index
    %697 = vector.load %arg3[%c8_537, %c0_538, %c0_539] : memref<16x10x784xf32, #tpu.memory_space<vmem>>, vector<1x10x784xf32>
    %698 = vector.shape_cast %697 : vector<1x10x784xf32> to vector<10x784xf32>
    %cst_540 = arith.constant dense<0.000000e+00> : vector<2x10xf32>
    %699 = tpu.matmul %696, %698, %cst_540 {dimension_numbers = #tpu.dot_dimension_numbers<[1], [1], [0], [0], [0, 0, 1, 0], [], []>} : vector<2x784xf32>, vector<10x784xf32>, vector<2x10xf32> -> vector<2x10xf32>
    %700 = arith.addf %636, %699 : vector<2x10xf32>
    %cst_541 = arith.constant 0.000000e+00 : f32
    %701 = vector.broadcast %cst_541 : f32 to vector<2x784xf32>
    %c9 = arith.constant 9 : index
    %c0_542 = arith.constant 0 : index
    %702 = memref.load %arg5[%c9, %c0_542] : memref<16x9xf32, #tpu.memory_space<smem>>
    %c0_543 = arith.constant 0 : index
    %c0_544 = arith.constant 0 : index
    %c0_545 = arith.constant 0 : index
    %703 = vector.load %arg8[%c0_543, %c0_544, %c0_545] : memref<9x2x784xf32, #tpu.memory_space<vmem>>, vector<1x2x784xf32>
    %704 = vector.shape_cast %703 : vector<1x2x784xf32> to vector<2x784xf32>
    %705 = vector.broadcast %702 : f32 to vector<2x784xf32>
    %706 = arith.mulf %705, %704 : vector<2x784xf32>
    %707 = arith.addf %701, %706 : vector<2x784xf32>
    %c9_546 = arith.constant 9 : index
    %c1_547 = arith.constant 1 : index
    %708 = memref.load %arg5[%c9_546, %c1_547] : memref<16x9xf32, #tpu.memory_space<smem>>
    %c1_548 = arith.constant 1 : index
    %c0_549 = arith.constant 0 : index
    %c0_550 = arith.constant 0 : index
    %709 = vector.load %arg8[%c1_548, %c0_549, %c0_550] : memref<9x2x784xf32, #tpu.memory_space<vmem>>, vector<1x2x784xf32>
    %710 = vector.shape_cast %709 : vector<1x2x784xf32> to vector<2x784xf32>
    %711 = vector.broadcast %708 : f32 to vector<2x784xf32>
    %712 = arith.mulf %711, %710 : vector<2x784xf32>
    %713 = arith.addf %707, %712 : vector<2x784xf32>
    %c9_551 = arith.constant 9 : index
    %c2_552 = arith.constant 2 : index
    %714 = memref.load %arg5[%c9_551, %c2_552] : memref<16x9xf32, #tpu.memory_space<smem>>
    %c2_553 = arith.constant 2 : index
    %c0_554 = arith.constant 0 : index
    %c0_555 = arith.constant 0 : index
    %715 = vector.load %arg8[%c2_553, %c0_554, %c0_555] : memref<9x2x784xf32, #tpu.memory_space<vmem>>, vector<1x2x784xf32>
    %716 = vector.shape_cast %715 : vector<1x2x784xf32> to vector<2x784xf32>
    %717 = vector.broadcast %714 : f32 to vector<2x784xf32>
    %718 = arith.mulf %717, %716 : vector<2x784xf32>
    %719 = arith.addf %713, %718 : vector<2x784xf32>
    %c9_556 = arith.constant 9 : index
    %c3_557 = arith.constant 3 : index
    %720 = memref.load %arg5[%c9_556, %c3_557] : memref<16x9xf32, #tpu.memory_space<smem>>
    %c3_558 = arith.constant 3 : index
    %c0_559 = arith.constant 0 : index
    %c0_560 = arith.constant 0 : index
    %721 = vector.load %arg8[%c3_558, %c0_559, %c0_560] : memref<9x2x784xf32, #tpu.memory_space<vmem>>, vector<1x2x784xf32>
    %722 = vector.shape_cast %721 : vector<1x2x784xf32> to vector<2x784xf32>
    %723 = vector.broadcast %720 : f32 to vector<2x784xf32>
    %724 = arith.mulf %723, %722 : vector<2x784xf32>
    %725 = arith.addf %719, %724 : vector<2x784xf32>
    %c9_561 = arith.constant 9 : index
    %c4_562 = arith.constant 4 : index
    %726 = memref.load %arg5[%c9_561, %c4_562] : memref<16x9xf32, #tpu.memory_space<smem>>
    %c4_563 = arith.constant 4 : index
    %c0_564 = arith.constant 0 : index
    %c0_565 = arith.constant 0 : index
    %727 = vector.load %arg8[%c4_563, %c0_564, %c0_565] : memref<9x2x784xf32, #tpu.memory_space<vmem>>, vector<1x2x784xf32>
    %728 = vector.shape_cast %727 : vector<1x2x784xf32> to vector<2x784xf32>
    %729 = vector.broadcast %726 : f32 to vector<2x784xf32>
    %730 = arith.mulf %729, %728 : vector<2x784xf32>
    %731 = arith.addf %725, %730 : vector<2x784xf32>
    %c9_566 = arith.constant 9 : index
    %c5_567 = arith.constant 5 : index
    %732 = memref.load %arg5[%c9_566, %c5_567] : memref<16x9xf32, #tpu.memory_space<smem>>
    %c5_568 = arith.constant 5 : index
    %c0_569 = arith.constant 0 : index
    %c0_570 = arith.constant 0 : index
    %733 = vector.load %arg8[%c5_568, %c0_569, %c0_570] : memref<9x2x784xf32, #tpu.memory_space<vmem>>, vector<1x2x784xf32>
    %734 = vector.shape_cast %733 : vector<1x2x784xf32> to vector<2x784xf32>
    %735 = vector.broadcast %732 : f32 to vector<2x784xf32>
    %736 = arith.mulf %735, %734 : vector<2x784xf32>
    %737 = arith.addf %731, %736 : vector<2x784xf32>
    %c9_571 = arith.constant 9 : index
    %c6_572 = arith.constant 6 : index
    %738 = memref.load %arg5[%c9_571, %c6_572] : memref<16x9xf32, #tpu.memory_space<smem>>
    %c6_573 = arith.constant 6 : index
    %c0_574 = arith.constant 0 : index
    %c0_575 = arith.constant 0 : index
    %739 = vector.load %arg8[%c6_573, %c0_574, %c0_575] : memref<9x2x784xf32, #tpu.memory_space<vmem>>, vector<1x2x784xf32>
    %740 = vector.shape_cast %739 : vector<1x2x784xf32> to vector<2x784xf32>
    %741 = vector.broadcast %738 : f32 to vector<2x784xf32>
    %742 = arith.mulf %741, %740 : vector<2x784xf32>
    %743 = arith.addf %737, %742 : vector<2x784xf32>
    %c9_576 = arith.constant 9 : index
    %c7_577 = arith.constant 7 : index
    %744 = memref.load %arg5[%c9_576, %c7_577] : memref<16x9xf32, #tpu.memory_space<smem>>
    %c7_578 = arith.constant 7 : index
    %c0_579 = arith.constant 0 : index
    %c0_580 = arith.constant 0 : index
    %745 = vector.load %arg8[%c7_578, %c0_579, %c0_580] : memref<9x2x784xf32, #tpu.memory_space<vmem>>, vector<1x2x784xf32>
    %746 = vector.shape_cast %745 : vector<1x2x784xf32> to vector<2x784xf32>
    %747 = vector.broadcast %744 : f32 to vector<2x784xf32>
    %748 = arith.mulf %747, %746 : vector<2x784xf32>
    %749 = arith.addf %743, %748 : vector<2x784xf32>
    %c9_581 = arith.constant 9 : index
    %c8_582 = arith.constant 8 : index
    %750 = memref.load %arg5[%c9_581, %c8_582] : memref<16x9xf32, #tpu.memory_space<smem>>
    %c8_583 = arith.constant 8 : index
    %c0_584 = arith.constant 0 : index
    %c0_585 = arith.constant 0 : index
    %751 = vector.load %arg8[%c8_583, %c0_584, %c0_585] : memref<9x2x784xf32, #tpu.memory_space<vmem>>, vector<1x2x784xf32>
    %752 = vector.shape_cast %751 : vector<1x2x784xf32> to vector<2x784xf32>
    %753 = vector.broadcast %750 : f32 to vector<2x784xf32>
    %754 = arith.mulf %753, %752 : vector<2x784xf32>
    %755 = arith.addf %749, %754 : vector<2x784xf32>
    %c9_586 = arith.constant 9 : index
    %756 = memref.load %arg6[%c9_586] : memref<16xf32, #tpu.memory_space<smem>>
    %757 = vector.broadcast %756 : f32 to vector<2x784xf32>
    %758 = arith.addf %755, %757 : vector<2x784xf32>
    %cst_587 = arith.constant 0.000000e+00 : f32
    %759 = vector.broadcast %cst_587 : f32 to vector<2x784xf32>
    %760 = arith.maximumf %758, %759 : vector<2x784xf32>
    %c9_588 = arith.constant 9 : index
    %c0_589 = arith.constant 0 : index
    %c0_590 = arith.constant 0 : index
    %761 = vector.load %arg3[%c9_588, %c0_589, %c0_590] : memref<16x10x784xf32, #tpu.memory_space<vmem>>, vector<1x10x784xf32>
    %762 = vector.shape_cast %761 : vector<1x10x784xf32> to vector<10x784xf32>
    %cst_591 = arith.constant dense<0.000000e+00> : vector<2x10xf32>
    %763 = tpu.matmul %760, %762, %cst_591 {dimension_numbers = #tpu.dot_dimension_numbers<[1], [1], [0], [0], [0, 0, 1, 0], [], []>} : vector<2x784xf32>, vector<10x784xf32>, vector<2x10xf32> -> vector<2x10xf32>
    %764 = arith.addf %700, %763 : vector<2x10xf32>
    %cst_592 = arith.constant 0.000000e+00 : f32
    %765 = vector.broadcast %cst_592 : f32 to vector<2x784xf32>
    %c10 = arith.constant 10 : index
    %c0_593 = arith.constant 0 : index
    %766 = memref.load %arg5[%c10, %c0_593] : memref<16x9xf32, #tpu.memory_space<smem>>
    %c0_594 = arith.constant 0 : index
    %c0_595 = arith.constant 0 : index
    %c0_596 = arith.constant 0 : index
    %767 = vector.load %arg8[%c0_594, %c0_595, %c0_596] : memref<9x2x784xf32, #tpu.memory_space<vmem>>, vector<1x2x784xf32>
    %768 = vector.shape_cast %767 : vector<1x2x784xf32> to vector<2x784xf32>
    %769 = vector.broadcast %766 : f32 to vector<2x784xf32>
    %770 = arith.mulf %769, %768 : vector<2x784xf32>
    %771 = arith.addf %765, %770 : vector<2x784xf32>
    %c10_597 = arith.constant 10 : index
    %c1_598 = arith.constant 1 : index
    %772 = memref.load %arg5[%c10_597, %c1_598] : memref<16x9xf32, #tpu.memory_space<smem>>
    %c1_599 = arith.constant 1 : index
    %c0_600 = arith.constant 0 : index
    %c0_601 = arith.constant 0 : index
    %773 = vector.load %arg8[%c1_599, %c0_600, %c0_601] : memref<9x2x784xf32, #tpu.memory_space<vmem>>, vector<1x2x784xf32>
    %774 = vector.shape_cast %773 : vector<1x2x784xf32> to vector<2x784xf32>
    %775 = vector.broadcast %772 : f32 to vector<2x784xf32>
    %776 = arith.mulf %775, %774 : vector<2x784xf32>
    %777 = arith.addf %771, %776 : vector<2x784xf32>
    %c10_602 = arith.constant 10 : index
    %c2_603 = arith.constant 2 : index
    %778 = memref.load %arg5[%c10_602, %c2_603] : memref<16x9xf32, #tpu.memory_space<smem>>
    %c2_604 = arith.constant 2 : index
    %c0_605 = arith.constant 0 : index
    %c0_606 = arith.constant 0 : index
    %779 = vector.load %arg8[%c2_604, %c0_605, %c0_606] : memref<9x2x784xf32, #tpu.memory_space<vmem>>, vector<1x2x784xf32>
    %780 = vector.shape_cast %779 : vector<1x2x784xf32> to vector<2x784xf32>
    %781 = vector.broadcast %778 : f32 to vector<2x784xf32>
    %782 = arith.mulf %781, %780 : vector<2x784xf32>
    %783 = arith.addf %777, %782 : vector<2x784xf32>
    %c10_607 = arith.constant 10 : index
    %c3_608 = arith.constant 3 : index
    %784 = memref.load %arg5[%c10_607, %c3_608] : memref<16x9xf32, #tpu.memory_space<smem>>
    %c3_609 = arith.constant 3 : index
    %c0_610 = arith.constant 0 : index
    %c0_611 = arith.constant 0 : index
    %785 = vector.load %arg8[%c3_609, %c0_610, %c0_611] : memref<9x2x784xf32, #tpu.memory_space<vmem>>, vector<1x2x784xf32>
    %786 = vector.shape_cast %785 : vector<1x2x784xf32> to vector<2x784xf32>
    %787 = vector.broadcast %784 : f32 to vector<2x784xf32>
    %788 = arith.mulf %787, %786 : vector<2x784xf32>
    %789 = arith.addf %783, %788 : vector<2x784xf32>
    %c10_612 = arith.constant 10 : index
    %c4_613 = arith.constant 4 : index
    %790 = memref.load %arg5[%c10_612, %c4_613] : memref<16x9xf32, #tpu.memory_space<smem>>
    %c4_614 = arith.constant 4 : index
    %c0_615 = arith.constant 0 : index
    %c0_616 = arith.constant 0 : index
    %791 = vector.load %arg8[%c4_614, %c0_615, %c0_616] : memref<9x2x784xf32, #tpu.memory_space<vmem>>, vector<1x2x784xf32>
    %792 = vector.shape_cast %791 : vector<1x2x784xf32> to vector<2x784xf32>
    %793 = vector.broadcast %790 : f32 to vector<2x784xf32>
    %794 = arith.mulf %793, %792 : vector<2x784xf32>
    %795 = arith.addf %789, %794 : vector<2x784xf32>
    %c10_617 = arith.constant 10 : index
    %c5_618 = arith.constant 5 : index
    %796 = memref.load %arg5[%c10_617, %c5_618] : memref<16x9xf32, #tpu.memory_space<smem>>
    %c5_619 = arith.constant 5 : index
    %c0_620 = arith.constant 0 : index
    %c0_621 = arith.constant 0 : index
    %797 = vector.load %arg8[%c5_619, %c0_620, %c0_621] : memref<9x2x784xf32, #tpu.memory_space<vmem>>, vector<1x2x784xf32>
    %798 = vector.shape_cast %797 : vector<1x2x784xf32> to vector<2x784xf32>
    %799 = vector.broadcast %796 : f32 to vector<2x784xf32>
    %800 = arith.mulf %799, %798 : vector<2x784xf32>
    %801 = arith.addf %795, %800 : vector<2x784xf32>
    %c10_622 = arith.constant 10 : index
    %c6_623 = arith.constant 6 : index
    %802 = memref.load %arg5[%c10_622, %c6_623] : memref<16x9xf32, #tpu.memory_space<smem>>
    %c6_624 = arith.constant 6 : index
    %c0_625 = arith.constant 0 : index
    %c0_626 = arith.constant 0 : index
    %803 = vector.load %arg8[%c6_624, %c0_625, %c0_626] : memref<9x2x784xf32, #tpu.memory_space<vmem>>, vector<1x2x784xf32>
    %804 = vector.shape_cast %803 : vector<1x2x784xf32> to vector<2x784xf32>
    %805 = vector.broadcast %802 : f32 to vector<2x784xf32>
    %806 = arith.mulf %805, %804 : vector<2x784xf32>
    %807 = arith.addf %801, %806 : vector<2x784xf32>
    %c10_627 = arith.constant 10 : index
    %c7_628 = arith.constant 7 : index
    %808 = memref.load %arg5[%c10_627, %c7_628] : memref<16x9xf32, #tpu.memory_space<smem>>
    %c7_629 = arith.constant 7 : index
    %c0_630 = arith.constant 0 : index
    %c0_631 = arith.constant 0 : index
    %809 = vector.load %arg8[%c7_629, %c0_630, %c0_631] : memref<9x2x784xf32, #tpu.memory_space<vmem>>, vector<1x2x784xf32>
    %810 = vector.shape_cast %809 : vector<1x2x784xf32> to vector<2x784xf32>
    %811 = vector.broadcast %808 : f32 to vector<2x784xf32>
    %812 = arith.mulf %811, %810 : vector<2x784xf32>
    %813 = arith.addf %807, %812 : vector<2x784xf32>
    %c10_632 = arith.constant 10 : index
    %c8_633 = arith.constant 8 : index
    %814 = memref.load %arg5[%c10_632, %c8_633] : memref<16x9xf32, #tpu.memory_space<smem>>
    %c8_634 = arith.constant 8 : index
    %c0_635 = arith.constant 0 : index
    %c0_636 = arith.constant 0 : index
    %815 = vector.load %arg8[%c8_634, %c0_635, %c0_636] : memref<9x2x784xf32, #tpu.memory_space<vmem>>, vector<1x2x784xf32>
    %816 = vector.shape_cast %815 : vector<1x2x784xf32> to vector<2x784xf32>
    %817 = vector.broadcast %814 : f32 to vector<2x784xf32>
    %818 = arith.mulf %817, %816 : vector<2x784xf32>
    %819 = arith.addf %813, %818 : vector<2x784xf32>
    %c10_637 = arith.constant 10 : index
    %820 = memref.load %arg6[%c10_637] : memref<16xf32, #tpu.memory_space<smem>>
    %821 = vector.broadcast %820 : f32 to vector<2x784xf32>
    %822 = arith.addf %819, %821 : vector<2x784xf32>
    %cst_638 = arith.constant 0.000000e+00 : f32
    %823 = vector.broadcast %cst_638 : f32 to vector<2x784xf32>
    %824 = arith.maximumf %822, %823 : vector<2x784xf32>
    %c10_639 = arith.constant 10 : index
    %c0_640 = arith.constant 0 : index
    %c0_641 = arith.constant 0 : index
    %825 = vector.load %arg3[%c10_639, %c0_640, %c0_641] : memref<16x10x784xf32, #tpu.memory_space<vmem>>, vector<1x10x784xf32>
    %826 = vector.shape_cast %825 : vector<1x10x784xf32> to vector<10x784xf32>
    %cst_642 = arith.constant dense<0.000000e+00> : vector<2x10xf32>
    %827 = tpu.matmul %824, %826, %cst_642 {dimension_numbers = #tpu.dot_dimension_numbers<[1], [1], [0], [0], [0, 0, 1, 0], [], []>} : vector<2x784xf32>, vector<10x784xf32>, vector<2x10xf32> -> vector<2x10xf32>
    %828 = arith.addf %764, %827 : vector<2x10xf32>
    %cst_643 = arith.constant 0.000000e+00 : f32
    %829 = vector.broadcast %cst_643 : f32 to vector<2x784xf32>
    %c11 = arith.constant 11 : index
    %c0_644 = arith.constant 0 : index
    %830 = memref.load %arg5[%c11, %c0_644] : memref<16x9xf32, #tpu.memory_space<smem>>
    %c0_645 = arith.constant 0 : index
    %c0_646 = arith.constant 0 : index
    %c0_647 = arith.constant 0 : index
    %831 = vector.load %arg8[%c0_645, %c0_646, %c0_647] : memref<9x2x784xf32, #tpu.memory_space<vmem>>, vector<1x2x784xf32>
    %832 = vector.shape_cast %831 : vector<1x2x784xf32> to vector<2x784xf32>
    %833 = vector.broadcast %830 : f32 to vector<2x784xf32>
    %834 = arith.mulf %833, %832 : vector<2x784xf32>
    %835 = arith.addf %829, %834 : vector<2x784xf32>
    %c11_648 = arith.constant 11 : index
    %c1_649 = arith.constant 1 : index
    %836 = memref.load %arg5[%c11_648, %c1_649] : memref<16x9xf32, #tpu.memory_space<smem>>
    %c1_650 = arith.constant 1 : index
    %c0_651 = arith.constant 0 : index
    %c0_652 = arith.constant 0 : index
    %837 = vector.load %arg8[%c1_650, %c0_651, %c0_652] : memref<9x2x784xf32, #tpu.memory_space<vmem>>, vector<1x2x784xf32>
    %838 = vector.shape_cast %837 : vector<1x2x784xf32> to vector<2x784xf32>
    %839 = vector.broadcast %836 : f32 to vector<2x784xf32>
    %840 = arith.mulf %839, %838 : vector<2x784xf32>
    %841 = arith.addf %835, %840 : vector<2x784xf32>
    %c11_653 = arith.constant 11 : index
    %c2_654 = arith.constant 2 : index
    %842 = memref.load %arg5[%c11_653, %c2_654] : memref<16x9xf32, #tpu.memory_space<smem>>
    %c2_655 = arith.constant 2 : index
    %c0_656 = arith.constant 0 : index
    %c0_657 = arith.constant 0 : index
    %843 = vector.load %arg8[%c2_655, %c0_656, %c0_657] : memref<9x2x784xf32, #tpu.memory_space<vmem>>, vector<1x2x784xf32>
    %844 = vector.shape_cast %843 : vector<1x2x784xf32> to vector<2x784xf32>
    %845 = vector.broadcast %842 : f32 to vector<2x784xf32>
    %846 = arith.mulf %845, %844 : vector<2x784xf32>
    %847 = arith.addf %841, %846 : vector<2x784xf32>
    %c11_658 = arith.constant 11 : index
    %c3_659 = arith.constant 3 : index
    %848 = memref.load %arg5[%c11_658, %c3_659] : memref<16x9xf32, #tpu.memory_space<smem>>
    %c3_660 = arith.constant 3 : index
    %c0_661 = arith.constant 0 : index
    %c0_662 = arith.constant 0 : index
    %849 = vector.load %arg8[%c3_660, %c0_661, %c0_662] : memref<9x2x784xf32, #tpu.memory_space<vmem>>, vector<1x2x784xf32>
    %850 = vector.shape_cast %849 : vector<1x2x784xf32> to vector<2x784xf32>
    %851 = vector.broadcast %848 : f32 to vector<2x784xf32>
    %852 = arith.mulf %851, %850 : vector<2x784xf32>
    %853 = arith.addf %847, %852 : vector<2x784xf32>
    %c11_663 = arith.constant 11 : index
    %c4_664 = arith.constant 4 : index
    %854 = memref.load %arg5[%c11_663, %c4_664] : memref<16x9xf32, #tpu.memory_space<smem>>
    %c4_665 = arith.constant 4 : index
    %c0_666 = arith.constant 0 : index
    %c0_667 = arith.constant 0 : index
    %855 = vector.load %arg8[%c4_665, %c0_666, %c0_667] : memref<9x2x784xf32, #tpu.memory_space<vmem>>, vector<1x2x784xf32>
    %856 = vector.shape_cast %855 : vector<1x2x784xf32> to vector<2x784xf32>
    %857 = vector.broadcast %854 : f32 to vector<2x784xf32>
    %858 = arith.mulf %857, %856 : vector<2x784xf32>
    %859 = arith.addf %853, %858 : vector<2x784xf32>
    %c11_668 = arith.constant 11 : index
    %c5_669 = arith.constant 5 : index
    %860 = memref.load %arg5[%c11_668, %c5_669] : memref<16x9xf32, #tpu.memory_space<smem>>
    %c5_670 = arith.constant 5 : index
    %c0_671 = arith.constant 0 : index
    %c0_672 = arith.constant 0 : index
    %861 = vector.load %arg8[%c5_670, %c0_671, %c0_672] : memref<9x2x784xf32, #tpu.memory_space<vmem>>, vector<1x2x784xf32>
    %862 = vector.shape_cast %861 : vector<1x2x784xf32> to vector<2x784xf32>
    %863 = vector.broadcast %860 : f32 to vector<2x784xf32>
    %864 = arith.mulf %863, %862 : vector<2x784xf32>
    %865 = arith.addf %859, %864 : vector<2x784xf32>
    %c11_673 = arith.constant 11 : index
    %c6_674 = arith.constant 6 : index
    %866 = memref.load %arg5[%c11_673, %c6_674] : memref<16x9xf32, #tpu.memory_space<smem>>
    %c6_675 = arith.constant 6 : index
    %c0_676 = arith.constant 0 : index
    %c0_677 = arith.constant 0 : index
    %867 = vector.load %arg8[%c6_675, %c0_676, %c0_677] : memref<9x2x784xf32, #tpu.memory_space<vmem>>, vector<1x2x784xf32>
    %868 = vector.shape_cast %867 : vector<1x2x784xf32> to vector<2x784xf32>
    %869 = vector.broadcast %866 : f32 to vector<2x784xf32>
    %870 = arith.mulf %869, %868 : vector<2x784xf32>
    %871 = arith.addf %865, %870 : vector<2x784xf32>
    %c11_678 = arith.constant 11 : index
    %c7_679 = arith.constant 7 : index
    %872 = memref.load %arg5[%c11_678, %c7_679] : memref<16x9xf32, #tpu.memory_space<smem>>
    %c7_680 = arith.constant 7 : index
    %c0_681 = arith.constant 0 : index
    %c0_682 = arith.constant 0 : index
    %873 = vector.load %arg8[%c7_680, %c0_681, %c0_682] : memref<9x2x784xf32, #tpu.memory_space<vmem>>, vector<1x2x784xf32>
    %874 = vector.shape_cast %873 : vector<1x2x784xf32> to vector<2x784xf32>
    %875 = vector.broadcast %872 : f32 to vector<2x784xf32>
    %876 = arith.mulf %875, %874 : vector<2x784xf32>
    %877 = arith.addf %871, %876 : vector<2x784xf32>
    %c11_683 = arith.constant 11 : index
    %c8_684 = arith.constant 8 : index
    %878 = memref.load %arg5[%c11_683, %c8_684] : memref<16x9xf32, #tpu.memory_space<smem>>
    %c8_685 = arith.constant 8 : index
    %c0_686 = arith.constant 0 : index
    %c0_687 = arith.constant 0 : index
    %879 = vector.load %arg8[%c8_685, %c0_686, %c0_687] : memref<9x2x784xf32, #tpu.memory_space<vmem>>, vector<1x2x784xf32>
    %880 = vector.shape_cast %879 : vector<1x2x784xf32> to vector<2x784xf32>
    %881 = vector.broadcast %878 : f32 to vector<2x784xf32>
    %882 = arith.mulf %881, %880 : vector<2x784xf32>
    %883 = arith.addf %877, %882 : vector<2x784xf32>
    %c11_688 = arith.constant 11 : index
    %884 = memref.load %arg6[%c11_688] : memref<16xf32, #tpu.memory_space<smem>>
    %885 = vector.broadcast %884 : f32 to vector<2x784xf32>
    %886 = arith.addf %883, %885 : vector<2x784xf32>
    %cst_689 = arith.constant 0.000000e+00 : f32
    %887 = vector.broadcast %cst_689 : f32 to vector<2x784xf32>
    %888 = arith.maximumf %886, %887 : vector<2x784xf32>
    %c11_690 = arith.constant 11 : index
    %c0_691 = arith.constant 0 : index
    %c0_692 = arith.constant 0 : index
    %889 = vector.load %arg3[%c11_690, %c0_691, %c0_692] : memref<16x10x784xf32, #tpu.memory_space<vmem>>, vector<1x10x784xf32>
    %890 = vector.shape_cast %889 : vector<1x10x784xf32> to vector<10x784xf32>
    %cst_693 = arith.constant dense<0.000000e+00> : vector<2x10xf32>
    %891 = tpu.matmul %888, %890, %cst_693 {dimension_numbers = #tpu.dot_dimension_numbers<[1], [1], [0], [0], [0, 0, 1, 0], [], []>} : vector<2x784xf32>, vector<10x784xf32>, vector<2x10xf32> -> vector<2x10xf32>
    %892 = arith.addf %828, %891 : vector<2x10xf32>
    %cst_694 = arith.constant 0.000000e+00 : f32
    %893 = vector.broadcast %cst_694 : f32 to vector<2x784xf32>
    %c12 = arith.constant 12 : index
    %c0_695 = arith.constant 0 : index
    %894 = memref.load %arg5[%c12, %c0_695] : memref<16x9xf32, #tpu.memory_space<smem>>
    %c0_696 = arith.constant 0 : index
    %c0_697 = arith.constant 0 : index
    %c0_698 = arith.constant 0 : index
    %895 = vector.load %arg8[%c0_696, %c0_697, %c0_698] : memref<9x2x784xf32, #tpu.memory_space<vmem>>, vector<1x2x784xf32>
    %896 = vector.shape_cast %895 : vector<1x2x784xf32> to vector<2x784xf32>
    %897 = vector.broadcast %894 : f32 to vector<2x784xf32>
    %898 = arith.mulf %897, %896 : vector<2x784xf32>
    %899 = arith.addf %893, %898 : vector<2x784xf32>
    %c12_699 = arith.constant 12 : index
    %c1_700 = arith.constant 1 : index
    %900 = memref.load %arg5[%c12_699, %c1_700] : memref<16x9xf32, #tpu.memory_space<smem>>
    %c1_701 = arith.constant 1 : index
    %c0_702 = arith.constant 0 : index
    %c0_703 = arith.constant 0 : index
    %901 = vector.load %arg8[%c1_701, %c0_702, %c0_703] : memref<9x2x784xf32, #tpu.memory_space<vmem>>, vector<1x2x784xf32>
    %902 = vector.shape_cast %901 : vector<1x2x784xf32> to vector<2x784xf32>
    %903 = vector.broadcast %900 : f32 to vector<2x784xf32>
    %904 = arith.mulf %903, %902 : vector<2x784xf32>
    %905 = arith.addf %899, %904 : vector<2x784xf32>
    %c12_704 = arith.constant 12 : index
    %c2_705 = arith.constant 2 : index
    %906 = memref.load %arg5[%c12_704, %c2_705] : memref<16x9xf32, #tpu.memory_space<smem>>
    %c2_706 = arith.constant 2 : index
    %c0_707 = arith.constant 0 : index
    %c0_708 = arith.constant 0 : index
    %907 = vector.load %arg8[%c2_706, %c0_707, %c0_708] : memref<9x2x784xf32, #tpu.memory_space<vmem>>, vector<1x2x784xf32>
    %908 = vector.shape_cast %907 : vector<1x2x784xf32> to vector<2x784xf32>
    %909 = vector.broadcast %906 : f32 to vector<2x784xf32>
    %910 = arith.mulf %909, %908 : vector<2x784xf32>
    %911 = arith.addf %905, %910 : vector<2x784xf32>
    %c12_709 = arith.constant 12 : index
    %c3_710 = arith.constant 3 : index
    %912 = memref.load %arg5[%c12_709, %c3_710] : memref<16x9xf32, #tpu.memory_space<smem>>
    %c3_711 = arith.constant 3 : index
    %c0_712 = arith.constant 0 : index
    %c0_713 = arith.constant 0 : index
    %913 = vector.load %arg8[%c3_711, %c0_712, %c0_713] : memref<9x2x784xf32, #tpu.memory_space<vmem>>, vector<1x2x784xf32>
    %914 = vector.shape_cast %913 : vector<1x2x784xf32> to vector<2x784xf32>
    %915 = vector.broadcast %912 : f32 to vector<2x784xf32>
    %916 = arith.mulf %915, %914 : vector<2x784xf32>
    %917 = arith.addf %911, %916 : vector<2x784xf32>
    %c12_714 = arith.constant 12 : index
    %c4_715 = arith.constant 4 : index
    %918 = memref.load %arg5[%c12_714, %c4_715] : memref<16x9xf32, #tpu.memory_space<smem>>
    %c4_716 = arith.constant 4 : index
    %c0_717 = arith.constant 0 : index
    %c0_718 = arith.constant 0 : index
    %919 = vector.load %arg8[%c4_716, %c0_717, %c0_718] : memref<9x2x784xf32, #tpu.memory_space<vmem>>, vector<1x2x784xf32>
    %920 = vector.shape_cast %919 : vector<1x2x784xf32> to vector<2x784xf32>
    %921 = vector.broadcast %918 : f32 to vector<2x784xf32>
    %922 = arith.mulf %921, %920 : vector<2x784xf32>
    %923 = arith.addf %917, %922 : vector<2x784xf32>
    %c12_719 = arith.constant 12 : index
    %c5_720 = arith.constant 5 : index
    %924 = memref.load %arg5[%c12_719, %c5_720] : memref<16x9xf32, #tpu.memory_space<smem>>
    %c5_721 = arith.constant 5 : index
    %c0_722 = arith.constant 0 : index
    %c0_723 = arith.constant 0 : index
    %925 = vector.load %arg8[%c5_721, %c0_722, %c0_723] : memref<9x2x784xf32, #tpu.memory_space<vmem>>, vector<1x2x784xf32>
    %926 = vector.shape_cast %925 : vector<1x2x784xf32> to vector<2x784xf32>
    %927 = vector.broadcast %924 : f32 to vector<2x784xf32>
    %928 = arith.mulf %927, %926 : vector<2x784xf32>
    %929 = arith.addf %923, %928 : vector<2x784xf32>
    %c12_724 = arith.constant 12 : index
    %c6_725 = arith.constant 6 : index
    %930 = memref.load %arg5[%c12_724, %c6_725] : memref<16x9xf32, #tpu.memory_space<smem>>
    %c6_726 = arith.constant 6 : index
    %c0_727 = arith.constant 0 : index
    %c0_728 = arith.constant 0 : index
    %931 = vector.load %arg8[%c6_726, %c0_727, %c0_728] : memref<9x2x784xf32, #tpu.memory_space<vmem>>, vector<1x2x784xf32>
    %932 = vector.shape_cast %931 : vector<1x2x784xf32> to vector<2x784xf32>
    %933 = vector.broadcast %930 : f32 to vector<2x784xf32>
    %934 = arith.mulf %933, %932 : vector<2x784xf32>
    %935 = arith.addf %929, %934 : vector<2x784xf32>
    %c12_729 = arith.constant 12 : index
    %c7_730 = arith.constant 7 : index
    %936 = memref.load %arg5[%c12_729, %c7_730] : memref<16x9xf32, #tpu.memory_space<smem>>
    %c7_731 = arith.constant 7 : index
    %c0_732 = arith.constant 0 : index
    %c0_733 = arith.constant 0 : index
    %937 = vector.load %arg8[%c7_731, %c0_732, %c0_733] : memref<9x2x784xf32, #tpu.memory_space<vmem>>, vector<1x2x784xf32>
    %938 = vector.shape_cast %937 : vector<1x2x784xf32> to vector<2x784xf32>
    %939 = vector.broadcast %936 : f32 to vector<2x784xf32>
    %940 = arith.mulf %939, %938 : vector<2x784xf32>
    %941 = arith.addf %935, %940 : vector<2x784xf32>
    %c12_734 = arith.constant 12 : index
    %c8_735 = arith.constant 8 : index
    %942 = memref.load %arg5[%c12_734, %c8_735] : memref<16x9xf32, #tpu.memory_space<smem>>
    %c8_736 = arith.constant 8 : index
    %c0_737 = arith.constant 0 : index
    %c0_738 = arith.constant 0 : index
    %943 = vector.load %arg8[%c8_736, %c0_737, %c0_738] : memref<9x2x784xf32, #tpu.memory_space<vmem>>, vector<1x2x784xf32>
    %944 = vector.shape_cast %943 : vector<1x2x784xf32> to vector<2x784xf32>
    %945 = vector.broadcast %942 : f32 to vector<2x784xf32>
    %946 = arith.mulf %945, %944 : vector<2x784xf32>
    %947 = arith.addf %941, %946 : vector<2x784xf32>
    %c12_739 = arith.constant 12 : index
    %948 = memref.load %arg6[%c12_739] : memref<16xf32, #tpu.memory_space<smem>>
    %949 = vector.broadcast %948 : f32 to vector<2x784xf32>
    %950 = arith.addf %947, %949 : vector<2x784xf32>
    %cst_740 = arith.constant 0.000000e+00 : f32
    %951 = vector.broadcast %cst_740 : f32 to vector<2x784xf32>
    %952 = arith.maximumf %950, %951 : vector<2x784xf32>
    %c12_741 = arith.constant 12 : index
    %c0_742 = arith.constant 0 : index
    %c0_743 = arith.constant 0 : index
    %953 = vector.load %arg3[%c12_741, %c0_742, %c0_743] : memref<16x10x784xf32, #tpu.memory_space<vmem>>, vector<1x10x784xf32>
    %954 = vector.shape_cast %953 : vector<1x10x784xf32> to vector<10x784xf32>
    %cst_744 = arith.constant dense<0.000000e+00> : vector<2x10xf32>
    %955 = tpu.matmul %952, %954, %cst_744 {dimension_numbers = #tpu.dot_dimension_numbers<[1], [1], [0], [0], [0, 0, 1, 0], [], []>} : vector<2x784xf32>, vector<10x784xf32>, vector<2x10xf32> -> vector<2x10xf32>
    %956 = arith.addf %892, %955 : vector<2x10xf32>
    %cst_745 = arith.constant 0.000000e+00 : f32
    %957 = vector.broadcast %cst_745 : f32 to vector<2x784xf32>
    %c13 = arith.constant 13 : index
    %c0_746 = arith.constant 0 : index
    %958 = memref.load %arg5[%c13, %c0_746] : memref<16x9xf32, #tpu.memory_space<smem>>
    %c0_747 = arith.constant 0 : index
    %c0_748 = arith.constant 0 : index
    %c0_749 = arith.constant 0 : index
    %959 = vector.load %arg8[%c0_747, %c0_748, %c0_749] : memref<9x2x784xf32, #tpu.memory_space<vmem>>, vector<1x2x784xf32>
    %960 = vector.shape_cast %959 : vector<1x2x784xf32> to vector<2x784xf32>
    %961 = vector.broadcast %958 : f32 to vector<2x784xf32>
    %962 = arith.mulf %961, %960 : vector<2x784xf32>
    %963 = arith.addf %957, %962 : vector<2x784xf32>
    %c13_750 = arith.constant 13 : index
    %c1_751 = arith.constant 1 : index
    %964 = memref.load %arg5[%c13_750, %c1_751] : memref<16x9xf32, #tpu.memory_space<smem>>
    %c1_752 = arith.constant 1 : index
    %c0_753 = arith.constant 0 : index
    %c0_754 = arith.constant 0 : index
    %965 = vector.load %arg8[%c1_752, %c0_753, %c0_754] : memref<9x2x784xf32, #tpu.memory_space<vmem>>, vector<1x2x784xf32>
    %966 = vector.shape_cast %965 : vector<1x2x784xf32> to vector<2x784xf32>
    %967 = vector.broadcast %964 : f32 to vector<2x784xf32>
    %968 = arith.mulf %967, %966 : vector<2x784xf32>
    %969 = arith.addf %963, %968 : vector<2x784xf32>
    %c13_755 = arith.constant 13 : index
    %c2_756 = arith.constant 2 : index
    %970 = memref.load %arg5[%c13_755, %c2_756] : memref<16x9xf32, #tpu.memory_space<smem>>
    %c2_757 = arith.constant 2 : index
    %c0_758 = arith.constant 0 : index
    %c0_759 = arith.constant 0 : index
    %971 = vector.load %arg8[%c2_757, %c0_758, %c0_759] : memref<9x2x784xf32, #tpu.memory_space<vmem>>, vector<1x2x784xf32>
    %972 = vector.shape_cast %971 : vector<1x2x784xf32> to vector<2x784xf32>
    %973 = vector.broadcast %970 : f32 to vector<2x784xf32>
    %974 = arith.mulf %973, %972 : vector<2x784xf32>
    %975 = arith.addf %969, %974 : vector<2x784xf32>
    %c13_760 = arith.constant 13 : index
    %c3_761 = arith.constant 3 : index
    %976 = memref.load %arg5[%c13_760, %c3_761] : memref<16x9xf32, #tpu.memory_space<smem>>
    %c3_762 = arith.constant 3 : index
    %c0_763 = arith.constant 0 : index
    %c0_764 = arith.constant 0 : index
    %977 = vector.load %arg8[%c3_762, %c0_763, %c0_764] : memref<9x2x784xf32, #tpu.memory_space<vmem>>, vector<1x2x784xf32>
    %978 = vector.shape_cast %977 : vector<1x2x784xf32> to vector<2x784xf32>
    %979 = vector.broadcast %976 : f32 to vector<2x784xf32>
    %980 = arith.mulf %979, %978 : vector<2x784xf32>
    %981 = arith.addf %975, %980 : vector<2x784xf32>
    %c13_765 = arith.constant 13 : index
    %c4_766 = arith.constant 4 : index
    %982 = memref.load %arg5[%c13_765, %c4_766] : memref<16x9xf32, #tpu.memory_space<smem>>
    %c4_767 = arith.constant 4 : index
    %c0_768 = arith.constant 0 : index
    %c0_769 = arith.constant 0 : index
    %983 = vector.load %arg8[%c4_767, %c0_768, %c0_769] : memref<9x2x784xf32, #tpu.memory_space<vmem>>, vector<1x2x784xf32>
    %984 = vector.shape_cast %983 : vector<1x2x784xf32> to vector<2x784xf32>
    %985 = vector.broadcast %982 : f32 to vector<2x784xf32>
    %986 = arith.mulf %985, %984 : vector<2x784xf32>
    %987 = arith.addf %981, %986 : vector<2x784xf32>
    %c13_770 = arith.constant 13 : index
    %c5_771 = arith.constant 5 : index
    %988 = memref.load %arg5[%c13_770, %c5_771] : memref<16x9xf32, #tpu.memory_space<smem>>
    %c5_772 = arith.constant 5 : index
    %c0_773 = arith.constant 0 : index
    %c0_774 = arith.constant 0 : index
    %989 = vector.load %arg8[%c5_772, %c0_773, %c0_774] : memref<9x2x784xf32, #tpu.memory_space<vmem>>, vector<1x2x784xf32>
    %990 = vector.shape_cast %989 : vector<1x2x784xf32> to vector<2x784xf32>
    %991 = vector.broadcast %988 : f32 to vector<2x784xf32>
    %992 = arith.mulf %991, %990 : vector<2x784xf32>
    %993 = arith.addf %987, %992 : vector<2x784xf32>
    %c13_775 = arith.constant 13 : index
    %c6_776 = arith.constant 6 : index
    %994 = memref.load %arg5[%c13_775, %c6_776] : memref<16x9xf32, #tpu.memory_space<smem>>
    %c6_777 = arith.constant 6 : index
    %c0_778 = arith.constant 0 : index
    %c0_779 = arith.constant 0 : index
    %995 = vector.load %arg8[%c6_777, %c0_778, %c0_779] : memref<9x2x784xf32, #tpu.memory_space<vmem>>, vector<1x2x784xf32>
    %996 = vector.shape_cast %995 : vector<1x2x784xf32> to vector<2x784xf32>
    %997 = vector.broadcast %994 : f32 to vector<2x784xf32>
    %998 = arith.mulf %997, %996 : vector<2x784xf32>
    %999 = arith.addf %993, %998 : vector<2x784xf32>
    %c13_780 = arith.constant 13 : index
    %c7_781 = arith.constant 7 : index
    %1000 = memref.load %arg5[%c13_780, %c7_781] : memref<16x9xf32, #tpu.memory_space<smem>>
    %c7_782 = arith.constant 7 : index
    %c0_783 = arith.constant 0 : index
    %c0_784 = arith.constant 0 : index
    %1001 = vector.load %arg8[%c7_782, %c0_783, %c0_784] : memref<9x2x784xf32, #tpu.memory_space<vmem>>, vector<1x2x784xf32>
    %1002 = vector.shape_cast %1001 : vector<1x2x784xf32> to vector<2x784xf32>
    %1003 = vector.broadcast %1000 : f32 to vector<2x784xf32>
    %1004 = arith.mulf %1003, %1002 : vector<2x784xf32>
    %1005 = arith.addf %999, %1004 : vector<2x784xf32>
    %c13_785 = arith.constant 13 : index
    %c8_786 = arith.constant 8 : index
    %1006 = memref.load %arg5[%c13_785, %c8_786] : memref<16x9xf32, #tpu.memory_space<smem>>
    %c8_787 = arith.constant 8 : index
    %c0_788 = arith.constant 0 : index
    %c0_789 = arith.constant 0 : index
    %1007 = vector.load %arg8[%c8_787, %c0_788, %c0_789] : memref<9x2x784xf32, #tpu.memory_space<vmem>>, vector<1x2x784xf32>
    %1008 = vector.shape_cast %1007 : vector<1x2x784xf32> to vector<2x784xf32>
    %1009 = vector.broadcast %1006 : f32 to vector<2x784xf32>
    %1010 = arith.mulf %1009, %1008 : vector<2x784xf32>
    %1011 = arith.addf %1005, %1010 : vector<2x784xf32>
    %c13_790 = arith.constant 13 : index
    %1012 = memref.load %arg6[%c13_790] : memref<16xf32, #tpu.memory_space<smem>>
    %1013 = vector.broadcast %1012 : f32 to vector<2x784xf32>
    %1014 = arith.addf %1011, %1013 : vector<2x784xf32>
    %cst_791 = arith.constant 0.000000e+00 : f32
    %1015 = vector.broadcast %cst_791 : f32 to vector<2x784xf32>
    %1016 = arith.maximumf %1014, %1015 : vector<2x784xf32>
    %c13_792 = arith.constant 13 : index
    %c0_793 = arith.constant 0 : index
    %c0_794 = arith.constant 0 : index
    %1017 = vector.load %arg3[%c13_792, %c0_793, %c0_794] : memref<16x10x784xf32, #tpu.memory_space<vmem>>, vector<1x10x784xf32>
    %1018 = vector.shape_cast %1017 : vector<1x10x784xf32> to vector<10x784xf32>
    %cst_795 = arith.constant dense<0.000000e+00> : vector<2x10xf32>
    %1019 = tpu.matmul %1016, %1018, %cst_795 {dimension_numbers = #tpu.dot_dimension_numbers<[1], [1], [0], [0], [0, 0, 1, 0], [], []>} : vector<2x784xf32>, vector<10x784xf32>, vector<2x10xf32> -> vector<2x10xf32>
    %1020 = arith.addf %956, %1019 : vector<2x10xf32>
    %cst_796 = arith.constant 0.000000e+00 : f32
    %1021 = vector.broadcast %cst_796 : f32 to vector<2x784xf32>
    %c14 = arith.constant 14 : index
    %c0_797 = arith.constant 0 : index
    %1022 = memref.load %arg5[%c14, %c0_797] : memref<16x9xf32, #tpu.memory_space<smem>>
    %c0_798 = arith.constant 0 : index
    %c0_799 = arith.constant 0 : index
    %c0_800 = arith.constant 0 : index
    %1023 = vector.load %arg8[%c0_798, %c0_799, %c0_800] : memref<9x2x784xf32, #tpu.memory_space<vmem>>, vector<1x2x784xf32>
    %1024 = vector.shape_cast %1023 : vector<1x2x784xf32> to vector<2x784xf32>
    %1025 = vector.broadcast %1022 : f32 to vector<2x784xf32>
    %1026 = arith.mulf %1025, %1024 : vector<2x784xf32>
    %1027 = arith.addf %1021, %1026 : vector<2x784xf32>
    %c14_801 = arith.constant 14 : index
    %c1_802 = arith.constant 1 : index
    %1028 = memref.load %arg5[%c14_801, %c1_802] : memref<16x9xf32, #tpu.memory_space<smem>>
    %c1_803 = arith.constant 1 : index
    %c0_804 = arith.constant 0 : index
    %c0_805 = arith.constant 0 : index
    %1029 = vector.load %arg8[%c1_803, %c0_804, %c0_805] : memref<9x2x784xf32, #tpu.memory_space<vmem>>, vector<1x2x784xf32>
    %1030 = vector.shape_cast %1029 : vector<1x2x784xf32> to vector<2x784xf32>
    %1031 = vector.broadcast %1028 : f32 to vector<2x784xf32>
    %1032 = arith.mulf %1031, %1030 : vector<2x784xf32>
    %1033 = arith.addf %1027, %1032 : vector<2x784xf32>
    %c14_806 = arith.constant 14 : index
    %c2_807 = arith.constant 2 : index
    %1034 = memref.load %arg5[%c14_806, %c2_807] : memref<16x9xf32, #tpu.memory_space<smem>>
    %c2_808 = arith.constant 2 : index
    %c0_809 = arith.constant 0 : index
    %c0_810 = arith.constant 0 : index
    %1035 = vector.load %arg8[%c2_808, %c0_809, %c0_810] : memref<9x2x784xf32, #tpu.memory_space<vmem>>, vector<1x2x784xf32>
    %1036 = vector.shape_cast %1035 : vector<1x2x784xf32> to vector<2x784xf32>
    %1037 = vector.broadcast %1034 : f32 to vector<2x784xf32>
    %1038 = arith.mulf %1037, %1036 : vector<2x784xf32>
    %1039 = arith.addf %1033, %1038 : vector<2x784xf32>
    %c14_811 = arith.constant 14 : index
    %c3_812 = arith.constant 3 : index
    %1040 = memref.load %arg5[%c14_811, %c3_812] : memref<16x9xf32, #tpu.memory_space<smem>>
    %c3_813 = arith.constant 3 : index
    %c0_814 = arith.constant 0 : index
    %c0_815 = arith.constant 0 : index
    %1041 = vector.load %arg8[%c3_813, %c0_814, %c0_815] : memref<9x2x784xf32, #tpu.memory_space<vmem>>, vector<1x2x784xf32>
    %1042 = vector.shape_cast %1041 : vector<1x2x784xf32> to vector<2x784xf32>
    %1043 = vector.broadcast %1040 : f32 to vector<2x784xf32>
    %1044 = arith.mulf %1043, %1042 : vector<2x784xf32>
    %1045 = arith.addf %1039, %1044 : vector<2x784xf32>
    %c14_816 = arith.constant 14 : index
    %c4_817 = arith.constant 4 : index
    %1046 = memref.load %arg5[%c14_816, %c4_817] : memref<16x9xf32, #tpu.memory_space<smem>>
    %c4_818 = arith.constant 4 : index
    %c0_819 = arith.constant 0 : index
    %c0_820 = arith.constant 0 : index
    %1047 = vector.load %arg8[%c4_818, %c0_819, %c0_820] : memref<9x2x784xf32, #tpu.memory_space<vmem>>, vector<1x2x784xf32>
    %1048 = vector.shape_cast %1047 : vector<1x2x784xf32> to vector<2x784xf32>
    %1049 = vector.broadcast %1046 : f32 to vector<2x784xf32>
    %1050 = arith.mulf %1049, %1048 : vector<2x784xf32>
    %1051 = arith.addf %1045, %1050 : vector<2x784xf32>
    %c14_821 = arith.constant 14 : index
    %c5_822 = arith.constant 5 : index
    %1052 = memref.load %arg5[%c14_821, %c5_822] : memref<16x9xf32, #tpu.memory_space<smem>>
    %c5_823 = arith.constant 5 : index
    %c0_824 = arith.constant 0 : index
    %c0_825 = arith.constant 0 : index
    %1053 = vector.load %arg8[%c5_823, %c0_824, %c0_825] : memref<9x2x784xf32, #tpu.memory_space<vmem>>, vector<1x2x784xf32>
    %1054 = vector.shape_cast %1053 : vector<1x2x784xf32> to vector<2x784xf32>
    %1055 = vector.broadcast %1052 : f32 to vector<2x784xf32>
    %1056 = arith.mulf %1055, %1054 : vector<2x784xf32>
    %1057 = arith.addf %1051, %1056 : vector<2x784xf32>
    %c14_826 = arith.constant 14 : index
    %c6_827 = arith.constant 6 : index
    %1058 = memref.load %arg5[%c14_826, %c6_827] : memref<16x9xf32, #tpu.memory_space<smem>>
    %c6_828 = arith.constant 6 : index
    %c0_829 = arith.constant 0 : index
    %c0_830 = arith.constant 0 : index
    %1059 = vector.load %arg8[%c6_828, %c0_829, %c0_830] : memref<9x2x784xf32, #tpu.memory_space<vmem>>, vector<1x2x784xf32>
    %1060 = vector.shape_cast %1059 : vector<1x2x784xf32> to vector<2x784xf32>
    %1061 = vector.broadcast %1058 : f32 to vector<2x784xf32>
    %1062 = arith.mulf %1061, %1060 : vector<2x784xf32>
    %1063 = arith.addf %1057, %1062 : vector<2x784xf32>
    %c14_831 = arith.constant 14 : index
    %c7_832 = arith.constant 7 : index
    %1064 = memref.load %arg5[%c14_831, %c7_832] : memref<16x9xf32, #tpu.memory_space<smem>>
    %c7_833 = arith.constant 7 : index
    %c0_834 = arith.constant 0 : index
    %c0_835 = arith.constant 0 : index
    %1065 = vector.load %arg8[%c7_833, %c0_834, %c0_835] : memref<9x2x784xf32, #tpu.memory_space<vmem>>, vector<1x2x784xf32>
    %1066 = vector.shape_cast %1065 : vector<1x2x784xf32> to vector<2x784xf32>
    %1067 = vector.broadcast %1064 : f32 to vector<2x784xf32>
    %1068 = arith.mulf %1067, %1066 : vector<2x784xf32>
    %1069 = arith.addf %1063, %1068 : vector<2x784xf32>
    %c14_836 = arith.constant 14 : index
    %c8_837 = arith.constant 8 : index
    %1070 = memref.load %arg5[%c14_836, %c8_837] : memref<16x9xf32, #tpu.memory_space<smem>>
    %c8_838 = arith.constant 8 : index
    %c0_839 = arith.constant 0 : index
    %c0_840 = arith.constant 0 : index
    %1071 = vector.load %arg8[%c8_838, %c0_839, %c0_840] : memref<9x2x784xf32, #tpu.memory_space<vmem>>, vector<1x2x784xf32>
    %1072 = vector.shape_cast %1071 : vector<1x2x784xf32> to vector<2x784xf32>
    %1073 = vector.broadcast %1070 : f32 to vector<2x784xf32>
    %1074 = arith.mulf %1073, %1072 : vector<2x784xf32>
    %1075 = arith.addf %1069, %1074 : vector<2x784xf32>
    %c14_841 = arith.constant 14 : index
    %1076 = memref.load %arg6[%c14_841] : memref<16xf32, #tpu.memory_space<smem>>
    %1077 = vector.broadcast %1076 : f32 to vector<2x784xf32>
    %1078 = arith.addf %1075, %1077 : vector<2x784xf32>
    %cst_842 = arith.constant 0.000000e+00 : f32
    %1079 = vector.broadcast %cst_842 : f32 to vector<2x784xf32>
    %1080 = arith.maximumf %1078, %1079 : vector<2x784xf32>
    %c14_843 = arith.constant 14 : index
    %c0_844 = arith.constant 0 : index
    %c0_845 = arith.constant 0 : index
    %1081 = vector.load %arg3[%c14_843, %c0_844, %c0_845] : memref<16x10x784xf32, #tpu.memory_space<vmem>>, vector<1x10x784xf32>
    %1082 = vector.shape_cast %1081 : vector<1x10x784xf32> to vector<10x784xf32>
    %cst_846 = arith.constant dense<0.000000e+00> : vector<2x10xf32>
    %1083 = tpu.matmul %1080, %1082, %cst_846 {dimension_numbers = #tpu.dot_dimension_numbers<[1], [1], [0], [0], [0, 0, 1, 0], [], []>} : vector<2x784xf32>, vector<10x784xf32>, vector<2x10xf32> -> vector<2x10xf32>
    %1084 = arith.addf %1020, %1083 : vector<2x10xf32>
    %cst_847 = arith.constant 0.000000e+00 : f32
    %1085 = vector.broadcast %cst_847 : f32 to vector<2x784xf32>
    %c15 = arith.constant 15 : index
    %c0_848 = arith.constant 0 : index
    %1086 = memref.load %arg5[%c15, %c0_848] : memref<16x9xf32, #tpu.memory_space<smem>>
    %c0_849 = arith.constant 0 : index
    %c0_850 = arith.constant 0 : index
    %c0_851 = arith.constant 0 : index
    %1087 = vector.load %arg8[%c0_849, %c0_850, %c0_851] : memref<9x2x784xf32, #tpu.memory_space<vmem>>, vector<1x2x784xf32>
    %1088 = vector.shape_cast %1087 : vector<1x2x784xf32> to vector<2x784xf32>
    %1089 = vector.broadcast %1086 : f32 to vector<2x784xf32>
    %1090 = arith.mulf %1089, %1088 : vector<2x784xf32>
    %1091 = arith.addf %1085, %1090 : vector<2x784xf32>
    %c15_852 = arith.constant 15 : index
    %c1_853 = arith.constant 1 : index
    %1092 = memref.load %arg5[%c15_852, %c1_853] : memref<16x9xf32, #tpu.memory_space<smem>>
    %c1_854 = arith.constant 1 : index
    %c0_855 = arith.constant 0 : index
    %c0_856 = arith.constant 0 : index
    %1093 = vector.load %arg8[%c1_854, %c0_855, %c0_856] : memref<9x2x784xf32, #tpu.memory_space<vmem>>, vector<1x2x784xf32>
    %1094 = vector.shape_cast %1093 : vector<1x2x784xf32> to vector<2x784xf32>
    %1095 = vector.broadcast %1092 : f32 to vector<2x784xf32>
    %1096 = arith.mulf %1095, %1094 : vector<2x784xf32>
    %1097 = arith.addf %1091, %1096 : vector<2x784xf32>
    %c15_857 = arith.constant 15 : index
    %c2_858 = arith.constant 2 : index
    %1098 = memref.load %arg5[%c15_857, %c2_858] : memref<16x9xf32, #tpu.memory_space<smem>>
    %c2_859 = arith.constant 2 : index
    %c0_860 = arith.constant 0 : index
    %c0_861 = arith.constant 0 : index
    %1099 = vector.load %arg8[%c2_859, %c0_860, %c0_861] : memref<9x2x784xf32, #tpu.memory_space<vmem>>, vector<1x2x784xf32>
    %1100 = vector.shape_cast %1099 : vector<1x2x784xf32> to vector<2x784xf32>
    %1101 = vector.broadcast %1098 : f32 to vector<2x784xf32>
    %1102 = arith.mulf %1101, %1100 : vector<2x784xf32>
    %1103 = arith.addf %1097, %1102 : vector<2x784xf32>
    %c15_862 = arith.constant 15 : index
    %c3_863 = arith.constant 3 : index
    %1104 = memref.load %arg5[%c15_862, %c3_863] : memref<16x9xf32, #tpu.memory_space<smem>>
    %c3_864 = arith.constant 3 : index
    %c0_865 = arith.constant 0 : index
    %c0_866 = arith.constant 0 : index
    %1105 = vector.load %arg8[%c3_864, %c0_865, %c0_866] : memref<9x2x784xf32, #tpu.memory_space<vmem>>, vector<1x2x784xf32>
    %1106 = vector.shape_cast %1105 : vector<1x2x784xf32> to vector<2x784xf32>
    %1107 = vector.broadcast %1104 : f32 to vector<2x784xf32>
    %1108 = arith.mulf %1107, %1106 : vector<2x784xf32>
    %1109 = arith.addf %1103, %1108 : vector<2x784xf32>
    %c15_867 = arith.constant 15 : index
    %c4_868 = arith.constant 4 : index
    %1110 = memref.load %arg5[%c15_867, %c4_868] : memref<16x9xf32, #tpu.memory_space<smem>>
    %c4_869 = arith.constant 4 : index
    %c0_870 = arith.constant 0 : index
    %c0_871 = arith.constant 0 : index
    %1111 = vector.load %arg8[%c4_869, %c0_870, %c0_871] : memref<9x2x784xf32, #tpu.memory_space<vmem>>, vector<1x2x784xf32>
    %1112 = vector.shape_cast %1111 : vector<1x2x784xf32> to vector<2x784xf32>
    %1113 = vector.broadcast %1110 : f32 to vector<2x784xf32>
    %1114 = arith.mulf %1113, %1112 : vector<2x784xf32>
    %1115 = arith.addf %1109, %1114 : vector<2x784xf32>
    %c15_872 = arith.constant 15 : index
    %c5_873 = arith.constant 5 : index
    %1116 = memref.load %arg5[%c15_872, %c5_873] : memref<16x9xf32, #tpu.memory_space<smem>>
    %c5_874 = arith.constant 5 : index
    %c0_875 = arith.constant 0 : index
    %c0_876 = arith.constant 0 : index
    %1117 = vector.load %arg8[%c5_874, %c0_875, %c0_876] : memref<9x2x784xf32, #tpu.memory_space<vmem>>, vector<1x2x784xf32>
    %1118 = vector.shape_cast %1117 : vector<1x2x784xf32> to vector<2x784xf32>
    %1119 = vector.broadcast %1116 : f32 to vector<2x784xf32>
    %1120 = arith.mulf %1119, %1118 : vector<2x784xf32>
    %1121 = arith.addf %1115, %1120 : vector<2x784xf32>
    %c15_877 = arith.constant 15 : index
    %c6_878 = arith.constant 6 : index
    %1122 = memref.load %arg5[%c15_877, %c6_878] : memref<16x9xf32, #tpu.memory_space<smem>>
    %c6_879 = arith.constant 6 : index
    %c0_880 = arith.constant 0 : index
    %c0_881 = arith.constant 0 : index
    %1123 = vector.load %arg8[%c6_879, %c0_880, %c0_881] : memref<9x2x784xf32, #tpu.memory_space<vmem>>, vector<1x2x784xf32>
    %1124 = vector.shape_cast %1123 : vector<1x2x784xf32> to vector<2x784xf32>
    %1125 = vector.broadcast %1122 : f32 to vector<2x784xf32>
    %1126 = arith.mulf %1125, %1124 : vector<2x784xf32>
    %1127 = arith.addf %1121, %1126 : vector<2x784xf32>
    %c15_882 = arith.constant 15 : index
    %c7_883 = arith.constant 7 : index
    %1128 = memref.load %arg5[%c15_882, %c7_883] : memref<16x9xf32, #tpu.memory_space<smem>>
    %c7_884 = arith.constant 7 : index
    %c0_885 = arith.constant 0 : index
    %c0_886 = arith.constant 0 : index
    %1129 = vector.load %arg8[%c7_884, %c0_885, %c0_886] : memref<9x2x784xf32, #tpu.memory_space<vmem>>, vector<1x2x784xf32>
    %1130 = vector.shape_cast %1129 : vector<1x2x784xf32> to vector<2x784xf32>
    %1131 = vector.broadcast %1128 : f32 to vector<2x784xf32>
    %1132 = arith.mulf %1131, %1130 : vector<2x784xf32>
    %1133 = arith.addf %1127, %1132 : vector<2x784xf32>
    %c15_887 = arith.constant 15 : index
    %c8_888 = arith.constant 8 : index
    %1134 = memref.load %arg5[%c15_887, %c8_888] : memref<16x9xf32, #tpu.memory_space<smem>>
    %c8_889 = arith.constant 8 : index
    %c0_890 = arith.constant 0 : index
    %c0_891 = arith.constant 0 : index
    %1135 = vector.load %arg8[%c8_889, %c0_890, %c0_891] : memref<9x2x784xf32, #tpu.memory_space<vmem>>, vector<1x2x784xf32>
    %1136 = vector.shape_cast %1135 : vector<1x2x784xf32> to vector<2x784xf32>
    %1137 = vector.broadcast %1134 : f32 to vector<2x784xf32>
    %1138 = arith.mulf %1137, %1136 : vector<2x784xf32>
    %1139 = arith.addf %1133, %1138 : vector<2x784xf32>
    %c15_892 = arith.constant 15 : index
    %1140 = memref.load %arg6[%c15_892] : memref<16xf32, #tpu.memory_space<smem>>
    %1141 = vector.broadcast %1140 : f32 to vector<2x784xf32>
    %1142 = arith.addf %1139, %1141 : vector<2x784xf32>
    %cst_893 = arith.constant 0.000000e+00 : f32
    %1143 = vector.broadcast %cst_893 : f32 to vector<2x784xf32>
    %1144 = arith.maximumf %1142, %1143 : vector<2x784xf32>
    %c15_894 = arith.constant 15 : index
    %c0_895 = arith.constant 0 : index
    %c0_896 = arith.constant 0 : index
    %1145 = vector.load %arg3[%c15_894, %c0_895, %c0_896] : memref<16x10x784xf32, #tpu.memory_space<vmem>>, vector<1x10x784xf32>
    %1146 = vector.shape_cast %1145 : vector<1x10x784xf32> to vector<10x784xf32>
    %cst_897 = arith.constant dense<0.000000e+00> : vector<2x10xf32>
    %1147 = tpu.matmul %1144, %1146, %cst_897 {dimension_numbers = #tpu.dot_dimension_numbers<[1], [1], [0], [0], [0, 0, 1, 0], [], []>} : vector<2x784xf32>, vector<10x784xf32>, vector<2x10xf32> -> vector<2x10xf32>
    %1148 = arith.addf %1084, %1147 : vector<2x10xf32>
    %c0_898 = arith.constant 0 : index
    %c0_899 = arith.constant 0 : index
    %1149 = vector.load %arg4[%c0_898, %c0_899] : memref<1x10xf32, #tpu.memory_space<vmem>>, vector<1x10xf32>
    %1150 = vector.broadcast %1149 : vector<1x10xf32> to vector<2x10xf32>
    %1151 = arith.addf %1148, %1150 : vector<2x10xf32>
    %c0_900 = arith.constant 0 : index
    %c0_901 = arith.constant 0 : index
    %1152 = vector.load %arg7[%c0_900, %c0_901] : memref<2x10xf32, #tpu.memory_space<vmem>>, vector<2x10xf32>
    tpu.vector_store %arg7[%c0_900, %c0_901], %1151 {strides = array<i32>} : memref<2x10xf32, #tpu.memory_space<vmem>>, vector<2x10xf32>,
    return
  }
  func.func @transform_0(%arg0: i32) -> (i32, i32) {
    %c0_i32 = arith.constant 0 : i32
    %c0_i32_0 = arith.constant 0 : i32
    return %arg0, %c0_i32 : i32, i32
  }
  func.func @transform_1(%arg0: i32) -> (i32, i32, i32) {
    %c0_i32 = arith.constant 0 : i32
    %c0_i32_0 = arith.constant 0 : i32
    %c0_i32_1 = arith.constant 0 : i32
    %c0_i32_2 = arith.constant 0 : i32
    return %c0_i32, %c0_i32_0, %c0_i32_1 : i32, i32, i32
  }
  func.func @transform_2(%arg0: i32) -> (i32, i32, i32) {
    %c0_i32 = arith.constant 0 : i32
    %c0_i32_0 = arith.constant 0 : i32
    %c0_i32_1 = arith.constant 0 : i32
    %c0_i32_2 = arith.constant 0 : i32
    return %c0_i32, %c0_i32_0, %c0_i32_1 : i32, i32, i32
  }
  func.func @transform_3(%arg0: i32) -> (i32, i32) {
    %c0_i32 = arith.constant 0 : i32
    %c0_i32_0 = arith.constant 0 : i32
    %c0_i32_1 = arith.constant 0 : i32
    return %c0_i32, %c0_i32_0 : i32, i32
  }
  func.func @transform_4(%arg0: i32) -> (i32, i32) {
    %c0_i32 = arith.constant 0 : i32
    %c0_i32_0 = arith.constant 0 : i32
    %c0_i32_1 = arith.constant 0 : i32
    return %c0_i32, %c0_i32_0 : i32, i32
  }
  func.func @transform_5(%arg0: i32) -> i32 {
    %c0_i32 = arith.constant 0 : i32
    %c0_i32_0 = arith.constant 0 : i32
    return %c0_i32 : i32
  }
  func.func @transform_6(%arg0: i32) -> (i32, i32) {
    %c0_i32 = arith.constant 0 : i32
    %c0_i32_0 = arith.constant 0 : i32
    return %arg0, %c0_i32 : i32, i32
  }
}

</mosaic_0001>

<bundles_post_ra>
// kernel: tpu_custom_call.1
= control target key start
LH: loop header
LB: loop body
LE: loop exit
PB: predicated region body
PF: predicated region fallthrough
CT: control target
= control target key end

     0   :  { %s12690_s0 = inlined_call_operand.vmem [shape: f32[2,784], index: 0, kind: input, shape index: {}]   ;;  %s12691_s1 = inlined_call_operand.vmem [shape: f32[9,1,784], index: 1, kind: input, shape index: {}]   ;;  %s12692_s2 = inlined_call_operand.vmem [shape: f32[16,10,784], index: 2, kind: input, shape index: {}]   ;;  %s12693_s3 = inlined_call_operand.vmem [shape: f32[1,10], index: 3, kind: input, shape index: {}]   ;;  %s12694_s4 = inlined_call_operand.vmem [shape: f32[16,9], index: 4, kind: input, shape index: {}]   ;;  %s12695_s5 = inlined_call_operand.vmem [shape: f32[16], index: 5, kind: input, shape index: {}]   ;;  %s12696_s6 = inlined_call_operand.hbm [shape: f32[2,10], index: 6, kind: output, shape index: {}]  }
   0x1   :  { %12773 = sst [smem:[#allocation37_spill]] %s12693_s3 }
   0x2   :  { %12774 = sst [smem:[#allocation38_spill]] %s12696_s6 }
   0x3   :  { %11 = vsyncpa [#allocation5], 0 }
   0x4   :  { %12 = vsyncpa [#allocation7], 0 }
   0x5   :  { %13 = vsyncpa [#allocation4], 0  ;;  %s27_s23 = sshll.u32 %s12694_s4, 4  ;;  %s40_s26 = sshll.u32 %s12695_s5, 4  ;;  %s28_s23 = int_to_ptr.vmem [resolvable:$true] %s27_s23  ;;  %s41_s26 = int_to_ptr.vmem [resolvable:$true] %s40_s26 }
   0x6   :  { %s8533_s27 = scalar_lea.vmem %s28_s23, 256  ;;  %p8538_p1 = scmp.lt.s32.totalorder %s28_s23, %s28_s23 }
   0x7   :  { %p8534_p0 = scmp.ne.s32.totalorder %s28_s23, %s8533_s27  ;;  %p8539_p2 = scmp.lt.s32.totalorder %s8533_s27, %s8533_s27 }
   0x9   :  { %p8540_p3 = por %p8539_p2, %p8538_p1 }
   0xb   :  { %p8541_p4 = pnand %p8540_p3, %p8534_p0 }
   0xd   :  { %8544 = shalt.err (!%p8541_p4)
}
   0xe   :  { %s8585_s28 = smov [#allocation3]   ;;  %s8586_s29 = smov 128  }
   0xf   :  { %s8587_s30 = smov 8   ;;  %s8545_s7 = scalar_lea.vmem %s41_s26, 16 }
  0x10   :  { %33 = dma.vmem_to_smem %s28_s23, 256, %s8585_s28, [#allocation5], %s8586_s29, %s8586_s29, %s8587_s30  }
  0x11   :  { %p8546_p5 = scmp.ne.s32.totalorder %s41_s26, %s8545_s7  ;;  %p8550_p6 = scmp.lt.s32.totalorder %s41_s26, %s41_s26 }
  0x12   :  { %p8551_p7 = scmp.lt.s32.totalorder %s8545_s7, %s8545_s7 }
  0x14   :  { %p8552_p8 = por %p8551_p7, %p8550_p6 }
  0x16   :  { %p8553_p9 = pnand %p8552_p8, %p8546_p5 }
  0x18   :  { %8556 = shalt.err (!%p8553_p9)
}
  0x19   :  { %s8588_s4 = smov [#allocation6]  }
  0x1a   :  { %43 = dma.vmem_to_smem %s41_s26, 16, %s8588_s4, [#allocation7]  }
  0x1b   :  { %8579 = dma.done.wait [#allocation5], 256  }
  0x1c   :  { %8580 = vsyncadd [#allocation5], 4294967040 }
  0x1d   :  { %8581 = dma.done.wait [#allocation7], 16  }
  0x1e   :  { %8582 = vsyncadd [#allocation7], 4294967280 }
  0x1f   :  { %50 = sfence }
  0x20   :  { %v51_v0 = vld [vmem:[%s12690_s0] sm:$0xff]  ;;  %v59_v1 = vlaneseq  ;;  %v8589_v2 = vmov 1983009808   ;;  %s8590_s9 = smov 29   ;;  %s8591_s10 = smov 28   ;;  %v8592_v17 = vmov 0  }
  0x21   :  { %v57_v3 = vunpack.c.l.s4 %v8589_v2  ;;  %v55_v6 = vcombine.high %v51_v0, %v51_v0  ;;  %v7632_v12 = vld [vmem:[%s12691_s1 + $0x1c] sm:$0x7f]  ;;  %s8593_s13 = smov 27   ;;  %v52_v19 = vld [vmem:[%s12690_s0 + $0x8] sm:$0x3f]  ;;  %s8594_s0 = smov 1  }
  0x22   :  { %v60_v4 = vshrl.u32 %v59_v1, 7  ;;  %vm564_vm0 = vcmp.ne.f32.partialorder %v7632_v12, 0.0  ;;  %v434_v25 = vcombine.high %v52_v19, %v52_v19  ;;  %vm194_vm6 = vcmask 1041408   ;;  %s8595_s16 = smov 127   ;;  %s8596_s17 = smov 101   ;;  %v7656_v51 = vld [vmem:[%s12692_s2 + $0x78] sm:$0xff] }
  0x23   :  { %v58_v5 = vunpack.c.0.s8 %v57_v3  ;;  %v565_v18 = vsel %vm564_vm0, 1, %v8592_v17  ;;  %vm195_vm9 = vcmask 1043458   ;;  %vm197_vm11 = vcmask 128004   ;;  %s8597_s18 = smov 100   ;;  %s8598_s19 = smov 99   ;;  %v7655_v54 = vld [vmem:[%s12692_s2 + $0x70] sm:$0xff] }
  0x24   :  { %v8682_v13 = vsub.s32 0, %v60_v4  ;;  %v8684_v14 = vsub.s32 3, %v60_v4  ;;  %v8686_v15 = vsub.s32 1, %v60_v4  ;;  %v8688_v16 = vsub.s32 2, %v60_v4  ;;  %vm196_vm10 = vmor %vm195_vm9, %vm194_vm6  ;;  %v7663_v52 = vld [vmem:[%s12692_s2 + $0xb0] sm:$0x3] }
  0x25   :  { %v8647_v7 = vsub.s32 %v58_v5, %v60_v4  ;;  %v8710_v27 = vsub.s32 4, %v60_v4  ;;  %v8715_v31 = vsub.s32 5, %v60_v4  ;;  %v8717_v32 = vsub.s32 6, %v60_v4  ;;  %vm8751_vm12 = vmor %vm197_vm11, %vm196_vm10  ;;  %v7662_v55 = vld [vmem:[%s12692_s2 + $0xa8] sm:$0x3]  ;;  %v7657_v60 = vld [vmem:[%s12692_s2 + $0x80] sm:$0xff] }
  0x26   :  { %v569_v20 = vrot.slane %v565_v18, %v8682_v13  ;;  %v573_v21 = vrot.slane %v565_v18, %v8686_v15  ;;  %v577_v22 = vrot.slane %v565_v18, %v8688_v16  ;;  %v581_v23 = vrot.slane %v565_v18, %v8684_v14  ;;  %v7658_v57 = vld [vmem:[%s12692_s2 + $0x88] sm:$0xff]  ;;  %v7665_v58 = vld [vmem:[%s12692_s2 + $0xc0] sm:$0x3]  ;;  %v7664_v61 = vld [vmem:[%s12692_s2 + $0xb8] sm:$0x3]  ;;  %s9109_s25 = sld [smem:[#allocation3 + $0x80]] }
  0x27   :  { %v8650_v8 = vrot.slane %v51_v0, %v8647_v7  ;;  %v8653_v9 = vrot.slane %v55_v6, %v8647_v7  ;;  %v8707_v24 = vrot.slane %v52_v19, %v8647_v7  ;;  %v585_v35 = vrot.slane %v565_v18, %v8710_v27  ;;  %v106_v63 = vld [vmem:[%s12691_s1] sm:$0x7f]  ;;  %v7629_v0 = vld [vmem:[%s12691_s1 + $0x7] sm:$0x7f]  ;;  %v7660_v1 = vld [vmem:[%s12692_s2 + $0x98] sm:$0xff]  ;;  %s9111_s26 = sld [smem:[#allocation3]] }
  0x28   :  { %vm594_vm1 = vcmp.eq.s32.totalorder %v569_v20, 1  ;;  %vm595_vm2 = vcmp.eq.s32.totalorder %v573_v21, 1  ;;  %vm596_vm3 = vcmp.eq.s32.totalorder %v577_v22, 1  ;;  %vm597_vm4 = vcmp.eq.s32.totalorder %v581_v23, 1  ;;  %v7667_v2 = vld [vmem:[%s12692_s2 + $0xd0] sm:$0x3] }
  0x29   :  { %80 = vrot.lane.b32.xlu0 %v8650_v8, %s8590_s9  ;;  %84 = vrot.lane.b32.xlu1 %v8653_v9, %s8590_s9  ;;  %v8661_v10 = vcombine.high %v8653_v9, %v8653_v9  ;;  %v8669_v11 = vcombine.high %v8650_v8, %v8650_v8  ;;  %v608_v26 = vsel %vm594_vm1, %v8650_v8, 0.0  ;;  %v610_v29 = vsel %vm596_vm3, %v8653_v9, 0.0  ;;  %s9141_s27 = sld [smem:[#allocation3 + $0x81]]  ;;  %s9143_s28 = sld [smem:[#allocation3 + $0x100]] }
  0x2a   :  { %v589_v36 = vrot.slane %v565_v18, %v8715_v31  ;;  %v593_v37 = vrot.slane %v565_v18, %v8717_v32  ;;  %v8729_v39 = vcombine.high %v8707_v24, %v8707_v24  ;;  %v8732_v40 = vrot.slane %v434_v25, %v8647_v7  ;;  %s9149_s29 = sld [smem:[#allocation3 + $0x1]]  ;;  %s9151_s30 = sld [smem:[#allocation3 + $0x180]] }
  0x2b   :  { %v609_v28 = vsel %vm595_vm2, %v8669_v11, 0.0  ;;  %v611_v30 = vsel %vm597_vm4, %v8661_v10, 0.0  ;;  %vm598_vm5 = vcmp.eq.s32.totalorder %v585_v35, 1  ;;  %v8214_v53 = vpack.c.bf16 %v7663_v52, %v7656_v51  ;;  %s9157_s7 = sld [smem:[#allocation3 + $0x101]]  ;;  %s9171_s5 = sld [smem:[#allocation3 + $0x200]] }
  0x2c   :  { %v622_v33 = vcombine.low %v608_v26, %v609_v28  ;;  %v623_v34 = vcombine.low %v610_v29, %v611_v30  ;;  %vm599_vm7 = vcmp.eq.s32.totalorder %v589_v36, 1  ;;  %vm600_vm8 = vcmp.eq.s32.totalorder %v593_v37, 1  ;;  %s9159_s4 = sld [smem:[#allocation3 + $0x181]]  ;;  %s9183_s8 = sld [smem:[#allocation3 + $0x82]] }
  0x2d   :  { %200 = vrot.lane.b32.xlu0 %v8650_v8, %s8591_s10  ;;  %86 = vrot.lane.b32.xlu1 %v8661_v10, %s8590_s9  ;;  %v612_v42 = vsel %vm598_vm5, %v8707_v24, 0.0  ;;  %v613_v43 = vsel %vm599_vm7, %v8729_v39, 0.0  ;;  %v614_v44 = vsel %vm600_vm8, %v8732_v40, 0.0  ;;  %v8216_v56 = vpack.c.bf16 %v7662_v55, %v7655_v54  ;;  %s9191_s11 = sld [smem:[#allocation3 + $0x182]]  ;;  %s9200_s12 = sld [smem:[#allocation3 + $0x83]] }
  0x2e   :  { %v630_v38 = vrot.slane %v622_v33, %v8647_v7  ;;  %v637_v41 = vrot.slane %v623_v34, %v8647_v7  ;;  %v639_v46 = vcombine.low %v612_v42, %v613_v43  ;;  %v653_v47 = vrot.slane %v614_v44, %v8647_v7  ;;  %8215 = vmatprep.subr.bf16.mxu0 %v8214_v53  ;;  %s9214_s14 = sld [smem:[#allocation3 + $0x4]]  ;;  %s9259_s21 = sld [smem:[#allocation3 + $0x201]] }
  0x2f   :  { %v8218_v59 = vpack.c.bf16 %v7665_v58, %v7658_v57  ;;  %8217 = vmatpush1.bf16.xpose.msra.mxu0 %v8216_v56  ;;  %v8220_v62 = vpack.c.bf16 %v7664_v61, %v7657_v60  ;;  %vm107_vm13 = vcmp.ne.f32.partialorder %v106_v63, 0.0  ;;  %vm228_vm14 = vcmp.ne.f32.partialorder %v7629_v0, 0.0  ;;  %s9222_s15 = sld [smem:[#allocation3 + $0x104]]  ;;  %s9267_s22 = sld [smem:[#allocation3 + $0x202]] }
  0x30   :  { %v8738_v45 = vcombine.low %v630_v38, %v637_v41  ;;  %v646_v48 = vrot.slane %v639_v46, %v8647_v7  ;;  %v8222_v3 = vpack.c.bf16 %v7667_v2, %v7660_v1  ;;  %v12701_v4 = vmov 0.0|0.0   ;;  %s9269_s23 = sld [smem:[#allocation3 + $0x203]]  ;;  %s9282_s24 = sld [smem:[#allocation3 + $0x280]] }
  0x31   :  { %82 = vrot.lane.b32.xlu0 %v8669_v11, %s8590_s9  ;;  %202 = vrot.lane.b32.xlu1 %v8669_v11, %s8591_s10  ;;  %v8858_v5 = vsel %vm107_vm13, 1, %v8592_v17  ;;  %v8861_v6 = vsel %vm228_vm14, 1, %v8592_v17  ;;  %vm92_vm0 = vcmask 236544   ;;  %vm212_vm2 = vcmask 228352   ;;  %12823 = sst [smem:[#allocation12_spill]] %s9171_s5  ;;  %s9287_s20 = sld [smem:[#allocation3 + $0x5]] }
  0x32   :  { %658 = vst [vmem:[#allocation2 + $0x38] sm:$0xff] %v8738_v45  ;;  %v654_v49 = vcombine.low %v646_v48, %v653_v47  ;;  %8219 = vmatprep.subr.bf16.mxu1 %v8218_v59  ;;  %8223 = vmatprep.subr.bf16.mxu0 %v8222_v3  ;;  %v233_v12 = vrot.slane %v8861_v6, %v8682_v13  ;;  %v7631_v47 = vld [vmem:[%s12691_s1 + $0x15] sm:$0x7f]  ;;  %vm329_vm10 = vcmask 220160   ;;  %s9303_s5 = sld [smem:[#allocation3 + $0x86]]  ;;  %s9344_s3 = sld [smem:[#allocation3 + $0x87]] }
  0x33   :  { %8221 = vmatpush1.bf16.xpose.msra.mxu1 %v8220_v62  ;;  %v124_v18 = vrot.slane %v8858_v5, %v8684_v14  ;;  %v116_v19 = vrot.slane %v8858_v5, %v8686_v15  ;;  %v120_v20 = vrot.slane %v8858_v5, %v8688_v16  ;;  %v237_v23 = vrot.slane %v8861_v6, %v8686_v15  ;;  %12828 = sst [smem:[#allocation13_spill]] %s9191_s11  ;;  %s9402_s6 = sld [smem:[#allocation3 + $0x7]] }
  0x34   :  { %659 = vst.msk [vmem:[#allocation2 + $0x40] sm:$0x3f] %vm8751_vm12, %v654_v49  ;;  %8226 = vmatprep.subr.bf16.mxu1 %v12701_v4  ;;  %vm8890_vm3 = vcmp.eq.s32.totalorder %v233_v12, 1  ;;  %vm473_vm11 = vcmp.ne.f32.partialorder %v7631_v47, 0.0  ;;  %12840 = sst [smem:[#allocation17_spill]] %s9259_s21  ;;  %s9917_s11 = sld [smem:[#allocation3 + $0x187]] }
  0x35   :  { %204 = vrot.lane.b32.xlu0 %v8653_v9, %s8591_s10  ;;  %206 = vrot.lane.b32.xlu1 %v8661_v10, %s8591_s10  ;;  %vm8894_vm4 = vcmp.eq.s32.totalorder %v124_v18, 1  ;;  %vm8900_vm5 = vcmp.eq.s32.totalorder %v116_v19, 1  ;;  %vm8904_vm6 = vcmp.eq.s32.totalorder %v120_v20, 1  ;;  %vm8908_vm7 = vcmp.eq.s32.totalorder %v237_v23, 1  ;;  %12833 = sst [smem:[#allocation14_spill]] %s9222_s15  ;;  %s9730_s21 = sld [smem:[#allocation3 + $0x105]] }
  0x36   :  { %12841 = sst [smem:[#allocation18_spill]] %s9267_s22 }
  0x37   :  { %12842 = sst [smem:[#allocation19_spill]] %s9269_s23  ;;  %s9437_s23 = sld [smem:[#allocation3 + $0x8]] }
  0x38   :  { %12843 = sst [smem:[#allocation20_spill]] %s9282_s24  ;;  %s9738_s22 = sld [smem:[#allocation3 + $0x106]] }
  0x39   :  { %317 = vrot.lane.b32.xlu0 %v8650_v8, %s8593_s13  ;;  %319 = vrot.lane.b32.xlu1 %v8669_v11, %s8593_s13  ;;  %s9426_s24 = sld [smem:[#allocation3 + $0x88]] }
  0x3d   :  { %321 = vrot.lane.b32.xlu0 %v8653_v9, %s8593_s13  ;;  %323 = vrot.lane.b32.xlu1 %v8661_v10, %s8593_s13 }
  0x41   :  { %442 = vrot.lane.b32.xlu0 %v8650_v8, %s8594_s0  ;;  %444 = vrot.lane.b32.xlu1 %v8669_v11, %s8594_s0 }
  0x45   :  { %446 = vrot.lane.b32.xlu0 %v8653_v9, %s8594_s0  ;;  %448 = vrot.lane.b32.xlu1 %v8661_v10, %s8594_s0 }
  0x49   :  { %88 = vrot.lane.b32.xlu0 %v8707_v24, %s8590_s9  ;;  %90 = vrot.lane.b32.xlu1 %v8729_v39, %s8590_s9  ;;  %s9185_s9 = sld [smem:[#allocation3 + $0x2]] }
  0x4d   :  { %208 = vrot.lane.b32.xlu0 %v8707_v24, %s8591_s10  ;;  %210 = vrot.lane.b32.xlu1 %v8729_v39, %s8591_s10  ;;  %s9189_s10 = sld [smem:[#allocation3 + $0x102]] }
  0x51   :  { %660 = vrot.lane.b32.xlu0 %v8650_v8, %s8595_s16  ;;  %662 = vrot.lane.b32.xlu1 %v8669_v11, %s8595_s16 }
  0x55   :  { %664 = vrot.lane.b32.xlu0 %v8653_v9, %s8595_s16  ;;  %666 = vrot.lane.b32.xlu1 %v8661_v10, %s8595_s16 }
  0x59   :  { %668 = vrot.lane.b32.xlu0 %v8707_v24, %s8595_s16  ;;  %325 = vrot.lane.b32.xlu1 %v8707_v24, %s8593_s13 }
  0x5d   :  { %327 = vrot.lane.b32.xlu0 %v8729_v39, %s8593_s13  ;;  %781 = vrot.lane.b32.xlu1 %v8650_v8, %s8596_s17  ;;  %s9202_s13 = sld [smem:[#allocation3 + $0x84]] }
  0x61   :  { %783 = vrot.lane.b32.xlu0 %v8669_v11, %s8596_s17  ;;  %785 = vrot.lane.b32.xlu1 %v8653_v9, %s8596_s17 }
  0x65   :  { %787 = vrot.lane.b32.xlu0 %v8661_v10, %s8596_s17  ;;  %789 = vrot.lane.b32.xlu1 %v8707_v24, %s8596_s17 }
  0x69   :  { %450 = vrot.lane.b32.xlu0 %v8707_v24, %s8594_s0  ;;  %452 = vrot.lane.b32.xlu1 %v8729_v39, %s8594_s0 }
  0x6d   :  { %895 = vrot.lane.b32.xlu0 %v8650_v8, %s8597_s18  ;;  %897 = vrot.lane.b32.xlu1 %v8669_v11, %s8597_s18 }
  0x71   :  { %899 = vrot.lane.b32.xlu0 %v8653_v9, %s8597_s18  ;;  %901 = vrot.lane.b32.xlu1 %v8661_v10, %s8597_s18 }
  0x75   :  { %903 = vrot.lane.b32.xlu0 %v8707_v24, %s8597_s18  ;;  %454 = vrot.lane.b32.xlu1 %v8732_v40, %s8594_s0  ;;  %s9224_s0 = sld [smem:[#allocation3 + $0x184]] }
  0x79   :  { %1001 = vrot.lane.b32.xlu0 %v8650_v8, %s8598_s19  ;;  %1003 = vrot.lane.b32.xlu1 %v8669_v11, %s8598_s19  ;;  %v7630_v8 = vld [vmem:[%s12691_s1 + $0xe] sm:$0x7f]  ;;  %v112_v11 = vrot.slane %v8858_v5, %v8682_v13 }
  0x7a   :  { %vm345_vm15 = vcmp.ne.f32.partialorder %v7630_v8, 0.0 }
  0x7b   :  { %v8883_v25 = vsel %vm345_vm15, 1, %v8592_v17  ;;  %vm8885_vm1 = vcmp.eq.s32.totalorder %v112_v11, 1  ;;  %12834 = sst [smem:[#allocation15_spill]] %s9224_s0 }
  0x7c   :  { %v350_v41 = vrot.slane %v8883_v25, %v8682_v13  ;;  %v354_v56 = vrot.slane %v8883_v25, %v8686_v15  ;;  %v358_v60 = vrot.slane %v8883_v25, %v8688_v16  ;;  %v362_v8 = vrot.slane %v8883_v25, %v8684_v14 }
  0x7d   :  { %1005 = vrot.lane.b32.xlu0 %v8653_v9, %s8598_s19  ;;  %1007 = vrot.lane.b32.xlu1 %v8661_v10, %s8598_s19 }
  0x7e   :  { %vm8962_vm13 = vcmp.eq.s32.totalorder %v350_v41, 1  ;;  %vm8966_vm14 = vcmp.eq.s32.totalorder %v354_v56, 1  ;;  %vm377_vm15 = vcmp.eq.s32.totalorder %v358_v60, 1  ;;  %v136_v60 = vrot.slane %v8858_v5, %v8717_v32 }
  0x81   :  { %1009 = vrot.lane.b32.xlu0 %v8707_v24, %s8598_s19  ;;  %670 = vrot.lane.b32.xlu1 %v8729_v39, %s8595_s16  ;;  %v241_v24 = vrot.slane %v8861_v6, %v8688_v16 }
  0x83   :  { %vm8912_vm8 = vcmp.eq.s32.totalorder %v241_v24, 1 }
  0x85   :  { %672 = vrot.lane.b32.xlu0 %v8732_v40, %s8595_s16  ;;  %791 = vrot.lane.b32.xlu1 %v8729_v39, %s8596_s17  ;;  %s9228_s16 = sld [smem:[#allocation3 + $0x3]] }
  0x89   :  { %793 = vrot.lane.b32.xlu0 %v8732_v40, %s8596_s17  ;;  %905 = vrot.lane.b32.xlu1 %v8729_v39, %s8597_s18  ;;  %s9231_s17 = sld [smem:[#allocation3 + $0x103]] }
  0x8d   :  { %907 = vrot.lane.b32.xlu0 %v8732_v40, %s8597_s18  ;;  %1011 = vrot.lane.b32.xlu1 %v8729_v39, %s8598_s19  ;;  %s9245_s18 = sld [smem:[#allocation3 + $0x183]] }
  0x91   :  { %1013 = vrot.lane.b32.xlu0 %v8732_v40, %s8598_s19  ;;  %v245_v40 = vrot.slane %v8861_v6, %v8684_v14  ;;  %s9284_s19 = sld [smem:[#allocation3 + $0x85]] }
  0x93   :  { %vm8939_vm9 = vcmp.eq.s32.totalorder %v245_v40, 1  ;;  %12835 = sst [smem:[#allocation16_spill]] %s9245_s18 }
  0x94   :  { %s9719_s18 = sld [smem:[#allocation3 + $0x284]] }
  0x9a   :  { %12884 = sst [smem:[#allocation21_spill]] %s9719_s18 }
  0x9b   :  { %v81_v9 = vpop.permute.xlu0 %80  ;;  %v85_v10 = vpop.permute.xlu1 %84 }
  0x9c   :  { %v105_v28 = vsel %vm92_vm0, 0.0, %v81_v9 }
  0x9d   :  { %v144_v42 = vsel %vm8885_vm1, %v105_v28, 0.0  ;;  %vm378_vm1 = vcmp.eq.s32.totalorder %v362_v8, 1 }
  0x9f   :  { %v201_v21 = vpop.permute.xlu0 %200  ;;  %v8876_v22 = vpop.permute.xlu1 %86 }
  0xa0   :  { %v95_v33 = vsel %vm92_vm0, %v85_v10, %v8876_v22  ;;  %v225_v48 = vsel %vm212_vm2, 0.0, %v201_v21 }
  0xa1   :  { %v147_v49 = vsel %vm8894_vm4, %v95_v33, 0.0  ;;  %v265_v61 = vsel %vm8890_vm3, %v225_v48, 0.0  ;;  %vm456_vm3 = vcmask 7168  }
  0xa3   :  { %v83_v36 = vpop.permute.xlu0 %82  ;;  %v203_v38 = vpop.permute.xlu1 %202 }
  0xa4   :  { %v93_v43 = vsel %vm92_vm0, %v81_v9, %v83_v36  ;;  %v94_v44 = vsel %vm92_vm0, %v83_v36, %v85_v10  ;;  %v213_v46 = vsel %vm212_vm2, %v201_v21, %v203_v38  ;;  %v8972_v21 = vsel %vm473_vm11, 1, %v8592_v17 }
  0xa5   :  { %v145_v51 = vsel %vm8900_vm5, %v93_v43, 0.0  ;;  %v146_v52 = vsel %vm8904_vm6, %v94_v44, 0.0  ;;  %v266_v55 = vsel %vm8908_vm7, %v213_v46, 0.0  ;;  %v478_v33 = vrot.slane %v8972_v21, %v8682_v13 }
  0xa6   :  { %v158_v53 = vcombine.low %v144_v42, %v145_v51  ;;  %v159_v54 = vcombine.low %v146_v52, %v147_v49  ;;  %v279_v1 = vcombine.low %v265_v61, %v266_v55  ;;  %v482_v34 = vrot.slane %v8972_v21, %v8686_v15 }
  0xa7   :  { %v205_v57 = vpop.permute.xlu0 %204  ;;  %v8943_v59 = vpop.permute.xlu1 %206  ;;  %v486_v43 = vrot.slane %v8972_v21, %v8688_v16  ;;  %vm8997_vm4 = vcmp.eq.s32.totalorder %v478_v33, 1  ;;  %v490_v48 = vrot.slane %v8972_v21, %v8684_v14  ;;  %v374_v33 = vrot.slane %v8883_v25, %v8717_v32 }
  0xa8   :  { %v166_v62 = vrot.slane %v158_v53, %v8647_v7  ;;  %v173_v63 = vrot.slane %v159_v54, %v8647_v7  ;;  %v214_v0 = vsel %vm212_vm2, %v203_v38, %v205_v57  ;;  %v215_v3 = vsel %vm212_vm2, %v205_v57, %v8943_v59 }
  0xa9   :  { %v267_v2 = vsel %vm8912_vm8, %v214_v0, 0.0  ;;  %v268_v10 = vsel %vm8939_vm9, %v215_v3, 0.0  ;;  %v287_v26 = vrot.slane %v279_v1, %v8647_v7  ;;  %vm9001_vm5 = vcmp.eq.s32.totalorder %v482_v34, 1 }
  0xaa   :  { %v8958_v9 = vcombine.low %v166_v62, %v173_v63  ;;  %v280_v18 = vcombine.low %v267_v2, %v268_v10  ;;  %vm9015_vm6 = vcmp.eq.s32.totalorder %v486_v43, 1  ;;  %vm506_vm7 = vcmp.eq.s32.totalorder %v490_v48, 1 }
  0xab   :  { %v318_v19 = vpop.permute.xlu0 %317  ;;  %v320_v20 = vpop.permute.xlu1 %319  ;;  %v128_v62 = vrot.slane %v8858_v5, %v8710_v27  ;;  %v132_v63 = vrot.slane %v8858_v5, %v8715_v31  ;;  %v249_v3 = vrot.slane %v8861_v6, %v8710_v27  ;;  %vm9037_vm8 = vcmp.eq.s32.totalorder %v136_v60, 1 }
  0xac   :  { %193 = vst [vmem:[#allocation2] sm:$0xff] %v8958_v9  ;;  %v342_v23 = vsel %vm329_vm10, 0.0, %v318_v19  ;;  %v330_v24 = vsel %vm329_vm10, %v318_v19, %v320_v20  ;;  %v294_v28 = vrot.slane %v280_v18, %v8647_v7  ;;  %v257_v18 = vrot.slane %v8861_v6, %v8717_v32 }
  0xad   :  { %v382_v29 = vsel %vm8962_vm13, %v342_v23, 0.0  ;;  %v383_v30 = vsel %vm8966_vm14, %v330_v24, 0.0  ;;  %vm9043_vm9 = vcmp.eq.s32.totalorder %v128_v62, 1  ;;  %vm9047_vm11 = vcmp.eq.s32.totalorder %v132_v63, 1  ;;  %v7634_v62 = vld [vmem:[%s12691_s1 + $0x2a] sm:$0x7f] }
  0xae   :  { %v8987_v35 = vcombine.low %v287_v26, %v294_v28  ;;  %v396_v38 = vcombine.low %v382_v29, %v383_v30  ;;  %v253_v24 = vrot.slane %v8861_v6, %v8715_v31  ;;  %v7633_v26 = vld [vmem:[%s12691_s1 + $0x23] sm:$0x7f]  ;;  %vm9057_vm13 = vcmp.eq.s32.totalorder %v249_v3, 1 }
  0xaf   :  { %v322_v36 = vpop.permute.xlu0 %321  ;;  %v8989_v37 = vpop.permute.xlu1 %323  ;;  %vm9071_vm14 = vcmp.eq.s32.totalorder %v257_v18, 1 }
  0xb0   :  { %v331_v39 = vsel %vm329_vm10, %v320_v20, %v322_v36  ;;  %v332_v40 = vsel %vm329_vm10, %v322_v36, %v8989_v37  ;;  %315 = vst [vmem:[#allocation2 + $0xe] sm:$0xff] %v8987_v35  ;;  %v404_v52 = vrot.slane %v396_v38, %v8647_v7 }
  0xb1   :  { %v384_v41 = vsel %vm377_vm15, %v331_v39, 0.0  ;;  %v385_v42 = vsel %vm378_vm1, %v332_v40, 0.0  ;;  %vm692_vm15 = vcmp.ne.f32.partialorder %v7633_v26, 0.0 }
  0xb2   :  { %v397_v44 = vcombine.low %v384_v41, %v385_v42 }
  0xb3   :  { %v443_v49 = vpop.permute.xlu0 %442  ;;  %v445_v51 = vpop.permute.xlu1 %444 }
  0xb4   :  { %v411_v53 = vrot.slane %v397_v44, %v8647_v7  ;;  %v470_v54 = vsel %vm456_vm3, 0.0, %v443_v49  ;;  %v457_v55 = vsel %vm456_vm3, %v443_v49, %v445_v51 }
  0xb5   :  { %v510_v56 = vsel %vm8997_vm4, %v470_v54, 0.0  ;;  %v511_v57 = vsel %vm9001_vm5, %v457_v55, 0.0  ;;  %v9088_v54 = vsel %vm692_vm15, 1, %v8592_v17  ;;  %vm812_vm4 = vcmp.ne.f32.partialorder %v7634_v62, 0.0 }
  0xb6   :  { %v9021_v61 = vcombine.low %v404_v52, %v411_v53  ;;  %v524_v0 = vcombine.low %v510_v56, %v511_v57  ;;  %v701_v58 = vrot.slane %v9088_v54, %v8686_v15  ;;  %v9130_v26 = vsel %vm812_vm4, 1, %v8592_v17 }
  0xb7   :  { %v447_v1 = vpop.permute.xlu0 %446  ;;  %v9027_v2 = vpop.permute.xlu1 %448  ;;  %v494_v62 = vrot.slane %v8972_v21, %v8710_v27 }
  0xb8   :  { %432 = vst [vmem:[#allocation2 + $0x1c] sm:$0xff] %v9021_v61  ;;  %v458_v8 = vsel %vm456_vm3, %v445_v51, %v447_v1  ;;  %v459_v10 = vsel %vm456_vm3, %v447_v1, %v9027_v2  ;;  %v532_v28 = vrot.slane %v524_v0, %v8647_v7  ;;  %v697_v0 = vrot.slane %v9088_v54, %v8682_v13 }
  0xb9   :  { %v512_v11 = vsel %vm9015_vm6, %v458_v8, 0.0  ;;  %v513_v12 = vsel %vm506_vm7, %v459_v10, 0.0  ;;  %v705_v1 = vrot.slane %v9088_v54, %v8688_v16  ;;  %vm9103_vm1 = vcmp.eq.s32.totalorder %v701_v58, 1 }
  0xba   :  { %v525_v19 = vcombine.low %v512_v11, %v513_v12  ;;  %v709_v10 = vrot.slane %v9088_v54, %v8684_v14  ;;  %vm9115_vm5 = vcmp.eq.s32.totalorder %v697_v0, 1 }
  0xbb   :  { %v89_v29 = vpop.permute.xlu0 %88  ;;  %v91_v30 = vpop.permute.xlu1 %90  ;;  %vm9123_vm6 = vcmp.eq.s32.totalorder %v705_v1, 1  ;;  %v825_v1 = vrot.slane %v9130_v26, %v8688_v16 }
  0xbc   :  { %v539_v34 = vrot.slane %v525_v19, %v8647_v7  ;;  %v96_v36 = vsel %vm92_vm0, %v8876_v22, %v89_v29  ;;  %v97_v38 = vsel %vm92_vm0, %v89_v29, %v91_v30  ;;  %v150_v6 = vsel %vm9037_vm8, %v91_v30, 0.0 }
  0xbd   :  { %v148_v39 = vsel %vm9043_vm9, %v96_v36, 0.0  ;;  %v149_v40 = vsel %vm9047_vm11, %v97_v38, 0.0  ;;  %v189_v22 = vrot.slane %v150_v6, %v8647_v7  ;;  %vm263_vm0 = vcmp.eq.s32.totalorder %v253_v24, 1 }
  0xbe   :  { %v9075_v42 = vcombine.low %v532_v28, %v539_v34  ;;  %v175_v43 = vcombine.low %v148_v39, %v149_v40  ;;  %v366_v24 = vrot.slane %v8883_v25, %v8710_v27  ;;  %vm9133_vm7 = vcmp.eq.s32.totalorder %v709_v10, 1 }
  0xbf   :  { %v209_v44 = vpop.permute.xlu0 %208  ;;  %v211_v46 = vpop.permute.xlu1 %210  ;;  %v370_v30 = vrot.slane %v8883_v25, %v8715_v31  ;;  %v817_v25 = vrot.slane %v9130_v26, %v8682_v13  ;;  %vm9179_vm11 = vcmp.eq.s32.totalorder %v374_v33, 1  ;;  %vm9247_vm15 = vcmp.eq.s32.totalorder %v825_v1, 1 }
  0xc0   :  { %560 = vst [vmem:[#allocation2 + $0x2a] sm:$0xff] %v9075_v42  ;;  %v182_v47 = vrot.slane %v175_v43, %v8647_v7  ;;  %v216_v48 = vsel %vm212_vm2, %v8943_v59, %v209_v44  ;;  %v217_v49 = vsel %vm212_vm2, %v209_v44, %v211_v46  ;;  %v271_v51 = vsel %vm9071_vm14, %v211_v46, 0.0 }
  0xc1   :  { %v269_v52 = vsel %vm9057_vm13, %v216_v48, 0.0  ;;  %v270_v53 = vsel %vm263_vm0, %v217_v49, 0.0  ;;  %v310_v57 = vrot.slane %v271_v51, %v8647_v7  ;;  %vm674_vm2 = vcmask 1039360  }
  0xc2   :  { %v190_v55 = vcombine.low %v182_v47, %v189_v22  ;;  %v296_v56 = vcombine.low %v269_v52, %v270_v53  ;;  %vm9165_vm8 = vcmp.eq.s32.totalorder %v366_v24, 1  ;;  %v821_v22 = vrot.slane %v9130_v26, %v8686_v15 }
  0xc3   :  { %v661_v59 = vpop.permute.xlu0 %660  ;;  %v663_v60 = vpop.permute.xlu1 %662  ;;  %vm9175_vm9 = vcmp.eq.s32.totalorder %v370_v30, 1  ;;  %vm795_vm13 = vcmask 826368   ;;  %v1200_v52 = vstv %s9109_s25  ;;  %v1110_v53 = vstv %s9111_s26  ;;  %s9691_s25 = sld [smem:[#allocation3 + $0x204]]  ;;  %s9700_s26 = sld [smem:[#allocation3 + $0x282]] }
  0xc4   :  { %199 = vst.msk [vmem:[#allocation2 + $0x8] sm:$0x3f] %vm8751_vm12, %v190_v55  ;;  %v303_v63 = vrot.slane %v296_v56, %v8647_v7  ;;  %v675_v18 = vsel %vm674_vm2, %v661_v59, %v663_v60  ;;  %vm9196_vm14 = vcmp.eq.s32.totalorder %v817_v25, 1  ;;  %v1212_v43 = vstv %s9183_s8  ;;  %s9721_s8 = sld [smem:[#allocation3 + $0x300]] }
  0xc5   :  { %v729_v34 = vsel %vm9115_vm5, %v675_v18, 0.0  ;;  %vm9338_vm5 = vcmp.eq.s32.totalorder %v494_v62, 1  ;;  %v1150_v25 = vstv %s9287_s20  ;;  %v1166_v33 = vstv %s9402_s6  ;;  %s9851_s20 = sld [smem:[#allocation3 + $0x380]]  ;;  %s10409_s6 = sld [smem:[#allocation3 + $0x307]] }
  0xc6   :  { %v311_v3 = vcombine.low %v303_v63, %v310_v57 }
  0xc7   :  { %v665_v11 = vpop.permute.xlu0 %664  ;;  %v667_v12 = vpop.permute.xlu1 %666 }
  0xc8   :  { %316 = vst.msk [vmem:[#allocation2 + $0x16] sm:$0x3f] %vm8751_vm12, %v311_v3  ;;  %v676_v19 = vsel %vm674_vm2, %v663_v60, %v665_v11  ;;  %v677_v28 = vsel %vm674_vm2, %v665_v11, %v667_v12  ;;  %v829_v3 = vrot.slane %v9130_v26, %v8684_v14  ;;  %v1206_v11 = vstv %s9141_s27  ;;  %s9680_s27 = sld [smem:[#allocation3 + $0x281]] }
  0xc9   :  { %v730_v20 = vsel %vm9103_vm1, %v676_v19, 0.0  ;;  %v731_v40 = vsel %vm9123_vm6, %v677_v28, 0.0 }
  0xca   :  { %v743_v6 = vcombine.low %v729_v34, %v730_v20  ;;  %vm9251_vm0 = vcmp.eq.s32.totalorder %v829_v3, 1  ;;  %v7636_v3 = vld [vmem:[%s12691_s1 + $0x38] sm:$0x7f] }
  0xcb   :  { %v9147_v36 = vpop.permute.xlu0 %668  ;;  %v326_v38 = vpop.permute.xlu1 %325  ;;  %vm1032_vm4 = vcmp.ne.f32.partialorder %v7636_v3, 0.0  ;;  %v12722_v3 = vstv %s9303_s5  ;;  %12900 = sst [smem:[#allocation24_spill]] %s9851_s20  ;;  %s12932_s20 = sld [smem:[#allocation20_spill]] }
  0xcc   :  { %v678_v39 = vsel %vm674_vm2, %v667_v12, %v9147_v36  ;;  %v333_v46 = vsel %vm329_vm10, %v8989_v37, %v326_v38  ;;  %v751_v37 = vrot.slane %v743_v6, %v8647_v7  ;;  %v1118_v12 = vstv %s9149_s29  ;;  %s9712_s29 = sld [smem:[#allocation6]] }
  0xcd   :  { %v732_v41 = vsel %vm9133_vm7, %v678_v39, 0.0  ;;  %v386_v58 = vsel %vm9165_vm8, %v333_v46, 0.0  ;;  %v7635_v39 = vld [vmem:[%s12691_s1 + $0x31] sm:$0x7f]  ;;  %s9315_s1 = sld [smem:[#allocation3 + $0x6]]  ;;  %vm909_vm7 = vcmask 818176  }
  0xce   :  { %v744_v44 = vcombine.low %v731_v40, %v732_v41  ;;  %vm926_vm1 = vcmp.ne.f32.partialorder %v7635_v39, 0.0 }
  0xcf   :  { %v328_v49 = vpop.permute.xlu0 %327  ;;  %v782_v51 = vpop.permute.xlu1 %781 }
  0xd0   :  { %v758_v55 = vrot.slane %v744_v44, %v8647_v7  ;;  %v334_v56 = vsel %vm329_vm10, %v326_v38, %v328_v49  ;;  %v388_v60 = vsel %vm9179_vm11, %v328_v49, 0.0  ;;  %vm9210_vm10 = vcmp.eq.s32.totalorder %v821_v22, 1 }
  0xd1   :  { %v387_v59 = vsel %vm9175_vm9, %v334_v56, 0.0  ;;  %v427_v20 = vrot.slane %v388_v60, %v8647_v7  ;;  %v1126_v22 = vstv %s9185_s9  ;;  %v1218_v56 = vstv %s9200_s12  ;;  %s9740_s12 = sld [smem:[#allocation3 + $0x301]]  ;;  %s9765_s9 = sld [smem:[#allocation3 + $0x107]] }
  0xd2   :  { %v9216_v63 = vcombine.low %v751_v37, %v758_v55  ;;  %v413_v0 = vcombine.low %v386_v58, %v387_v59  ;;  %v12709_v58 = vstv %s9214_s14  ;;  %v12703_v59 = vstv %s9222_s15  ;;  %s10003_s15 = sld [smem:[#allocation3 + $0x285]] }
  0xd3   :  { %v784_v8 = vpop.permute.xlu0 %783  ;;  %v786_v10 = vpop.permute.xlu1 %785  ;;  %v12700_v60 = vstv %s9224_s0  ;;  %s9455_s0 = sld [smem:[#allocation6 + $0x1]]  ;;  %v1219_v18 = vmul.f32 %v1218_v56, %v9075_v42  ;;  %v1127_v44 = vmul.f32 %v1126_v22, %v9021_v61 }
  0xd4   :  { %779 = vst [vmem:[#allocation2 + $0x46] sm:$0xff] %v9216_v63  ;;  %v420_v19 = vrot.slane %v413_v0, %v8647_v7  ;;  %v796_v23 = vsel %vm795_vm13, %v782_v51, %v784_v8  ;;  %v797_v24 = vsel %vm795_vm13, %v784_v8, %v786_v10  ;;  %v1224_v51 = vstv %s9202_s13  ;;  %s9774_s13 = sld [smem:[#allocation3 + $0x108]] }
  0xd5   :  { %v844_v28 = vsel %vm9196_vm14, %v796_v23, 0.0  ;;  %v845_v29 = vsel %vm9210_vm10, %v797_v24, 0.0  ;;  %v9301_v8 = vmul.f32 %v1224_v51, %v8738_v45  ;;  %v498_v24 = vrot.slane %v8972_v21, %v8715_v31 }
  0xd6   :  { %v428_v34 = vcombine.low %v420_v19, %v427_v20  ;;  %v857_v47 = vcombine.low %v844_v28, %v845_v29  ;;  %v9313_v28 = vsel %vm926_vm1, 1, %v8592_v17  ;;  %v9320_v29 = vmul.f32 %v12709_v58, %v8738_v45 }
  0xd7   :  { %v788_v40 = vpop.permute.xlu0 %787  ;;  %v9261_v41 = vpop.permute.xlu1 %789  ;;  %v9331_v6 = vmul.f32 %v12700_v60, %v8738_v45  ;;  %vm9351_vm6 = vcmp.eq.s32.totalorder %v498_v24, 1  ;;  %v939_v60 = vrot.slane %v9313_v28, %v8688_v16  ;;  %v1111_v19 = vmul.f32 %v1110_v53, %v8958_v9 }
  0xd8   :  { %433 = vst.msk [vmem:[#allocation2 + $0x24] sm:$0x3f] %vm8751_vm12, %v428_v34  ;;  %v798_v48 = vsel %vm795_vm13, %v786_v10, %v788_v40  ;;  %v799_v49 = vsel %vm795_vm13, %v788_v40, %v9261_v41  ;;  %v1134_v10 = vstv %s9228_s16  ;;  %v865_v20 = vrot.slane %v857_v47, %v8647_v7  ;;  %s9768_s16 = sld [smem:[#allocation3 + $0x283]] }
  0xd9   :  { %v846_v37 = vsel %vm9247_vm15, %v798_v48, 0.0  ;;  %v847_v55 = vsel %vm9251_vm0, %v799_v49, 0.0  ;;  %v9325_v34 = vmul.f32 %v12703_v59, %v8738_v45  ;;  %v935_v40 = vrot.slane %v9313_v28, %v8686_v15 }
  0xda   :  { %v858_v57 = vcombine.low %v846_v37, %v847_v55  ;;  %v931_v37 = vrot.slane %v9313_v28, %v8682_v13  ;;  %v502_v45 = vrot.slane %v8972_v21, %v8717_v32  ;;  %v1158_v48 = vstv %s9315_s1  ;;  %s9871_s1 = sld [smem:[#allocation6 + $0x2]] }
  0xdb   :  { %v451_v0 = vpop.permute.xlu0 %450  ;;  %v9293_v1 = vpop.permute.xlu1 %452  ;;  %vm9367_vm8 = vcmp.eq.s32.totalorder %v935_v40, 1  ;;  %vm9390_vm11 = vcmp.eq.s32.totalorder %v939_v60, 1  ;;  %vm1015_vm15 = vcmask 809984  }
  0xdc   :  { %v872_v23 = vrot.slane %v858_v57, %v8647_v7  ;;  %v460_v62 = vsel %vm456_vm3, %v9027_v2, %v451_v0  ;;  %v943_v57 = vrot.slane %v9313_v28, %v8684_v14  ;;  %v9365_v2 = vsel %vm1032_vm4, 1, %v8592_v17 }
  0xdd   :  { %v514_v4 = vsel %vm9338_vm5, %v460_v62, 0.0  ;;  %vm9378_vm9 = vcmp.eq.s32.totalorder %v931_v37, 1  ;;  %v1037_v47 = vrot.slane %v9365_v2, %v8682_v13  ;;  %vm9398_vm10 = vcmp.eq.s32.totalorder %v502_v45, 1 }
  0xde   :  { %v9333_v39 = vcombine.low %v865_v20, %v872_v23  ;;  %v461_v23 = vsel %vm456_vm3, %v451_v0, %v9293_v1  ;;  %v12710_v0 = vstv %s9284_s19  ;;  %vm9394_vm14 = vcmp.eq.s32.totalorder %v943_v57, 1 }
  0xdf   :  { %v896_v49 = vpop.permute.xlu0 %895  ;;  %v898_v55 = vpop.permute.xlu1 %897  ;;  %v515_v38 = vsel %vm9351_vm6, %v461_v23, 0.0  ;;  %v1045_v45 = vrot.slane %v9365_v2, %v8688_v16  ;;  %v1049_v24 = vrot.slane %v9365_v2, %v8684_v14  ;;  %vm9420_vm0 = vcmp.eq.s32.totalorder %v1037_v47, 1 }
  0xe0   :  { %893 = vst [vmem:[#allocation2 + $0x54] sm:$0xff] %v9333_v39  ;;  %v910_v40 = vsel %vm909_vm7, %v896_v49, %v898_v55  ;;  %v541_v13 = vcombine.low %v514_v4, %v515_v38  ;;  %v12720_v4 = vstv %s9344_s3  ;;  %v1207_v47 = vmul.f32 %v1206_v11, %v8987_v35 }
  0xe1   :  { %v958_v60 = vsel %vm9378_vm9, %v910_v40, 0.0  ;;  %v713_v40 = vrot.slane %v9088_v54, %v8710_v27  ;;  %v717_v37 = vrot.slane %v9088_v54, %v8715_v31  ;;  %vm9461_vm1 = vcmp.eq.s32.totalorder %v1045_v45, 1 }
  0xe2   :  { %vm9465_vm4 = vcmp.eq.s32.totalorder %v1049_v24, 1  ;;  %vm688_vm6 = vcmask 121856  }
  0xe3   :  { %v900_v21 = vpop.permute.xlu0 %899  ;;  %v902_v17 = vpop.permute.xlu1 %901  ;;  %vm9477_vm5 = vcmp.eq.s32.totalorder %v713_v40, 1  ;;  %v837_v40 = vrot.slane %v9130_v26, %v8715_v31 }
  0xe4   :  { %v911_v46 = vsel %vm909_vm7, %v898_v55, %v900_v21  ;;  %v912_v55 = vsel %vm909_vm7, %v900_v21, %v902_v17 }
  0xe5   :  { %v959_v62 = vsel %vm9367_vm8, %v911_v46, 0.0  ;;  %v1041_v46 = vrot.slane %v9365_v2, %v8686_v15  ;;  %v960_v14 = vsel %vm9390_vm11, %v912_v55, 0.0  ;;  %vm9481_vm8 = vcmp.eq.s32.totalorder %v717_v37, 1 }
  0xe6   :  { %v970_v38 = vcombine.low %v958_v60, %v959_v62  ;;  %vm808_vm11 = vcmask 957440  }
  0xe7   :  { %v9409_v57 = vpop.permute.xlu0 %903  ;;  %v455_v23 = vpop.permute.xlu1 %454 }
  0xe8   :  { %v913_v21 = vsel %vm909_vm7, %v902_v17, %v9409_v57  ;;  %v462_v15 = vsel %vm456_vm3, %v9293_v1, %v455_v23  ;;  %v548_v17 = vrot.slane %v541_v13, %v8647_v7  ;;  %vm9443_vm3 = vcmp.eq.s32.totalorder %v1041_v46, 1 }
  0xe9   :  { %v961_v16 = vsel %vm9394_vm14, %v913_v21, 0.0  ;;  %v516_v1 = vsel %vm9398_vm10, %v462_v15, 0.0  ;;  %v721_v23 = vrot.slane %v9088_v54, %v8717_v32  ;;  %v1201_v13 = vmul.f32 %v1200_v52, %v8958_v9  ;;  %v9457_v15 = vld [vmem:[#allocation2 + $0x40] sm:$0x3f] }
  0xea   :  { %v971_v62 = vcombine.low %v960_v14, %v961_v16  ;;  %v555_v60 = vrot.slane %v516_v1, %v8647_v7  ;;  %v1213_v21 = vmul.f32 %v1212_v43, %v9021_v61  ;;  %v978_v14 = vrot.slane %v970_v38, %v8647_v7 }
  0xeb   :  { %v1002_v20 = vpop.permute.xlu0 %1001  ;;  %v1004_v55 = vpop.permute.xlu1 %1003  ;;  %v1209_v54 = vadd.f32 %v1207_v47, %v1201_v13  ;;  %v833_v38 = vrot.slane %v9130_v26, %v8710_v27  ;;  %vm9487_vm9 = vcmp.eq.s32.totalorder %v721_v23, 1  ;;  %v9496_v37 = vmul.f32 %v1224_v51, %v9457_v15 }
  0xec   :  { %v985_v46 = vrot.slane %v971_v62, %v8647_v7  ;;  %v556_v16 = vcombine.low %v548_v17, %v555_v60  ;;  %v1016_v13 = vsel %vm1015_vm15, %v1002_v20, %v1004_v55  ;;  %v947_v23 = vrot.slane %v9313_v28, %v8710_v27 }
  0xed   :  { %v1215_v60 = vadd.f32 %v1213_v21, %v1209_v54  ;;  %v12721_v21 = vstv %s9426_s24  ;;  %v951_v20 = vrot.slane %v9313_v28, %v8715_v31  ;;  %v1064_v49 = vsel %vm9420_vm0, %v1016_v13, 0.0 }
  0xee   :  { %v9473_v58 = vcombine.low %v978_v14, %v985_v46  ;;  %561 = vst.msk [vmem:[#allocation2 + $0x32] sm:$0x3f] %vm8751_vm12, %v556_v16  ;;  %v1119_v46 = vmul.f32 %v1118_v12, %v8987_v35  ;;  %vm9522_vm14 = vcmp.eq.s32.totalorder %v833_v38, 1  ;;  %vm9526_vm10 = vcmp.eq.s32.totalorder %v837_v40, 1 }
  0xef   :  { %v1006_v47 = vpop.permute.xlu0 %1005  ;;  %v1008_v17 = vpop.permute.xlu1 %1007  ;;  %v1221_v51 = vadd.f32 %v1219_v18, %v1215_v60  ;;  %v1254_v28 = vstv %s9455_s0  ;;  %vm922_vm0 = vcmask 949248   ;;  %s9906_s0 = sld [smem:[#allocation3 + $0x205]] }
  0xf0   :  { %999 = vst [vmem:[#allocation2 + $0x62] sm:$0xff] %v9473_v58  ;;  %v1017_v14 = vsel %vm1015_vm15, %v1004_v55, %v1006_v47  ;;  %v1018_v54 = vsel %vm1015_vm15, %v1006_v47, %v1008_v17  ;;  %v1053_v55 = vrot.slane %v9365_v2, %v8710_v27  ;;  %v1231_v27 = vmul.f32 %v12710_v0, %v9216_v63 }
  0xf1   :  { %v1065_v26 = vsel %vm9443_vm3, %v1017_v14, 0.0  ;;  %v1121_v38 = vadd.f32 %v1119_v46, %v1111_v19  ;;  %v1066_v40 = vsel %vm9461_vm1, %v1018_v54, 0.0  ;;  %v1227_v30 = vadd.f32 %v9301_v8, %v1221_v51 }
  0xf2   :  { %v1076_v59 = vcombine.low %v1064_v49, %v1065_v26  ;;  %v1237_v0 = vmul.f32 %v12722_v3, %v9333_v39  ;;  %v1057_v19 = vrot.slane %v9365_v2, %v8715_v31  ;;  %vm9551_vm3 = vcmp.eq.s32.totalorder %v947_v23, 1 }
  0xf3   :  { %v9520_v14 = vpop.permute.xlu0 %1009  ;;  %v671_v18 = vpop.permute.xlu1 %670  ;;  %vm9555_vm1 = vcmp.eq.s32.totalorder %v951_v20, 1  ;;  %v1233_v8 = vadd.f32 %v1231_v27, %v1227_v30  ;;  %v1129_v51 = vadd.f32 %v1127_v44, %v1121_v38  ;;  %v9572_v20 = vld [vmem:[%s12692_s2 + $0xa0] sm:$0xff]  ;;  %v9577_v30 = vld [vmem:[%s12692_s2 + $0xd8] sm:$0x3]  ;;  %v9588_v27 = vld [vmem:[%s12692_s2 + $0x90] sm:$0xff]  ;;  %v12723_v38 = vmov 0.0  }
  0xf4   :  { %v1019_v13 = vsel %vm1015_vm15, %v1008_v17, %v9520_v14  ;;  %v679_v26 = vsel %vm674_vm2, %v9147_v36, %v671_v18  ;;  %v1135_v36 = vmul.f32 %v1134_v10, %v9075_v42  ;;  %v1084_v31 = vrot.slane %v1076_v59, %v8647_v7  ;;  %v9593_v59 = vld [vmem:[%s12692_s2 + $0xc8] sm:$0x3] }
  0xf5   :  { %v1067_v5 = vsel %vm9465_vm4, %v1019_v13, 0.0  ;;  %v733_v44 = vsel %vm9477_vm5, %v679_v26, 0.0  ;;  %v9595_v13 = vld [vmem:[#allocation2 + $0x16] sm:$0x3f]  ;;  %v9601_v62 = vrot.slane %v12723_v38, %v8647_v7  ;;  %vm9615_vm4 = vcmp.eq.s32.totalorder %v1053_v55, 1 }
  0xf6   :  { %v1077_v16 = vcombine.low %v1066_v40, %v1067_v5  ;;  %v1243_v5 = vmul.f32 %v12720_v4, %v9473_v58  ;;  %v9611_v40 = vld [vmem:[%s12692_s2 + $0x50] sm:$0x3]  ;;  %vm9619_vm5 = vcmp.eq.s32.totalorder %v1057_v19, 1  ;;  %v9635_v19 = vld [vmem:[%s12692_s2 + $0x8] sm:$0xff] }
  0xf7   :  { %v673_v17 = vpop.permute.xlu0 %672  ;;  %v792_v1 = vpop.permute.xlu1 %791 }
  0xf8   :  { %v1091_v2 = vrot.slane %v1077_v16, %v8647_v7  ;;  %v680_v23 = vsel %vm674_vm2, %v671_v18, %v673_v17  ;;  %v689_v54 = vsel %vm688_vm6, %v673_v17, 0.0  ;;  %v1239_v18 = vadd.f32 %v1237_v0, %v1233_v8  ;;  %v9606_v0 = vld [vmem:[%s12692_s2 + $0x18] sm:$0xff] }
  0xf9   :  { %v734_v16 = vsel %vm9481_vm8, %v680_v23, 0.0  ;;  %v735_v49 = vsel %vm9487_vm9, %v689_v54, 0.0  ;;  %vm1028_vm2 = vcmask 941056   ;;  %v800_v26 = vsel %vm795_vm13, %v9261_v41, %v792_v1 }
  0xfa   :  { %v9597_v45 = vcombine.low %v1084_v31, %v1091_v2  ;;  %v760_v24 = vcombine.low %v733_v44, %v734_v16  ;;  %v1245_v23 = vadd.f32 %v1243_v5, %v1239_v18  ;;  %v1137_v44 = vadd.f32 %v1135_v36, %v1129_v51  ;;  %v9640_v5 = vld [vmem:[%s12692_s2 + $0x40] sm:$0x3]  ;;  %v9642_v51 = vld [vmem:[#allocation2 + $0x8] sm:$0x3f] }
  0xfb   :  { %v794_v17 = vpop.permute.xlu0 %793  ;;  %v906_v8 = vpop.permute.xlu1 %905  ;;  %v774_v16 = vrot.slane %v735_v49, %v8647_v7  ;;  %v8224_v49 = vpack.c.bf16 %v9593_v59, %v9588_v27  ;;  %v8234_v18 = vpack.c.bf16 %v9611_v40, %v9606_v0  ;;  %v8230_v54 = vpack.c.bf16 %v9640_v5, %v9635_v19 }
  0xfc   :  { %1105 = vst [vmem:[#allocation2 + $0x70] sm:$0xff] %v9597_v45  ;;  %v767_v41 = vrot.slane %v760_v24, %v8647_v7  ;;  %v801_v55 = vsel %vm795_vm13, %v792_v1, %v794_v17  ;;  %v1249_v4 = vmul.f32 %v12721_v21, %v9597_v45  ;;  %v1208_v1 = vmul.f32 %v1206_v11, %v9595_v13 }
  0xfd   :  { %v809_v36 = vsel %vm808_vm11, %v801_v55, 0.0  ;;  %v848_v17 = vsel %vm9522_vm14, %v800_v26, 0.0  ;;  %vm1315_vm13 = vcmask 130048   ;;  %v914_v3 = vsel %vm909_vm7, %v9409_v57, %v906_v8 }
  0xfe   :  { %v775_v24 = vcombine.low %v767_v41, %v774_v16  ;;  %v849_v21 = vsel %vm9526_vm10, %v809_v36, 0.0  ;;  %v1251_v55 = vadd.f32 %v1249_v4, %v1245_v23  ;;  %v1151_v41 = vmul.f32 %v1150_v25, %v9216_v63 }
  0xff   :  { %v874_v11 = vcombine.low %v848_v17, %v849_v21  ;;  %v908_v38 = vpop.permute.xlu0 %907  ;;  %v1012_v47 = vpop.permute.xlu1 %1011  ;;  %v1202_v4 = vmul.f32 %v1200_v52, %v9642_v51  ;;  %v1145_v57 = vadd.f32 %v9320_v29, %v1137_v44  ;;  %v1112_v16 = vmul.f32 %v1110_v53, %v9642_v51 }
 0x100   :  { %780 = vst.msk [vmem:[#allocation2 + $0x4e] sm:$0x3f] %vm8751_vm12, %v775_v24  ;;  %v915_v60 = vsel %vm909_vm7, %v906_v8, %v908_v38  ;;  %v1255_v21 = vadd.f32 %v1254_v28, %v1251_v55  ;;  %v1120_v36 = vmul.f32 %v1118_v12, %v9595_v13  ;;  %v9682_v38 = vld [vmem:[#allocation2 + $0x24] sm:$0x3f]  ;;  %v962_v52 = vsel %vm9551_vm3, %v914_v3, 0.0  ;;  %vm9747_vm7 = vmpackc.low %vm1315_vm13, %vm1315_vm13 }
 0x101   :  { %v881_v26 = vrot.slane %v874_v11, %v8647_v7  ;;  %v923_v23 = vsel %vm922_vm0, %v915_v60, 0.0  ;;  %v1210_v8 = vadd.f32 %v1208_v1, %v1202_v4  ;;  %v1020_v12 = vsel %vm1015_vm15, %v9520_v14, %v1012_v47  ;;  %v9693_v11 = vld [vmem:[#allocation2 + $0x32] sm:$0x3f] }
 0x102   :  { %v963_v29 = vsel %vm9555_vm1, %v923_v23, 0.0  ;;  %v1257_v44 = vmax.f32 %v1255_v21, 0.0  ;;  %v1153_v55 = vadd.f32 %v1151_v41, %v1145_v57  ;;  %v1159_v1 = vmul.f32 %v1158_v48, %v9333_v39 }
 0x103   :  { %v889_v24 = vcombine.low %v881_v26, %v9601_v62  ;;  %v987_v53 = vcombine.low %v962_v52, %v963_v29  ;;  %v1014_v17 = vpop.permute.xlu0 %1013  ;;  %v1214_v60 = vmul.f32 %v1212_v43, %v9682_v38  ;;  %v1068_v4 = vsel %vm9615_vm4, %v1020_v12, 0.0 }
 0x104   :  { %v1021_v3 = vsel %vm1015_vm15, %v1012_v47, %v1014_v17  ;;  %v1283_v46 = vrot.slane %v1257_v44, %v8647_v7  ;;  %v1276_v32 = vcombine.high %v1257_v44, %v1257_v44  ;;  %v1167_v47 = vmul.f32 %v1166_v33, %v9473_v58 }
 0x105   :  { %894 = vst.msk [vmem:[#allocation2 + $0x5c] sm:$0x3f] %vm8751_vm12, %v889_v24  ;;  %v994_v14 = vrot.slane %v987_v53, %v8647_v7  ;;  %v1029_v41 = vsel %vm1028_vm2, %v1021_v3, 0.0  ;;  %v1220_v52 = vmul.f32 %v1218_v56, %v9693_v11  ;;  %v1128_v31 = vmul.f32 %v1126_v22, %v9682_v38 }
 0x106   :  { %v1069_v21 = vsel %vm9619_vm5, %v1029_v41, 0.0  ;;  %v1291_v57 = vcombine.high %v1283_v46, %v1283_v46  ;;  %v1290_v26 = vrot.slane %v1276_v32, %v8647_v7  ;;  %v1161_v29 = vadd.f32 %v1159_v1, %v1153_v55 }
 0x107   :  { %v995_v43 = vcombine.low %v994_v14, %v9601_v62  ;;  %v1093_v23 = vcombine.low %v1068_v4, %v1069_v21  ;;  %v12885_v44 = vstv %s9437_s23  ;;  %v12886_v53 = vstv %s9157_s7  ;;  %v9754_v3 = vld [vmem:[#allocation2 + $0x4e] sm:$0x3f] }
 0x108   :  { %1388 = vmatprep.mubr.f32.mxu0 %v1291_v57  ;;  %v1292_v2 = vcombine.high %v1290_v26, %v1290_v26  ;;  %v1175_v24 = vmul.f32 %v12885_v44, %v9597_v45  ;;  %v1941_v12 = vmul.f32 %v12886_v53, %v8987_v35  ;;  %v1216_v56 = vadd.f32 %v1214_v60, %v1210_v8 }
 0x109   :  { %1000 = vst.msk [vmem:[#allocation2 + $0x6a] sm:$0x3f] %vm8751_vm12, %v995_v43  ;;  %v1100_v22 = vrot.slane %v1093_v23, %v8647_v7  ;;  %1389 = vmatmul.mubr.f32.vlgmr.msra.gmra.mrb[0].mxu0 %v1283_v46  ;;  %v1122_v55 = vadd.f32 %v1120_v36, %v1112_v16  ;;  %v1136_v35 = vmul.f32 %v1134_v10, %v9693_v11  ;;  %v12889_v46 = vstv %s9143_s28 }
 0x10a   :  { %1458 = vmatprep.mubr.f32.mxu1 %v1292_v2  ;;  %8225 = vmatpush1.bf16.xpose.msra.mxu0 %v8224_v49  ;;  %v1169_v8 = vadd.f32 %v1167_v47, %v1161_v29  ;;  %v1935_v32 = vmul.f32 %v12889_v46, %v8958_v9  ;;  %v12890_v1 = vstv %s9189_s10  ;;  %v12734_v16 = vstv %s9680_s27 }
 0x10b   :  { %v1947_v14 = vmul.f32 %v12890_v1, %v9021_v61  ;;  %v1101_v10 = vcombine.low %v1100_v22, %v9601_v62  ;;  %v1222_v36 = vadd.f32 %v1220_v52, %v1216_v56  ;;  %1459 = vmatmul.mubr.f32.vlgmr.msra.gmra.mrb[0].mxu1 %v1290_v26  ;;  %8231 = vmatprep.subr.bf16.mxu0 %v8230_v54  ;;  %v2768_v61 = vstv %s9691_s25  ;;  %v9802_v26 = vld [vmem:[#allocation2 + $0x38] sm:$0xff]  ;;  %s10243_s25 = sld [smem:[#allocation3 + $0x288]] }
 0x10c   :  { %v1130_v9 = vadd.f32 %v1128_v31, %v1122_v55  ;;  %v9777_v27 = vld [vmem:[#allocation2 + $0x5c] sm:$0x3f]  ;;  %v12891_v59 = vpack.c.bf16 %v9577_v30, %v9572_v20  ;;  %vm8601_vm15 = vmmov 0   ;;  %v12892_v62 = vmov 0.0  }
 0x10d   :  { %8106 = vmatprep.mubr.msk.f32.mxu1 %vm8601_vm15, %v12892_v62  ;;  %v1177_v54 = vadd.f32 %v1175_v24, %v1169_v8  ;;  %v1943_v19 = vadd.f32 %v1941_v12, %v1935_v32  ;;  %v12893_v5 = vstv %s9231_s17  ;;  %v3161_v41 = vstv %s9700_s26  ;;  %1106 = vst.msk [vmem:[#allocation2 + $0x78] sm:$0x3f] %vm8751_vm12, %v1101_v10  ;;  %s10398_s26 = sld [smem:[#allocation3 + $0x385]] }
 0x10e   :  { %8229 = vmatpush3.bf16.xpose.msk.msra.mxu1 %vm9747_vm7, %v12891_v59  ;;  %v1953_v49 = vmul.f32 %v12893_v5, %v9075_v42  ;;  %v12894_v20 = vstv %s9284_s19  ;;  %v1180_v60 = vstv %s9712_s29  ;;  %v1138_v47 = vadd.f32 %v1136_v35, %v1130_v9  ;;  %s9849_s19 = sld [smem:[#allocation3 + $0x304]] }
 0x10f   :  { %v1232_v30 = vmul.f32 %v12894_v20, %v9754_v3  ;;  %8235 = vmatprep.subr.bf16.mxu1 %v8234_v18  ;;  %v12895_v4 = vstv %s9214_s14  ;;  %v1949_v57 = vadd.f32 %v1947_v14, %v1943_v19  ;;  %v9807_v50 = vmul.f32 %v9802_v26, %v2768_v61  ;;  %s9819_s14 = sld [smem:[#allocation3 + $0x185]]  ;;  %s10030_s29 = sld [smem:[#allocation3 + $0x384]] }
 0x110   :  { %v1144_v21 = vmul.f32 %v12895_v4, %v9457_v15  ;;  %v12728_v43 = vstv %s9719_s18  ;;  %v1228_v40 = vadd.f32 %v9496_v37, %v1222_v36  ;;  %v12896_v18 = vstv %s9303_s5  ;;  %v9821_v2 = vld [vmem:[#allocation2 + $0x6a] sm:$0x3f]  ;;  %s9833_s5 = sld [smem:[#allocation3 + $0x302]]  ;;  %s9986_s18 = sld [smem:[#allocation3 + $0x381]] }
 0x111   :  { %v1238_v23 = vmul.f32 %v12896_v18, %v9777_v27  ;;  %v1152_v52 = vmul.f32 %v1150_v25, %v9754_v3  ;;  %v1964_v31 = vstv %s9730_s21  ;;  %v1181_v29 = vadd.f32 %v1180_v60, %v1177_v54  ;;  %s9979_s21 = sld [smem:[#allocation3 + $0x303]] }
 0x112   :  { %v1955_v44 = vadd.f32 %v1953_v49, %v1949_v57  ;;  %v1970_v37 = vstv %s9738_s22  ;;  %v3560_v24 = vstv %s9740_s12  ;;  %v1234_v53 = vadd.f32 %v1232_v30, %v1228_v40  ;;  %s10043_s22 = sld [smem:[#allocation3 + $0x206]] }
 0x113   :  { %v12897_v12 = vstv %s9344_s3  ;;  %v1146_v56 = vadd.f32 %v1144_v21, %v1138_v47  ;;  %v1160_v25 = vmul.f32 %v1158_v48, %v9777_v27  ;;  %v1965_v55 = vmul.f32 %v1964_v31, %v9216_v63  ;;  %s10307_s3 = sld [smem:[#allocation3 + $0x306]] }
 0x114   :  { %v1244_v22 = vmul.f32 %v12897_v12, %v9821_v2  ;;  %v1976_v35 = vstv %s9765_s9  ;;  %v3167_v8 = vstv %s9768_s16  ;;  %v9843_v46 = vmul.f32 %v9802_v26, %v12728_v43  ;;  %12899 = sst [smem:[#allocation23_spill]] %s9849_s19  ;;  %v9853_v10 = vld [vmem:[#allocation2 + $0x78] sm:$0x3f]  ;;  %s12917_s9 = sld [smem:[#allocation17_spill]] }
 0x115   :  { %v1240_v32 = vadd.f32 %v1238_v23, %v1234_v53  ;;  %v1154_v1 = vadd.f32 %v1152_v52, %v1146_v56  ;;  %v1168_v48 = vmul.f32 %v1166_v33, %v9821_v2  ;;  %v1982_v14 = vstv %s9774_s13  ;;  %s12921_s13 = sld [smem:[#allocation18_spill]]  ;;  %s12948_s16 = sld [smem:[#allocation23_spill]] }
 0x116   :  { %12898 = sst [smem:[#allocation22_spill]] %s9833_s5  ;;  %v1183_v36 = vmax.f32 %v1181_v29, 0.0  ;;  %v1961_v9 = vadd.f32 %v9325_v34, %v1955_v44  ;;  %v1971_v59 = vmul.f32 %v1970_v37, %v9333_v39  ;;  %v12901_v54 = vstv %s9157_s7  ;;  %v9879_v29 = vld [vmem:[#allocation2 + $0xe] sm:$0xff]  ;;  %s12907_s7 = sld [smem:[#allocation13_spill]] }
 0x117   :  { %v1942_v33 = vmul.f32 %v12901_v54, %v9595_v13  ;;  %v1246_v19 = vadd.f32 %v1244_v22, %v1240_v32  ;;  %v12902_v5 = vstv %s9426_s24  ;;  %v1162_v20 = vadd.f32 %v1160_v25, %v1154_v1  ;;  %s10169_s5 = sld [smem:[#allocation3 + $0x287]]  ;;  %s10506_s12 = sld [smem:[#allocation6 + $0x6]] }
 0x118   :  { %v1250_v49 = vmul.f32 %v12902_v5, %v9853_v10  ;;  %v12903_v30 = vstv %s9437_s23  ;;  %v1967_v4 = vadd.f32 %v1965_v55, %v1961_v9  ;;  %v1977_v34 = vmul.f32 %v1976_v35, %v9473_v58  ;;  %s12911_s23 = sld [smem:[#allocation16_spill]]  ;;  %s12079_s24 = sld [smem:[#allocation3 + $0x702]] }
 0x119   :  { %v1176_v47 = vmul.f32 %v12903_v30, %v9853_v10  ;;  %v12904_v21 = vstv %s9143_s28  ;;  %v12905_v40 = vstv %s9189_s10  ;;  %v1170_v52 = vadd.f32 %v1168_v48, %v1162_v20  ;;  %s12909_s28 = sld [smem:[#allocation14_spill]]  ;;  %s9891_s10 = sld [smem:[#allocation3 + $0x186]]  ;;  %v9901_v20 = vld [vmem:[#allocation2 + $0x1c] sm:$0xff] }
 0x11a   :  { %v1936_v57 = vmul.f32 %v12904_v21, %v9642_v51  ;;  %v1948_v18 = vmul.f32 %v12905_v40, %v9682_v38  ;;  %v1252_v23 = vadd.f32 %v1250_v49, %v1246_v19  ;;  %v12906_v44 = vstv %s9159_s4 }
 0x11b   :  { %v2346_v53 = vmul.f32 %v9879_v29, %v12906_v44  ;;  %v2369_v12 = vstv %s9819_s14  ;;  %v1973_v22 = vadd.f32 %v1971_v59, %v1967_v4  ;;  %v1983_v56 = vmul.f32 %v1982_v14, %v9597_v45  ;;  %v9896_v59 = vld [vmem:[#allocation2] sm:$0xff]  ;;  %s10148_s14 = sld [smem:[#allocation3 + $0x286]] }
 0x11c   :  { %v1944_v25 = vadd.f32 %v1942_v33, %v1936_v57  ;;  %v12908_v55 = vstv %s9231_s17  ;;  %v1256_v1 = vadd.f32 %v1254_v28, %v1252_v23  ;;  %v1606_v48 = vcombine.high %v1183_v36, %v1183_v36  ;;  %v1185_v23 = vld [vmem:[%s12692_s2] sm:$0xff]  ;;  %s10032_s17 = sld [smem:[#allocation6 + $0x3]] }
 0x11d   :  { %v1954_v32 = vmul.f32 %v12908_v55, %v9693_v11  ;;  %v1178_v9 = vadd.f32 %v1176_v47, %v1170_v52  ;;  %v1979_v19 = vadd.f32 %v1977_v34, %v1973_v22  ;;  %v12910_v49 = vstv %s9151_s30  ;;  %v1187_v47 = vld [vmem:[%s12692_s2 + $0x10] sm:$0xff]  ;;  %v1194_v34 = vld [vmem:[%s12692_s2 + $0x48] sm:$0x3]  ;;  %v1192_v52 = vld [vmem:[%s12692_s2 + $0x38] sm:$0x3] }
 0x11e   :  { %v1950_v5 = vadd.f32 %v1948_v18, %v1944_v25  ;;  %v2340_v33 = vmul.f32 %v9896_v59, %v12910_v49  ;;  %v12912_v30 = vstv %s12907_s7  ;;  %v1258_v28 = vmax.f32 %v1256_v1, 0.0  ;;  %v1190_v18 = vld [vmem:[%s12692_s2 + $0x28] sm:$0xff] }
 0x11f   :  { %v2352_v4 = vmul.f32 %v9901_v20, %v12912_v30  ;;  %v12913_v21 = vstv %s12909_s28  ;;  %v12729_v40 = vstv %s9849_s19  ;;  %v1985_v44 = vadd.f32 %v1983_v56, %v1979_v19  ;;  %s9930_s28 = sld [smem:[#allocation3 + $0x188]]  ;;  %s10080_s19 = sld [smem:[#allocation3 + $0x207]] }
 0x120   :  { %v1960_v57 = vmul.f32 %v12913_v21, %v9457_v15  ;;  %v1956_v22 = vadd.f32 %v1954_v32, %v1950_v5  ;;  %v2348_v25 = vadd.f32 %v2346_v53, %v2340_v33  ;;  %v12914_v55 = vstv %s12911_s23  ;;  %v1197_v53 = vld [vmem:[%s12692_s2 + $0x60] sm:$0x3] }
 0x121   :  { %v2358_v1 = vmul.f32 %v12914_v55, %v9075_v42  ;;  %v1293_v49 = vcombine.high %v1258_v28, %v1258_v28  ;;  %v1300_v30 = vrot.slane %v1258_v28, %v8647_v7  ;;  %v9934_v21 = vrot.slane %v1606_v48, %v8647_v7 }
 0x122   :  { %v1182_v56 = vadd.f32 %v1180_v60, %v1178_v9  ;;  %v8236_v42 = vpack.c.bf16 %v1194_v34, %v1187_v47  ;;  %v9945_v32 = vrot.slane %v1183_v36, %v8647_v7  ;;  %v1988_v19 = vstv %s9871_s1  ;;  %v9955_v60 = vld [vmem:[%s12692_s2 + $0x30] sm:$0xff]  ;;  %v9960_v36 = vld [vmem:[%s12692_s2 + $0x68] sm:$0x3]  ;;  %s10151_s1 = sld [smem:[#allocation3 + $0x383]] }
 0x123   :  { %v2354_v5 = vadd.f32 %v2352_v4, %v2348_v25  ;;  %v1307_v48 = vrot.slane %v1293_v49, %v8647_v7  ;;  %v1308_v33 = vcombine.high %v1300_v30, %v1300_v30  ;;  %v8232_v28 = vpack.c.bf16 %v1192_v52, %v1185_v23 }
 0x124   :  { %v1966_v55 = vmul.f32 %v1964_v31, %v9754_v3  ;;  %v8238_v43 = vpack.c.bf16 %v1197_v53, %v1190_v18  ;;  %v1962_v9 = vadd.f32 %v1960_v57, %v1956_v22  ;;  %v2375_v47 = vstv %s9891_s10  ;;  %s10305_s10 = sld [smem:[#allocation3 + $0x305]] }
 0x125   :  { %v2360_v4 = vadd.f32 %v2358_v1, %v2354_v5  ;;  %1528 = vmatprep.mubr.f32.mxu0 %v1308_v33  ;;  %8107 = vmatmul.mubr.msk.f32.vlgmr.msra.gmra.mrb[2].mxu1 %vm1315_vm13, %v1307_v48  ;;  %v1622_v31 = vcombine.high %v9934_v21, %v9934_v21  ;;  %v9966_v34 = vmax.f32 %v1182_v56, 0.0  ;;  %v1989_v18 = vadd.f32 %v1988_v19, %v1985_v44  ;;  %v1196_v44 = vld [vmem:[%s12692_s2 + $0x58] sm:$0x3]  ;;  %v7686_v5 = vld [vmem:[%s12692_s2 + $0xe8] sm:$0xff] }
 0x126   :  { %v1972_v23 = vmul.f32 %v1970_v37, %v9777_v27  ;;  %8237 = vmatpush1.bf16.xpose.msra.mxu1 %v8236_v42  ;;  %1529 = vmatmul.mubr.f32.vlgmr.msra.gmra.mrb[2].mxu0 %v1300_v30  ;;  %v1621_v57 = vcombine.high %v9945_v32, %v9945_v32  ;;  %v2370_v52 = vmul.f32 %v2369_v12, %v9216_v63  ;;  %v2774_v22 = vstv %s9906_s0  ;;  %v1189_v63 = vld [vmem:[%s12692_s2 + $0x20] sm:$0xff]  ;;  %v7688_v1 = vld [vmem:[%s12692_s2 + $0xf8] sm:$0xff]  ;;  %v7695_v42 = vld [vmem:[%s12692_s2 + $0x130] sm:$0x3]  ;;  %s10688_s0 = sld [smem:[#allocation3 + $0x404]] }
 0x127   :  { %v9984_v25 = vmul.f32 %v9802_v26, %v12729_v40  ;;  %8233 = vmatpush1.bf16.xpose.msra.mxu0 %v8232_v28  ;;  %1787 = vmatprep.mubr.f32.mxu1 %v1622_v31  ;;  %v8243_v37 = vpack.c.bf16 %v9960_v36, %v9955_v60  ;;  %v1968_v49 = vadd.f32 %v1966_v55, %v1962_v9  ;;  %v2381_v53 = vstv %s9917_s11  ;;  %s10757_s11 = sld [smem:[#allocation3 + $0x406]] }
 0x128   :  { %v1978_v30 = vmul.f32 %v1976_v35, %v9821_v2  ;;  %1717 = vmatprep.mubr.f32.mxu0 %v1621_v57  ;;  %v12915_v56 = vmov 0.0|0.0   ;;  %v7693_v35 = vld [vmem:[%s12692_s2 + $0x120] sm:$0x3]  ;;  %v2366_v48 = vadd.f32 %v9331_v6, %v2360_v4  ;;  %v2376_v33 = vmul.f32 %v2375_v47, %v9333_v39  ;;  %8239 = vmatprep.subr.bf16.mxu0 %v8238_v43 }
 0x129   :  { %8242 = vmatprep.subr.bf16.mxu1 %v12915_v56  ;;  %v2387_v28 = vstv %s9930_s28  ;;  %v12916_v55 = vstv %s9159_s4  ;;  %v10025_v36 = vrot.slane %v9966_v34, %v8647_v7  ;;  %v1991_v9 = vmax.f32 %v1989_v18, 0.0  ;;  %s12920_s4 = sld [smem:[#allocation12_spill]] }
 0x12a   :  { %v2347_v60 = vmul.f32 %v12916_v55, %v9595_v13  ;;  %v1974_v31 = vadd.f32 %v1972_v23, %v1968_v49  ;;  %v1984_v6 = vmul.f32 %v1982_v14, %v9853_v10  ;;  %v8240_v4 = vpack.c.bf16 %v1196_v44, %v1189_v63  ;;  %s10232_s28 = sld [smem:[#allocation3 + $0x400]] }
 0x12b   :  { %v2372_v57 = vadd.f32 %v2370_v52, %v2366_v48  ;;  %v12918_v55 = vstv %s9151_s30  ;;  %v12919_v40 = vstv %s12907_s7  ;;  %v8250_v18 = vpack.c.bf16 %v7695_v42, %v7688_v1  ;;  %s12924_s30 = sld [smem:[#allocation15_spill]]  ;;  %s10067_s7 = sld [smem:[#allocation3 + $0x382]] }
 0x12c   :  { %v2341_v43 = vmul.f32 %v12918_v55, %v9642_v51  ;;  %v2353_v54 = vmul.f32 %v12919_v40, %v9682_v38  ;;  %v8246_v0 = vpack.c.bf16 %v7693_v35, %v7686_v5  ;;  %v1980_v23 = vadd.f32 %v1978_v30, %v1974_v31 }
 0x12d   :  { %v2382_v14 = vmul.f32 %v2381_v53, %v9473_v58  ;;  %v2378_v52 = vadd.f32 %v2376_v33, %v2372_v57  ;;  %v12922_v44 = vstv %s12911_s23  ;;  %v12923_v48 = vstv %s12917_s9  ;;  %1788 = vmatmul.mubr.f32.vlgmr.msra.gmra.mrb[4].mxu1 %v9934_v21  ;;  %s12927_s23 = sld [smem:[#allocation19_spill]] }
 0x12e   :  { %v2349_v63 = vadd.f32 %v2347_v60, %v2341_v43  ;;  %v2359_v49 = vmul.f32 %v12922_v44, %v9693_v11  ;;  %v2751_v55 = vmul.f32 %v9879_v29, %v12923_v48  ;;  %v1638_v40 = vcombine.high %v10025_v36, %v10025_v36  ;;  %1718 = vmatmul.mubr.f32.vlgmr.msra.gmra.mrb[4].mxu0 %v9945_v32  ;;  %v7694_v32 = vld [vmem:[%s12692_s2 + $0x128] sm:$0x3] }
 0x12f   :  { %v2010_v1 = vcombine.high %v1991_v9, %v1991_v9  ;;  %v1986_v30 = vadd.f32 %v1984_v6, %v1980_v23  ;;  %v2388_v42 = vmul.f32 %v2387_v28, %v9597_v45  ;;  %8245 = vmatpush3.bf16.xpose.msk.msra.mxu1 %vm9747_vm7, %v8243_v37  ;;  %v12925_v35 = vstv %s12920_s4  ;;  %8241 = vmatpush1.bf16.xpose.msra.mxu0 %v8240_v4  ;;  %v7692_v23 = vld [vmem:[%s12692_s2 + $0x118] sm:$0x3] }
 0x130   :  { %v2355_v5 = vadd.f32 %v2353_v54, %v2349_v63  ;;  %v2745_v33 = vmul.f32 %v9896_v59, %v12925_v35  ;;  %v12926_v21 = vstv %s12921_s13  ;;  %v1623_v6 = vcombine.high %v9966_v34, %v9966_v34  ;;  %1857 = vmatprep.mubr.f32.mxu0 %v1638_v40  ;;  %v7687_v54 = vld [vmem:[%s12692_s2 + $0xf0] sm:$0xff]  ;;  %8113 = vmatprep.mubr.msk.f32.mxu1 %vm8601_vm15, %v12892_v62  ;;  %v7685_v34 = vld [vmem:[%s12692_s2 + $0xe0] sm:$0xff]  ;;  %v7690_v35 = vld [vmem:[%s12692_s2 + $0x108] sm:$0xff] }
 0x131   :  { %v2757_v60 = vmul.f32 %v9901_v20, %v12926_v21  ;;  %v2384_v37 = vadd.f32 %v2382_v14, %v2378_v52  ;;  %v12928_v57 = vstv %s12924_s30  ;;  %8251 = vmatprep.subr.bf16.mxu1 %v8250_v18  ;;  %v10091_v63 = vld [vmem:[#allocation2 + $0x2a] sm:$0xff]  ;;  %s10096_s30 = sld [smem:[#allocation3 + $0x208]]  ;;  %8247 = vmatprep.subr.bf16.mxu0 %v8246_v0  ;;  %v10100_v40 = vrot.slane %v2010_v1, %v8647_v7 }
 0x132   :  { %v2365_v43 = vmul.f32 %v12928_v57, %v9457_v15  ;;  %v2361_v14 = vadd.f32 %v2359_v49, %v2355_v5  ;;  %v2753_v52 = vadd.f32 %v2751_v55, %v2745_v33  ;;  %v7697_v49 = vld [vmem:[%s12692_s2 + $0x140] sm:$0x3]  ;;  %v1990_v55 = vadd.f32 %v1988_v19, %v1986_v30 }
 0x133   :  { %v12929_v44 = vstv %s12927_s23  ;;  %v2390_v5 = vadd.f32 %v2388_v42, %v2384_v37  ;;  %v12733_v33 = vstv %s10030_s29  ;;  %v8252_v21 = vpack.c.bf16 %v7694_v32, %v7687_v54  ;;  %v10138_v32 = vld [vmem:[#allocation2 + $0x46] sm:$0xff] }
 0x134   :  { %v2763_v48 = vmul.f32 %v10091_v63, %v12929_v44  ;;  %v10112_v0 = vrot.slane %v1991_v9, %v8647_v7  ;;  %v2393_v1 = vstv %s10032_s17  ;;  %v2759_v57 = vadd.f32 %v2757_v60, %v2753_v52  ;;  %v7696_v52 = vld [vmem:[%s12692_s2 + $0x138] sm:$0x3]  ;;  %s11627_s17 = sld [smem:[#allocation3 + $0x602]] }
 0x135   :  { %v1637_v44 = vrot.slane %v1623_v6, %v8647_v7  ;;  %v8248_v31 = vpack.c.bf16 %v7692_v23, %v7685_v34  ;;  %v2371_v4 = vmul.f32 %v2369_v12, %v9754_v3  ;;  %v2780_v18 = vstv %s10043_s22  ;;  %v7698_v34 = vld [vmem:[%s12692_s2 + $0x148] sm:$0x3]  ;;  %s11349_s22 = sld [smem:[#allocation3 + $0x506]] }
 0x136   :  { %v8254_v19 = vpack.c.bf16 %v7697_v49, %v7690_v35  ;;  %v2367_v30 = vadd.f32 %v2365_v43, %v2361_v14  ;;  %v2765_v42 = vadd.f32 %v2763_v48, %v2759_v57  ;;  %v10123_v54 = vmul.f32 %v9802_v26, %v12733_v33  ;;  %1858 = vmatmul.mubr.f32.vlgmr.msra.gmra.mrb[6].mxu0 %v10025_v36  ;;  %v7691_v36 = vld [vmem:[%s12692_s2 + $0x110] sm:$0xff]  ;;  %v7713_v57 = vld [vmem:[%s12692_s2 + $0x158] sm:$0xff] }
 0x137   :  { %8114 = vmatmul.mubr.msk.f32.vlgmr.msra.gmra.mrb[6].mxu1 %vm1315_vm13, %v1637_v44  ;;  %v2026_v9 = vcombine.high %v10100_v40, %v10100_v40  ;;  %v10128_v60 = vmax.f32 %v1990_v55, 0.0  ;;  %v2394_v6 = vadd.f32 %v2393_v1, %v2390_v5  ;;  %v2377_v12 = vmul.f32 %v2375_v47, %v9777_v27  ;;  %8249 = vmatpush1.bf16.xpose.msra.mxu0 %v8248_v31 }
 0x138   :  { %8253 = vmatpush1.bf16.xpose.msra.mxu1 %v8252_v21  ;;  %v2025_v26 = vcombine.high %v10112_v0, %v10112_v0  ;;  %v2775_v37 = vmul.f32 %v10138_v32, %v2774_v22  ;;  %v10146_v43 = vmul.f32 %v2768_v61, %v9457_v15  ;;  %v7689_v15 = vld [vmem:[%s12692_s2 + $0x100] sm:$0xff]  ;;  %v2373_v61 = vadd.f32 %v2371_v4, %v2367_v30  ;;  %v7715_v4 = vld [vmem:[%s12692_s2 + $0x168] sm:$0xff] }
 0x139   :  { %2191 = vmatprep.mubr.f32.mxu1 %v2026_v9  ;;  %v2383_v23 = vmul.f32 %v2381_v53, %v9821_v2  ;;  %v2786_v14 = vstv %s10080_s19  ;;  %v3156_v31 = vmul.f32 %v9879_v29, %v12734_v16  ;;  %8258 = vmatprep.subr.bf16.mxu1 %v12915_v56  ;;  %v7722_v53 = vld [vmem:[%s12692_s2 + $0x1a0] sm:$0x3]  ;;  %v2771_v48 = vadd.f32 %v9807_v50, %v2765_v42  ;;  %v7720_v50 = vld [vmem:[%s12692_s2 + $0x190] sm:$0x3]  ;;  %s10343_s19 = sld [smem:[#allocation6 + $0x5]] }
 0x13a   :  { %2121 = vmatprep.mubr.f32.mxu0 %v2025_v26  ;;  %v2781_v35 = vmul.f32 %v2780_v18, %v9333_v39  ;;  %v2792_v49 = vstv %s10096_s30  ;;  %v12930_v55 = vstv %s12917_s9  ;;  %8255 = vmatprep.subr.bf16.mxu0 %v8254_v19  ;;  %v10191_v21 = vrot.slane %v10128_v60, %v8647_v7  ;;  %s10202_s9 = sld [smem:[#allocation6 + $0x4]] }
 0x13b   :  { %v2752_v5 = vmul.f32 %v12930_v55, %v9595_v13  ;;  %v2396_v39 = vmax.f32 %v2394_v6, 0.0  ;;  %v2379_v44 = vadd.f32 %v2377_v12, %v2373_v61  ;;  %v2389_v30 = vmul.f32 %v2387_v28, %v9853_v10  ;;  %s12945_s30 = sld [smem:[#allocation24_spill]] }
 0x13c   :  { %v8259_v19 = vpack.c.bf16 %v7698_v34, %v7691_v36  ;;  %v2777_v42 = vadd.f32 %v2775_v37, %v2771_v48  ;;  %v2787_v9 = vmul.f32 %v2786_v14, %v9473_v58  ;;  %v12931_v26 = vstv %s12920_s4  ;;  %s12936_s4 = sld [smem:[#allocation22_spill]] }
 0x13d   :  { %v2746_v55 = vmul.f32 %v12931_v26, %v9642_v51  ;;  %v8256_v33 = vpack.c.bf16 %v7696_v52, %v7689_v15  ;;  %v8266_v47 = vpack.c.bf16 %v7722_v53, %v7715_v4  ;;  %v2385_v6 = vadd.f32 %v2383_v23, %v2379_v44  ;;  %v7719_v44 = vld [vmem:[%s12692_s2 + $0x188] sm:$0x3]  ;;  %v7717_v26 = vld [vmem:[%s12692_s2 + $0x178] sm:$0xff] }
 0x13e   :  { %v12933_v12 = vstv %s12921_s13  ;;  %v8262_v61 = vpack.c.bf16 %v7720_v50, %v7713_v57  ;;  %v2783_v16 = vadd.f32 %v2781_v35, %v2777_v42  ;;  %v2793_v37 = vmul.f32 %v2792_v49, %v9597_v45  ;;  %2122 = vmatmul.mubr.f32.vlgmr.msra.gmra.mrb[8].mxu0 %v10112_v0  ;;  %v7721_v0 = vld [vmem:[%s12692_s2 + $0x198] sm:$0x3]  ;;  %s10537_s13 = sld [smem:[#allocation3 + $0x386]] }
 0x13f   :  { %v2758_v28 = vmul.f32 %v12933_v12, %v9682_v38  ;;  %v2754_v36 = vadd.f32 %v2752_v5, %v2746_v55  ;;  %2192 = vmatmul.mubr.f32.vlgmr.msra.gmra.mrb[8].mxu1 %v10100_v40  ;;  %v2042_v58 = vcombine.high %v10191_v21, %v10191_v21  ;;  %v2415_v34 = vcombine.high %v2396_v39, %v2396_v39  ;;  %v7724_v55 = vld [vmem:[%s12692_s2 + $0x1b0] sm:$0x3] }
 0x140   :  { %v2391_v15 = vadd.f32 %v2389_v30, %v2385_v6  ;;  %v12934_v23 = vstv %s12927_s23  ;;  %8261 = vmatpush3.bf16.xpose.msk.msra.mxu1 %vm9747_vm7, %v8259_v19  ;;  %v2789_v4 = vadd.f32 %v2787_v9, %v2783_v16  ;;  %v12935_v53 = vstv %s12932_s20  ;;  %8257 = vmatpush1.bf16.xpose.msra.mxu0 %v8256_v33  ;;  %v7714_v16 = vld [vmem:[%s12692_s2 + $0x160] sm:$0xff]  ;;  %s10755_s23 = sld [smem:[#allocation3 + $0x405]] }
 0x141   :  { %v2764_v52 = vmul.f32 %v12934_v23, %v9693_v11  ;;  %v3150_v48 = vmul.f32 %v9896_v59, %v12935_v53  ;;  %v3162_v40 = vmul.f32 %v9901_v20, %v3161_v41  ;;  %v12738_v35 = vstv %s10151_s1  ;;  %2261 = vmatprep.mubr.f32.mxu0 %v2042_v58  ;;  %8120 = vmatprep.mubr.msk.f32.mxu1 %vm8601_vm15, %v12892_v62 }
 0x142   :  { %v2027_v5 = vcombine.high %v10128_v60, %v10128_v60  ;;  %v2760_v57 = vadd.f32 %v2758_v28, %v2754_v36  ;;  %v3185_v50 = vstv %s10148_s14  ;;  %v3561_v33 = vmul.f32 %v9879_v29, %v3560_v24  ;;  %8267 = vmatprep.subr.bf16.mxu1 %v8266_v47  ;;  %v7712_v60 = vld [vmem:[%s12692_s2 + $0x150] sm:$0xff]  ;;  %8263 = vmatprep.subr.bf16.mxu0 %v8262_v61  ;;  %s10939_s14 = sld [smem:[#allocation3 + $0x480]] }
 0x143   :  { %v2795_v30 = vadd.f32 %v2793_v37, %v2789_v4  ;;  %v3158_v19 = vadd.f32 %v3156_v31, %v3150_v48  ;;  %v3168_v42 = vmul.f32 %v10091_v63, %v3167_v8  ;;  %v3191_v9 = vstv %s10169_s5  ;;  %s11854_s5 = sld [smem:[#allocation3 + $0x683]] }
 0x144   :  { %v10261_v47 = vrot.slane %v2415_v34, %v8647_v7  ;;  %v2395_v31 = vadd.f32 %v2393_v1, %v2391_v15  ;;  %v2798_v6 = vstv %s10202_s9  ;;  %v2766_v12 = vadd.f32 %v2764_v52, %v2760_v57  ;;  %v7718_v57 = vld [vmem:[%s12692_s2 + $0x180] sm:$0xff]  ;;  %s11077_s9 = sld [smem:[#allocation3 + $0x484]] }
 0x145   :  { %v8268_v28 = vpack.c.bf16 %v7721_v0, %v7714_v16  ;;  %v10273_v61 = vrot.slane %v2396_v39, %v8647_v7  ;;  %v3164_v37 = vadd.f32 %v3162_v40, %v3158_v19  ;;  %v12937_v36 = vstv %s9721_s8  ;;  %v7723_v19 = vld [vmem:[%s12692_s2 + $0x1a8] sm:$0x3] }
 0x146   :  { %v3555_v58 = vmul.f32 %v9896_v59, %v12937_v36  ;;  %v2041_v34 = vrot.slane %v2027_v5, %v8647_v7  ;;  %v8264_v23 = vpack.c.bf16 %v7719_v44, %v7712_v60  ;;  %v2776_v4 = vmul.f32 %v2774_v22, %v9754_v3  ;;  %v7725_v44 = vld [vmem:[%s12692_s2 + $0x1b8] sm:$0x3] }
 0x147   :  { %v12938_v53 = vstv %s12936_s4  ;;  %v8270_v15 = vpack.c.bf16 %v7724_v55, %v7717_v26  ;;  %v2799_v52 = vadd.f32 %v2798_v6, %v2795_v30  ;;  %v3170_v39 = vadd.f32 %v3168_v42, %v3164_v37  ;;  %2262 = vmatmul.mubr.f32.vlgmr.msra.gmra.mrb[10].mxu0 %v10191_v21  ;;  %v7716_v30 = vld [vmem:[%s12692_s2 + $0x170] sm:$0xff] }
 0x148   :  { %v3567_v1 = vmul.f32 %v9901_v20, %v12938_v53  ;;  %v3563_v48 = vadd.f32 %v3561_v33, %v3555_v58  ;;  %8121 = vmatmul.mubr.msk.f32.vlgmr.msra.gmra.mrb[10].mxu1 %vm1315_vm13, %v2041_v34  ;;  %v2431_v40 = vcombine.high %v10261_v47, %v10261_v47  ;;  %v10290_v5 = vmax.f32 %v2395_v31, 0.0  ;;  %8265 = vmatpush1.bf16.xpose.msra.mxu0 %v8264_v23  ;;  %v7742_v31 = vld [vmem:[%s12692_s2 + $0x1d8] sm:$0xff] }
 0x149   :  { %v2772_v16 = vadd.f32 %v10146_v43, %v2766_v12  ;;  %v2782_v22 = vmul.f32 %v2780_v18, %v9777_v27  ;;  %8269 = vmatpush1.bf16.xpose.msra.mxu1 %v8268_v28  ;;  %v2430_v0 = vcombine.high %v10273_v61, %v10273_v61  ;;  %v12939_v33 = vstv %s10003_s15  ;;  %v7749_v12 = vld [vmem:[%s12692_s2 + $0x210] sm:$0x3]  ;;  %v10338_v37 = vld [vmem:[#allocation2 + $0x54] sm:$0xff]  ;;  %8271 = vmatprep.subr.bf16.mxu0 %v8270_v15 }
 0x14a   :  { %v3180_v60 = vmul.f32 %v10138_v32, %v12939_v33  ;;  %v12940_v18 = vstv %s9986_s18  ;;  %v12735_v21 = vstv %s10232_s28  ;;  %2596 = vmatprep.mubr.f32.mxu1 %v2431_v40  ;;  %v3197_v26 = vstv %s10243_s25  ;;  %8274 = vmatprep.subr.bf16.mxu1 %v12915_v56  ;;  %s10596_s25 = sld [smem:[#allocation3 + $0x388]] }
 0x14b   :  { %v10312_v43 = vmul.f32 %v9879_v29, %v12940_v18  ;;  %v2778_v42 = vadd.f32 %v2776_v4, %v2772_v16  ;;  %v2788_v29 = vmul.f32 %v2786_v14, %v9821_v2  ;;  %v3569_v55 = vadd.f32 %v3567_v1, %v3563_v48  ;;  %2526 = vmatprep.mubr.f32.mxu0 %v2430_v0  ;;  %v7747_v4 = vld [vmem:[%s12692_s2 + $0x200] sm:$0x3]  ;;  %v10367_v18 = vld [vmem:[#allocation2 + $0x62] sm:$0xff] }
 0x14c   :  { %v10335_v28 = vmax.f32 %v2799_v52, 0.0  ;;  %v3176_v14 = vadd.f32 %v9843_v46, %v3170_v39  ;;  %v3186_v36 = vmul.f32 %v10338_v37, %v3185_v50  ;;  %v12941_v58 = vstv %s9680_s27  ;;  %v7740_v46 = vld [vmem:[%s12692_s2 + $0x1c8] sm:$0xff]  ;;  %s12944_s27 = sld [smem:[#allocation21_spill]] }
 0x14d   :  { %v3157_v34 = vmul.f32 %v12941_v58, %v9595_v13  ;;  %v10350_v23 = vrot.slane %v10290_v5, %v8647_v7  ;;  %v2784_v53 = vadd.f32 %v2782_v22, %v2778_v42  ;;  %v2794_v1 = vmul.f32 %v2792_v49, %v9853_v10 }
 0x14e   :  { %v12942_v52 = vstv %s9979_s21  ;;  %v8275_v15 = vpack.c.bf16 %v7725_v44, %v7718_v57  ;;  %v8272_v39 = vpack.c.bf16 %v7723_v19, %v7716_v30  ;;  %v3182_v48 = vadd.f32 %v3180_v60, %v3176_v14 }
 0x14f   :  { %v3573_v13 = vmul.f32 %v10091_v63, %v12942_v52  ;;  %v12943_v40 = vstv %s12932_s20  ;;  %v8282_v0 = vpack.c.bf16 %v7749_v12, %v7742_v31  ;;  %v2790_v33 = vadd.f32 %v2788_v29, %v2784_v53  ;;  %2527 = vmatmul.mubr.f32.vlgmr.msra.gmra.mrb[12].mxu0 %v10273_v61  ;;  %s10680_s20 = sld [smem:[#allocation3 + $0x403]] }
 0x150   :  { %v3151_v16 = vmul.f32 %v12943_v40, %v9642_v51  ;;  %v3192_v22 = vmul.f32 %v10367_v18, %v3191_v9  ;;  %v3163_v49 = vmul.f32 %v3161_v41, %v9682_v38  ;;  %v8278_v57 = vpack.c.bf16 %v7747_v4, %v7740_v46  ;;  %2597 = vmatmul.mubr.f32.vlgmr.msra.gmra.mrb[12].mxu1 %v10261_v47  ;;  %v10389_v38 = vld [vmem:[#allocation2 + $0x40] sm:$0x3f]  ;;  %v7746_v46 = vld [vmem:[%s12692_s2 + $0x1f8] sm:$0x3] }
 0x151   :  { %v2820_v60 = vcombine.high %v10335_v28, %v10335_v28  ;;  %v3188_v44 = vadd.f32 %v3186_v36, %v3182_v48  ;;  %v2447_v51 = vcombine.high %v10350_v23, %v10350_v23  ;;  %v2796_v19 = vadd.f32 %v2794_v1, %v2790_v33  ;;  %8277 = vmatpush3.bf16.xpose.msk.msra.mxu1 %vm9747_vm7, %v8275_v15  ;;  %v7751_v15 = vld [vmem:[%s12692_s2 + $0x220] sm:$0x3] }
 0x152   :  { %v3159_v30 = vadd.f32 %v3157_v34, %v3151_v16  ;;  %v3198_v42 = vmul.f32 %v3197_v26, %v9597_v45  ;;  %v3169_v29 = vmul.f32 %v3167_v8, %v9693_v11  ;;  %v12946_v41 = vstv %s12944_s27  ;;  %8273 = vmatpush1.bf16.xpose.msra.mxu0 %v8272_v39  ;;  %v7741_v11 = vld [vmem:[%s12692_s2 + $0x1d0] sm:$0xff]  ;;  %v7748_v8 = vld [vmem:[%s12692_s2 + $0x208] sm:$0x3]  ;;  %8127 = vmatprep.mubr.msk.f32.mxu1 %vm8601_vm15, %v12892_v62  ;;  %v7739_v34 = vld [vmem:[%s12692_s2 + $0x1c0] sm:$0xff]  ;;  %s10423_s27 = sld [smem:[#allocation3 + $0x308]] }
 0x153   :  { %v3175_v47 = vmul.f32 %v10389_v38, %v12946_v41  ;;  %v3575_v31 = vadd.f32 %v3573_v13, %v3569_v55  ;;  %v3584_v12 = vstv %s10305_s10  ;;  %v12947_v14 = vstv %s12945_s30  ;;  %2666 = vmatprep.mubr.f32.mxu0 %v2447_v51  ;;  %8283 = vmatprep.subr.bf16.mxu1 %v8282_v0  ;;  %v7744_v13 = vld [vmem:[%s12692_s2 + $0x1e8] sm:$0xff]  ;;  %s11219_s10 = sld [smem:[#allocation3 + $0x501]] }
 0x154   :  { %v3960_v36 = vmul.f32 %v9896_v59, %v12947_v14  ;;  %v2432_v45 = vcombine.high %v10290_v5, %v10290_v5  ;;  %v3194_v61 = vadd.f32 %v3192_v22, %v3188_v44  ;;  %v3165_v55 = vadd.f32 %v3163_v49, %v3159_v30  ;;  %8279 = vmatprep.subr.bf16.mxu0 %v8278_v57 }
 0x155   :  { %v3590_v58 = vstv %s10307_s3  ;;  %v10414_v5 = vrot.slane %v2820_v60, %v8647_v7  ;;  %v3203_v4 = vstv %s10343_s19  ;;  %v12949_v53 = vstv %s12948_s16  ;;  %s10662_s16 = sld [smem:[#allocation3 + $0x402]]  ;;  %s10808_s3 = sld [smem:[#allocation3 + $0x407]] }
 0x156   :  { %v10428_v1 = vmul.f32 %v10389_v38, %v12949_v53  ;;  %v10433_v52 = vmul.f32 %v9896_v59, %v12735_v21  ;;  %v2800_v39 = vadd.f32 %v2798_v6, %v2796_v19  ;;  %v3200_v48 = vadd.f32 %v3198_v42, %v3194_v61  ;;  %v10478_v19 = vld [vmem:[%s12692_s2 + $0x1e0] sm:$0xff]  ;;  %v10483_v42 = vld [vmem:[%s12692_s2 + $0x218] sm:$0x3]  ;;  %s11233_s19 = sld [smem:[#allocation3 + $0x502]] }
 0x157   :  { %v3171_v40 = vadd.f32 %v3169_v29, %v3165_v55  ;;  %v10444_v16 = vadd.f32 %v10312_v43, %v3960_v36  ;;  %v8284_v59 = vpack.c.bf16 %v7748_v8, %v7741_v11  ;;  %v10448_v0 = vrot.slane %v10335_v28, %v8647_v7  ;;  %v10462_v43 = vld [vmem:[%s12692_s2 + $0x1f0] sm:$0xff]  ;;  %v10467_v28 = vld [vmem:[%s12692_s2 + $0x228] sm:$0x3]  ;;  %v10531_v55 = vld [vmem:[%s12692_s2 + $0x238] sm:$0xff] }
 0x158   :  { %v12950_v33 = vstv %s10067_s7  ;;  %v10456_v49 = vmul.f32 %v10091_v63, %v12738_v35  ;;  %v2446_v6 = vrot.slane %v2432_v45, %v8647_v7  ;;  %v8280_v57 = vpack.c.bf16 %v7746_v46, %v7739_v34  ;;  %v10508_v11 = vld [vmem:[#allocation2 + $0x8] sm:$0x3f] }
 0x159   :  { %v3972_v22 = vmul.f32 %v9901_v20, %v12950_v33  ;;  %v12951_v20 = vstv %s10003_s15  ;;  %v3581_v44 = vadd.f32 %v9984_v25, %v3575_v31  ;;  %v2836_v30 = vcombine.high %v10414_v5, %v10414_v5  ;;  %v10488_v25 = vld [vmem:[#allocation2 + $0x16] sm:$0x3f]  ;;  %2667 = vmatmul.mubr.f32.vlgmr.msra.gmra.mrb[14].mxu0 %v10350_v23  ;;  %s10514_s15 = sld [smem:[#allocation3 + $0x401]]  ;;  %v10526_v23 = vld [vmem:[%s12692_s2 + $0x280] sm:$0x3] }
 0x15a   :  { %v3181_v60 = vmul.f32 %v12951_v20, %v9754_v3  ;;  %v8286_v51 = vpack.c.bf16 %v7751_v15, %v7744_v13  ;;  %v3585_v3 = vmul.f32 %v10138_v32, %v3584_v12  ;;  %v3562_v29 = vmul.f32 %v10488_v25, %v3560_v24  ;;  %8128 = vmatmul.mubr.msk.f32.vlgmr.msra.gmra.mrb[14].mxu1 %vm1315_vm13, %v2446_v6  ;;  %v10543_v13 = vld [vmem:[%s12692_s2 + $0x270] sm:$0x3]  ;;  %v10548_v15 = vld [vmem:[%s12692_s2 + $0x240] sm:$0xff] }
 0x15b   :  { %v10494_v41 = vmax.f32 %v2800_v39, 0.0  ;;  %v3204_v31 = vadd.f32 %v3203_v4, %v3200_v48  ;;  %v3177_v14 = vadd.f32 %v3175_v47, %v3171_v40  ;;  %v3187_v36 = vmul.f32 %v3185_v50, %v9777_v27  ;;  %8285 = vmatpush1.bf16.xpose.msra.mxu1 %v8284_v59  ;;  %3001 = vmatprep.mubr.f32.mxu1 %v2836_v30  ;;  %v10521_v50 = vld [vmem:[%s12692_s2 + $0x248] sm:$0xff] }
 0x15c   :  { %v2835_v45 = vcombine.high %v10448_v0, %v10448_v0  ;;  %v8291_v24 = vpack.c.bf16 %v10467_v28, %v10462_v43  ;;  %v12952_v8 = vstv %s9721_s8  ;;  %v12736_v61 = vstv %s10398_s26  ;;  %8281 = vmatpush1.bf16.xpose.msra.mxu0 %v8280_v57  ;;  %8290 = vmatprep.subr.bf16.mxu1 %v12915_v56  ;;  %v10566_v57 = vld [vmem:[%s12692_s2 + $0x230] sm:$0xff]  ;;  %v10571_v43 = vld [vmem:[%s12692_s2 + $0x268] sm:$0x3]  ;;  %s10576_s8 = sld [smem:[#allocation3 + $0x387]] }
 0x15d   :  { %v3556_v47 = vmul.f32 %v10508_v11, %v12952_v8  ;;  %v8288_v27 = vpack.c.bf16 %v10483_v42, %v10478_v19  ;;  %v3183_v34 = vadd.f32 %v3181_v60, %v3177_v14  ;;  %v3193_v46 = vmul.f32 %v3191_v9, %v9821_v2  ;;  %v10553_v9 = vld [vmem:[%s12692_s2 + $0x278] sm:$0x3]  ;;  %8287 = vmatprep.subr.bf16.mxu0 %v8286_v51  ;;  %v10585_v30 = vld [vmem:[#allocation2 + $0x24] sm:$0x3f] }
 0x15e   :  { %v3596_v53 = vstv %s10409_s6  ;;  %2931 = vmatprep.mubr.f32.mxu0 %v2835_v45  ;;  %v3587_v39 = vadd.f32 %v3585_v3, %v3581_v44  ;;  %v3591_v48 = vmul.f32 %v10338_v37, %v3590_v58  ;;  %v3602_v40 = vstv %s10423_s27  ;;  %v10583_v44 = vld [vmem:[%s12692_s2 + $0x258] sm:$0xff]  ;;  %s10987_s6 = sld [smem:[#allocation3 + $0x482]]  ;;  %s11231_s27 = sld [smem:[#allocation3 + $0x500]] }
 0x15f   :  { %v3564_v59 = vadd.f32 %v3562_v29, %v3556_v47  ;;  %v10561_v33 = vrot.slane %v10494_v41, %v8647_v7  ;;  %v3206_v6 = vmax.f32 %v3204_v31, 0.0  ;;  %v3189_v28 = vadd.f32 %v3187_v36, %v3183_v34  ;;  %v10605_v31 = vld [vmem:[%s12692_s2 + $0x290] sm:$0x3]  ;;  %v10622_v47 = vld [vmem:[#allocation2 + $0x32] sm:$0x3f] }
 0x160   :  { %v3199_v20 = vmul.f32 %v3197_v26, %v9853_v10  ;;  %v8298_v60 = vpack.c.bf16 %v10526_v23, %v10521_v50  ;;  %v12953_v51 = vstv %s12936_s4  ;;  %v3974_v42 = vadd.f32 %v3972_v22, %v10444_v16  ;;  %v10610_v16 = vld [vmem:[%s12692_s2 + $0x260] sm:$0xff]  ;;  %v10615_v22 = vld [vmem:[%s12692_s2 + $0x298] sm:$0x3]  ;;  %s10892_s4 = sld [smem:[#allocation3 + $0x408]] }
 0x161   :  { %v3568_v19 = vmul.f32 %v10585_v30, %v12953_v51  ;;  %v10594_v26 = vmul.f32 %v10138_v32, %v12736_v61  ;;  %v8294_v3 = vpack.c.bf16 %v10543_v13, %v10531_v55  ;;  %v8300_v29 = vpack.c.bf16 %v10553_v9, %v10548_v15  ;;  %v10634_v13 = vld [vmem:[%s12692_s2 + $0x250] sm:$0xff] }
 0x162   :  { %v3195_v14 = vadd.f32 %v3193_v46, %v3189_v28  ;;  %v3597_v36 = vmul.f32 %v10367_v18, %v3596_v53  ;;  %v8296_v45 = vpack.c.bf16 %v10571_v43, %v10566_v57  ;;  %v3593_v8 = vadd.f32 %v3591_v48, %v3587_v39  ;;  %3002 = vmatmul.mubr.f32.vlgmr.msra.gmra.mrb[16].mxu1 %v10414_v5  ;;  %v10639_v39 = vld [vmem:[%s12692_s2 + $0x288] sm:$0x3]  ;;  %v10641_v28 = vld [vmem:[#allocation2 + $0x70] sm:$0xff]  ;;  %v10802_v57 = vld [vmem:[%s12692_s2 + $0x2c0] sm:$0xff] }
 0x163   :  { %v12954_v50 = vstv %s9979_s21  ;;  %v3980_v55 = vadd.f32 %v10456_v49, %v3974_v42  ;;  %v2852_v34 = vcombine.high %v10561_v33, %v10561_v33  ;;  %v3225_v46 = vcombine.high %v3206_v6, %v3206_v6  ;;  %2932 = vmatmul.mubr.f32.vlgmr.msra.gmra.mrb[16].mxu0 %v10448_v0  ;;  %8293 = vmatpush3.bf16.xpose.msk.msra.mxu1 %vm9747_vm7, %v8291_v24  ;;  %s10653_s21 = sld [smem:[#allocation6 + $0x7]]  ;;  %v10690_v61 = vld [vmem:[#allocation2 + $0x4e] sm:$0x3f] }
 0x164   :  { %v3574_v23 = vmul.f32 %v10622_v47, %v12954_v50  ;;  %v3201_v48 = vadd.f32 %v3199_v20, %v3195_v14  ;;  %v3603_v5 = vmul.f32 %v10641_v28, %v3602_v40  ;;  %v3570_v42 = vadd.f32 %v3568_v19, %v3564_v59  ;;  %8289 = vmatpush1.bf16.xpose.msra.mxu0 %v8288_v27  ;;  %v10676_v59 = vld [vmem:[%s12692_s2 + $0x2f0] sm:$0x3]  ;;  %v10731_v27 = vld [vmem:[#allocation2 + $0x5c] sm:$0x3f] }
 0x165   :  { %v2837_v14 = vcombine.high %v10494_v41, %v10494_v41  ;;  %3071 = vmatprep.mubr.f32.mxu0 %v2852_v34  ;;  %v10659_v0 = vrot.slane %v3206_v6, %v8647_v7  ;;  %v3599_v24 = vadd.f32 %v3597_v36, %v3593_v8  ;;  %v12737_v50 = vstv %s10537_s13  ;;  %8134 = vmatprep.mubr.msk.f32.mxu1 %vm8601_vm15, %v12892_v62  ;;  %v10671_v41 = vld [vmem:[%s12692_s2 + $0x2b8] sm:$0xff] }
 0x166   :  { %8299 = vmatprep.subr.bf16.mxu1 %v8298_v60  ;;  %v12741_v6 = vstv %s10506_s12  ;;  %v3576_v19 = vadd.f32 %v3574_v23, %v3570_v42  ;;  %v3986_v60 = vadd.f32 %v10123_v54, %v3980_v55  ;;  %8295 = vmatprep.subr.bf16.mxu0 %v8294_v3  ;;  %v10683_v36 = vrot.slane %v3225_v46, %v8647_v7 }
 0x167   :  { %v3205_v8 = vadd.f32 %v3203_v4, %v3201_v48  ;;  %v3605_v34 = vadd.f32 %v3603_v5, %v3599_v24  ;;  %v12740_v21 = vstv %s10576_s8  ;;  %v3586_v23 = vmul.f32 %v10690_v61, %v3584_v12  ;;  %v10710_v12 = vld [vmem:[%s12692_s2 + $0x2a8] sm:$0xff] }
 0x168   :  { %v3996_v54 = vmul.f32 %v10338_v37, %v12737_v50  ;;  %v12739_v3 = vstv %s10596_s25  ;;  %v12955_v55 = vstv %s12945_s30  ;;  %v2851_v4 = vrot.slane %v2837_v14, %v8647_v7  ;;  %v10718_v14 = vld [vmem:[%s12692_s2 + $0x2e0] sm:$0x3]  ;;  %v10728_v50 = vld [vmem:[%s12692_s2 + $0x2e8] sm:$0x3]  ;;  %s11378_s30 = sld [smem:[#allocation3 + $0x507]] }
 0x169   :  { %v3961_v46 = vmul.f32 %v10508_v11, %v12955_v55  ;;  %v3240_v48 = vcombine.high %v10659_v0, %v10659_v0  ;;  %v12956_v42 = vstv %s9986_s18  ;;  %v10723_v55 = vld [vmem:[%s12692_s2 + $0x2b0] sm:$0xff]  ;;  %v3582_v5 = vadd.f32 %v10428_v1, %v3576_v19  ;;  %v10766_v19 = vld [vmem:[%s12692_s2 + $0x2d8] sm:$0x3]  ;;  %s11819_s18 = sld [smem:[#allocation3 + $0x682]] }
 0x16a   :  { %v3967_v24 = vmul.f32 %v10488_v25, %v12956_v42  ;;  %v3592_v42 = vmul.f32 %v10731_v27, %v3590_v58  ;;  %v3992_v51 = vadd.f32 %v10594_v26, %v3986_v60  ;;  %v4002_v20 = vmul.f32 %v10367_v18, %v12740_v21  ;;  %8135 = vmatmul.mubr.msk.f32.vlgmr.msra.gmra.mrb[18].mxu1 %vm1315_vm13, %v2851_v4  ;;  %v10750_v58 = vld [vmem:[%s12692_s2 + $0x2a0] sm:$0xff] }
 0x16b   :  { %v3241_v35 = vcombine.high %v10683_v36, %v10683_v36  ;;  %v10743_v49 = vmax.f32 %v3205_v8, 0.0  ;;  %v3609_v1 = vadd.f32 %v12741_v6, %v3605_v34  ;;  %v3598_v26 = vmul.f32 %v3596_v53, %v9821_v2  ;;  %3072 = vmatmul.mubr.f32.vlgmr.msra.gmra.mrb[18].mxu0 %v10561_v33  ;;  %8301 = vmatpush1.bf16.xpose.msra.mxu1 %v8300_v29  ;;  %v10771_v2 = vld [vmem:[%s12692_s2 + $0x2c8] sm:$0xff]  ;;  %v10776_v53 = vld [vmem:[%s12692_s2 + $0x300] sm:$0x3]  ;;  %v10814_v34 = vld [vmem:[%s12692_s2 + $0x2f8] sm:$0x3] }
 0x16c   :  { %v3588_v33 = vadd.f32 %v3586_v23, %v3582_v5  ;;  %v3998_v15 = vadd.f32 %v3996_v54, %v3992_v51  ;;  %v4008_v9 = vmul.f32 %v10641_v28, %v12739_v3  ;;  %v12742_v29 = vstv %s10653_s21  ;;  %8297 = vmatpush1.bf16.xpose.msra.mxu0 %v8296_v45  ;;  %v10792_v51 = vld [vmem:[%s12692_s2 + $0x2d0] sm:$0xff]  ;;  %3336 = vmatprep.mubr.f32.mxu0 %v3240_v48  ;;  %v10819_v54 = vld [vmem:[%s12692_s2 + $0x328] sm:$0xff] }
 0x16d   :  { %3406 = vmatprep.mubr.f32.mxu1 %v3241_v35  ;;  %v10797_v35 = vld [vmem:[%s12692_s2 + $0x308] sm:$0x3]  ;;  %v3604_v43 = vmul.f32 %v3602_v40, %v9853_v10  ;;  %v12743_v45 = vstv %s10662_s16  ;;  %8306 = vmatprep.subr.bf16.mxu1 %v12915_v56  ;;  %v10824_v10 = vld [vmem:[%s12692_s2 + $0x360] sm:$0x3]  ;;  %v12957_v4 = vstv %s10067_s7  ;;  %v12958_v8 = vpack.c.bf16 %v10605_v31, %v10583_v44  ;;  %s11610_s7 = sld [smem:[#allocation3 + $0x601]] }
 0x16e   :  { %v3594_v23 = vadd.f32 %v3592_v42, %v3588_v33  ;;  %v4004_v40 = vadd.f32 %v4002_v20, %v3998_v15  ;;  %v3973_v48 = vmul.f32 %v10585_v30, %v12957_v4  ;;  %v10835_v42 = vrot.slane %v10743_v49, %v8647_v7  ;;  %v10842_v20 = vld [vmem:[%s12692_s2 + $0x318] sm:$0xff]  ;;  %v10847_v15 = vld [vmem:[%s12692_s2 + $0x350] sm:$0x3] }
 0x16f   :  { %8303 = vmatprep.subr.bf16.mxu0 %v12958_v8  ;;  %v3611_v33 = vmax.f32 %v3609_v1, 0.0  ;;  %v3969_v4 = vadd.f32 %v3967_v24, %v3961_v46  ;;  %v12959_v21 = vstv %s10151_s1  ;;  %v10871_v24 = vld [vmem:[%s12692_s2 + $0x358] sm:$0x3]  ;;  %v12968_v5 = vpack.c.bf16 %v10639_v39, %v10634_v13  ;;  %s10941_s1 = sld [smem:[#allocation3 + $0x481]] }
 0x170   :  { %v3600_v31 = vadd.f32 %v3598_v26, %v3594_v23  ;;  %v4010_v8 = vadd.f32 %v4008_v9, %v4004_v40  ;;  %v3979_v1 = vmul.f32 %v10622_v47, %v12959_v21  ;;  %v10866_v21 = vld [vmem:[%s12692_s2 + $0x320] sm:$0xff]  ;;  %v10873_v9 = vld [vmem:[#allocation2 + $0xe] sm:$0xff]  ;;  %v12961_v23 = vstv %s10514_s15 }
 0x171   :  { %12960 = vst [vmem:[#allocation25_spill] sm:$0xff] %v10866_v21  ;;  %v3975_v26 = vadd.f32 %v3973_v48, %v3969_v4  ;;  %v3257_v40 = vcombine.high %v10835_v42, %v10835_v42  ;;  %v10882_v46 = vrot.slane %v3611_v33, %v8647_v7  ;;  %v10887_v48 = vld [vmem:[%s12692_s2 + $0x310] sm:$0xff]  ;;  %v12963_v4 = vstv %s10030_s29  ;;  %v11019_v21 = vld [vmem:[#allocation2 + $0x38] sm:$0xff]  ;;  %s12118_s29 = sld [smem:[#allocation6 + $0xd]] }
 0x172   :  { %v3606_v44 = vadd.f32 %v3604_v43, %v3600_v31  ;;  %v4371_v43 = vmul.f32 %v10873_v9, %v12961_v23  ;;  %3407 = vmatmul.mubr.f32.vlgmr.msra.gmra.mrb[20].mxu1 %v10683_v36  ;;  %v3630_v31 = vcombine.high %v3611_v33, %v3611_v33  ;;  %12962 = vst [vmem:[#allocation26_spill] sm:$0xff] %v10887_v48  ;;  %v10905_v23 = vld [vmem:[%s12692_s2 + $0x348] sm:$0x3]  ;;  %v12971_v39 = vstv %s10506_s12  ;;  %s11136_s12 = sld [smem:[#allocation3 + $0x487]] }
 0x173   :  { %v3985_v6 = vmul.f32 %v10389_v38, %v12963_v4  ;;  %3337 = vmatmul.mubr.f32.vlgmr.msra.gmra.mrb[20].mxu0 %v10659_v0  ;;  %v12964_v36 = vpack.c.bf16 %v10615_v22, %v10610_v16  ;;  %v4014_v33 = vadd.f32 %v12742_v29, %v4010_v8  ;;  %12965 = vst [vmem:[#allocation27_spill] sm:$0xff] %v10905_v23  ;;  %v10910_v4 = vld [vmem:[%s12692_s2 + $0x338] sm:$0xff]  ;;  %v10915_v16 = vld [vmem:[%s12692_s2 + $0x370] sm:$0x3]  ;;  %vm7611_vm12 = vcmask 74752  }
 0x174   :  { %12966 = vst [vmem:[#allocation28_spill] sm:$0xff] %v10910_v4  ;;  %12967 = vst [vmem:[#allocation29_spill] sm:$0xff] %v10915_v16  ;;  %v3981_v22 = vadd.f32 %v3979_v1, %v3975_v26  ;;  %v10917_v0 = vld [vmem:[#allocation2 + $0x1c] sm:$0xff]  ;;  %8305 = vmatpush1.bf16.xpose.msra.mxu0 %v12968_v5  ;;  %v3242_v29 = vcombine.high %v10743_v49, %v10743_v49  ;;  %3476 = vmatprep.mubr.f32.mxu0 %v3257_v40  ;;  %v12969_v26 = vstv %s10398_s26  ;;  %v10953_v5 = vld [vmem:[%s12692_s2 + $0x378] sm:$0x3]  ;;  %s11065_s26 = sld [smem:[#allocation6 + $0x8]] }
 0x175   :  { %8309 = vmatpush3.bf16.xpose.msk.msra.mxu1 %vm9747_vm7, %v12964_v36  ;;  %v4377_v8 = vmul.f32 %v10917_v0, %v12743_v45  ;;  %v10933_v1 = vld [vmem:[%s12692_s2 + $0x340] sm:$0xff]  ;;  %v3991_v45 = vmul.f32 %v10690_v61, %v12969_v26  ;;  %8141 = vmatprep.mubr.msk.f32.mxu1 %vm8601_vm15, %v12892_v62  ;;  %v12970_v13 = vpack.c.bf16 %v10676_v59, %v10671_v41  ;;  %v10958_v40 = vld [vmem:[%s12692_s2 + $0x330] sm:$0xff]  ;;  %v10963_v26 = vld [vmem:[%s12692_s2 + $0x368] sm:$0x3]  ;;  %v12972_v59 = vstv %s10680_s20 }
 0x176   :  { %v3610_v49 = vadd.f32 %v12971_v39, %v3606_v44  ;;  %v4373_v41 = vadd.f32 %v4371_v43, %v10433_v52  ;;  %v4383_v44 = vmul.f32 %v10091_v63, %v12972_v59  ;;  %v12973_v39 = vpack.c.bf16 %v10718_v14, %v10710_v12  ;;  %v10985_v63 = vld [vmem:[%s12692_s2 + $0x398] sm:$0xff]  ;;  %v10995_v59 = vld [vmem:[%s12692_s2 + $0x3d0] sm:$0x3]  ;;  %v11005_v52 = vld [vmem:[%s12692_s2 + $0x3c0] sm:$0x3] }
 0x177   :  { %8315 = vmatprep.subr.bf16.mxu1 %v12970_v13  ;;  %v10974_v60 = vrot.slane %v3630_v31, %v8647_v7  ;;  %v3645_v3 = vcombine.high %v10882_v46, %v10882_v46  ;;  %v4016_v12 = vmax.f32 %v4014_v33, 0.0  ;;  %v3987_v14 = vadd.f32 %v3985_v6, %v3981_v22  ;;  %v11012_v36 = vld [vmem:[#allocation2 + $0x6a] sm:$0x3f] }
 0x178   :  { %8311 = vmatprep.subr.bf16.mxu0 %v12973_v39  ;;  %v12974_v43 = vstv %s10537_s13  ;;  %v11000_v39 = vld [vmem:[%s12692_s2 + $0x388] sm:$0xff]  ;;  %v4379_v6 = vadd.f32 %v4377_v8, %v4373_v41  ;;  %v3256_v33 = vrot.slane %v3242_v29, %v8647_v7  ;;  %v12975_v13 = vstv %s10576_s8  ;;  %s11024_s13 = sld [smem:[#allocation3 + $0x483]] }
 0x179   :  { %v3997_v31 = vmul.f32 %v10731_v27, %v12974_v43  ;;  %v4003_v4 = vmul.f32 %v11012_v36, %v12975_v13  ;;  %v11017_v16 = vmax.f32 %v3610_v49, 0.0  ;;  %v3993_v48 = vadd.f32 %v3991_v45, %v3987_v14  ;;  %v11029_v13 = vld [vmem:[#allocation2 + $0x78] sm:$0x3f]  ;;  %s11711_s8 = sld [smem:[#allocation6 + $0xb]] }
 0x17a   :  { %v4385_v23 = vadd.f32 %v4383_v44, %v4379_v6  ;;  %v12976_v8 = vstv %s10688_s0  ;;  %v3646_v41 = vcombine.high %v10974_v60, %v10974_v60  ;;  %v12977_v49 = vstv %s10596_s25  ;;  %v11050_v44 = vld [vmem:[%s12692_s2 + $0x3c8] sm:$0x3]  ;;  %s11748_s25 = sld [smem:[#allocation3 + $0x605]] }
 0x17b   :  { %v4389_v29 = vmul.f32 %v11019_v21, %v12976_v8  ;;  %v4009_v45 = vmul.f32 %v11029_v13, %v12977_v49  ;;  %3477 = vmatmul.mubr.f32.vlgmr.msra.gmra.mrb[22].mxu0 %v10835_v42  ;;  %v12978_v6 = vpack.c.bf16 %v10728_v50, %v10723_v55  ;;  %v3999_v8 = vadd.f32 %v3997_v31, %v3993_v48  ;;  %v11045_v49 = vld [vmem:[%s12692_s2 + $0x390] sm:$0xff] }
 0x17c   :  { %8142 = vmatmul.mubr.msk.f32.vlgmr.msra.gmra.mrb[22].mxu1 %vm1315_vm13, %v3256_v33  ;;  %v4035_v33 = vcombine.high %v4016_v12, %v4016_v12  ;;  %v12979_v14 = vstv %s10755_s23  ;;  %v12751_v43 = vstv %s10892_s4  ;;  %v12980_v50 = vpack.c.bf16 %v10766_v19, %v10750_v58  ;;  %3741 = vmatprep.mubr.f32.mxu0 %v3645_v3 }
 0x17d   :  { %8317 = vmatpush1.bf16.xpose.msra.mxu1 %v12978_v6  ;;  %v4395_v42 = vmul.f32 %v10138_v32, %v12979_v14  ;;  %3811 = vmatprep.mubr.f32.mxu1 %v3646_v41  ;;  %v11060_v55 = vrot.slane %v4016_v12, %v8647_v7  ;;  %v12981_v48 = vstv %s10757_s11  ;;  %v12982_v6 = vstv %s10514_s15  ;;  %s11096_s15 = sld [smem:[#allocation3 + $0x485]] }
 0x17e   :  { %8313 = vmatpush1.bf16.xpose.msra.mxu0 %v12980_v50  ;;  %v4401_v31 = vmul.f32 %v10338_v37, %v12981_v48  ;;  %v4372_v22 = vmul.f32 %v10488_v25, %v12982_v6  ;;  %8322 = vmatprep.subr.bf16.mxu1 %v12915_v56  ;;  %v11074_v58 = vrot.slane %v11017_v16, %v8647_v7  ;;  %v12749_v41 = vstv %s10941_s1 }
 0x17f   :  { %v4005_v19 = vadd.f32 %v4003_v4, %v3999_v8  ;;  %v4391_v12 = vadd.f32 %v4389_v29, %v4385_v23  ;;  %v12983_v14 = vpack.c.bf16 %v10776_v53, %v10771_v2  ;;  %v3647_v3 = vcombine.high %v11017_v16, %v11017_v16 }
 0x180   :  { %v12984_v48 = vstv %s10232_s28  ;;  %v12985_v8 = vstv %s10662_s16  ;;  %v12986_v32 = vstv %s10808_s3  ;;  %v12750_v53 = vstv %s10987_s6  ;;  %s11112_s28 = sld [smem:[#allocation3 + $0x486]] }
 0x181   :  { %8319 = vmatprep.subr.bf16.mxu0 %v12983_v14  ;;  %v4366_v4 = vmul.f32 %v10508_v11, %v12984_v48  ;;  %v4378_v23 = vmul.f32 %v10585_v30, %v12985_v8  ;;  %v4011_v29 = vadd.f32 %v4009_v45, %v4005_v19  ;;  %v4397_v6 = vadd.f32 %v4395_v42, %v4391_v12  ;;  %v11126_v12 = vld [vmem:[%s12692_s2 + $0x3b8] sm:$0x3] }
 0x182   :  { %v4407_v2 = vmul.f32 %v10367_v18, %v12986_v32  ;;  %v11099_v16 = vrot.slane %v4035_v33, %v8647_v7  ;;  %v12987_v50 = vstv %s10680_s20  ;;  %v4776_v8 = vmul.f32 %v10873_v9, %v12749_v41  ;;  %v11121_v33 = vld [vmem:[%s12692_s2 + $0x380] sm:$0xff]  ;;  %s11817_s20 = sld [smem:[#allocation3 + $0x680]] }
 0x183   :  { %v4374_v14 = vadd.f32 %v4372_v22, %v4366_v4  ;;  %v4384_v48 = vmul.f32 %v10622_v47, %v12987_v50  ;;  %v3662_v45 = vcombine.high %v11074_v58, %v11074_v58  ;;  %v4403_v32 = vadd.f32 %v4401_v31, %v4397_v6  ;;  %v11128_v50 = vld [vmem:[#allocation2] sm:$0xff] }
 0x184   :  { %v12752_v19 = vstv %s11024_s13  ;;  %3812 = vmatmul.mubr.f32.vlgmr.msra.gmra.mrb[24].mxu1 %v10974_v60  ;;  %v4413_v22 = vmul.f32 %v10641_v28, %v12751_v43  ;;  %v12988_v4 = vstv %s10939_s14  ;;  %v4782_v6 = vmul.f32 %v10917_v0, %v12750_v53  ;;  %v11154_v53 = vld [vmem:[%s12692_s2 + $0x3e0] sm:$0x3] }
 0x185   :  { %v4380_v31 = vadd.f32 %v4378_v23, %v4374_v14  ;;  %v4770_v60 = vmul.f32 %v11128_v50, %v12988_v4  ;;  %3742 = vmatmul.mubr.f32.vlgmr.msra.gmra.mrb[24].mxu0 %v10882_v46  ;;  %v12989_v41 = vpack.c.bf16 %v10797_v35, %v10792_v51  ;;  %v12990_v23 = vstv %s10653_s21  ;;  %v11149_v4 = vld [vmem:[%s12692_s2 + $0x3a8] sm:$0xff]  ;;  %12992 = vst [vmem:[#allocation31_spill] sm:$0xff] %v11154_v53  ;;  %v11159_v51 = vld [vmem:[%s12692_s2 + $0x3b0] sm:$0xff]  ;;  %s11164_s21 = sld [smem:[#allocation3 + $0x488]] }
 0x186   :  { %v4015_v14 = vadd.f32 %v12990_v23, %v4011_v29  ;;  %v4409_v42 = vadd.f32 %v4407_v2, %v4403_v32  ;;  %12991 = vst [vmem:[#allocation30_spill] sm:$0xff] %v11149_v4  ;;  %12993 = vst [vmem:[#allocation32_spill] sm:$0xff] %v11159_v51  ;;  %v12994_v35 = vstv %s10688_s0  ;;  %3881 = vmatprep.mubr.f32.mxu0 %v3662_v45  ;;  %v11173_v2 = vld [vmem:[%s12692_s2 + $0x3e8] sm:$0x3]  ;;  %v11178_v32 = vld [vmem:[%s12692_s2 + $0x3a0] sm:$0xff]  ;;  %8148 = vmatprep.mubr.msk.f32.mxu1 %vm8601_vm15, %v12892_v62  ;;  %s11535_s0 = sld [smem:[#allocation3 + $0x586]] }
 0x187   :  { %8325 = vmatpush3.bf16.xpose.msk.msra.mxu1 %vm9747_vm7, %v12989_v41  ;;  %v4390_v46 = vmul.f32 %v10389_v38, %v12994_v35  ;;  %v12995_v41 = vpack.c.bf16 %v10814_v34, %v10802_v57  ;;  %12996 = vst [vmem:[#allocation33_spill] sm:$0xff] %v11173_v2  ;;  %12997 = vst [vmem:[#allocation34_spill] sm:$0xff] %v11178_v32  ;;  %v11183_v23 = vld [vmem:[%s12692_s2 + $0x3d8] sm:$0x3]  ;;  %v4386_v57 = vadd.f32 %v4384_v48, %v4380_v31  ;;  %v11185_v45 = vld [vmem:[#allocation2 + $0x2a] sm:$0xff] }
 0x188   :  { %12998 = vst [vmem:[#allocation35_spill] sm:$0xff] %v11183_v23  ;;  %v4778_v34 = vadd.f32 %v4776_v8, %v4770_v60  ;;  %v4788_v35 = vmul.f32 %v11185_v45, %v12752_v19  ;;  %v12999_v29 = vpack.c.bf16 %v10824_v10, %v10819_v54  ;;  %v4051_v43 = vcombine.high %v11099_v16, %v11099_v16  ;;  %v11212_v10 = vld [vmem:[%s12692_s2 + $0x408] sm:$0xff] }
 0x189   :  { %8321 = vmatpush1.bf16.xpose.msra.mxu0 %v12995_v41  ;;  %v3661_v41 = vrot.slane %v3647_v3, %v8647_v7  ;;  %v12758_v8 = vstv %s11077_s9  ;;  %v13000_v31 = vpack.c.bf16 %v10847_v15, %v10842_v20  ;;  %v4415_v60 = vadd.f32 %v4413_v22, %v4409_v42  ;;  %v11228_v22 = vld [vmem:[%s12692_s2 + $0x3f8] sm:$0xff]  ;;  %v11246_v42 = vld [vmem:[%s12692_s2 + $0x400] sm:$0xff] }
 0x18a   :  { %8331 = vmatprep.subr.bf16.mxu1 %v12999_v29  ;;  %v13001_v19 = vstv %s10755_s23  ;;  %v11217_v29 = vld [vmem:[%s12692_s2 + $0x440] sm:$0x3]  ;;  %v4784_v20 = vadd.f32 %v4782_v6, %v4778_v34  ;;  %v4017_v15 = vmax.f32 %v4015_v14, 0.0  ;;  %v4392_v6 = vadd.f32 %v4390_v46, %v4386_v57  ;;  %13003 = vst [vmem:[#allocation36_spill] sm:$0xff] %v11246_v42  ;;  %v11251_v3 = vld [vmem:[%s12692_s2 + $0x438] sm:$0x3] }
 0x18b   :  { %8327 = vmatprep.subr.bf16.mxu0 %v13000_v31  ;;  %v4396_v54 = vmul.f32 %v10690_v61, %v13001_v19  ;;  %v13002_v14 = vstv %s10757_s11  ;;  %v11241_v19 = vld [vmem:[%s12692_s2 + $0x430] sm:$0x3]  ;;  %v4794_v57 = vmul.f32 %v11019_v21, %v12758_v8  ;;  %v13005_v31 = vstv %s10892_s4  ;;  %s11274_s11 = sld [smem:[#allocation3 + $0x503]]  ;;  %s11310_s4 = sld [smem:[#allocation3 + $0x504]] }
 0x18c   :  { %v4402_v34 = vmul.f32 %v10731_v27, %v13002_v14  ;;  %v4790_v46 = vadd.f32 %v4788_v35, %v4784_v20  ;;  %v13004_v14 = vstv %s10808_s3  ;;  %v4414_v32 = vmul.f32 %v11029_v13, %v13005_v31  ;;  %v11268_v20 = vld [vmem:[#allocation2 + $0x46] sm:$0xff]  ;;  %s11301_s3 = sld [smem:[#allocation6 + $0x9]] }
 0x18d   :  { %v4408_v48 = vmul.f32 %v11012_v36, %v13004_v14  ;;  %v12760_v51 = vstv %s11112_s28  ;;  %v13006_v2 = vstv %s11065_s26  ;;  %v4398_v35 = vadd.f32 %v4396_v54, %v4392_v6  ;;  %v13008_v31 = vld [vmem:[#allocation25_spill] sm:$0xff]  ;;  %v13011_v54 = vld [vmem:[#allocation26_spill] sm:$0xff] }
 0x18e   :  { %8149 = vmatmul.mubr.msk.f32.vlgmr.msra.gmra.mrb[26].mxu1 %vm1315_vm13, %v3661_v41  ;;  %v4419_v4 = vadd.f32 %v13006_v2, %v4415_v60  ;;  %v13007_v8 = vstv %s11096_s15  ;;  %v13009_v23 = vpack.c.bf16 %v10871_v24, %v13008_v31  ;;  %v11281_v2 = vrot.slane %v4017_v15, %v8647_v7  ;;  %v13010_v60 = vld [vmem:[#allocation27_spill] sm:$0xff] }
 0x18f   :  { %v4800_v53 = vmul.f32 %v11268_v20, %v13007_v8  ;;  %4216 = vmatprep.mubr.f32.mxu1 %v4051_v43  ;;  %v13012_v6 = vpack.c.bf16 %v13010_v60, %v13011_v54  ;;  %v4796_v14 = vadd.f32 %v4794_v57, %v4790_v46  ;;  %v4806_v24 = vmul.f32 %v10338_v37, %v12760_v51  ;;  %v13016_v46 = vld [vmem:[#allocation29_spill] sm:$0xff]  ;;  %v13017_v57 = vld [vmem:[#allocation28_spill] sm:$0xff] }
 0x190   :  { %3882 = vmatmul.mubr.f32.vlgmr.msra.gmra.mrb[26].mxu0 %v11074_v58  ;;  %8333 = vmatpush1.bf16.xpose.msra.mxu1 %v13009_v23  ;;  %v4404_v58 = vadd.f32 %v4402_v34, %v4398_v35  ;;  %v12762_v23 = vstv %s11164_s21  ;;  %v13013_v31 = vcombine.high %v11060_v55, %v11060_v55  ;;  %v4052_v43 = vcombine.high %v4017_v15, %v4017_v15 }
 0x191   :  { %8329 = vmatpush1.bf16.xpose.msra.mxu0 %v13012_v6  ;;  %8338 = vmatprep.subr.bf16.mxu1 %v12915_v56  ;;  %v13014_v8 = vstv %s11136_s12  ;;  %v13015_v34 = vstv %s10941_s1  ;;  %v13018_v35 = vpack.c.bf16 %v13016_v46, %v13017_v57  ;;  %v4421_v54 = vmax.f32 %v4419_v4, 0.0  ;;  %s11325_s1 = sld [smem:[#allocation3 + $0x505]] }
 0x192   :  { %4146 = vmatprep.mubr.f32.mxu0 %v13013_v31  ;;  %v4812_v60 = vmul.f32 %v10367_v18, %v13014_v8  ;;  %v4777_v37 = vmul.f32 %v10488_v25, %v13015_v34  ;;  %v4410_v6 = vadd.f32 %v4408_v48, %v4404_v58  ;;  %v4802_v31 = vadd.f32 %v4800_v53, %v4796_v14 }
 0x193   :  { %8335 = vmatprep.subr.bf16.mxu0 %v13018_v35  ;;  %v4067_v8 = vcombine.high %v11281_v2, %v11281_v2  ;;  %v4818_v41 = vmul.f32 %v10641_v28, %v12762_v23  ;;  %v13019_v51 = vstv %s10939_s14  ;;  %v13020_v42 = vstv %s10987_s6  ;;  %s11434_s6 = sld [smem:[#allocation3 + $0x580]]  ;;  %s11783_s14 = sld [smem:[#allocation3 + $0x681]] }
 0x194   :  { %v4771_v34 = vmul.f32 %v10508_v11, %v13019_v51  ;;  %v4783_v46 = vmul.f32 %v10585_v30, %v13020_v42  ;;  %v4416_v4 = vadd.f32 %v4414_v32, %v4410_v6  ;;  %v4808_v48 = vadd.f32 %v4806_v24, %v4802_v31 }
 0x195   :  { %v5174_v58 = vstv %s11231_s27  ;;  %v5186_v53 = vstv %s11233_s19  ;;  %v4066_v14 = vrot.slane %v4052_v43, %v8647_v7  ;;  %v13021_v35 = vstv %s11024_s13  ;;  %v11341_v43 = vld [vmem:[%s12692_s2 + $0x3f0] sm:$0xff]  ;;  %s11436_s13 = sld [smem:[#allocation3 + $0x582]]  ;;  %s12158_s27 = sld [smem:[#allocation3 + $0x704]] }
 0x196   :  { %v4779_v57 = vadd.f32 %v4777_v37, %v4771_v34  ;;  %v4789_v15 = vmul.f32 %v10622_v47, %v13021_v35  ;;  %v13022_v23 = vstv %s11219_s10  ;;  %v4440_v42 = vcombine.high %v4421_v54, %v4421_v54  ;;  %v11346_v37 = vld [vmem:[%s12692_s2 + $0x428] sm:$0x3]  ;;  %s12434_s19 = sld [smem:[#allocation3 + $0x787]] }
 0x197   :  { %v5181_v51 = vmul.f32 %v10873_v9, %v13022_v23  ;;  %4217 = vmatmul.mubr.f32.vlgmr.msra.gmra.mrb[28].mxu1 %v11099_v16  ;;  %v11336_v32 = vrot.slane %v4421_v54, %v8647_v7  ;;  %v4814_v24 = vadd.f32 %v4812_v60, %v4808_v48  ;;  %v5192_v23 = vstv %s11274_s11  ;;  %v11360_v60 = vld [vmem:[%s12692_s2 + $0x418] sm:$0xff]  ;;  %v11365_v54 = vld [vmem:[%s12692_s2 + $0x450] sm:$0x3]  ;;  %s12446_s11 = sld [smem:[#allocation3 + $0x788]] }
 0x198   :  { %4147 = vmatmul.mubr.f32.vlgmr.msra.gmra.mrb[28].mxu0 %v11060_v55  ;;  %v13023_v16 = vpack.c.bf16 %v10953_v5, %v10933_v1  ;;  %v11370_v55 = vld [vmem:[%s12692_s2 + $0x420] sm:$0xff]  ;;  %v4785_v1 = vadd.f32 %v4783_v46, %v4779_v57  ;;  %v5175_v5 = vmul.f32 %v11128_v50, %v5174_v58  ;;  %v5187_v6 = vmul.f32 %v10917_v0, %v5186_v53  ;;  %v11388_v46 = vld [vmem:[%s12692_s2 + $0x458] sm:$0x3]  ;;  %v11393_v57 = vld [vmem:[%s12692_s2 + $0x410] sm:$0xff] }
 0x199   :  { %v13024_v31 = vpack.c.bf16 %v10963_v26, %v10958_v40  ;;  %4286 = vmatprep.mubr.f32.mxu0 %v4067_v8  ;;  %v13025_v34 = vstv %s11065_s26  ;;  %v4820_v35 = vadd.f32 %v4818_v41, %v4814_v24  ;;  %v11398_v40 = vld [vmem:[%s12692_s2 + $0x448] sm:$0x3]  ;;  %v13026_v26 = vstv %s11077_s9  ;;  %8155 = vmatprep.mubr.msk.f32.mxu1 %vm8601_vm15, %v12892_v62  ;;  %s11412_s26 = sld [smem:[#allocation3 + $0x581]]  ;;  %s11425_s9 = sld [smem:[#allocation3 + $0x508]] }
 0x19a   :  { %8341 = vmatpush3.bf16.xpose.msk.msra.mxu1 %vm9747_vm7, %v13023_v16  ;;  %v4420_v48 = vadd.f32 %v13025_v34, %v4416_v4  ;;  %v4795_v8 = vmul.f32 %v10389_v38, %v13026_v26  ;;  %v13027_v41 = vpack.c.bf16 %v10995_v59, %v10985_v63  ;;  %v12763_v4 = vstv %s11301_s3 }
 0x19b   :  { %8337 = vmatpush1.bf16.xpose.msra.mxu0 %v13024_v31  ;;  %v4791_v24 = vadd.f32 %v4789_v15, %v4785_v1  ;;  %v5183_v16 = vadd.f32 %v5181_v51, %v5175_v5  ;;  %v5193_v31 = vmul.f32 %v11185_v45, %v5192_v23  ;;  %v13028_v38 = vpack.c.bf16 %v11005_v52, %v11000_v39 }
 0x19c   :  { %8347 = vmatprep.subr.bf16.mxu1 %v13027_v41  ;;  %v11418_v34 = vrot.slane %v4440_v42, %v8647_v7  ;;  %v5198_v15 = vstv %s11310_s4  ;;  %v13029_v39 = vstv %s11096_s15  ;;  %v4455_v5 = vcombine.high %v11336_v32, %v11336_v32  ;;  %s11451_s15 = sld [smem:[#allocation3 + $0x583]]  ;;  %s11559_s4 = sld [smem:[#allocation3 + $0x587]] }
 0x19d   :  { %8343 = vmatprep.subr.bf16.mxu0 %v13028_v38  ;;  %v4801_v42 = vmul.f32 %v10690_v61, %v13029_v39  ;;  %v5189_v1 = vadd.f32 %v5187_v6, %v5183_v16  ;;  %v11440_v26 = vmax.f32 %v4420_v48, 0.0  ;;  %v4824_v41 = vadd.f32 %v12763_v4, %v4820_v35 }
 0x19e   :  { %v5204_v38 = vstv %s11325_s1  ;;  %v4797_v52 = vadd.f32 %v4795_v8, %v4791_v24  ;;  %v13030_v39 = vstv %s11112_s28  ;;  %v5199_v51 = vmul.f32 %v11019_v21, %v5198_v15  ;;  %s11495_s28 = sld [smem:[#allocation6 + $0xa]]  ;;  %s11589_s1 = sld [smem:[#allocation3 + $0x588]] }
 0x19f   :  { %v4807_v6 = vmul.f32 %v10731_v27, %v13030_v39  ;;  %v5195_v16 = vadd.f32 %v5193_v31, %v5189_v1  ;;  %v4456_v48 = vcombine.high %v11418_v34, %v11418_v34  ;;  %v13031_v35 = vstv %s11136_s12  ;;  %s11498_s12 = sld [smem:[#allocation3 + $0x584]] }
 0x1a0   :  { %v4813_v59 = vmul.f32 %v11012_v36, %v13031_v35  ;;  %v5210_v8 = vstv %s11349_s22  ;;  %v13032_v24 = vstv %s11219_s10  ;;  %v13033_v31 = vpack.c.bf16 %v11050_v44, %v11045_v49  ;;  %s11625_s22 = sld [smem:[#allocation3 + $0x600]]  ;;  %s12286_s10 = sld [smem:[#allocation3 + $0x782]] }
 0x1a1   :  { %8156 = vmatmul.mubr.msk.f32.vlgmr.msra.gmra.mrb[30].mxu1 %vm1315_vm13, %v4066_v14  ;;  %v5182_v39 = vmul.f32 %v10488_v25, %v13032_v24  ;;  %v4803_v1 = vadd.f32 %v4801_v42, %v4797_v52  ;;  %v13034_v14 = vstv %s11164_s21  ;;  %v5205_v4 = vmul.f32 %v11268_v20, %v5204_v38  ;;  %v11490_v42 = vld [vmem:[#allocation2 + $0x54] sm:$0xff]  ;;  %s11512_s21 = sld [smem:[#allocation3 + $0x585]] }
 0x1a2   :  { %4287 = vmatmul.mubr.f32.vlgmr.msra.gmra.mrb[30].mxu0 %v11281_v2  ;;  %8349 = vmatpush1.bf16.xpose.msra.mxu1 %v13033_v31  ;;  %v4819_v63 = vmul.f32 %v11029_v13, %v13034_v14  ;;  %v5216_v35 = vstv %s11378_s30  ;;  %v13035_v25 = vpack.c.bf16 %v11126_v12, %v11121_v33  ;;  %v11479_v44 = vrot.slane %v11440_v26, %v8647_v7  ;;  %s11666_s30 = sld [smem:[#allocation3 + $0x603]] }
 0x1a3   :  { %4621 = vmatprep.mubr.f32.mxu1 %v4456_v48  ;;  %v11481_v49 = vmax.f32 %v4824_v41, 0.0  ;;  %v5176_v2 = vmul.f32 %v10508_v11, %v5174_v58  ;;  %v5188_v52 = vmul.f32 %v10585_v30, %v5186_v53  ;;  %4551 = vmatprep.mubr.f32.mxu0 %v4455_v5  ;;  %v4809_v33 = vadd.f32 %v4807_v6, %v4803_v1  ;;  %v13036_v11 = vld [vmem:[#allocation31_spill] sm:$0xff]  ;;  %v13037_v58 = vld [vmem:[#allocation30_spill] sm:$0xff] }
 0x1a4   :  { %8345 = vmatpush1.bf16.xpose.msra.mxu0 %v13035_v25  ;;  %8354 = vmatprep.subr.bf16.mxu1 %v12915_v56  ;;  %v5201_v12 = vadd.f32 %v5199_v51, %v5195_v16  ;;  %v5211_v41 = vmul.f32 %v11490_v42, %v5210_v8  ;;  %v5585_v48 = vstv %s11412_s26  ;;  %v13038_v30 = vpack.c.bf16 %v13036_v11, %v13037_v58  ;;  %v11538_v58 = vld [vmem:[#allocation2 + $0x40] sm:$0x3f]  ;;  %s11727_s26 = sld [smem:[#allocation3 + $0x604]] }
 0x1a5   :  { %v5217_v53 = vmul.f32 %v10367_v18, %v5216_v35  ;;  %v5222_v5 = vstv %s11425_s9  ;;  %v5184_v51 = vadd.f32 %v5182_v39, %v5176_v2  ;;  %v5194_v6 = vmul.f32 %v10622_v47, %v5192_v23  ;;  %v11521_v39 = vld [vmem:[%s12692_s2 + $0x478] sm:$0xff]  ;;  %v11526_v23 = vld [vmem:[%s12692_s2 + $0x4b0] sm:$0x3]  ;;  %s11994_s9 = sld [smem:[#allocation3 + $0x688]] }
 0x1a6   :  { %8351 = vmatprep.subr.bf16.mxu0 %v13038_v30  ;;  %v4815_v16 = vadd.f32 %v4813_v59, %v4809_v33  ;;  %v5207_v24 = vadd.f32 %v5205_v4, %v5201_v12  ;;  %v5579_v31 = vstv %s11434_s6  ;;  %v5591_v1 = vstv %s11436_s13  ;;  %v13039_v30 = vld [vmem:[#allocation33_spill] sm:$0xff]  ;;  %s11758_s6 = sld [smem:[#allocation3 + $0x606]] }
 0x1a7   :  { %v4472_v14 = vcombine.high %v11479_v44, %v11479_v44  ;;  %v4845_v18 = vcombine.high %v11481_v49, %v11481_v49  ;;  %v5190_v4 = vadd.f32 %v5188_v52, %v5184_v51  ;;  %v5586_v59 = vmul.f32 %v10873_v9, %v5585_v48  ;;  %v13040_v51 = vld [vmem:[#allocation32_spill] sm:$0xff] }
 0x1a8   :  { %v4821_v25 = vadd.f32 %v4819_v63, %v4815_v16  ;;  %v5213_v2 = vadd.f32 %v5211_v41, %v5207_v24  ;;  %v5223_v33 = vmul.f32 %v10641_v28, %v5222_v5  ;;  %v5597_v12 = vstv %s11451_s15  ;;  %v13042_v24 = vld [vmem:[#allocation35_spill] sm:$0xff]  ;;  %s11931_s15 = sld [smem:[#allocation3 + $0x686]] }
 0x1a9   :  { %4622 = vmatmul.mubr.f32.vlgmr.msra.gmra.mrb[32].mxu1 %v11418_v34  ;;  %v5196_v11 = vadd.f32 %v5194_v6, %v5190_v4  ;;  %v5200_v52 = vmul.f32 %v11538_v58, %v5198_v15  ;;  %v5580_v63 = vmul.f32 %v11128_v50, %v5579_v31  ;;  %v5592_v41 = vmul.f32 %v10917_v0, %v5591_v1  ;;  %v13043_v4 = vld [vmem:[#allocation34_spill] sm:$0xff] }
 0x1aa   :  { %v13041_v34 = vpack.c.bf16 %v13039_v30, %v13040_v51  ;;  %v4457_v6 = vcombine.high %v11440_v26, %v11440_v26  ;;  %v5219_v16 = vadd.f32 %v5217_v53, %v5213_v2  ;;  %v11567_v30 = vld [vmem:[%s12692_s2 + $0x468] sm:$0xff]  ;;  %v11572_v26 = vld [vmem:[%s12692_s2 + $0x4a0] sm:$0x3]  ;;  %v5206_v53 = vmul.f32 %v10690_v61, %v5204_v38  ;;  %8162 = vmatprep.mubr.msk.f32.mxu1 %vm8601_vm15, %v12892_v62 }
 0x1ab   :  { %4552 = vmatmul.mubr.f32.vlgmr.msra.gmra.mrb[32].mxu0 %v11336_v32  ;;  %v13044_v32 = vpack.c.bf16 %v13042_v24, %v13043_v4  ;;  %v5588_v2 = vadd.f32 %v5586_v59, %v5580_v63  ;;  %v5598_v51 = vmul.f32 %v11185_v45, %v5597_v12  ;;  %v5603_v15 = vstv %s11498_s12  ;;  %v11642_v63 = vld [vmem:[%s12692_s2 + $0x4c0] sm:$0x3]  ;;  %s11833_s12 = sld [smem:[#allocation3 + $0x608]] }
 0x1ac   :  { %8357 = vmatpush3.bf16.xpose.msk.msra.mxu1 %vm9747_vm7, %v13041_v34  ;;  %4691 = vmatprep.mubr.f32.mxu0 %v4472_v14  ;;  %v13045_v14 = vpack.c.bf16 %v11217_v29, %v11212_v10  ;;  %v13046_v34 = vstv %s11301_s3  ;;  %v5225_v4 = vadd.f32 %v5223_v33, %v5219_v16  ;;  %v13047_v61 = vpack.c.bf16 %v11241_v19, %v11228_v22  ;;  %v11600_v10 = vld [vmem:[%s12692_s2 + $0x470] sm:$0xff]  ;;  %v11605_v29 = vld [vmem:[%s12692_s2 + $0x4a8] sm:$0x3]  ;;  %s12372_s3 = sld [smem:[#allocation3 + $0x784]] }
 0x1ad   :  { %8353 = vmatpush1.bf16.xpose.msra.mxu0 %v13044_v32  ;;  %v4825_v24 = vadd.f32 %v13046_v34, %v4821_v25  ;;  %v5228_v32 = vstv %s11495_s28  ;;  %v11595_v38 = vrot.slane %v4845_v18, %v8647_v7  ;;  %v5202_v59 = vadd.f32 %v5200_v52, %v5196_v11  ;;  %v11622_v11 = vld [vmem:[%s12692_s2 + $0x460] sm:$0xff]  ;;  %v11637_v52 = vld [vmem:[%s12692_s2 + $0x488] sm:$0xff]  ;;  %v11713_v34 = vld [vmem:[#allocation2 + $0x16] sm:$0x3f]  ;;  %s11781_s28 = sld [smem:[#allocation3 + $0x607]] }
 0x1ae   :  { %8363 = vmatprep.subr.bf16.mxu1 %v13045_v14  ;;  %8359 = vmatprep.subr.bf16.mxu0 %v13047_v61  ;;  %v5212_v25 = vmul.f32 %v10731_v27, %v5210_v8  ;;  %v5594_v19 = vadd.f32 %v5592_v41, %v5588_v2  ;;  %v4471_v22 = vrot.slane %v4457_v6, %v8647_v7  ;;  %v12766_v8 = vstv %s11512_s21 }
 0x1af   :  { %v11615_v18 = vrot.slane %v11481_v49, %v8647_v7  ;;  %v11632_v49 = vld [vmem:[%s12692_s2 + $0x498] sm:$0x3]  ;;  %v5208_v41 = vadd.f32 %v5206_v53, %v5202_v59  ;;  %v5218_v6 = vmul.f32 %v11012_v36, %v5216_v35  ;;  %v5604_v2 = vmul.f32 %v11019_v21, %v5603_v15 }
 0x1b0   :  { %v5600_v16 = vadd.f32 %v5598_v51, %v5594_v19  ;;  %v11650_v14 = vmax.f32 %v4825_v24, 0.0  ;;  %v5229_v61 = vadd.f32 %v5228_v32, %v5225_v4  ;;  %v12764_v33 = vstv %s11535_s0  ;;  %v13048_v24 = vld [vmem:[#allocation36_spill] sm:$0xff] }
 0x1b1   :  { %v4861_v53 = vcombine.high %v11595_v38, %v11595_v38  ;;  %v5214_v59 = vadd.f32 %v5212_v25, %v5208_v41  ;;  %v5224_v35 = vmul.f32 %v11029_v13, %v5222_v5  ;;  %v5610_v51 = vmul.f32 %v11268_v20, %v12766_v8  ;;  %v11690_v41 = vld [vmem:[%s12692_s2 + $0x4c8] sm:$0x3] }
 0x1b2   :  { %v13049_v4 = vpack.c.bf16 %v11251_v3, %v13048_v24  ;;  %v4860_v19 = vcombine.high %v11615_v18, %v11615_v18  ;;  %v13050_v3 = vpack.c.bf16 %v11346_v37, %v11341_v43  ;;  %v11695_v24 = vld [vmem:[%s12692_s2 + $0x480] sm:$0xff]  ;;  %v5606_v43 = vadd.f32 %v5604_v2, %v5600_v16 }
 0x1b3   :  { %8163 = vmatmul.mubr.msk.f32.vlgmr.msra.gmra.mrb[34].mxu1 %vm1315_vm13, %v4471_v22  ;;  %v11681_v22 = vld [vmem:[%s12692_s2 + $0x490] sm:$0xff]  ;;  %v5616_v37 = vmul.f32 %v11490_v42, %v12764_v33  ;;  %v5231_v5 = vmax.f32 %v5229_v61, 0.0  ;;  %v12767_v25 = vstv %s11589_s1  ;;  %v13051_v16 = vpack.c.bf16 %v11365_v54, %v11360_v60  ;;  %v11733_v54 = vld [vmem:[#allocation2 + $0x8] sm:$0x3f] }
 0x1b4   :  { %4692 = vmatmul.mubr.f32.vlgmr.msra.gmra.mrb[34].mxu0 %v11479_v44  ;;  %8365 = vmatpush1.bf16.xpose.msra.mxu1 %v13049_v4  ;;  %v12765_v44 = vstv %s11559_s4  ;;  %v11700_v4 = vld [vmem:[%s12692_s2 + $0x4b8] sm:$0x3]  ;;  %v5990_v33 = vstv %s11610_s7  ;;  %v5599_v8 = vmul.f32 %v10622_v47, %v5597_v12  ;;  %v11773_v47 = vld [vmem:[%s12692_s2 + $0x4e8] sm:$0xff]  ;;  %s12271_s7 = sld [smem:[#allocation3 + $0x781]] }
 0x1b5   :  { %5026 = vmatprep.mubr.f32.mxu1 %v4861_v53  ;;  %8361 = vmatpush1.bf16.xpose.msra.mxu0 %v13050_v3  ;;  %v5220_v53 = vadd.f32 %v5218_v6, %v5214_v59  ;;  %v11708_v3 = vrot.slane %v11650_v14, %v8647_v7  ;;  %v5587_v6 = vmul.f32 %v11713_v34, %v5585_v48  ;;  %v5984_v48 = vstv %s11625_s22  ;;  %s11967_s22 = sld [smem:[#allocation3 + $0x687]] }
 0x1b6   :  { %4956 = vmatprep.mubr.f32.mxu0 %v4860_v19  ;;  %8370 = vmatprep.subr.bf16.mxu1 %v12915_v56  ;;  %v5612_v59 = vadd.f32 %v5610_v51, %v5606_v43  ;;  %v11721_v19 = vld [vmem:[#allocation2 + $0x62] sm:$0xff] }
 0x1b7   :  { %8367 = vmatprep.subr.bf16.mxu0 %v13051_v16  ;;  %v5226_v2 = vadd.f32 %v5224_v35, %v5220_v53  ;;  %v5622_v61 = vmul.f32 %v11721_v19, %v12765_v44  ;;  %v5581_v35 = vmul.f32 %v11733_v54, %v5579_v31  ;;  %v11738_v51 = vld [vmem:[#allocation2 + $0x24] sm:$0x3f]  ;;  %v5628_v16 = vmul.f32 %v10641_v28, %v12767_v25 }
 0x1b8   :  { %v5593_v53 = vmul.f32 %v11738_v51, %v5591_v1  ;;  %v5618_v43 = vadd.f32 %v5616_v37, %v5612_v59  ;;  %v5996_v44 = vstv %s11627_s17  ;;  %v4877_v60 = vcombine.high %v11708_v3, %v11708_v3 }
 0x1b9   :  { %v5589_v31 = vadd.f32 %v5587_v6, %v5581_v35  ;;  %v5991_v1 = vmul.f32 %v10873_v9, %v5990_v33  ;;  %v5250_v28 = vcombine.high %v5231_v5, %v5231_v5  ;;  %v5230_v37 = vadd.f32 %v5228_v32, %v5226_v2  ;;  %v11798_v2 = vld [vmem:[%s12692_s2 + $0x4d8] sm:$0xff] }
 0x1ba   :  { %v5624_v59 = vadd.f32 %v5622_v61, %v5618_v43  ;;  %v6002_v25 = vstv %s11666_s30  ;;  %v13052_v6 = vpack.c.bf16 %v11388_v46, %v11370_v55  ;;  %v5985_v32 = vmul.f32 %v11128_v50, %v5984_v48 }
 0x1bb   :  { %5027 = vmatmul.mubr.f32.vlgmr.msra.gmra.mrb[36].mxu1 %v11595_v38  ;;  %v5595_v12 = vadd.f32 %v5593_v53, %v5589_v31  ;;  %v5997_v38 = vmul.f32 %v10917_v0, %v5996_v44  ;;  %v13053_v55 = vpack.c.bf16 %v11398_v40, %v11393_v57  ;;  %v4862_v46 = vcombine.high %v11650_v14, %v11650_v14  ;;  %v11803_v57 = vld [vmem:[%s12692_s2 + $0x510] sm:$0x3]  ;;  %v11842_v31 = vld [vmem:[%s12692_s2 + $0x4e0] sm:$0xff] }
 0x1bc   :  { %4957 = vmatmul.mubr.f32.vlgmr.msra.gmra.mrb[36].mxu0 %v11615_v18  ;;  %8373 = vmatpush3.bf16.xpose.msk.msra.mxu1 %vm9747_vm7, %v13052_v6  ;;  %v11793_v18 = vld [vmem:[%s12692_s2 + $0x520] sm:$0x3]  ;;  %v5630_v40 = vadd.f32 %v5628_v16, %v5624_v59  ;;  %v5605_v14 = vmul.f32 %v11538_v58, %v5603_v15  ;;  %v13054_v61 = vpack.c.bf16 %v11526_v23, %v11521_v39  ;;  %v6008_v16 = vstv %s11727_s26  ;;  %s12058_s26 = sld [smem:[#allocation3 + $0x700]] }
 0x1bd   :  { %8369 = vmatpush1.bf16.xpose.msra.mxu0 %v13053_v55  ;;  %5096 = vmatprep.mubr.f32.mxu0 %v4877_v60  ;;  %v5633_v60 = vstv %s11711_s8  ;;  %v5601_v35 = vadd.f32 %v5599_v8, %v5595_v12  ;;  %v5993_v53 = vadd.f32 %v5991_v1, %v5985_v32  ;;  %v6003_v43 = vmul.f32 %v11185_v45, %v6002_v25  ;;  %v11849_v1 = vld [vmem:[#allocation2 + $0x4e] sm:$0x3f]  ;;  %s12047_s8 = sld [smem:[#allocation3 + $0x701]] }
 0x1be   :  { %8169 = vmatprep.mubr.msk.f32.mxu1 %vm8601_vm15, %v12892_v62  ;;  %8379 = vmatprep.subr.bf16.mxu1 %v13054_v61  ;;  %v13055_v15 = vpack.c.bf16 %v11572_v26, %v11567_v30  ;;  %v11825_v39 = vrot.slane %v5250_v28, %v8647_v7  ;;  %v11828_v23 = vrot.slane %v5231_v5, %v8647_v7  ;;  %v11830_v8 = vmax.f32 %v5230_v37, 0.0  ;;  %v11847_v5 = vld [vmem:[%s12692_s2 + $0x518] sm:$0x3] }
 0x1bf   :  { %v13056_v28 = vstv %s11512_s21  ;;  %v5999_v59 = vadd.f32 %v5997_v38, %v5993_v53  ;;  %v4876_v6 = vrot.slane %v4862_v46, %v8647_v7  ;;  %v5634_v12 = vadd.f32 %v5633_v60, %v5630_v40  ;;  %s11889_s21 = sld [smem:[#allocation3 + $0x684]] }
 0x1c0   :  { %8375 = vmatprep.subr.bf16.mxu0 %v13055_v15  ;;  %v5611_v37 = vmul.f32 %v11849_v1, %v13056_v28  ;;  %v13057_v32 = vstv %s11535_s0  ;;  %v6014_v61 = vstv %s11748_s25  ;;  %v5607_v15 = vadd.f32 %v5605_v14, %v5601_v35  ;;  %s11903_s0 = sld [smem:[#allocation6 + $0xc]]  ;;  %s12097_s25 = sld [smem:[#allocation3 + $0x703]] }
 0x1c1   :  { %v5617_v55 = vmul.f32 %v10731_v27, %v13057_v32  ;;  %v6005_v26 = vadd.f32 %v6003_v43, %v5999_v59  ;;  %v6009_v30 = vmul.f32 %v11019_v21, %v6008_v16  ;;  %v6020_v28 = vstv %s11758_s6  ;;  %s13074_s6 = sld [smem:[#allocation37_spill]] }
 0x1c2   :  { %v5266_v38 = vcombine.high %v11825_v39, %v11825_v39  ;;  %v5265_v46 = vcombine.high %v11828_v23, %v11828_v23  ;;  %v11874_v27 = vrot.slane %v11830_v8, %v8647_v7  ;;  %v8396_v40 = vpack.c.bf16 %v11847_v5, %v11842_v31  ;;  %v12123_v5 = vld [vmem:[%s12692_s2 + $0x588] sm:$0x3] }
 0x1c3   :  { %8170 = vmatmul.mubr.msk.f32.vlgmr.msra.gmra.mrb[38].mxu1 %vm1315_vm13, %v4876_v6  ;;  %v13058_v14 = vpack.c.bf16 %v11605_v29, %v11600_v10  ;;  %v5613_v35 = vadd.f32 %v5611_v37, %v5607_v15  ;;  %v13059_v53 = vstv %s11559_s4  ;;  %v6015_v59 = vmul.f32 %v11268_v20, %v6014_v61  ;;  %s11908_s4 = sld [smem:[#allocation3 + $0x685]] }
 0x1c4   :  { %5097 = vmatmul.mubr.f32.vlgmr.msra.gmra.mrb[38].mxu0 %v11708_v3  ;;  %v5623_v43 = vmul.f32 %v11012_v36, %v13059_v53  ;;  %v12768_v6 = vstv %s11783_s14  ;;  %5431 = vmatprep.mubr.f32.mxu1 %v5266_v38  ;;  %v13060_v3 = vpack.c.bf16 %v11632_v49, %v11622_v11  ;;  %v11894_v10 = vmax.f32 %v5634_v12, 0.0  ;;  %v11946_v53 = vld [vmem:[%s12692_s2 + $0x530] sm:$0x3] }
 0x1c5   :  { %8381 = vmatpush1.bf16.xpose.msra.mxu1 %v13058_v14  ;;  %v13061_v29 = vstv %s11589_s1  ;;  %v6021_v37 = vmul.f32 %v11490_v42, %v6020_v28  ;;  %v6026_v32 = vstv %s11781_s28  ;;  %5361 = vmatprep.mubr.f32.mxu0 %v5265_v46  ;;  %v5619_v11 = vadd.f32 %v5617_v55, %v5613_v35 }
 0x1c6   :  { %8377 = vmatpush1.bf16.xpose.msra.mxu0 %v13060_v3  ;;  %v5629_v36 = vmul.f32 %v11029_v13, %v13061_v29  ;;  %8386 = vmatprep.subr.bf16.mxu1 %v12915_v56  ;;  %v6011_v49 = vadd.f32 %v6009_v30, %v6005_v26  ;;  %v12769_v15 = vstv %s11817_s20  ;;  %v12770_v12 = vstv %s11819_s18  ;;  %v11925_v26 = vld [vmem:[%s12692_s2 + $0x4d0] sm:$0xff] }
 0x1c7   :  { %v13062_v13 = vpack.c.bf16 %v11642_v63, %v11637_v52  ;;  %v5282_v38 = vcombine.high %v11874_v27, %v11874_v27  ;;  %v6032_v46 = vstv %s11833_s12  ;;  %v5992_v55 = vmul.f32 %v11713_v34, %v5990_v33  ;;  %v11936_v33 = vld [vmem:[%s12692_s2 + $0x508] sm:$0x3] }
 0x1c8   :  { %v6396_v30 = vmul.f32 %v10873_v9, %v12768_v6  ;;  %v5625_v52 = vadd.f32 %v5623_v43, %v5619_v11  ;;  %v6017_v63 = vadd.f32 %v6015_v59, %v6011_v49  ;;  %v6027_v14 = vmul.f32 %v11721_v19, %v6026_v32  ;;  %v11941_v9 = vld [vmem:[%s12692_s2 + $0x4f8] sm:$0xff]  ;;  %v11962_v6 = vld [vmem:[#allocation2 + $0x70] sm:$0xff] }
 0x1c9   :  { %8383 = vmatprep.subr.bf16.mxu0 %v13062_v13  ;;  %v6407_v35 = vstv %s11854_s5  ;;  %v5986_v43 = vmul.f32 %v11733_v54, %v5984_v48  ;;  %v5998_v59 = vmul.f32 %v11738_v51, %v5996_v44  ;;  %v6390_v3 = vmul.f32 %v11128_v50, %v12769_v15  ;;  %v11970_v15 = vld [vmem:[#allocation2 + $0x32] sm:$0x3f]  ;;  %s12208_s5 = sld [smem:[#allocation3 + $0x707]] }
 0x1ca   :  { %v6402_v29 = vmul.f32 %v10917_v0, %v12770_v12  ;;  %v5655_v11 = vcombine.high %v11894_v10, %v11894_v10  ;;  %v5631_v49 = vadd.f32 %v5629_v36, %v5625_v52  ;;  %v6023_v13 = vadd.f32 %v6021_v37, %v6017_v63  ;;  %v12009_v52 = vld [vmem:[%s12692_s2 + $0x4f0] sm:$0xff] }
 0x1cb   :  { %v6033_v48 = vmul.f32 %v11962_v6, %v6032_v46  ;;  %v5994_v44 = vadd.f32 %v5992_v55, %v5986_v43  ;;  %v6004_v0 = vmul.f32 %v11970_v15, %v6002_v25  ;;  %v6398_v12 = vadd.f32 %v6396_v30, %v6390_v3  ;;  %v11991_v25 = vld [vmem:[%s12692_s2 + $0x500] sm:$0xff]  ;;  %v12030_v43 = vld [vmem:[%s12692_s2 + $0x558] sm:$0xff] }
 0x1cc   :  { %5432 = vmatmul.mubr.f32.vlgmr.msra.gmra.mrb[40].mxu1 %v11825_v39  ;;  %v6408_v36 = vmul.f32 %v11185_v45, %v6407_v35  ;;  %v13063_v37 = vpack.c.bf16 %v11690_v41, %v11681_v22  ;;  %v8392_v39 = vpack.c.bf16 %v11936_v33, %v11925_v26  ;;  %v8398_v55 = vpack.c.bf16 %v11946_v53, %v11941_v9  ;;  %v12004_v26 = vld [vmem:[%s12692_s2 + $0x538] sm:$0x3] }
 0x1cd   :  { %5362 = vmatmul.mubr.f32.vlgmr.msra.gmra.mrb[40].mxu0 %v11828_v23  ;;  %v6029_v30 = vadd.f32 %v6027_v14, %v6023_v13  ;;  %v6413_v23 = vstv %s11889_s21  ;;  %v13064_v22 = vpack.c.bf16 %v11700_v4, %v11695_v24  ;;  %v5267_v41 = vcombine.high %v11830_v8, %v11830_v8  ;;  %v12014_v24 = vld [vmem:[%s12692_s2 + $0x528] sm:$0x3]  ;;  %8176 = vmatprep.mubr.msk.f32.mxu1 %vm8601_vm15, %v12892_v62  ;;  %s12263_s21 = sld [smem:[#allocation3 + $0x708]] }
 0x1ce   :  { %8389 = vmatpush3.bf16.xpose.msk.msra.mxu1 %vm9747_vm7, %v13063_v37  ;;  %5501 = vmatprep.mubr.f32.mxu0 %v5282_v38  ;;  %v6038_v4 = vstv %s11903_s0  ;;  %v6000_v8 = vadd.f32 %v5998_v59, %v5994_v44  ;;  %v6404_v38 = vadd.f32 %v6402_v29, %v6398_v12  ;;  %v13065_v63 = vpack.c.bf16 %v11793_v18, %v11773_v47  ;;  %v12035_v12 = vld [vmem:[%s12692_s2 + $0x590] sm:$0x3]  ;;  %s12404_s0 = sld [smem:[#allocation3 + $0x786]] }
 0x1cf   :  { %8385 = vmatpush1.bf16.xpose.msra.mxu0 %v13064_v22  ;;  %v12023_v14 = vrot.slane %v5655_v11, %v8647_v7  ;;  %v5635_v33 = vadd.f32 %v5633_v60, %v5631_v49  ;;  %v6035_v59 = vadd.f32 %v6033_v48, %v6029_v30  ;;  %v6419_v3 = vstv %s11908_s4  ;;  %v12071_v48 = vld [vmem:[%s12692_s2 + $0x580] sm:$0x3]  ;;  %s12284_s4 = sld [smem:[#allocation3 + $0x780]] }
 0x1d0   :  { %8395 = vmatprep.subr.bf16.mxu1 %v13065_v63  ;;  %v13066_v47 = vpack.c.bf16 %v11803_v57, %v11798_v2  ;;  %v6006_v18 = vadd.f32 %v6004_v0, %v6000_v8  ;;  %v6010_v60 = vmul.f32 %v11538_v58, %v6008_v16  ;;  %v6410_v29 = vadd.f32 %v6408_v36, %v6404_v38  ;;  %v12089_v8 = vld [vmem:[#allocation2 + $0x5c] sm:$0x3f] }
 0x1d1   :  { %v6414_v11 = vmul.f32 %v11019_v21, %v6413_v23  ;;  %v12051_v49 = vrot.slane %v11894_v10, %v8647_v7  ;;  %v8403_v2 = vpack.c.bf16 %v12004_v26, %v11991_v25  ;;  %v8400_v57 = vpack.c.bf16 %v12014_v24, %v12009_v52  ;;  %v12066_v10 = vld [vmem:[%s12692_s2 + $0x548] sm:$0xff]  ;;  %v7967_v26 = vld [vmem:[%s12692_s2 + $0x5a0] sm:$0x3] }
 0x1d2   :  { %8391 = vmatprep.subr.bf16.mxu0 %v13066_v47  ;;  %v6425_v13 = vstv %s11931_s15  ;;  %v5281_v21 = vrot.slane %v5267_v41, %v8647_v7  ;;  %v8410_v16 = vpack.c.bf16 %v12035_v12, %v12030_v43  ;;  %v6016_v44 = vmul.f32 %v11849_v1, %v6014_v61  ;;  %v12112_v47 = vld [vmem:[#allocation2 + $0x6a] sm:$0x3f]  ;;  %v12229_v52 = vld [vmem:[%s12692_s2 + $0x5a8] sm:$0x3]  ;;  %s12329_s15 = sld [smem:[#allocation3 + $0x783]] }
 0x1d3   :  { %v6420_v0 = vmul.f32 %v11268_v20, %v6419_v3  ;;  %v5671_v36 = vcombine.high %v12023_v14, %v12023_v14  ;;  %v12083_v37 = vmax.f32 %v5635_v33, 0.0  ;;  %v6039_v30 = vadd.f32 %v6038_v4, %v6035_v59 }
 0x1d4   :  { %v12771_v22 = vstv %s11967_s22  ;;  %v6012_v41 = vadd.f32 %v6010_v60, %v6006_v18  ;;  %v6022_v61 = vmul.f32 %v12089_v8, %v6020_v28  ;;  %v6416_v38 = vadd.f32 %v6414_v11, %v6410_v29  ;;  %v12110_v28 = vld [vmem:[%s12692_s2 + $0x550] sm:$0xff] }
 0x1d5   :  { %8177 = vmatmul.mubr.msk.f32.vlgmr.msra.gmra.mrb[42].mxu1 %vm1315_vm13, %v5281_v21  ;;  %v6426_v63 = vmul.f32 %v11490_v42, %v6425_v13  ;;  %v5670_v33 = vcombine.high %v12051_v49, %v12051_v49  ;;  %v8406_v59 = vpack.c.bf16 %v12071_v48, %v12066_v10  ;;  %v12772_v31 = vstv %s11994_s9  ;;  %v12143_v21 = vld [vmem:[#allocation2 + $0x78] sm:$0x3f] }
 0x1d6   :  { %5502 = vmatmul.mubr.f32.vlgmr.msra.gmra.mrb[42].mxu0 %v11874_v27  ;;  %8397 = vmatpush1.bf16.xpose.msra.mxu1 %v8396_v40  ;;  %v6028_v27 = vmul.f32 %v12112_v47, %v6026_v32  ;;  %v12128_v40 = vld [vmem:[%s12692_s2 + $0x540] sm:$0xff]  ;;  %v12133_v32 = vld [vmem:[%s12692_s2 + $0x578] sm:$0x3]  ;;  %v6018_v18 = vadd.f32 %v6016_v44, %v6012_v41  ;;  %v6422_v60 = vadd.f32 %v6420_v0, %v6416_v38  ;;  %v6041_v11 = vmax.f32 %v6039_v30, 0.0 }
 0x1d7   :  { %5836 = vmatprep.mubr.f32.mxu1 %v5671_v36  ;;  %8393 = vmatpush1.bf16.xpose.msra.mxu0 %v8392_v39  ;;  %v6432_v39 = vmul.f32 %v11721_v19, %v12771_v22  ;;  %v12141_v29 = vrot.slane %v12083_v37, %v8647_v7  ;;  %v6034_v44 = vmul.f32 %v12143_v21, %v6032_v46  ;;  %v13067_v0 = vstv %s11783_s14  ;;  %s12172_s14 = sld [smem:[#allocation3 + $0x705]] }
 0x1d8   :  { %5766 = vmatprep.mubr.f32.mxu0 %v5670_v33  ;;  %8402 = vmatprep.subr.bf16.mxu1 %v12915_v56  ;;  %v6397_v36 = vmul.f32 %v11713_v34, %v13067_v0  ;;  %v6024_v41 = vadd.f32 %v6022_v61, %v6018_v18  ;;  %v6428_v38 = vadd.f32 %v6426_v63, %v6422_v60  ;;  %v6800_v33 = vstv %s12047_s8  ;;  %s12387_s8 = sld [smem:[#allocation3 + $0x785]] }
 0x1d9   :  { %8399 = vmatprep.subr.bf16.mxu0 %v8398_v55  ;;  %v6438_v30 = vmul.f32 %v11962_v6, %v12772_v31  ;;  %v13068_v22 = vstv %s11817_s20  ;;  %v13069_v53 = vstv %s11819_s18  ;;  %v6794_v18 = vstv %s12058_s26  ;;  %s12186_s20 = sld [smem:[#allocation3 + $0x706]] }
 0x1da   :  { %v6391_v9 = vmul.f32 %v11733_v54, %v13068_v22  ;;  %v6403_v55 = vmul.f32 %v11738_v51, %v13069_v53  ;;  %v6030_v61 = vadd.f32 %v6028_v27, %v6024_v41  ;;  %v6434_v63 = vadd.f32 %v6432_v39, %v6428_v38  ;;  %v12179_v22 = vld [vmem:[#allocation2 + $0xe] sm:$0xff] }
 0x1db   :  { %v6806_v60 = vstv %s12079_s24  ;;  %v5687_v31 = vcombine.high %v12141_v29, %v12141_v29  ;;  %v6409_v0 = vmul.f32 %v11970_v15, %v6407_v35  ;;  %v6801_v27 = vmul.f32 %v12179_v22, %v6800_v33  ;;  %v12197_v35 = vld [vmem:[%s12692_s2 + $0x568] sm:$0xff] }
 0x1dc   :  { %v6399_v46 = vadd.f32 %v6397_v36, %v6391_v9  ;;  %v6060_v39 = vcombine.high %v6041_v11, %v6041_v11  ;;  %v6036_v41 = vadd.f32 %v6034_v44, %v6030_v61  ;;  %v6440_v38 = vadd.f32 %v6438_v30, %v6434_v63  ;;  %v12203_v30 = vld [vmem:[#allocation2 + $0x1c] sm:$0xff] }
 0x1dd   :  { %5837 = vmatmul.mubr.f32.vlgmr.msra.gmra.mrb[44].mxu1 %v12023_v14  ;;  %v6812_v53 = vstv %s12097_s25  ;;  %v6443_v14 = vstv %s12118_s29  ;;  %v6795_v36 = vmul.f32 %v11128_v50, %v6794_v18  ;;  %v5672_v25 = vcombine.high %v12083_v37, %v12083_v37  ;;  %v12247_v37 = vld [vmem:[%s12692_s2 + $0x598] sm:$0x3] }
 0x1de   :  { %5767 = vmatmul.mubr.f32.vlgmr.msra.gmra.mrb[44].mxu0 %v12051_v49  ;;  %8405 = vmatpush3.bf16.xpose.msk.msra.mxu1 %vm9747_vm7, %v8403_v2  ;;  %v6405_v44 = vadd.f32 %v6403_v55, %v6399_v46  ;;  %v6807_v49 = vmul.f32 %v12203_v30, %v6806_v60  ;;  %v12216_v50 = vrot.slane %v6041_v11, %v8647_v7  ;;  %v12224_v2 = vld [vmem:[%s12692_s2 + $0x570] sm:$0xff]  ;;  %v6818_v46 = vstv %s12158_s27  ;;  %v12281_v55 = vld [vmem:[%s12692_s2 + $0x5c8] sm:$0xff]  ;;  %v12296_v63 = vld [vmem:[%s12692_s2 + $0x5b8] sm:$0xff] }
 0x1df   :  { %8401 = vmatpush1.bf16.xpose.msra.mxu0 %v8400_v57  ;;  %5906 = vmatprep.mubr.f32.mxu0 %v5687_v31  ;;  %v6415_v24 = vmul.f32 %v11538_v58, %v6413_v23  ;;  %v12242_v57 = vld [vmem:[%s12692_s2 + $0x560] sm:$0xff]  ;;  %v6803_v23 = vadd.f32 %v6801_v27, %v6795_v36  ;;  %v6813_v11 = vmul.f32 %v11185_v45, %v6812_v53  ;;  %v6824_v61 = vstv %s12172_s14  ;;  %v12301_v27 = vld [vmem:[%s12692_s2 + $0x5f0] sm:$0x3] }
 0x1e0   :  { %8183 = vmatprep.mubr.msk.f32.mxu1 %vm8601_vm15, %v12892_v62  ;;  %8411 = vmatprep.subr.bf16.mxu1 %v8410_v16  ;;  %v6411_v31 = vadd.f32 %v6409_v0, %v6405_v44  ;;  %v12256_v43 = vrot.slane %v6060_v39, %v8647_v7  ;;  %v6040_v12 = vadd.f32 %v6038_v4, %v6036_v41 }
 0x1e1   :  { %8407 = vmatprep.subr.bf16.mxu0 %v8406_v59  ;;  %v6444_v16 = vadd.f32 %v6443_v14, %v6440_v38  ;;  %v8414_v0 = vpack.c.bf16 %v7967_v26, %v12197_v35  ;;  %v8419_v45 = vpack.c.bf16 %v12229_v52, %v12224_v2  ;;  %v6421_v10 = vmul.f32 %v11849_v1, %v6419_v3  ;;  %v12291_v3 = vld [vmem:[%s12692_s2 + $0x600] sm:$0x3]  ;;  %v12306_v35 = vld [vmem:[#allocation2 + $0x38] sm:$0xff] }
 0x1e2   :  { %v6809_v48 = vadd.f32 %v6807_v49, %v6803_v23  ;;  %v5686_v4 = vrot.slane %v5672_v25, %v8647_v7  ;;  %v6075_v59 = vcombine.high %v12216_v50, %v12216_v50  ;;  %v8416_v9 = vpack.c.bf16 %v12247_v37, %v12242_v57  ;;  %v8529_v52 = vld [vmem:[#allocation2] sm:$0xff] }
 0x1e3   :  { %v6417_v39 = vadd.f32 %v6415_v24, %v6411_v31  ;;  %v6427_v41 = vmul.f32 %v12089_v8, %v6425_v13  ;;  %v6819_v44 = vmul.f32 %v12306_v35, %v6818_v46  ;;  %v6076_v36 = vcombine.high %v12256_v43, %v12256_v43 }
 0x1e4   :  { %v6815_v38 = vadd.f32 %v6813_v11, %v6809_v48  ;;  %v12314_v49 = vmax.f32 %v6040_v12, 0.0  ;;  %v12316_v25 = vmax.f32 %v6444_v16, 0.0  ;;  %v6830_v26 = vstv %s12186_s20 }
 0x1e5   :  { %8184 = vmatmul.mubr.msk.f32.vlgmr.msra.gmra.mrb[46].mxu1 %vm1315_vm13, %v5686_v4  ;;  %v13070_v13 = vpack.c.bf16 %v12123_v5, %v12110_v28  ;;  %v6423_v24 = vadd.f32 %v6421_v10, %v6417_v39  ;;  %v13071_v31 = vstv %s11967_s22  ;;  %v6825_v11 = vmul.f32 %v11268_v20, %v6824_v61  ;;  %v12346_v20 = vld [vmem:[%s12692_s2 + $0x5c0] sm:$0xff] }
 0x1e6   :  { %5907 = vmatmul.mubr.f32.vlgmr.msra.gmra.mrb[46].mxu0 %v12141_v29  ;;  %v6433_v23 = vmul.f32 %v12112_v47, %v13071_v31  ;;  %6241 = vmatprep.mubr.f32.mxu1 %v6076_v36  ;;  %v13072_v12 = vpack.c.bf16 %v12133_v32, %v12128_v40  ;;  %v8426_v28 = vpack.c.bf16 %v12291_v3, %v12281_v55  ;;  %v13073_v29 = vstv %s11994_s9  ;;  %v12351_v40 = vld [vmem:[%s12692_s2 + $0x5f8] sm:$0x3]  ;;  %s12356_s9 = sld [smem:[#allocation6 + $0xe]] }
 0x1e7   :  { %8413 = vmatpush1.bf16.xpose.msra.mxu1 %v13070_v13  ;;  %v8422_v5 = vpack.c.bf16 %v12301_v27, %v12296_v63  ;;  %v6439_v16 = vmul.f32 %v12143_v21, %v13073_v29  ;;  %v6836_v10 = vstv %s12208_s5  ;;  %6171 = vmatprep.mubr.f32.mxu0 %v6075_v59  ;;  %v6429_v32 = vadd.f32 %v6427_v41, %v6423_v24 }
 0x1e8   :  { %8409 = vmatpush1.bf16.xpose.msra.mxu0 %v13072_v12  ;;  %8418 = vmatprep.subr.bf16.mxu1 %v12915_v56  ;;  %v6821_v48 = vadd.f32 %v6819_v44, %v6815_v38  ;;  %v6831_v4 = vmul.f32 %v11490_v42, %v6830_v26  ;;  %v12360_v59 = vrot.slane %v12314_v49, %v8647_v7  ;;  %v6842_v3 = vstv %s12263_s21  ;;  %s12529_s21 = sld [smem:[#allocation6 + $0xf]] }
 0x1e9   :  { %8415 = vmatprep.subr.bf16.mxu0 %v8414_v0  ;;  %v6465_v55 = vcombine.high %v12316_v25, %v12316_v25  ;;  %v6802_v63 = vmul.f32 %v11713_v34, %v6800_v33  ;;  %v6435_v27 = vadd.f32 %v6433_v23, %v6429_v32  ;;  %v6837_v41 = vmul.f32 %v11721_v19, %v6836_v10 }
 0x1ea   :  { %v6827_v39 = vadd.f32 %v6825_v11, %v6821_v48  ;;  %v7205_v38 = vstv %s12271_s7  ;;  %v8428_v0 = vpack.c.bf16 %v12351_v40, %v12346_v20  ;;  %v6796_v44 = vmul.f32 %v11733_v54, %v6794_v18  ;;  %v7982_v18 = vld [vmem:[%s12692_s2 + $0x5b0] sm:$0xff]  ;;  %v7993_v20 = vld [vmem:[%s12692_s2 + $0x608] sm:$0x3]  ;;  %v8012_v40 = vld [vmem:[%s12692_s2 + $0x638] sm:$0xff] }
 0x1eb   :  { %v6808_v36 = vmul.f32 %v11738_v51, %v6806_v60  ;;  %v7199_v33 = vstv %s12284_s4  ;;  %v6441_v13 = vadd.f32 %v6439_v16, %v6435_v27  ;;  %v6843_v31 = vmul.f32 %v11962_v6, %v6842_v3  ;;  %v7989_v60 = vld [vmem:[%s12692_s2 + $0x5e8] sm:$0x3] }
 0x1ec   :  { %v6833_v24 = vadd.f32 %v6831_v4, %v6827_v39  ;;  %v7211_v23 = vstv %s12286_s10  ;;  %v6092_v11 = vcombine.high %v12360_v59, %v12360_v59  ;;  %v6804_v12 = vadd.f32 %v6802_v63, %v6796_v44  ;;  %v1460_v44 = vpop.f32.mrb[0].mxu1 }
 0x1ed   :  { %v6814_v29 = vmul.f32 %v11970_v15, %v6812_v53  ;;  %v6077_v16 = vcombine.high %v12314_v49, %v12314_v49  ;;  %v12415_v32 = vrot.slane %v6465_v55, %v8647_v7  ;;  %v7217_v48 = vstv %s12329_s15 }
 0x1ee   :  { %6242 = vmatmul.mubr.f32.vlgmr.msra.gmra.mrb[48].mxu1 %v12256_v43  ;;  %v7206_v43 = vmul.f32 %v12179_v22, %v7205_v38  ;;  %v6839_v53 = vadd.f32 %v6837_v41, %v6833_v24  ;;  %v12424_v22 = vld [vmem:[%s12692_s2 + $0x5d8] sm:$0xff]  ;;  %v6810_v2 = vadd.f32 %v6808_v36, %v6804_v12  ;;  %v7212_v57 = vmul.f32 %v12203_v30, %v7211_v23  ;;  %v8530_v41 = vld [vmem:[#allocation2 + $0x2a] sm:$0xff]  ;;  %v1462_v24 = vpop.f32.mrb[1].mxu1 }
 0x1ef   :  { %6172 = vmatmul.mubr.f32.vlgmr.msra.gmra.mrb[48].mxu0 %v12216_v50  ;;  %8421 = vmatpush3.bf16.xpose.msk.msra.mxu1 %vm9747_vm7, %v8419_v45  ;;  %v7994_v50 = vld [vmem:[%s12692_s2 + $0x610] sm:$0x3]  ;;  %v7200_v45 = vmul.f32 %v8529_v52, %v7199_v33  ;;  %v8424_v37 = vpack.c.bf16 %v7989_v60, %v7982_v18  ;;  %v6445_v49 = vadd.f32 %v6443_v14, %v6441_v13  ;;  %v6848_v55 = vstv %s12356_s9 }
 0x1f0   :  { %8417 = vmatpush1.bf16.xpose.msra.mxu0 %v8416_v9  ;;  %6311 = vmatprep.mubr.f32.mxu0 %v6092_v11  ;;  %v1390_v9 = vpop.f32.mrb[0].mxu0  ;;  %v6845_v4 = vadd.f32 %v6843_v31, %v6839_v53  ;;  %v6816_v27 = vadd.f32 %v6814_v29, %v6810_v2  ;;  %v6820_v30 = vmul.f32 %v11538_v58, %v6818_v46  ;;  %v7223_v46 = vstv %s12372_s3  ;;  %v8531_v2 = vld [vmem:[#allocation2 + $0x46] sm:$0xff] }
 0x1f1   :  { %8190 = vmatprep.mubr.msk.f32.mxu1 %vm8601_vm15, %v12892_v62  ;;  %8427 = vmatprep.subr.bf16.mxu1 %v8426_v28  ;;  %v1392_v63 = vpop.f32.mrb[1].mxu0  ;;  %v7208_v39 = vadd.f32 %v7206_v43, %v7200_v45  ;;  %v7218_v28 = vmul.f32 %v8530_v41, %v7217_v48  ;;  %v6091_v14 = vrot.slane %v6077_v16, %v8647_v7  ;;  %v12462_v18 = vmax.f32 %v6445_v49, 0.0  ;;  %v8010_v49 = vld [vmem:[%s12692_s2 + $0x628] sm:$0xff] }
 0x1f2   :  { %8423 = vmatprep.subr.bf16.mxu0 %v8422_v5  ;;  %v12451_v5 = vrot.slane %v12316_v25, %v8647_v7  ;;  %v8430_v58 = vpack.c.bf16 %v7994_v50, %v12424_v22  ;;  %v6481_v36 = vcombine.high %v12415_v32, %v12415_v32  ;;  %v12457_v13 = vadd.f32 %v1460_v44, %v1390_v9 }
 0x1f3   :  { %v6826_v31 = vmul.f32 %v11849_v1, %v6824_v61  ;;  %v7214_v11 = vadd.f32 %v7212_v57, %v7208_v39  ;;  %v6849_v25 = vadd.f32 %v6848_v55, %v6845_v4  ;;  %v6832_v60 = vmul.f32 %v12089_v8, %v6830_v26  ;;  %v7988_v26 = vld [vmem:[%s12692_s2 + $0x5e0] sm:$0xff] }
 0x1f4   :  { %v7229_v12 = vstv %s12387_s8  ;;  %v6822_v29 = vadd.f32 %v6820_v30, %v6816_v27  ;;  %v7224_v16 = vmul.f32 %v12306_v35, %v7223_v46  ;;  %v7235_v53 = vstv %s12404_s0  ;;  %v7995_v35 = vld [vmem:[%s12692_s2 + $0x618] sm:$0x3]  ;;  %v8017_v4 = vld [vmem:[%s12692_s2 + $0x660] sm:$0x3] }
 0x1f5   :  { %v7220_v43 = vadd.f32 %v7218_v28, %v7214_v11  ;;  %v6480_v61 = vcombine.high %v12451_v5, %v12451_v5  ;;  %v6838_v50 = vmul.f32 %v12112_v47, %v6836_v10  ;;  %v7230_v52 = vmul.f32 %v8531_v2, %v7229_v12 }
 0x1f6   :  { %8191 = vmatmul.mubr.msk.f32.vlgmr.msra.gmra.mrb[50].mxu1 %vm1315_vm13, %v6091_v14  ;;  %v6828_v22 = vadd.f32 %v6826_v31, %v6822_v29  ;;  %v7241_v45 = vstv %s12434_s19  ;;  %v12508_v57 = vrot.slane %v12462_v18, %v8647_v7  ;;  %v6844_v9 = vmul.f32 %v12143_v21, %v6842_v3  ;;  %s8602_s19 = smov [#allocation8]  }
 0x1f7   :  { %6312 = vmatmul.mubr.f32.vlgmr.msra.gmra.mrb[50].mxu0 %v12360_v59  ;;  %8429 = vmatpush1.bf16.xpose.msra.mxu1 %v8428_v0  ;;  %v7986_v59 = vld [vmem:[%s12692_s2 + $0x5d0] sm:$0xff]  ;;  %v7236_v10 = vmul.f32 %v11490_v42, %v7235_v53  ;;  %v7226_v27 = vadd.f32 %v7224_v16, %v7220_v43  ;;  %v7247_v30 = vstv %s12446_s11  ;;  %v7207_v3 = vmul.f32 %v11713_v34, %v7205_v38  ;;  %s7619_s23 = sshll.u32 %s8602_s19, 4  ;;  %s7620_s23 = int_to_ptr.vmem [resolvable:$true] %s7619_s23 }
 0x1f8   :  { %6646 = vmatprep.mubr.f32.mxu1 %v6481_v36  ;;  %8425 = vmatpush1.bf16.xpose.msra.mxu0 %v8424_v37  ;;  %v8019_v0 = vld [vmem:[%s12692_s2 + $0x670] sm:$0x3]  ;;  %v6851_v37 = vmax.f32 %v6849_v25, 0.0  ;;  %v6834_v63 = vadd.f32 %v6832_v60, %v6828_v22  ;;  %v8435_v39 = vpack.c.bf16 %v7995_v35, %v7988_v26  ;;  %v8432_v41 = vpack.c.bf16 %v7993_v20, %v7986_v59  ;;  %s8557_s26 = scalar_lea.vmem %s7620_s23, 32  ;;  %p8562_p11 = scmp.lt.s32.totalorder %s7620_s23, %s7620_s23 }
 0x1f9   :  { %6576 = vmatprep.mubr.f32.mxu0 %v6480_v61  ;;  %8434 = vmatprep.subr.bf16.mxu1 %v12915_v56  ;;  %v8442_v42 = vpack.c.bf16 %v8019_v0, %v8012_v40  ;;  %v7242_v28 = vmul.f32 %v11721_v19, %v7241_v45  ;;  %v7232_v44 = vadd.f32 %v7230_v52, %v7226_v27  ;;  %v8532_v61 = vld [vmem:[#allocation2 + $0x40] sm:$0x3f]  ;;  %v7253_v20 = vstv %s12529_s21  ;;  %p8558_p10 = scmp.ne.s32.totalorder %s7620_s23, %s8557_s26  ;;  %p8563_p12 = scmp.lt.s32.totalorder %s8557_s26, %s8557_s26 }
 0x1fa   :  { %8431 = vmatprep.subr.bf16.mxu0 %v8430_v58  ;;  %v6840_v14 = vadd.f32 %v6838_v50, %v6834_v63  ;;  %v7201_v58 = vmul.f32 %v11733_v54, %v7199_v33  ;;  %v7213_v36 = vmul.f32 %v11738_v51, %v7211_v23  ;;  %v6497_v34 = vcombine.high %v12508_v57, %v12508_v57  ;;  %v8011_v51 = vld [vmem:[%s12692_s2 + $0x630] sm:$0xff] }
 0x1fb   :  { %v8438_v38 = vpack.c.bf16 %v8017_v4, %v8010_v49  ;;  %v6870_v24 = vcombine.high %v6851_v37, %v6851_v37  ;;  %v7248_v31 = vmul.f32 %v11962_v6, %v7247_v30  ;;  %v7238_v11 = vadd.f32 %v7236_v10, %v7232_v44  ;;  %v8018_v6 = vld [vmem:[%s12692_s2 + $0x668] sm:$0x3]  ;;  %v1530_v4 = vpop.f32.mrb[2].mxu0  ;;  %v8037_v44 = vld [vmem:[%s12692_s2 + $0x698] sm:$0xff]  ;;  %p8564_p13 = por %p8563_p12, %p8562_p11 }
 0x1fc   :  { %v6846_v19 = vadd.f32 %v6844_v9, %v6840_v14  ;;  %v7209_v25 = vadd.f32 %v7207_v3, %v7201_v58  ;;  %v7219_v60 = vmul.f32 %v11970_v15, %v7217_v48  ;;  %v6482_v54 = vcombine.high %v12462_v18, %v12462_v18  ;;  %v8016_v48 = vld [vmem:[%s12692_s2 + $0x658] sm:$0x3]  ;;  %v8021_v18 = vld [vmem:[%s12692_s2 + $0x680] sm:$0x3]  ;;  %v8044_v58 = vld [vmem:[%s12692_s2 + $0x6d0] sm:$0x3] }
 0x1fd   :  { %v7244_v15 = vadd.f32 %v7242_v28, %v7238_v11  ;;  %v6884_v23 = vrot.slane %v6870_v24, %v8647_v7  ;;  %v7225_v26 = vmul.f32 %v8532_v61, %v7223_v46  ;;  %v8444_v35 = vpack.c.bf16 %v8018_v6, %v8011_v51  ;;  %v1532_v28 = vpop.f32.mrb[3].mxu0  ;;  %v8038_v11 = vld [vmem:[%s12692_s2 + $0x6a0] sm:$0xff]  ;;  %v8043_v51 = vld [vmem:[%s12692_s2 + $0x6c8] sm:$0x3]  ;;  %p8565_p0 = pnand %p8564_p13, %p8558_p10 }
 0x1fe   :  { %6647 = vmatmul.mubr.f32.vlgmr.msra.gmra.mrb[52].mxu1 %v12415_v32  ;;  %v7215_v33 = vadd.f32 %v7213_v36, %v7209_v25  ;;  %v8009_v32 = vld [vmem:[%s12692_s2 + $0x620] sm:$0xff]  ;;  %v6850_v29 = vadd.f32 %v6848_v55, %v6846_v19  ;;  %v6877_v59 = vrot.slane %v6851_v37, %v8647_v7  ;;  %v6496_v40 = vrot.slane %v6482_v54, %v8647_v7  ;;  %v8045_v25 = vld [vmem:[%s12692_s2 + $0x6d8] sm:$0x3]  ;;  %v8036_v54 = vld [vmem:[%s12692_s2 + $0x690] sm:$0xff] }
 0x1ff   :  { %6577 = vmatmul.mubr.f32.vlgmr.msra.gmra.mrb[52].mxu0 %v12451_v5  ;;  %8437 = vmatpush3.bf16.xpose.msk.msra.mxu1 %vm9747_vm7, %v8435_v39  ;;  %v8014_v5 = vld [vmem:[%s12692_s2 + $0x648] sm:$0xff]  ;;  %v7250_v43 = vadd.f32 %v7248_v31, %v7244_v15  ;;  %v8440_v0 = vpack.c.bf16 %v8016_v48, %v8009_v32  ;;  %v7231_v22 = vmul.f32 %v11849_v1, %v7229_v12  ;;  %v8015_v1 = vld [vmem:[%s12692_s2 + $0x650] sm:$0xff] }
 0x200   :  { %8433 = vmatpush1.bf16.xpose.msra.mxu0 %v8432_v41  ;;  %6716 = vmatprep.mubr.f32.mxu0 %v6497_v34  ;;  %v7221_v16 = vadd.f32 %v7219_v60, %v7215_v33  ;;  %v6886_v50 = vcombine.high %v6884_v23, %v6884_v23  ;;  %v8446_v2 = vpack.c.bf16 %v8021_v18, %v8014_v5  ;;  %v12583_v55 = vmax.f32 %v6850_v29, 0.0  ;;  %v8022_v12 = vld [vmem:[%s12692_s2 + $0x688] sm:$0x3]  ;;  %v8041_v29 = vld [vmem:[%s12692_s2 + $0x6b8] sm:$0xff] }
 0x201   :  { %8197 = vmatprep.mubr.msk.f32.mxu1 %vm8601_vm15, %v12892_v62  ;;  %8443 = vmatprep.subr.bf16.mxu1 %v8442_v42  ;;  %v7254_v52 = vadd.f32 %v7253_v20, %v7250_v43  ;;  %v7237_v37 = vmul.f32 %v12089_v8, %v7235_v53  ;;  %v6885_v9 = vcombine.high %v6877_v59, %v6877_v59  ;;  %v1600_v8 = vpop.f32.mrb[2].mxu1  ;;  %v8013_v53 = vld [vmem:[%s12692_s2 + $0x640] sm:$0xff]  ;;  %v1719_v6 = vpop.f32.mrb[4].mxu0  ;;  %v8048_v43 = vld [vmem:[%s12692_s2 + $0x6f0] sm:$0x3] }
 0x202   :  { %8439 = vmatprep.subr.bf16.mxu0 %v8438_v38  ;;  %v7227_v46 = vadd.f32 %v7225_v26, %v7221_v16  ;;  %v7243_v49 = vmul.f32 %v12112_v47, %v7241_v45  ;;  %v8108_v63 = vpop.f32.mrb[3].mxu1  ;;  %v6894_v27 = vrot.slane %v12583_v55, %v8647_v7  ;;  %v8039_v47 = vld [vmem:[%s12692_s2 + $0x6a8] sm:$0xff]  ;;  %v8046_v45 = vld [vmem:[%s12692_s2 + $0x6e0] sm:$0x3]  ;;  %v7249_v41 = vmul.f32 %v12143_v21, %v7247_v30  ;;  %v1721_v48 = vpop.f32.mrb[5].mxu0 }
 0x203   :  { %v7256_v3 = vmax.f32 %v7254_v52, 0.0  ;;  %v1531_v42 = vadd.f32 %v1530_v4, %v12457_v13  ;;  %v8451_v14 = vpack.c.bf16 %v8022_v12, %v8015_v1  ;;  %v8458_v24 = vpack.c.bf16 %v8046_v45, %v8039_v47  ;;  %v1789_v60 = vpop.f32.mrb[4].mxu1 }
 0x204   :  { %v7233_v10 = vadd.f32 %v7231_v22, %v7227_v46  ;;  %v6902_v31 = vcombine.high %v6894_v27, %v6894_v27  ;;  %v8454_v19 = vpack.c.bf16 %v8044_v58, %v8037_v44  ;;  %v6887_v13 = vcombine.high %v12583_v55, %v12583_v55  ;;  %v1791_v15 = vpop.f32.mrb[5].mxu1  ;;  %v8049_v22 = vld [vmem:[%s12692_s2 + $0x6f8] sm:$0x3]  ;;  %v8047_v55 = vld [vmem:[%s12692_s2 + $0x6e8] sm:$0x3] }
 0x205   :  { %v1601_v38 = vadd.f32 %v1600_v8, %v1531_v42  ;;  %v7275_v21 = vcombine.high %v7256_v3, %v7256_v3  ;;  %v8460_v5 = vpack.c.bf16 %v8045_v25, %v8038_v11  ;;  %v7282_v18 = vrot.slane %v7256_v3, %v8647_v7 }
 0x206   :  { %8198 = vmatmul.mubr.msk.f32.vlgmr.msra.gmra.mrb[54].mxu1 %vm1315_vm13, %v6496_v40  ;;  %v7239_v39 = vadd.f32 %v7237_v37, %v7233_v10  ;;  %v6901_v16 = vrot.slane %v6887_v13, %v8647_v7  ;;  %v8456_v61 = vpack.c.bf16 %v8043_v51, %v8036_v54 }
 0x207   :  { %6717 = vmatmul.mubr.f32.vlgmr.msra.gmra.mrb[54].mxu0 %v12508_v57  ;;  %8445 = vmatpush1.bf16.xpose.msra.mxu1 %v8444_v35  ;;  %v8020_v57 = vld [vmem:[%s12692_s2 + $0x678] sm:$0x3]  ;;  %v7289_v33 = vrot.slane %v7275_v21, %v8647_v7  ;;  %v1720_v32 = vadd.f32 %v1719_v6, %v1601_v38  ;;  %v7290_v40 = vcombine.high %v7282_v18, %v7282_v18 }
 0x208   :  { %7051 = vmatprep.mubr.f32.mxu1 %v6886_v50  ;;  %8441 = vmatpush1.bf16.xpose.msra.mxu0 %v8440_v0  ;;  %v8448_v36 = vpack.c.bf16 %v8020_v57, %v8013_v53  ;;  %v7245_v34 = vadd.f32 %v7243_v49, %v7239_v39  ;;  %v8042_v0 = vld [vmem:[%s12692_s2 + $0x6c0] sm:$0xff] }
 0x209   :  { %6981 = vmatprep.mubr.f32.mxu0 %v6885_v9  ;;  %8450 = vmatprep.subr.bf16.mxu1 %v12915_v56  ;;  %v1790_v26 = vadd.f32 %v1789_v60, %v1720_v32  ;;  %v7291_v35 = vcombine.high %v7289_v33, %v7289_v33  ;;  %v1859_v52 = vpop.f32.mrb[6].mxu0  ;;  %v8467_v12 = vpack.c.bf16 %v8049_v22, %v8042_v0 }
 0x20a   :  { %8447 = vmatprep.subr.bf16.mxu0 %v8446_v2  ;;  %v7251_v30 = vadd.f32 %v7249_v41, %v7245_v34  ;;  %v1929_v50 = vpop.f32.mrb[6].mxu1  ;;  %v8040_v2 = vld [vmem:[%s12692_s2 + $0x6b0] sm:$0xff]  ;;  %v1861_v1 = vpop.f32.mrb[7].mxu0 }
 0x20b   :  { %v8115_v46 = vpop.f32.mrb[7].mxu1  ;;  %v1860_v9 = vadd.f32 %v1859_v52, %v1790_v26  ;;  %v8464_v10 = vpack.c.bf16 %v8047_v55, %v8040_v2 }
 0x20d   :  { %v1930_v49 = vadd.f32 %v1929_v50, %v1860_v9 }
 0x20e   :  { %7052 = vmatmul.mubr.f32.vlgmr.msra.gmra.mrb[56].mxu1 %v6884_v23  ;;  %v7255_v23 = vadd.f32 %v7253_v20, %v7251_v30 }
 0x20f   :  { %6982 = vmatmul.mubr.f32.vlgmr.msra.gmra.mrb[56].mxu0 %v6877_v59  ;;  %8453 = vmatpush3.bf16.xpose.msk.msra.mxu1 %vm9747_vm7, %v8451_v14  ;;  %v8462_v59 = vpack.c.bf16 %v8048_v43, %v8041_v29 }
 0x210   :  { %8449 = vmatpush1.bf16.xpose.msra.mxu0 %v8448_v36  ;;  %7121 = vmatprep.mubr.f32.mxu0 %v6902_v31  ;;  %v7257_v20 = vmax.f32 %v7255_v23, 0.0 }
 0x211   :  { %8204 = vmatprep.mubr.msk.f32.mxu1 %vm8601_vm15, %v12892_v62  ;;  %8459 = vmatprep.subr.bf16.mxu1 %v8458_v24  ;;  %v2123_v57 = vpop.f32.mrb[8].mxu0 }
 0x212   :  { %8455 = vmatprep.subr.bf16.mxu0 %v8454_v19  ;;  %v7299_v37 = vrot.slane %v7257_v20, %v8647_v7  ;;  %v7292_v8 = vcombine.high %v7257_v20, %v7257_v20  ;;  %v2193_v53 = vpop.f32.mrb[8].mxu1 }
 0x213   :  { %v2195_v4 = vpop.f32.mrb[9].mxu1  ;;  %v2194_v63 = vadd.f32 %v2193_v53, %v2123_v57 }
 0x214   :  { %v7306_v47 = vrot.slane %v7292_v8, %v8647_v7 }
 0x216   :  { %8205 = vmatmul.mubr.msk.f32.vlgmr.msra.gmra.mrb[58].mxu1 %vm1315_vm13, %v6901_v16 }
 0x217   :  { %7122 = vmatmul.mubr.f32.vlgmr.msra.gmra.mrb[58].mxu0 %v6894_v27  ;;  %8461 = vmatpush1.bf16.xpose.msra.mxu1 %v8460_v5  ;;  %v2125_v27 = vpop.f32.mrb[9].mxu0 }
 0x218   :  { %7456 = vmatprep.mubr.f32.mxu1 %v7291_v35  ;;  %8457 = vmatpush1.bf16.xpose.msra.mxu0 %v8456_v61 }
 0x219   :  { %7386 = vmatprep.mubr.f32.mxu0 %v7290_v40  ;;  %8466 = vmatprep.subr.bf16.mxu1 %v12915_v56  ;;  %v7307_v56 = vcombine.high %v7299_v37, %v7299_v37 }
 0x21a   :  { %8463 = vmatprep.subr.bf16.mxu0 %v8462_v59  ;;  %v2263_v3 = vpop.f32.mrb[10].mxu0 }
 0x21b   :  { %v2333_v45 = vpop.f32.mrb[10].mxu1  ;;  %v2264_v39 = vadd.f32 %v2263_v3, %v2194_v63  ;;  %v2265_v41 = vpop.f32.mrb[11].mxu0 }
 0x21c   :  { %v8122_v17 = vpop.f32.mrb[11].mxu1 }
 0x21d   :  { %v2334_v42 = vadd.f32 %v2333_v45, %v2264_v39 }
 0x21e   :  { %7457 = vmatmul.mubr.f32.vlgmr.msra.gmra.mrb[60].mxu1 %v7289_v33 }
 0x21f   :  { %7387 = vmatmul.mubr.f32.vlgmr.msra.gmra.mrb[60].mxu0 %v7282_v18  ;;  %8469 = vmatpush3.bf16.xpose.msk.msra.mxu1 %vm9747_vm7, %v8467_v12  ;;  %v2337_v28 = vadd.f32 %v2334_v42, %v1930_v49 }
 0x220   :  { %8465 = vmatpush1.bf16.xpose.msra.mxu0 %v8464_v10  ;;  %7526 = vmatprep.mubr.f32.mxu0 %v7307_v56 }
 0x221   :  { %8211 = vmatprep.mubr.msk.f32.mxu1 %vm8601_vm15, %v12892_v62 }
 0x222   :  { %v2528_v44 = vpop.f32.mrb[12].mxu0 }
 0x223   :  { %v2598_v14 = vpop.f32.mrb[12].mxu1  ;;  %v2530_v36 = vpop.f32.mrb[13].mxu0 }
 0x224   :  { %v2600_v58 = vpop.f32.mrb[13].mxu1  ;;  %v2599_v62 = vadd.f32 %v2598_v14, %v2528_v44 }
 0x226   :  { %8212 = vmatmul.mubr.msk.f32.vlgmr.msra.gmra.mrb[62].mxu1 %vm1315_vm13, %v7306_v47 }
 0x227   :  { %7527 = vmatmul.mubr.f32.vlgmr.msra.gmra.mrb[62].mxu0 %v7299_v37 }
 0x22c   :  { %v2668_v38 = vpop.f32.mrb[14].mxu0 }
 0x22d   :  { %v2738_v34 = vpop.f32.mrb[14].mxu1  ;;  %v2669_v31 = vadd.f32 %v2668_v38, %v2599_v62  ;;  %v2670_v7 = vpop.f32.mrb[15].mxu0 }
 0x22e   :  { %v8129_v24 = vpop.f32.mrb[15].mxu1 }
 0x22f   :  { %v2739_v19 = vadd.f32 %v2738_v34, %v2669_v31 }
 0x231   :  { %v2742_v21 = vadd.f32 %v2739_v19, %v2337_v28 }
 0x235   :  { %v3003_v30 = vpop.f32.mrb[16].mxu1 }
 0x236   :  { %v2933_v13 = vpop.f32.mrb[16].mxu0  ;;  %v3005_v11 = vpop.f32.mrb[17].mxu1 }
 0x237   :  { %v3004_v25 = vadd.f32 %v3003_v30, %v2933_v13  ;;  %v2935_v60 = vpop.f32.mrb[17].mxu0 }
 0x23d   :  { %v3143_v54 = vpop.f32.mrb[18].mxu1 }
 0x23e   :  { %v3073_v51 = vpop.f32.mrb[18].mxu0  ;;  %v8136_v6 = vpop.f32.mrb[19].mxu1 }
 0x23f   :  { %v3074_v15 = vadd.f32 %v3073_v51, %v3004_v25  ;;  %v3075_v33 = vpop.f32.mrb[19].mxu0 }
 0x241   :  { %v3144_v23 = vadd.f32 %v3143_v54, %v3074_v15 }
 0x243   :  { %v3147_v32 = vadd.f32 %v3144_v23, %v2742_v21 }
 0x245   :  { %v3408_v48 = vpop.f32.mrb[20].mxu1 }
 0x246   :  { %v3338_v5 = vpop.f32.mrb[20].mxu0  ;;  %v3410_v18 = vpop.f32.mrb[21].mxu1 }
 0x247   :  { %v3409_v29 = vadd.f32 %v3408_v48, %v3338_v5  ;;  %v3340_v43 = vpop.f32.mrb[21].mxu0 }
 0x24e   :  { %v3478_v61 = vpop.f32.mrb[22].mxu0 }
 0x24f   :  { %v3548_v16 = vpop.f32.mrb[22].mxu1  ;;  %v3479_v35 = vadd.f32 %v3478_v61, %v3409_v29  ;;  %v3480_v59 = vpop.f32.mrb[23].mxu0 }
 0x250   :  { %v8143_v26 = vpop.f32.mrb[23].mxu1 }
 0x251   :  { %v3549_v20 = vadd.f32 %v3548_v16, %v3479_v35 }
 0x253   :  { %v3552_v40 = vadd.f32 %v3549_v20, %v3147_v32 }
 0x257   :  { %v3813_v0 = vpop.f32.mrb[24].mxu1 }
 0x258   :  { %v3743_v22 = vpop.f32.mrb[24].mxu0  ;;  %v3815_v50 = vpop.f32.mrb[25].mxu1 }
 0x259   :  { %v3814_v2 = vadd.f32 %v3813_v0, %v3743_v22  ;;  %v3745_v55 = vpop.f32.mrb[25].mxu0 }
 0x261   :  { %v3953_v52 = vpop.f32.mrb[26].mxu1 }
 0x262   :  { %v8150_v37 = vpop.f32.mrb[27].mxu1 }
 0x263   :  { %v3883_v46 = vpop.f32.mrb[26].mxu0 }
 0x264   :  { %v3884_v9 = vadd.f32 %v3883_v46, %v3814_v2  ;;  %v3885_v1 = vpop.f32.mrb[27].mxu0 }
 0x266   :  { %v3954_v12 = vadd.f32 %v3953_v52, %v3884_v9 }
 0x268   :  { %v3957_v10 = vadd.f32 %v3954_v12, %v3552_v40 }
 0x26a   :  { %v4218_v49 = vpop.f32.mrb[28].mxu1 }
 0x26b   :  { %v4148_v56 = vpop.f32.mrb[28].mxu0  ;;  %v4220_v8 = vpop.f32.mrb[29].mxu1 }
 0x26c   :  { %v4219_v53 = vadd.f32 %v4218_v49, %v4148_v56  ;;  %v4150_v57 = vpop.f32.mrb[29].mxu0 }
 0x274   :  { %v4358_v4 = vpop.f32.mrb[30].mxu1 }
 0x275   :  { %v4288_v63 = vpop.f32.mrb[30].mxu0  ;;  %v8157_v27 = vpop.f32.mrb[31].mxu1 }
 0x276   :  { %v4289_v47 = vadd.f32 %v4288_v63, %v4219_v53  ;;  %v4290_v45 = vpop.f32.mrb[31].mxu0 }
 0x278   :  { %v4359_v3 = vadd.f32 %v4358_v4, %v4289_v47 }
 0x27a   :  { %v4362_v17 = vadd.f32 %v4359_v3, %v3957_v10 }
 0x27c   :  { %v4623_v39 = vpop.f32.mrb[32].mxu1 }
 0x27d   :  { %v4625_v42 = vpop.f32.mrb[33].mxu1 }
 0x27e   :  { %v4553_v41 = vpop.f32.mrb[32].mxu0 }
 0x27f   :  { %v4624_v28 = vadd.f32 %v4623_v39, %v4553_v41  ;;  %v4555_v14 = vpop.f32.mrb[33].mxu0 }
 0x286   :  { %v4763_v44 = vpop.f32.mrb[34].mxu1 }
 0x287   :  { %v4693_v58 = vpop.f32.mrb[34].mxu0  ;;  %v8164_v62 = vpop.f32.mrb[35].mxu1 }
 0x288   :  { %v4694_v36 = vadd.f32 %v4693_v58, %v4624_v28  ;;  %v4695_v34 = vpop.f32.mrb[35].mxu0 }
 0x28a   :  { %v4764_v38 = vadd.f32 %v4763_v44, %v4694_v36 }
 0x28c   :  { %v4767_v24 = vadd.f32 %v4764_v38, %v4362_v17 }
 0x28e   :  { %v5028_v31 = vpop.f32.mrb[36].mxu1 }
 0x28f   :  { %v4958_v7 = vpop.f32.mrb[36].mxu0  ;;  %v5030_v19 = vpop.f32.mrb[37].mxu1 }
 0x290   :  { %v5029_v21 = vadd.f32 %v5028_v31, %v4958_v7  ;;  %v4960_v30 = vpop.f32.mrb[37].mxu0 }
 0x296   :  { %v5168_v13 = vpop.f32.mrb[38].mxu1 }
 0x297   :  { %v5098_v11 = vpop.f32.mrb[38].mxu0  ;;  %v8171_v25 = vpop.f32.mrb[39].mxu1 }
 0x298   :  { %v5099_v60 = vadd.f32 %v5098_v11, %v5029_v21  ;;  %v5100_v54 = vpop.f32.mrb[39].mxu0 }
 0x29a   :  { %v5169_v51 = vadd.f32 %v5168_v13, %v5099_v60 }
 0x29c   :  { %v5172_v6 = vadd.f32 %v5169_v51, %v4767_v24 }
 0x29f   :  { %v5433_v15 = vpop.f32.mrb[40].mxu1 }
 0x2a0   :  { %v5363_v33 = vpop.f32.mrb[40].mxu0  ;;  %v5435_v23 = vpop.f32.mrb[41].mxu1 }
 0x2a1   :  { %v5434_v32 = vadd.f32 %v5433_v15, %v5363_v33  ;;  %v5365_v48 = vpop.f32.mrb[41].mxu0 }
 0x2a8   :  { %v5573_v5 = vpop.f32.mrb[42].mxu1 }
 0x2a9   :  { %v5503_v18 = vpop.f32.mrb[42].mxu0  ;;  %v8178_v29 = vpop.f32.mrb[43].mxu1 }
 0x2aa   :  { %v5504_v43 = vadd.f32 %v5503_v18, %v5434_v32  ;;  %v5505_v16 = vpop.f32.mrb[43].mxu0  ;;  %v8053_v29 = vld [vmem:[%s13074_s6] ss:$0 sm:$0xff] }
 0x2ac   :  { %v5574_v61 = vadd.f32 %v5573_v5, %v5504_v43 }
 0x2ae   :  { %v5577_v26 = vadd.f32 %v5574_v61, %v5172_v6 }
 0x2b0   :  { %v5838_v35 = vpop.f32.mrb[44].mxu1 }
 0x2b1   :  { %v5768_v59 = vpop.f32.mrb[44].mxu0  ;;  %v5840_v20 = vpop.f32.mrb[45].mxu1 }
 0x2b2   :  { %v5839_v40 = vadd.f32 %v5838_v35, %v5768_v59  ;;  %v5770_v0 = vpop.f32.mrb[45].mxu0 }
 0x2b8   :  { %v5978_v22 = vpop.f32.mrb[46].mxu1 }
 0x2b9   :  { %v5908_v50 = vpop.f32.mrb[46].mxu0  ;;  %v8185_v2 = vpop.f32.mrb[47].mxu1 }
 0x2ba   :  { %v5909_v55 = vadd.f32 %v5908_v50, %v5839_v40  ;;  %v5910_v52 = vpop.f32.mrb[47].mxu0 }
 0x2bc   :  { %v5979_v46 = vadd.f32 %v5978_v22, %v5909_v55 }
 0x2be   :  { %v5982_v37 = vadd.f32 %v5979_v46, %v5577_v26 }
 0x2c1   :  { %v6243_v9 = vpop.f32.mrb[48].mxu1 }
 0x2c2   :  { %v6173_v1 = vpop.f32.mrb[48].mxu0  ;;  %v6245_v12 = vpop.f32.mrb[49].mxu1 }
 0x2c3   :  { %v6244_v10 = vadd.f32 %v6243_v9, %v6173_v1  ;;  %v6175_v49 = vpop.f32.mrb[49].mxu0 }
 0x2c9   :  { %v6383_v56 = vpop.f32.mrb[50].mxu1 }
 0x2ca   :  { %v6313_v8 = vpop.f32.mrb[50].mxu0  ;;  %v8192_v53 = vpop.f32.mrb[51].mxu1 }
 0x2cb   :  { %v6314_v57 = vadd.f32 %v6313_v8, %v6244_v10  ;;  %v6315_v4 = vpop.f32.mrb[51].mxu0 }
 0x2cd   :  { %v6384_v63 = vadd.f32 %v6383_v56, %v6314_v57 }
 0x2cf   :  { %v6387_v27 = vadd.f32 %v6384_v63, %v5982_v37 }
 0x2d1   :  { %v6648_v47 = vpop.f32.mrb[52].mxu1 }
 0x2d2   :  { %v6578_v45 = vpop.f32.mrb[52].mxu0  ;;  %v6650_v3 = vpop.f32.mrb[53].mxu1 }
 0x2d3   :  { %v6649_v17 = vadd.f32 %v6648_v47, %v6578_v45  ;;  %v6580_v39 = vpop.f32.mrb[53].mxu0 }
 0x2d9   :  { %v6788_v41 = vpop.f32.mrb[54].mxu1 }
 0x2da   :  { %v6718_v42 = vpop.f32.mrb[54].mxu0  ;;  %v8199_v28 = vpop.f32.mrb[55].mxu1 }
 0x2db   :  { %v6719_v14 = vadd.f32 %v6718_v42, %v6649_v17  ;;  %v6720_v44 = vpop.f32.mrb[55].mxu0 }
 0x2dd   :  { %v6789_v58 = vadd.f32 %v6788_v41, %v6719_v14 }
 0x2df   :  { %v6792_v62 = vadd.f32 %v6789_v58, %v6387_v27 }
 0x2e1   :  { %v7053_v36 = vpop.f32.mrb[56].mxu1 }
 0x2e2   :  { %v6983_v34 = vpop.f32.mrb[56].mxu0  ;;  %v7055_v38 = vpop.f32.mrb[57].mxu1 }
 0x2e3   :  { %v7054_v24 = vadd.f32 %v7053_v36, %v6983_v34  ;;  %v6985_v31 = vpop.f32.mrb[57].mxu0 }
 0x2e9   :  { %v7193_v7 = vpop.f32.mrb[58].mxu1 }
 0x2ea   :  { %v7123_v19 = vpop.f32.mrb[58].mxu0  ;;  %v8206_v21 = vpop.f32.mrb[59].mxu1 }
 0x2eb   :  { %v7124_v30 = vadd.f32 %v7123_v19, %v7054_v24  ;;  %v7125_v13 = vpop.f32.mrb[59].mxu0 }
 0x2ed   :  { %v7194_v11 = vadd.f32 %v7193_v7, %v7124_v30 }
 0x2ef   :  { %v7197_v25 = vadd.f32 %v7194_v11, %v6792_v62 }
 0x2f1   :  { %v7458_v60 = vpop.f32.mrb[60].mxu1 }
 0x2f2   :  { %v7388_v54 = vpop.f32.mrb[60].mxu0  ;;  %v7460_v51 = vpop.f32.mrb[61].mxu1 }
 0x2f3   :  { %v7459_v6 = vadd.f32 %v7458_v60, %v7388_v54  ;;  %v7390_v15 = vpop.f32.mrb[61].mxu0 }
 0x2f9   :  { %v7598_v33 = vpop.f32.mrb[62].mxu1 }
 0x2fa   :  { %v7528_v23 = vpop.f32.mrb[62].mxu0  ;;  %v8213_v32 = vpop.f32.mrb[63].mxu1 }
 0x2fb   :  { %v7529_v48 = vadd.f32 %v7528_v23, %v7459_v6  ;;  %v7530_v5 = vpop.f32.mrb[63].mxu0 }
 0x2fd   :  { %v7599_v18 = vadd.f32 %v7598_v33, %v7529_v48 }
 0x2ff   :  { %v7602_v43 = vadd.f32 %v7599_v18, %v7197_v25 }
 0x301   :  { %v7610_v16 = vadd.f32 %v8053_v29, %v7602_v43 }
 0x303   :  { %7612 = vst.msk [vmem:[#allocation8] sm:$0x3] %vm7611_vm12, %v7610_v16 }
 0x304   :  { %8568 = shalt.err (!%p8565_p0)
}
 0x305   :  { %s13075_s24 = sld [smem:[#allocation38_spill]] }
 0x30b   :  { %s8569_s13 = scalar_lea.hbm %s13075_s24, 32 }
 0x30c   :  { %p8570_p1 = scmp.ne.s32.totalorder %s13075_s24, %s8569_s13  ;;  %p8573_p2 = scmp.lt.u32.totalorder %s8569_s13, %s13075_s24 }
 0x30e   :  { %p8575_p3 = pnand %p8573_p2, %p8570_p1 }
 0x310   :  { %8578 = shalt.err (!%p8575_p3)
}
 0x311   :  { %7622 = dma.vmem_to_hbm [thread:$0]  %s7620_s23, 32, %s13075_s24, [#allocation4]  }
 0x312   :  { %8583 = dma.done.wait [#allocation4], 32  }
 0x313   :  { %8584 = vsyncadd [#allocation4], 4294967264 }
 0x314   :  { %7626 = vsyncpa [#allocation4], 1 }
 0x315   :  { %7627 = vsyncpa [#allocation5], 1 }
 0x316   :  { %7628 = vsyncpa [#allocation7], 1 }

</bundles_post_ra>
